<compile_context>
chip_gen: v5e
topology: v5e:2x2
jax: 0.10.0
libtpu: 0.0.40
codegen_flags: <defaults>
</compile_context>

<pallas_src>
import functools
from typing import NamedTuple, Tuple

import numpy as np
import jax
import jax.numpy as jnp
from jax import lax
from jax.experimental import pallas as pl
from jax.experimental.pallas import tpu as pltpu

F32 = jnp.float32
BF16 = jnp.bfloat16
WT_BITS = 2          # weight bits for HardQuantizeConv / PACT
AC_BITS = 2          # activation bits for LTQ
BN_EPS = 1e-5
TM_CAP = 4096        # max rows per matmul tile

stage_out_channel = [32] + [16] + [24] * 2 + [32] * 3 + [64] * 4 + [96] * 3 + [160] * 3 + [320]
overall_channel = stage_out_channel
mid_channel = [overall_channel[i - 1] * (1 if i == 1 else 6) for i in range(1, 18)]


def _vmem_limit():
    cap = 64 * 1024 * 1024          # safe default (v7x per-TensorCore VMEM)
    try:
        info = pltpu.get_tpu_info()
        val = int(getattr(info, "vmem_capacity_bytes", 0))
        if val > 0:
            cap = val
    except Exception:
        pass
    return min(cap * 3 // 4, 96 * 1024 * 1024)


VMEM_LIMIT = _vmem_limit()


class LTQCfg(NamedTuple):
    thre: Tuple[float, ...]
    step: Tuple[float, ...]
    s1: float
    s2: float


class PACTCfg(NamedTuple):
    clip_val: float
    n: float


def _cparams(sem):
    return pltpu.CompilerParams(dimension_semantics=sem, vmem_limit_bytes=VMEM_LIMIT)


def _round_up(x, m):
    return (x + m - 1) // m * m


def _choose_tm(M, cap=TM_CAP):
    """Largest row-tile that divides M (so no pad/slice copies are needed)."""
    if M <= cap:
        return M
    best = None
    for t in range(8, cap + 1, 8):
        if M % t == 0:
            best = t
    if best is not None and best >= 128:
        return best
    return None


# ---------------------------------------------------------------------------
# In-kernel element-wise helpers (forward values only)
# ---------------------------------------------------------------------------
def _preact_math(x, b1, pa, b2, cfg: LTQCfg):
    """LearnableBias -> PReLU -> LearnableBias -> LTQ."""
    x = x + b1
    x = jnp.where(x > 0, x, x * pa)
    x = (x + b2) * cfg.s1
    xf = jnp.zeros_like(x)
    for t, v in zip(cfg.thre, cfg.step):
        xf = jnp.where(x > t, jnp.float32(v), xf)
    return xf * cfg.s2


# ---------------------------------------------------------------------------
# Fused pointwise-matmul kernel (prologue + MXU matmul + BN + epilogue + res)
# ---------------------------------------------------------------------------
def _make_pw_kernel(prologue, pre_cfg, epilogue, post_cfg, has_residual):
    def kernel(*refs):
        it = iter(refs)
        a_ref = next(it)
        if prologue == "preact":
            pb1, ppa, pb2 = next(it), next(it), next(it)
        w_ref = next(it)
        s_ref = next(it)
        c_ref = next(it)
        if epilogue == "preact":
            qb1, qpa, qb2 = next(it), next(it), next(it)
        r_ref = next(it) if has_residual else None
        o_ref = next(it)

        if prologue == "preact":
            a = _preact_math(a_ref[...].astype(F32), pb1[...], ppa[...], pb2[...], pre_cfg)
        elif prologue == "pact":
            a = jnp.clip(a_ref[...].astype(F32), 0.0, pre_cfg.clip_val)
            a = jnp.round(a * pre_cfg.n) / pre_cfg.n
        else:
            a = a_ref[...]
        y = jnp.dot(a.astype(BF16), w_ref[...], preferred_element_type=F32)
        y = y * s_ref[...] + c_ref[...]
        if epilogue == "relu6":
            y = jnp.clip(y, 0.0, 6.0)
        elif epilogue == "preact":
            y = _preact_math(y, qb1[...], qpa[...], qb2[...], post_cfg)
        if has_residual:
            y = y + r_ref[...].astype(F32)
        o_ref[...] = y.astype(o_ref.dtype)
    return kernel


@functools.partial(jax.jit,
                   static_argnames=("prologue", "pre_cfg", "epilogue", "post_cfg", "out_dtype"))
def matmul_fused(a, w, scale, bias,
                 pre_b1=None, pre_pa=None, pre_b2=None,
                 post_b1=None, post_pa=None, post_b2=None,
                 residual=None, *,
                 prologue=None, pre_cfg=None, epilogue=None, post_cfg=None,
                 out_dtype=BF16):
    """out = epilogue(prologue(a) @ w * scale + bias) [+ residual].

    `a` may have any leading dims; the channel dim must be last.  The output
    keeps the leading dims and replaces the last dim with N.
    """
    lead = a.shape[:-1]
    K = a.shape[-1]
    Kw, N = w.shape
    assert Kw == K
    M = int(np.prod(lead))
    a2 = a.reshape(M, K)
    res2 = residual.reshape(M, residual.shape[-1]) if residual is not None else None

    tm = _choose_tm(M)
    if tm is None:
        # Ragged fallback (not hit for the shapes in this script).
        tm = 1024
        Mp = _round_up(M, tm)
        a2 = jnp.pad(a2, ((0, Mp - M), (0, 0)))
        if res2 is not None:
            res2 = jnp.pad(res2, ((0, Mp - M), (0, 0)))
    else:
        Mp = M

    args = [a2]
    in_specs = [pl.BlockSpec((tm, K), lambda i: (i, 0))]
    if prologue == "preact":
        for v in (pre_b1, pre_pa, pre_b2):
            args.append(v)
            in_specs.append(pl.BlockSpec((1, K), lambda i: (0, 0)))
    args += [w, scale, bias]
    in_specs += [pl.BlockSpec((K, N), lambda i: (0, 0)),
                 pl.BlockSpec((1, N), lambda i: (0, 0)),
                 pl.BlockSpec((1, N), lambda i: (0, 0))]
    if epilogue == "preact":
        for v in (post_b1, post_pa, post_b2):
            args.append(v)
            in_specs.append(pl.BlockSpec((1, N), lambda i: (0, 0)))
    if res2 is not None:
        args.append(res2)
        in_specs.append(pl.BlockSpec((tm, N), lambda i: (i, 0)))

    kernel = _make_pw_kernel(prologue, pre_cfg, epilogue, post_cfg, res2 is not None)
    out = pl.pallas_call(
        kernel,
        out_shape=jax.ShapeDtypeStruct((Mp, N), out_dtype),
        grid=(Mp // tm,),
        in_specs=in_specs,
        out_specs=pl.BlockSpec((tm, N), lambda i: (i, 0)),
        compiler_params=_cparams(("parallel",)),
    )(*args)
    if Mp != M:
        out = out[:M]
    return out.reshape(lead + (N,))


# ---------------------------------------------------------------------------
# Fused 3x3 depthwise conv kernel (taps built in-kernel, BN + preact epilogue)
# ---------------------------------------------------------------------------
def _dw_taps_sum(tap_fn):
    # Tree-reduce the 9 tap products to shorten the VPU dependency chain.
    return (((tap_fn(0) + tap_fn(1)) + (tap_fn(2) + tap_fn(3)))
            + ((tap_fn(4) + tap_fn(5)) + (tap_fn(6) + tap_fn(7)))) + tap_fn(8)


def _dw_s1_kernel(x_ref, w_ref, s_ref, c_ref, b1_ref, pa_ref, b2_ref, o_ref, *, ltq):
    _, Ho, Wo, _ = o_ref.shape

    def tap(k):
        dy, dx = divmod(k, 3)
        t = x_ref[0, pl.ds(dy, Ho), pl.ds(dx, Wo), :].astype(F32)
        return t * w_ref[k, :].astype(F32)

    acc = _dw_taps_sum(tap)
    y = acc * s_ref[0, :] + c_ref[0, :]
    y = _preact_math(y, b1_ref[0, :], pa_ref[0, :], b2_ref[0, :], ltq)
    o_ref[0] = y.astype(o_ref.dtype)


def _dw_s2_kernel(x00_ref, x01_ref, x10_ref, x11_ref,
                  w_ref, s_ref, c_ref, b1_ref, pa_ref, b2_ref, o_ref, *, ltq):
    _, Ho, Wo, _ = o_ref.shape
    phases = ((x00_ref, x01_ref), (x10_ref, x11_ref))

    def tap(k):
        dy, dx = divmod(k, 3)
        ref = phases[dy % 2][dx % 2]
        t = ref[0, pl.ds(dy // 2, Ho), pl.ds(dx // 2, Wo), :].astype(F32)
        return t * w_ref[k, :].astype(F32)

    acc = _dw_taps_sum(tap)
    y = acc * s_ref[0, :] + c_ref[0, :]
    y = _preact_math(y, b1_ref[0, :], pa_ref[0, :], b2_ref[0, :], ltq)
    o_ref[0] = y.astype(o_ref.dtype)


@functools.partial(jax.jit, static_argnames=("stride", "ltq", "out_dtype"))
def depthwise_fused(x, w9c, bn_s, bn_b, b1, pa, b2, *, stride, ltq, out_dtype=BF16):
    """3x3 depthwise conv (pad=1) + folded BN + fused preact epilogue (NHWC)."""
    N, H, W, C = x.shape
    Ho = (H - 1) // stride + 1
    Wo = (W - 1) // stride + 1
    xp = jnp.pad(x, ((0, 0), (1, 1), (1, 1), (0, 0)))
    chan_specs = ([pl.BlockSpec((9, C), lambda n: (0, 0))]
                  + [pl.BlockSpec((1, C), lambda n: (0, 0))] * 5)
    chan_args = [w9c, bn_s, bn_b, b1, pa, b2]
    if stride == 1:
        kernel = functools.partial(_dw_s1_kernel, ltq=ltq)
        in_specs = ([pl.BlockSpec((1, H + 2, W + 2, C), lambda n: (n, 0, 0, 0))]
                    + chan_specs)
        args = [xp] + chan_args
    else:
        # 4-phase decomposition of the padded input so the kernel only needs
        # unit-stride slices for the taps.
        phases = [xp[:, p::2, q::2, :] for p in (0, 1) for q in (0, 1)]
        kernel = functools.partial(_dw_s2_kernel, ltq=ltq)
        in_specs = ([pl.BlockSpec((1,) + ph.shape[1:], lambda n: (n, 0, 0, 0))
                     for ph in phases] + chan_specs)
        args = phases + chan_args
    return pl.pallas_call(
        kernel,
        out_shape=jax.ShapeDtypeStruct((N, Ho, Wo, C), out_dtype),
        grid=(N,),
        in_specs=in_specs,
        out_specs=pl.BlockSpec((1, Ho, Wo, C), lambda n: (n, 0, 0, 0)),
        compiler_params=_cparams(("parallel",)),
    )(*args)


# ---------------------------------------------------------------------------
# Fused AvgPool2d(7) + Linear kernel
# ---------------------------------------------------------------------------
def _pool_fc_kernel(x_ref, w_ref, b_ref, o_ref):
    m = jnp.mean(x_ref[...].astype(F32), axis=1)                   # (N, 1280)
    y = jnp.dot(m.astype(BF16), w_ref[...], preferred_element_type=F32)
    o_ref[...] = y + b_ref[...]


@jax.jit
def pool_fc(x3d, w, b):
    N = x3d.shape[0]
    O = w.shape[1]
    return pl.pallas_call(
        _pool_fc_kernel,
        out_shape=jax.ShapeDtypeStruct((N, O), F32),
        compiler_params=pltpu.CompilerParams(vmem_limit_bytes=VMEM_LIMIT),
    )(x3d, w, b)


# ---------------------------------------------------------------------------
# Plain-JAX glue (weight quantization, stem im2col, BN folding)
# ---------------------------------------------------------------------------
def quantize_conv_weight(w, num_bits, clip_val=2.0):
    """HardQuantizeConv weight quantization (forward value of the STE)."""
    gamma = (2.0 ** num_bits - 1) / 2.0 ** (num_bits - 1)
    sf = gamma * jnp.mean(jnp.abs(w), axis=(1, 2, 3), keepdims=True)
    sw = w / sf
    half = clip_val / 2.0
    cw = jnp.clip(sw, -half, half)
    n = (2.0 ** num_bits - 1) / clip_val
    return sf * (jnp.round((cw + half) * n) / n - half)


def bn_fold(C):
    # Freshly-initialized BatchNorm2d in eval mode: gamma=1, beta=0, mean=0, var=1.
    gamma = jnp.ones((C,), F32)
    beta = jnp.zeros((C,), F32)
    mean = jnp.zeros((C,), F32)
    var = jnp.ones((C,), F32)
    s = gamma / jnp.sqrt(var + BN_EPS)
    return s.reshape(1, C), (beta - mean * s).reshape(1, C)


def ltq_consts(num_bits):
    """Forward thresholds / step values of LTQ at its deterministic init."""
    n_val = 2 ** num_bits - 1
    interval = np.float32(2.0 / n_val)
    a = np.full((n_val,), interval, np.float32)
    a_pos = np.maximum(a, np.float32(0.001))
    thre, step = [], []
    sr = np.float32(0.0)
    tf = np.float32(0.0 + a_pos[0] / 2)
    for i in range(n_val):
        sr = np.float32(sr + interval)
        if i > 0:
            tf = np.float32(tf + a_pos[i - 1] / 2 + a_pos[i] / 2)
        thre.append(float(tf))
        step.append(float(sr))
    return LTQCfg(thre=tuple(thre), step=tuple(step), s1=1.0, s2=1.0)


def _im2col_slices(xp, Ho, Wo, stride):
    """9 shifted (and strided) views of a zero-padded NHWC tensor."""
    slabs = []
    for dy in range(3):
        for dx in range(3):
            slabs.append(
                lax.slice(
                    xp,
                    (0, dy, dx, 0),
                    (xp.shape[0], dy + (Ho - 1) * stride + 1,
                     dx + (Wo - 1) * stride + 1, xp.shape[3]),
                    (1, stride, stride, 1)))
    return slabs


# ---------------------------------------------------------------------------
# Model forward
# ---------------------------------------------------------------------------
def stem_forward(x, p):
    N, H, W, C = x.shape
    Ho, Wo = (H - 1) // 2 + 1, (W - 1) // 2 + 1
    xp = jnp.pad(x, ((0, 0), (1, 1), (1, 1), (0, 0)))
    patches = jnp.stack(_im2col_slices(xp, Ho, Wo, 2), axis=3)     # (N,Ho,Wo,9,C)
    patches = patches.reshape(N, Ho, Wo, 9 * C)
    return matmul_fused(patches, p["w"], p["bn_s"], p["bn_b"],
                        epilogue="relu6", out_dtype=BF16)


def bottleneck_forward(x, p):
    N, H, W, inp = x.shape
    oup, stride, ltq = p["oup"], p["stride"], p["ltq"]
    # preact1 -> conv1(1x1) -> bn1 -> preact2, all fused in one matmul kernel.
    # Output kept f32 because the depthwise kernel slices it at sub-tile offsets.
    h = matmul_fused(x, p["w1"], p["bn1_s"], p["bn1_b"],
                     pre_b1=p["b11"], pre_pa=p["pr1"], pre_b2=p["b12"],
                     post_b1=p["b21"], post_pa=p["pr2"], post_b2=p["b22"],
                     prologue="preact", pre_cfg=ltq,
                     epilogue="preact", post_cfg=ltq,
                     out_dtype=F32)
    # conv2 (3x3 depthwise) -> bn2 -> preact3, fused in one kernel.
    h = depthwise_fused(h, p["w2"], p["bn2_s"], p["bn2_b"],
                        p["b31"], p["pr3"], p["b32"],
                        stride=stride, ltq=ltq, out_dtype=BF16)
    # conv3 (1x1) -> bn3 (+ residual), fused in one matmul kernel.
    residual = x if (inp == oup and stride == 1) else None
    return matmul_fused(h, p["w3"], p["bn3_s"], p["bn3_b"],
                        residual=residual, out_dtype=BF16)


def head_forward(x, p):
    # PACT -> HardQuantizeConv(320, 1280, 1x1) -> BN -> relu6, fused.
    return matmul_fused(x, p["w"], p["bn_s"], p["bn_b"],
                        prologue="pact", pre_cfg=p["pact"],
                        epilogue="relu6", out_dtype=BF16)


def mobilenet_v2_forward(x_nchw, params):
    x = jnp.transpose(x_nchw, (0, 2, 3, 1)).astype(F32)            # NCHW -> NHWC
    x = stem_forward(x, params["stem"])
    for p in params["blocks"]:
        x = bottleneck_forward(x, p)
    x = head_forward(x, params["head"])
    N, H, W, C = x.shape
    assert H == 7 and W == 7, "AvgPool2d(7) expects a 7x7 feature map"
    return pool_fc(x.reshape(N, H * W, C), params["fc_w"], params["fc_b"])


# ---------------------------------------------------------------------------
# Deterministic parameter construction (matches the module's __init__ shapes)
# ---------------------------------------------------------------------------
def build_params(key):
    keys = iter(jax.random.split(key, 64))
    ltq = ltq_consts(AC_BITS)
    params = {}

    # stem: Conv2d(3, 32, 3, stride=2, padding=1, bias=False) + BN + relu6
    w0 = jax.random.normal(next(keys), (32, 3, 3, 3), F32) * 0.1
    s0, b0 = bn_fold(32)
    params["stem"] = dict(
        w=jnp.transpose(w0, (2, 3, 1, 0)).reshape(27, 32).astype(BF16),
        bn_s=s0, bn_b=b0)

    blocks = []
    for i in range(1, 18):
        inp, oup, mid = overall_channel[i - 1], overall_channel[i], mid_channel[i - 1]
        if i == 1:
            stride = 1
        elif (stage_out_channel[i - 1] != stage_out_channel[i]
              and stage_out_channel[i] != 96 and stage_out_channel[i] != 320):
            stride = 2
        else:
            stride = 1

        def hq_weight(shape):
            return (jax.random.uniform(next(keys), shape, F32) - 0.5) * 0.001

        w1 = quantize_conv_weight(hq_weight((mid, inp, 1, 1)), WT_BITS)
        w2 = quantize_conv_weight(hq_weight((mid, 1, 3, 3)), WT_BITS)
        w3 = quantize_conv_weight(hq_weight((oup, mid, 1, 1)), WT_BITS)
        bn1_s, bn1_b = bn_fold(mid)
        bn2_s, bn2_b = bn_fold(mid)
        bn3_s, bn3_b = bn_fold(oup)
        blocks.append(dict(
            mid=mid, oup=oup, stride=stride, ltq=ltq,
            b11=jnp.zeros((1, inp), F32), pr1=jnp.full((1, inp), 0.25, F32),
            b12=jnp.zeros((1, inp), F32),
            w1=jnp.transpose(w1[:, :, 0, 0]).astype(BF16), bn1_s=bn1_s, bn1_b=bn1_b,
            b21=jnp.zeros((1, mid), F32), pr2=jnp.full((1, mid), 0.25, F32),
            b22=jnp.zeros((1, mid), F32),
            w2=jnp.transpose(w2[:, 0], (1, 2, 0)).reshape(9, mid),
            bn2_s=bn2_s, bn2_b=bn2_b,
            b31=jnp.zeros((1, mid), F32), pr3=jnp.full((1, mid), 0.25, F32),
            b32=jnp.zeros((1, mid), F32),
            w3=jnp.transpose(w3[:, :, 0, 0]).astype(BF16), bn3_s=bn3_s, bn3_b=bn3_b,
        ))
    params["blocks"] = blocks

    # head: PACT -> HardQuantizeConv(320, 1280, 1x1) -> BN -> relu6
    w18 = quantize_conv_weight(
        (jax.random.uniform(next(keys), (1280, 320, 1, 1), F32) - 0.5) * 0.001, WT_BITS)
    s18, b18 = bn_fold(1280)
    params["head"] = dict(
        w=jnp.transpose(w18[:, :, 0, 0]).astype(BF16), bn_s=s18, bn_b=b18,
        pact=PACTCfg(clip_val=2.0, n=float(2 ** WT_BITS - 1) / 2.0))

    # classifier: Linear(1280, 1000)
    fc_w = jax.random.normal(next(keys), (1000, 1280), F32) * 0.01
    fc_b = jax.random.normal(next(keys), (1000,), F32) * 0.01
    params["fc_w"] = jnp.transpose(fc_w).astype(BF16)
    params["fc_b"] = fc_b.reshape(1, 1000)
    return params


if __name__ == "__main__":
    key = jax.random.PRNGKey(0)
    pkey, xkey = jax.random.split(key)
    params = build_params(pkey)
    # batch=2, NCHW input like the PyTorch module; spatial 224 so the final
    # 7x7 map matches AvgPool2d(7) -> view(-1, 1280) exactly.
    x = jax.random.normal(xkey, (2, 3, 224, 224), F32)
    logits = mobilenet_v2_forward(x, params)
    logits = jax.block_until_ready(logits)
    assert logits.shape == (2, 1000)
    assert bool(jnp.all(jnp.isfinite(logits)))
    print("KERNEL_OK")
</pallas_src>

<mosaic_0001>
module attributes {stable_mosaic.version = 11 : i64} {
  func.func @kernel(%arg0: i32, %arg1: memref<3584x27xf32, #tpu.memory_space<vmem>>, %arg2: memref<27x32xbf16, #tpu.memory_space<vmem>>, %arg3: memref<1x32xf32, #tpu.memory_space<vmem>>, %arg4: memref<1x32xf32, #tpu.memory_space<vmem>>, %arg5: memref<3584x32xbf16, #tpu.memory_space<vmem>>) attributes {dimension_semantics = [#tpu.dimension_semantics<parallel>], iteration_bounds = array<i64: 7>, scalar_prefetch = 0 : i64, scratch_operands = 0 : i64, tpu.core_type = #tpu.core_type<tc>, window_params = [{transform_indices = @transform_0, window_bounds = array<i64: 3584, 27>}, {pipeline_mode = #tpu.pipeline_mode<synchronous>, transform_indices = @transform_1, window_bounds = array<i64: 27, 32>}, {pipeline_mode = #tpu.pipeline_mode<synchronous>, transform_indices = @transform_2, window_bounds = array<i64: 1, 32>}, {pipeline_mode = #tpu.pipeline_mode<synchronous>, transform_indices = @transform_3, window_bounds = array<i64: 1, 32>}, {transform_indices = @transform_4, window_bounds = array<i64: 3584, 32>}]} {
    %c0 = arith.constant 0 : index
    %c0_0 = arith.constant 0 : index
    %0 = vector.load %arg1[%c0, %c0_0] : memref<3584x27xf32, #tpu.memory_space<vmem>>, vector<3584x27xf32>
    %1 = arith.truncf %0 : vector<3584x27xf32> to vector<3584x27xbf16>
    %c0_1 = arith.constant 0 : index
    %c0_2 = arith.constant 0 : index
    %2 = vector.load %arg2[%c0_1, %c0_2] : memref<27x32xbf16, #tpu.memory_space<vmem>>, vector<27x32xbf16>
    %cst = arith.constant dense<0.000000e+00> : vector<3584x32xf32>
    %3 = tpu.matmul %1, %2, %cst {dimension_numbers = #tpu.dot_dimension_numbers<[1], [0], [0], [1], [0, 0, 1, 1], [], []>} : vector<3584x27xbf16>, vector<27x32xbf16>, vector<3584x32xf32> -> vector<3584x32xf32>
    %c0_3 = arith.constant 0 : index
    %c0_4 = arith.constant 0 : index
    %4 = vector.load %arg3[%c0_3, %c0_4] : memref<1x32xf32, #tpu.memory_space<vmem>>, vector<1x32xf32>
    %5 = vector.broadcast %4 : vector<1x32xf32> to vector<3584x32xf32>
    %6 = arith.mulf %3, %5 : vector<3584x32xf32>
    %c0_5 = arith.constant 0 : index
    %c0_6 = arith.constant 0 : index
    %7 = vector.load %arg4[%c0_5, %c0_6] : memref<1x32xf32, #tpu.memory_space<vmem>>, vector<1x32xf32>
    %8 = vector.broadcast %7 : vector<1x32xf32> to vector<3584x32xf32>
    %9 = arith.addf %6, %8 : vector<3584x32xf32>
    %cst_7 = arith.constant 0.000000e+00 : f32
    %cst_8 = arith.constant 6.000000e+00 : f32
    %10 = vector.broadcast %cst_7 : f32 to vector<3584x32xf32>
    %11 = arith.maximumf %10, %9 : vector<3584x32xf32>
    %12 = vector.broadcast %cst_8 : f32 to vector<3584x32xf32>
    %13 = arith.minimumf %12, %11 : vector<3584x32xf32>
    %14 = arith.truncf %13 : vector<3584x32xf32> to vector<3584x32xbf16>
    %c0_9 = arith.constant 0 : index
    %c0_10 = arith.constant 0 : index
    %15 = vector.load %arg5[%c0_9, %c0_10] : memref<3584x32xbf16, #tpu.memory_space<vmem>>, vector<3584x32xbf16>
    tpu.vector_store %arg5[%c0_9, %c0_10], %14 {strides = array<i32>} : memref<3584x32xbf16, #tpu.memory_space<vmem>>, vector<3584x32xbf16>,
    return
  }
  func.func @transform_0(%arg0: i32) -> (i32, i32) {
    %c0_i32 = arith.constant 0 : i32
    %c0_i32_0 = arith.constant 0 : i32
    return %arg0, %c0_i32 : i32, i32
  }
  func.func @transform_1(%arg0: i32) -> (i32, i32) {
    %c0_i32 = arith.constant 0 : i32
    %c0_i32_0 = arith.constant 0 : i32
    %c0_i32_1 = arith.constant 0 : i32
    return %c0_i32, %c0_i32_0 : i32, i32
  }
  func.func @transform_2(%arg0: i32) -> (i32, i32) {
    %c0_i32 = arith.constant 0 : i32
    %c0_i32_0 = arith.constant 0 : i32
    %c0_i32_1 = arith.constant 0 : i32
    return %c0_i32, %c0_i32_0 : i32, i32
  }
  func.func @transform_3(%arg0: i32) -> (i32, i32) {
    %c0_i32 = arith.constant 0 : i32
    %c0_i32_0 = arith.constant 0 : i32
    %c0_i32_1 = arith.constant 0 : i32
    return %c0_i32, %c0_i32_0 : i32, i32
  }
  func.func @transform_4(%arg0: i32) -> (i32, i32) {
    %c0_i32 = arith.constant 0 : i32
    %c0_i32_0 = arith.constant 0 : i32
    return %arg0, %c0_i32 : i32, i32
  }
}

</mosaic_0001>

<bundles_post_ra>
// kernel: matmul_fused.1
= control target key start
LH: loop header
LB: loop body
LE: loop exit
PB: predicated region body
PF: predicated region fallthrough
CT: control target
= control target key end

     0   :  { %s5759_s15 = smov 0   ;;  %s8337_s0 = inlined_call_operand.vmem [shape: f32[25088,27], index: 0, kind: input, shape index: {}]   ;;  %s8338_s1 = inlined_call_operand.vmem [shape: bf16[27,32], index: 1, kind: input, shape index: {}]   ;;  %s8339_s2 = inlined_call_operand.vmem [shape: f32[1,32], index: 2, kind: input, shape index: {}]   ;;  %s8340_s3 = inlined_call_operand.vmem [shape: f32[1,32], index: 3, kind: input, shape index: {}]   ;;  %s8341_s4 = inlined_call_operand.vmem [shape: bf16[25088,32], index: 4, kind: output, shape index: {}]  }
   0x1 LB: > { %s5451_s16 = sadd.s32 4294967295, %s5731_s15   ;;  %p5455_p0 = scmp.ge.s32.totalorder %s5731_s15, 1  ;;  %s5731_s15 = sphi %s5759_s15, %s14_s15  }
   0x2   : > { %p163_p1 = scmp.lt.s32.totalorder %s5731_s15, 8 }
   0x4   : > { %p164_p2 = pnand %p5455_p0, %p163_p1 }
   0x5   : > { %s189_s21 = smul.u32 (!%p164_p2), 448, %s5451_s16 }
   0x6   : > { %167 = sbr.rel (%p164_p2) target bundleno = 1057 (0x421), region = 36 }
   0x7   : > { %p190_p3 = scmp.lt.s32.totalorder (!%p164_p2), %s189_s21, 3135 }
   0xb   : > { %v5464_v0 = vld [vmem:[%s8338_s1 + $0x8] sm:$0xf]  ;;  %v5693_v1 = vld [vmem:[%s8338_s1 + $0x8] sm:$0x30]  ;;  %vm1562_vm0 = vcmask 1044480   ;;  %vm1563_vm1 = vcmask 1045504  }
   0xc   : > { %v5465_v2 = vor.u32 %v5693_v1, %v5464_v0  ;;  %v5733_v3 = vmov 65535   ;;  %s8343_s21 = smov (!%p190_p3, %s189_s21), 3135  ;;  %v5692_v7 = vld [vmem:[%s8338_s1] sm:$0xff]  ;;  %vm889_vm2 = vcmask 220160   ;;  %vm4946_vm3 = vcmask 257024  }
   0xd   : > { %v1564_v4 = vsel %vm1562_vm0, 4294967295, %v5733_v3  ;;  %s5456_s24 = sshll.u32 %s8343_s21, 3  ;;  %s5457_s6 = sshll.u32 %s8343_s21, 2 }
   0xe   : > { %v1565_v5 = vsel %vm1563_vm1, %v1564_v4, 0  ;;  %s5782_s27 = scalar_lea.vmem %s8337_s0, %s5456_s24  ;;  %s5910_s9 = scalar_lea.vmem %s8341_s4, %s5457_s6 }
   0xf   : > { %v1567_v6 = vand.u32 %v5465_v2, %v1565_v5  ;;  %v202_v8 = vld [vmem:[%s5782_s27] sm:$0xff]  ;;  %v203_v9 = vld [vmem:[%s5782_s27 + $0x8] sm:$0xff]  ;;  %v204_v20 = vld [vmem:[%s5782_s27 + $0x10] sm:$0xff] }
  0x10   : > { %v314_v10 = vld [vmem:[%s5782_s27 + $0x380] sm:$0xff]  ;;  %v650_v11 = vpack.c.bf16 %v203_v9, %v202_v8  ;;  %v315_v12 = vld [vmem:[%s5782_s27 + $0x388] sm:$0xff]  ;;  %v205_v21 = vld [vmem:[%s5782_s27 + $0x18] sm:$0xff] }
  0x11   : > { %1575 = vmatpush.bf16.msra.mxu0 %v1567_v6  ;;  %5694 = vmatpush.bf16.msra.mxu1 %v1567_v6  ;;  %v426_v13 = vld [vmem:[%s5782_s27 + $0x700] sm:$0xff]  ;;  %v427_v14 = vld [vmem:[%s5782_s27 + $0x708] sm:$0xff]  ;;  %v706_v15 = vpack.c.bf16 %v315_v12, %v314_v10  ;;  %v316_v22 = vld [vmem:[%s5782_s27 + $0x390] sm:$0xff]  ;;  %v651_v28 = vpack.c.bf16 %v205_v21, %v204_v20 }
  0x12   : > { %5695 = vmatpush.bf16.msra.mxu2 %v1567_v6  ;;  %5696 = vmatpush.bf16.msra.mxu3 %v1567_v6  ;;  %v762_v16 = vpack.c.bf16 %v427_v14, %v426_v13  ;;  %v538_v17 = vld [vmem:[%s5782_s27 + $0xa80] sm:$0xff]  ;;  %v539_v18 = vld [vmem:[%s5782_s27 + $0xa88] sm:$0xff]  ;;  %v317_v23 = vld [vmem:[%s5782_s27 + $0x398] sm:$0xff] }
  0x13   : > { %v818_v19 = vpack.c.bf16 %v539_v18, %v538_v17  ;;  %v428_v24 = vld [vmem:[%s5782_s27 + $0x710] sm:$0xff]  ;;  %v429_v25 = vld [vmem:[%s5782_s27 + $0x718] sm:$0xff]  ;;  %v707_v29 = vpack.c.bf16 %v317_v23, %v316_v22  ;;  %v206_v32 = vld [vmem:[%s5782_s27 + $0x20] sm:$0xff] }
  0x14   : > { %v540_v26 = vld [vmem:[%s5782_s27 + $0xa90] sm:$0xff]  ;;  %v541_v27 = vld [vmem:[%s5782_s27 + $0xa98] sm:$0xff]  ;;  %v763_v30 = vpack.c.bf16 %v429_v25, %v428_v24  ;;  %v207_v33 = vld [vmem:[%s5782_s27 + $0x28] sm:$0xff] }
  0x15   : > { %1576 = vmatpush.bf16.msra.mxu0 %v5692_v7  ;;  %5697 = vmatpush.bf16.msra.mxu1 %v5692_v7  ;;  %v819_v31 = vpack.c.bf16 %v541_v27, %v540_v26  ;;  %v318_v34 = vld [vmem:[%s5782_s27 + $0x3a0] sm:$0xff]  ;;  %v319_v35 = vld [vmem:[%s5782_s27 + $0x3a8] sm:$0xff]  ;;  %v652_v40 = vpack.c.bf16 %v207_v33, %v206_v32  ;;  %v208_v44 = vld [vmem:[%s5782_s27 + $0x30] sm:$0xff] }
  0x16   : > { %5698 = vmatpush.bf16.msra.mxu2 %v5692_v7  ;;  %5699 = vmatpush.bf16.msra.mxu3 %v5692_v7  ;;  %v430_v36 = vld [vmem:[%s5782_s27 + $0x720] sm:$0xff]  ;;  %v431_v37 = vld [vmem:[%s5782_s27 + $0x728] sm:$0xff]  ;;  %v708_v41 = vpack.c.bf16 %v319_v35, %v318_v34  ;;  %v209_v45 = vld [vmem:[%s5782_s27 + $0x38] sm:$0xff] }
  0x17   : > { %v542_v38 = vld [vmem:[%s5782_s27 + $0xaa0] sm:$0xff]  ;;  %v543_v39 = vld [vmem:[%s5782_s27 + $0xaa8] sm:$0xff]  ;;  %v764_v42 = vpack.c.bf16 %v431_v37, %v430_v36  ;;  %v320_v46 = vld [vmem:[%s5782_s27 + $0x3b0] sm:$0xff]  ;;  %v653_v52 = vpack.c.bf16 %v209_v45, %v208_v44 }
  0x18   : > { %5466 = vmatmul.msk.bf16.vlgmr.msra.gmra.mxu0 %vm889_vm2, %v650_v11  ;;  %5522 = vmatmul.msk.bf16.vlgmr.msra.gmra.mxu1 %vm889_vm2, %v706_v15  ;;  %v820_v43 = vpack.c.bf16 %v543_v39, %v542_v38  ;;  %v321_v47 = vld [vmem:[%s5782_s27 + $0x3b8] sm:$0xff]  ;;  %v432_v48 = vld [vmem:[%s5782_s27 + $0x730] sm:$0xff]  ;;  %v210_v56 = vld [vmem:[%s5782_s27 + $0x40] sm:$0xff] }
  0x19   : > { %5578 = vmatmul.msk.bf16.vlgmr.msra.gmra.mxu2 %vm889_vm2, %v762_v16  ;;  %5634 = vmatmul.msk.bf16.vlgmr.msra.gmra.mxu3 %vm889_vm2, %v818_v19  ;;  %v433_v49 = vld [vmem:[%s5782_s27 + $0x738] sm:$0xff]  ;;  %v544_v50 = vld [vmem:[%s5782_s27 + $0xab0] sm:$0xff]  ;;  %v709_v53 = vpack.c.bf16 %v321_v47, %v320_v46  ;;  %v211_v57 = vld [vmem:[%s5782_s27 + $0x48] sm:$0xff] }
  0x1a   : > { %v545_v51 = vld [vmem:[%s5782_s27 + $0xab8] sm:$0xff]  ;;  %v765_v54 = vpack.c.bf16 %v433_v49, %v432_v48  ;;  %v322_v58 = vld [vmem:[%s5782_s27 + $0x3c0] sm:$0xff]  ;;  %v323_v59 = vld [vmem:[%s5782_s27 + $0x3c8] sm:$0xff]  ;;  %v654_v0 = vpack.c.bf16 %v211_v57, %v210_v56 }
  0x1b   : > { %v821_v55 = vpack.c.bf16 %v545_v51, %v544_v50  ;;  %v434_v60 = vld [vmem:[%s5782_s27 + $0x740] sm:$0xff]  ;;  %v435_v61 = vld [vmem:[%s5782_s27 + $0x748] sm:$0xff]  ;;  %v710_v1 = vpack.c.bf16 %v323_v59, %v322_v58  ;;  %v212_v4 = vld [vmem:[%s5782_s27 + $0x50] sm:$0xff] }
  0x1c   : > { %v546_v62 = vld [vmem:[%s5782_s27 + $0xac0] sm:$0xff]  ;;  %v547_v63 = vld [vmem:[%s5782_s27 + $0xac8] sm:$0xff]  ;;  %v766_v2 = vpack.c.bf16 %v435_v61, %v434_v60  ;;  %v213_v5 = vld [vmem:[%s5782_s27 + $0x58] sm:$0xff] }
  0x1d   : > { %v822_v3 = vpack.c.bf16 %v547_v63, %v546_v62  ;;  %v324_v6 = vld [vmem:[%s5782_s27 + $0x3d0] sm:$0xff]  ;;  %v325_v7 = vld [vmem:[%s5782_s27 + $0x3d8] sm:$0xff]  ;;  %v655_v12 = vpack.c.bf16 %v213_v5, %v212_v4  ;;  %v214_v16 = vld [vmem:[%s5782_s27 + $0x60] sm:$0xff] }
  0x1e   : > { %v436_v8 = vld [vmem:[%s5782_s27 + $0x750] sm:$0xff]  ;;  %v437_v9 = vld [vmem:[%s5782_s27 + $0x758] sm:$0xff]  ;;  %v711_v13 = vpack.c.bf16 %v325_v7, %v324_v6  ;;  %v215_v17 = vld [vmem:[%s5782_s27 + $0x68] sm:$0xff] }
  0x1f   : > { %v548_v10 = vld [vmem:[%s5782_s27 + $0xad0] sm:$0xff]  ;;  %v549_v11 = vld [vmem:[%s5782_s27 + $0xad8] sm:$0xff]  ;;  %v767_v14 = vpack.c.bf16 %v437_v9, %v436_v8  ;;  %v326_v18 = vld [vmem:[%s5782_s27 + $0x3e0] sm:$0xff]  ;;  %v656_v24 = vpack.c.bf16 %v215_v17, %v214_v16 }
  0x20   : > { %v823_v15 = vpack.c.bf16 %v549_v11, %v548_v10  ;;  %v327_v19 = vld [vmem:[%s5782_s27 + $0x3e8] sm:$0xff]  ;;  %v438_v20 = vld [vmem:[%s5782_s27 + $0x760] sm:$0xff]  ;;  %v440_v32 = vld [vmem:[%s5782_s27 + $0x770] sm:$0xff] }
  0x21   : > { %v439_v21 = vld [vmem:[%s5782_s27 + $0x768] sm:$0xff]  ;;  %v550_v22 = vld [vmem:[%s5782_s27 + $0xae0] sm:$0xff]  ;;  %v712_v25 = vpack.c.bf16 %v327_v19, %v326_v18  ;;  %v441_v33 = vld [vmem:[%s5782_s27 + $0x778] sm:$0xff] }
  0x22   : > { %v551_v23 = vld [vmem:[%s5782_s27 + $0xae8] sm:$0xff]  ;;  %v768_v26 = vpack.c.bf16 %v439_v21, %v438_v20  ;;  %v552_v34 = vld [vmem:[%s5782_s27 + $0xaf0] sm:$0xff]  ;;  %v553_v35 = vld [vmem:[%s5782_s27 + $0xaf8] sm:$0xff]  ;;  %v769_v38 = vpack.c.bf16 %v441_v33, %v440_v32 }
  0x23   : > { %v824_v27 = vpack.c.bf16 %v551_v23, %v550_v22  ;;  %v825_v39 = vpack.c.bf16 %v553_v35, %v552_v34  ;;  %v331_v44 = vld [vmem:[%s5782_s27 + $0x408] sm:$0xff]  ;;  %v442_v45 = vld [vmem:[%s5782_s27 + $0x780] sm:$0xff]  ;;  %v333_v17 = vld [vmem:[%s5782_s27 + $0x418] sm:$0xff] }
  0x24   : > { %v443_v46 = vld [vmem:[%s5782_s27 + $0x788] sm:$0xff]  ;;  %v554_v47 = vld [vmem:[%s5782_s27 + $0xb00] sm:$0xff]  ;;  %v444_v18 = vld [vmem:[%s5782_s27 + $0x790] sm:$0xff] }
  0x25   : > { %v555_v48 = vld [vmem:[%s5782_s27 + $0xb08] sm:$0xff]  ;;  %v5896_v49 = vld [vmem:[%s8340_s3] ss:$0 sm:$0xff]  ;;  %v445_v19 = vld [vmem:[%s5782_s27 + $0x798] sm:$0xff] }
  0x26   : > { %v556_v22 = vld [vmem:[%s5782_s27 + $0xb10] sm:$0xff]  ;;  %v557_v23 = vld [vmem:[%s5782_s27 + $0xb18] sm:$0xff]  ;;  %v771_v34 = vpack.c.bf16 %v445_v19, %v444_v18 }
  0x27   : > { %v827_v35 = vpack.c.bf16 %v557_v23, %v556_v22 }
  0x28   : > { %5467 = vmatmul.msk.bf16.gmra.mxu0 %vm889_vm2, %v651_v28  ;;  %5523 = vmatmul.msk.bf16.gmra.mxu1 %vm889_vm2, %v707_v29  ;;  %v216_v28 = vld [vmem:[%s5782_s27 + $0x70] sm:$0xff]  ;;  %v217_v29 = vld [vmem:[%s5782_s27 + $0x78] sm:$0xff] }
  0x29   : > { %5579 = vmatmul.msk.bf16.gmra.mxu2 %vm889_vm2, %v763_v30  ;;  %5635 = vmatmul.msk.bf16.gmra.mxu3 %vm889_vm2, %v819_v31  ;;  %v328_v30 = vld [vmem:[%s5782_s27 + $0x3f0] sm:$0xff]  ;;  %v329_v31 = vld [vmem:[%s5782_s27 + $0x3f8] sm:$0xff]  ;;  %v657_v36 = vpack.c.bf16 %v217_v29, %v216_v28 }
  0x2a   : > { %v713_v37 = vpack.c.bf16 %v329_v31, %v328_v30 }
  0x38   : > { %5468 = vmatmul.msk.bf16.gmra.mxu0 %vm889_vm2, %v652_v40  ;;  %5524 = vmatmul.msk.bf16.gmra.mxu1 %vm889_vm2, %v708_v41  ;;  %v5883_v40 = vld [vmem:[%s8339_s2] ss:$0 sm:$0xff] }
  0x39   : > { %5580 = vmatmul.msk.bf16.gmra.mxu2 %vm889_vm2, %v764_v42  ;;  %5636 = vmatmul.msk.bf16.gmra.mxu3 %vm889_vm2, %v820_v43  ;;  %v218_v41 = vld [vmem:[%s5782_s27 + $0x80] sm:$0xff]  ;;  %v219_v42 = vld [vmem:[%s5782_s27 + $0x88] sm:$0xff] }
  0x3a   : > { %v330_v43 = vld [vmem:[%s5782_s27 + $0x400] sm:$0xff]  ;;  %v658_v50 = vpack.c.bf16 %v219_v42, %v218_v41 }
  0x3b   : > { %v714_v51 = vpack.c.bf16 %v331_v44, %v330_v43 }
  0x48   : > { %5469 = vmatmul.msk.bf16.gmra.mxu0 %vm889_vm2, %v653_v52  ;;  %5525 = vmatmul.msk.bf16.gmra.mxu1 %vm889_vm2, %v709_v53 }
  0x49   : > { %5581 = vmatmul.msk.bf16.gmra.mxu2 %vm889_vm2, %v765_v54  ;;  %5637 = vmatmul.msk.bf16.gmra.mxu3 %vm889_vm2, %v821_v55  ;;  %v770_v54 = vpack.c.bf16 %v443_v46, %v442_v45  ;;  %v826_v55 = vpack.c.bf16 %v555_v48, %v554_v47 }
  0x58   : > { %5470 = vmatmul.msk.bf16.gmra.mxu0 %vm889_vm2, %v654_v0  ;;  %5526 = vmatmul.msk.bf16.gmra.mxu1 %vm889_vm2, %v710_v1 }
  0x59   : > { %5582 = vmatmul.msk.bf16.gmra.mxu2 %vm889_vm2, %v766_v2  ;;  %5638 = vmatmul.msk.bf16.gmra.mxu3 %vm889_vm2, %v822_v3 }
  0x68   : > { %5471 = vmatmul.msk.bf16.gmra.mxu0 %vm889_vm2, %v655_v12  ;;  %5527 = vmatmul.msk.bf16.gmra.mxu1 %vm889_vm2, %v711_v13  ;;  %v220_v12 = vld [vmem:[%s5782_s27 + $0x90] sm:$0xff]  ;;  %v221_v13 = vld [vmem:[%s5782_s27 + $0x98] sm:$0xff] }
  0x69   : > { %5583 = vmatmul.msk.bf16.gmra.mxu2 %vm889_vm2, %v767_v14  ;;  %5639 = vmatmul.msk.bf16.gmra.mxu3 %vm889_vm2, %v823_v15  ;;  %v332_v14 = vld [vmem:[%s5782_s27 + $0x410] sm:$0xff]  ;;  %v659_v28 = vpack.c.bf16 %v221_v13, %v220_v12  ;;  %v334_v12 = vld [vmem:[%s5782_s27 + $0x420] sm:$0xff] }
  0x6a   : > { %v715_v29 = vpack.c.bf16 %v333_v17, %v332_v14  ;;  %v447_v17 = vld [vmem:[%s5782_s27 + $0x7a8] sm:$0xff] }
  0x78   : > { %5472 = vmatmul.msk.bf16.gmra.mxu0 %vm889_vm2, %v656_v24  ;;  %5528 = vmatmul.msk.bf16.gmra.mxu1 %vm889_vm2, %v712_v25 }
  0x79   : > { %5584 = vmatmul.msk.bf16.gmra.mxu2 %vm889_vm2, %v768_v26  ;;  %5640 = vmatmul.msk.bf16.gmra.mxu3 %vm889_vm2, %v824_v27 }
  0x88   : > { %5473 = vmatmul.msk.bf16.gmra.mxu0 %vm889_vm2, %v657_v36  ;;  %5529 = vmatmul.msk.bf16.gmra.mxu1 %vm889_vm2, %v713_v37 }
  0x89   : > { %5585 = vmatmul.msk.bf16.gmra.mxu2 %vm889_vm2, %v769_v38  ;;  %5641 = vmatmul.msk.bf16.gmra.mxu3 %vm889_vm2, %v825_v39 }
  0x95   : > { %v1578_v52 = vpop.f32.mrf.mxu0  ;;  %v1858_v53 = vpop.f32.mrf.mxu1 }
  0x96   : > { %v2702_v56 = vmul.f32 %v5883_v40, %v1578_v52  ;;  %v2814_v57 = vmul.f32 %v5883_v40, %v1858_v53 }
  0x98   : > { %v3154_v58 = vadd.f32 %v5896_v49, %v2702_v56  ;;  %v3266_v59 = vadd.f32 %v5896_v49, %v2814_v57  ;;  %5474 = vmatmul.msk.bf16.gmra.mxu0 %vm889_vm2, %v658_v50  ;;  %5530 = vmatmul.msk.bf16.gmra.mxu1 %vm889_vm2, %v714_v51 }
  0x99   : > { %5586 = vmatmul.msk.bf16.gmra.mxu2 %vm889_vm2, %v770_v54  ;;  %5642 = vmatmul.msk.bf16.gmra.mxu3 %vm889_vm2, %v826_v55 }
  0x9a   : > { %v3602_v60 = vmax.f32 %v3154_v58, 0.0  ;;  %v3714_v61 = vmax.f32 %v3266_v59, 0.0 }
  0x9c   : > { %v4050_v62 = vmin.f32 %v3602_v60, 6.0  ;;  %v4162_v63 = vmin.f32 %v3714_v61, 6.0  ;;  %v2138_v0 = vpop.f32.mrf.mxu2  ;;  %v2418_v1 = vpop.f32.mrf.mxu3 }
  0x9d   : > { %v2926_v2 = vmul.f32 %v5883_v40, %v2138_v0  ;;  %v3038_v3 = vmul.f32 %v5883_v40, %v2418_v1  ;;  %v1580_v4 = vpop.f32.mrf.mxu0  ;;  %v1860_v5 = vpop.f32.mrf.mxu1 }
  0x9e   : > { %v4498_v6 = vpack.c.bf16 %v4050_v62, %v4050_v62  ;;  %v4610_v7 = vpack.c.bf16 %v4162_v63, %v4162_v63  ;;  %v2703_v8 = vmul.f32 %v5883_v40, %v1580_v4  ;;  %v2815_v9 = vmul.f32 %v5883_v40, %v1860_v5 }
  0x9f   : > { %v3378_v10 = vadd.f32 %v5896_v49, %v2926_v2  ;;  %v3490_v11 = vadd.f32 %v5896_v49, %v3038_v3 }
  0xa0   : > { %4947 = vst.msk [vmem:[%s5910_s9] sm:$0xf] %vm4946_vm3, %v4498_v6  ;;  %v3155_v15 = vadd.f32 %v5896_v49, %v2703_v8  ;;  %v3267_v16 = vadd.f32 %v5896_v49, %v2815_v9 }
  0xa1   : > { %5059 = vst.msk [vmem:[%s5910_s9 + $0x1c0] sm:$0xf] %vm4946_vm3, %v4610_v7  ;;  %v3826_v20 = vmax.f32 %v3378_v10, 0.0  ;;  %v3938_v21 = vmax.f32 %v3490_v11, 0.0  ;;  %v222_v10 = vld [vmem:[%s5782_s27 + $0xa0] sm:$0xff]  ;;  %v223_v11 = vld [vmem:[%s5782_s27 + $0xa8] sm:$0xff] }
  0xa2   : > { %v3603_v24 = vmax.f32 %v3155_v15, 0.0  ;;  %v3715_v25 = vmax.f32 %v3267_v16, 0.0  ;;  %v335_v15 = vld [vmem:[%s5782_s27 + $0x428] sm:$0xff]  ;;  %v446_v16 = vld [vmem:[%s5782_s27 + $0x7a0] sm:$0xff] }
  0xa3   : > { %v4274_v26 = vmin.f32 %v3826_v20, 6.0  ;;  %v4386_v27 = vmin.f32 %v3938_v21, 6.0  ;;  %v558_v20 = vld [vmem:[%s5782_s27 + $0xb20] sm:$0xff]  ;;  %v559_v21 = vld [vmem:[%s5782_s27 + $0xb28] sm:$0xff] }
  0xa4   : > { %v4051_v30 = vmin.f32 %v3603_v24, 6.0  ;;  %v4163_v31 = vmin.f32 %v3715_v25, 6.0  ;;  %v2140_v32 = vpop.f32.mrf.mxu2  ;;  %v2420_v33 = vpop.f32.mrf.mxu3 }
  0xa5   : > { %v4722_v36 = vpack.c.bf16 %v4274_v26, %v4274_v26  ;;  %v4834_v37 = vpack.c.bf16 %v4386_v27, %v4386_v27  ;;  %v2927_v38 = vmul.f32 %v5883_v40, %v2140_v32  ;;  %v3039_v39 = vmul.f32 %v5883_v40, %v2420_v33  ;;  %v1583_v41 = vpop.f32.mrf.mxu0  ;;  %v1863_v42 = vpop.f32.mrf.mxu1 }
  0xa6   : > { %v4499_v43 = vpack.c.bf16 %v4051_v30, %v4051_v30  ;;  %v4611_v44 = vpack.c.bf16 %v4163_v31, %v4163_v31  ;;  %v2704_v45 = vmul.f32 %v5883_v40, %v1583_v41  ;;  %v2816_v46 = vmul.f32 %v5883_v40, %v1863_v42 }
  0xa7   : > { %5171 = vst.msk [vmem:[%s5910_s9 + $0x380] sm:$0xf] %vm4946_vm3, %v4722_v36  ;;  %v3379_v47 = vadd.f32 %v5896_v49, %v2927_v38  ;;  %v3491_v48 = vadd.f32 %v5896_v49, %v3039_v39  ;;  %v660_v26 = vpack.c.bf16 %v223_v11, %v222_v10  ;;  %v716_v27 = vpack.c.bf16 %v335_v15, %v334_v12  ;;  %v336_v10 = vld [vmem:[%s5782_s27 + $0x430] sm:$0xff]  ;;  %v449_v15 = vld [vmem:[%s5782_s27 + $0x7b8] sm:$0xff] }
  0xa8   : > { %5283 = vst.msk [vmem:[%s5910_s9 + $0x540] sm:$0xf] %vm4946_vm3, %v4834_v37  ;;  %v3156_v50 = vadd.f32 %v5896_v49, %v2704_v45  ;;  %v3268_v51 = vadd.f32 %v5896_v49, %v2816_v46  ;;  %5475 = vmatmul.msk.bf16.gmra.mxu0 %vm889_vm2, %v659_v28  ;;  %5531 = vmatmul.msk.bf16.gmra.mxu1 %vm889_vm2, %v715_v29 }
  0xa9   : > { %4948 = vst.msk [vmem:[%s5910_s9 + $0x4] sm:$0xf] %vm4946_vm3, %v4499_v43  ;;  %v3827_v52 = vmax.f32 %v3379_v47, 0.0  ;;  %v3939_v53 = vmax.f32 %v3491_v48, 0.0  ;;  %5587 = vmatmul.msk.bf16.gmra.mxu2 %vm889_vm2, %v771_v34  ;;  %5643 = vmatmul.msk.bf16.gmra.mxu3 %vm889_vm2, %v827_v35  ;;  %v772_v32 = vpack.c.bf16 %v447_v17, %v446_v16  ;;  %v828_v33 = vpack.c.bf16 %v559_v21, %v558_v20 }
  0xaa   : > { %5060 = vst.msk [vmem:[%s5910_s9 + $0x1c4] sm:$0xf] %vm4946_vm3, %v4611_v44  ;;  %v3604_v54 = vmax.f32 %v3156_v50, 0.0  ;;  %v3716_v55 = vmax.f32 %v3268_v51, 0.0 }
  0xab   : > { %v4275_v56 = vmin.f32 %v3827_v52, 6.0  ;;  %v4387_v57 = vmin.f32 %v3939_v53, 6.0 }
  0xac   : > { %v4052_v58 = vmin.f32 %v3604_v54, 6.0  ;;  %v4164_v59 = vmin.f32 %v3716_v55, 6.0  ;;  %v2143_v60 = vpop.f32.mrf.mxu2  ;;  %v2423_v61 = vpop.f32.mrf.mxu3 }
  0xad   : > { %v4723_v62 = vpack.c.bf16 %v4275_v56, %v4275_v56  ;;  %v4835_v63 = vpack.c.bf16 %v4387_v57, %v4387_v57  ;;  %v2928_v0 = vmul.f32 %v5883_v40, %v2143_v60  ;;  %v3040_v1 = vmul.f32 %v5883_v40, %v2423_v61  ;;  %v1585_v2 = vpop.f32.mrf.mxu0  ;;  %v1865_v3 = vpop.f32.mrf.mxu1 }
  0xae   : > { %v4500_v4 = vpack.c.bf16 %v4052_v58, %v4052_v58  ;;  %v4612_v5 = vpack.c.bf16 %v4164_v59, %v4164_v59  ;;  %v2705_v6 = vmul.f32 %v5883_v40, %v1585_v2  ;;  %v2817_v7 = vmul.f32 %v5883_v40, %v1865_v3 }
  0xaf   : > { %5172 = vst.msk [vmem:[%s5910_s9 + $0x384] sm:$0xf] %vm4946_vm3, %v4723_v62  ;;  %v3380_v8 = vadd.f32 %v5896_v49, %v2928_v0  ;;  %v3492_v9 = vadd.f32 %v5896_v49, %v3040_v1 }
  0xb0   : > { %5284 = vst.msk [vmem:[%s5910_s9 + $0x544] sm:$0xf] %vm4946_vm3, %v4835_v63  ;;  %v3157_v13 = vadd.f32 %v5896_v49, %v2705_v6  ;;  %v3269_v14 = vadd.f32 %v5896_v49, %v2817_v7 }
  0xb1   : > { %4949 = vst.msk [vmem:[%s5910_s9 + $0x8] sm:$0xf] %vm4946_vm3, %v4500_v4  ;;  %v3828_v18 = vmax.f32 %v3380_v8, 0.0  ;;  %v3940_v19 = vmax.f32 %v3492_v9, 0.0  ;;  %v224_v8 = vld [vmem:[%s5782_s27 + $0xb0] sm:$0xff]  ;;  %v225_v9 = vld [vmem:[%s5782_s27 + $0xb8] sm:$0xff] }
  0xb2   : > { %5061 = vst.msk [vmem:[%s5910_s9 + $0x1c8] sm:$0xf] %vm4946_vm3, %v4612_v5  ;;  %v3605_v22 = vmax.f32 %v3157_v13, 0.0  ;;  %v3717_v23 = vmax.f32 %v3269_v14, 0.0  ;;  %v337_v13 = vld [vmem:[%s5782_s27 + $0x438] sm:$0xff]  ;;  %v448_v14 = vld [vmem:[%s5782_s27 + $0x7b0] sm:$0xff] }
  0xb3   : > { %v4276_v24 = vmin.f32 %v3828_v18, 6.0  ;;  %v4388_v25 = vmin.f32 %v3940_v19, 6.0  ;;  %v560_v18 = vld [vmem:[%s5782_s27 + $0xb30] sm:$0xff]  ;;  %v561_v19 = vld [vmem:[%s5782_s27 + $0xb38] sm:$0xff] }
  0xb4   : > { %v4053_v28 = vmin.f32 %v3605_v22, 6.0  ;;  %v4165_v29 = vmin.f32 %v3717_v23, 6.0  ;;  %v2145_v30 = vpop.f32.mrf.mxu2  ;;  %v2425_v31 = vpop.f32.mrf.mxu3 }
  0xb5   : > { %v4724_v34 = vpack.c.bf16 %v4276_v24, %v4276_v24  ;;  %v4836_v35 = vpack.c.bf16 %v4388_v25, %v4388_v25  ;;  %v2929_v36 = vmul.f32 %v5883_v40, %v2145_v30  ;;  %v3041_v37 = vmul.f32 %v5883_v40, %v2425_v31  ;;  %v1588_v38 = vpop.f32.mrf.mxu0  ;;  %v1868_v39 = vpop.f32.mrf.mxu1 }
  0xb6   : > { %v4501_v41 = vpack.c.bf16 %v4053_v28, %v4053_v28  ;;  %v4613_v42 = vpack.c.bf16 %v4165_v29, %v4165_v29  ;;  %v2706_v43 = vmul.f32 %v5883_v40, %v1588_v38  ;;  %v2818_v44 = vmul.f32 %v5883_v40, %v1868_v39 }
  0xb7   : > { %5173 = vst.msk [vmem:[%s5910_s9 + $0x388] sm:$0xf] %vm4946_vm3, %v4724_v34  ;;  %v3381_v45 = vadd.f32 %v5896_v49, %v2929_v36  ;;  %v3493_v46 = vadd.f32 %v5896_v49, %v3041_v37  ;;  %v661_v24 = vpack.c.bf16 %v225_v9, %v224_v8  ;;  %v717_v25 = vpack.c.bf16 %v337_v13, %v336_v10  ;;  %v338_v8 = vld [vmem:[%s5782_s27 + $0x440] sm:$0xff]  ;;  %v451_v13 = vld [vmem:[%s5782_s27 + $0x7c8] sm:$0xff] }
  0xb8   : > { %5285 = vst.msk [vmem:[%s5910_s9 + $0x548] sm:$0xf] %vm4946_vm3, %v4836_v35  ;;  %v3158_v47 = vadd.f32 %v5896_v49, %v2706_v43  ;;  %v3270_v48 = vadd.f32 %v5896_v49, %v2818_v44  ;;  %5476 = vmatmul.msk.bf16.gmra.mxu0 %vm889_vm2, %v660_v26  ;;  %5532 = vmatmul.msk.bf16.gmra.mxu1 %vm889_vm2, %v716_v27 }
  0xb9   : > { %4950 = vst.msk [vmem:[%s5910_s9 + $0xc] sm:$0xf] %vm4946_vm3, %v4501_v41  ;;  %v3829_v50 = vmax.f32 %v3381_v45, 0.0  ;;  %v3941_v51 = vmax.f32 %v3493_v46, 0.0  ;;  %5588 = vmatmul.msk.bf16.gmra.mxu2 %vm889_vm2, %v772_v32  ;;  %5644 = vmatmul.msk.bf16.gmra.mxu3 %vm889_vm2, %v828_v33  ;;  %v773_v30 = vpack.c.bf16 %v449_v15, %v448_v14  ;;  %v829_v31 = vpack.c.bf16 %v561_v19, %v560_v18 }
  0xba   : > { %5062 = vst.msk [vmem:[%s5910_s9 + $0x1cc] sm:$0xf] %vm4946_vm3, %v4613_v42  ;;  %v3606_v52 = vmax.f32 %v3158_v47, 0.0  ;;  %v3718_v53 = vmax.f32 %v3270_v48, 0.0 }
  0xbb   : > { %v4277_v54 = vmin.f32 %v3829_v50, 6.0  ;;  %v4389_v55 = vmin.f32 %v3941_v51, 6.0 }
  0xbc   : > { %v4054_v56 = vmin.f32 %v3606_v52, 6.0  ;;  %v4166_v57 = vmin.f32 %v3718_v53, 6.0  ;;  %v2148_v58 = vpop.f32.mrf.mxu2  ;;  %v2428_v59 = vpop.f32.mrf.mxu3 }
  0xbd   : > { %v4725_v60 = vpack.c.bf16 %v4277_v54, %v4277_v54  ;;  %v4837_v61 = vpack.c.bf16 %v4389_v55, %v4389_v55  ;;  %v2930_v62 = vmul.f32 %v5883_v40, %v2148_v58  ;;  %v3042_v63 = vmul.f32 %v5883_v40, %v2428_v59  ;;  %v1590_v0 = vpop.f32.mrf.mxu0  ;;  %v1870_v1 = vpop.f32.mrf.mxu1 }
  0xbe   : > { %v4502_v2 = vpack.c.bf16 %v4054_v56, %v4054_v56  ;;  %v4614_v3 = vpack.c.bf16 %v4166_v57, %v4166_v57  ;;  %v2707_v4 = vmul.f32 %v5883_v40, %v1590_v0  ;;  %v2819_v5 = vmul.f32 %v5883_v40, %v1870_v1 }
  0xbf   : > { %5174 = vst.msk [vmem:[%s5910_s9 + $0x38c] sm:$0xf] %vm4946_vm3, %v4725_v60  ;;  %v3382_v6 = vadd.f32 %v5896_v49, %v2930_v62  ;;  %v3494_v7 = vadd.f32 %v5896_v49, %v3042_v63 }
  0xc0   : > { %5286 = vst.msk [vmem:[%s5910_s9 + $0x54c] sm:$0xf] %vm4946_vm3, %v4837_v61  ;;  %v3159_v11 = vadd.f32 %v5896_v49, %v2707_v4  ;;  %v3271_v12 = vadd.f32 %v5896_v49, %v2819_v5 }
  0xc1   : > { %4951 = vst.msk [vmem:[%s5910_s9 + $0x10] sm:$0xf] %vm4946_vm3, %v4502_v2  ;;  %v3830_v16 = vmax.f32 %v3382_v6, 0.0  ;;  %v3942_v17 = vmax.f32 %v3494_v7, 0.0  ;;  %v226_v6 = vld [vmem:[%s5782_s27 + $0xc0] sm:$0xff]  ;;  %v227_v7 = vld [vmem:[%s5782_s27 + $0xc8] sm:$0xff] }
  0xc2   : > { %5063 = vst.msk [vmem:[%s5910_s9 + $0x1d0] sm:$0xf] %vm4946_vm3, %v4614_v3  ;;  %v3607_v20 = vmax.f32 %v3159_v11, 0.0  ;;  %v3719_v21 = vmax.f32 %v3271_v12, 0.0  ;;  %v339_v11 = vld [vmem:[%s5782_s27 + $0x448] sm:$0xff]  ;;  %v450_v12 = vld [vmem:[%s5782_s27 + $0x7c0] sm:$0xff] }
  0xc3   : > { %v4278_v22 = vmin.f32 %v3830_v16, 6.0  ;;  %v4390_v23 = vmin.f32 %v3942_v17, 6.0  ;;  %v562_v16 = vld [vmem:[%s5782_s27 + $0xb40] sm:$0xff]  ;;  %v563_v17 = vld [vmem:[%s5782_s27 + $0xb48] sm:$0xff] }
  0xc4   : > { %v4055_v26 = vmin.f32 %v3607_v20, 6.0  ;;  %v4167_v27 = vmin.f32 %v3719_v21, 6.0  ;;  %v2150_v28 = vpop.f32.mrf.mxu2  ;;  %v2430_v29 = vpop.f32.mrf.mxu3 }
  0xc5   : > { %v4726_v32 = vpack.c.bf16 %v4278_v22, %v4278_v22  ;;  %v4838_v33 = vpack.c.bf16 %v4390_v23, %v4390_v23  ;;  %v2931_v34 = vmul.f32 %v5883_v40, %v2150_v28  ;;  %v3043_v35 = vmul.f32 %v5883_v40, %v2430_v29  ;;  %v1593_v36 = vpop.f32.mrf.mxu0  ;;  %v1873_v37 = vpop.f32.mrf.mxu1 }
  0xc6   : > { %v4503_v38 = vpack.c.bf16 %v4055_v26, %v4055_v26  ;;  %v4615_v39 = vpack.c.bf16 %v4167_v27, %v4167_v27  ;;  %v2708_v41 = vmul.f32 %v5883_v40, %v1593_v36  ;;  %v2820_v42 = vmul.f32 %v5883_v40, %v1873_v37 }
  0xc7   : > { %5175 = vst.msk [vmem:[%s5910_s9 + $0x390] sm:$0xf] %vm4946_vm3, %v4726_v32  ;;  %v3383_v43 = vadd.f32 %v5896_v49, %v2931_v34  ;;  %v3495_v44 = vadd.f32 %v5896_v49, %v3043_v35  ;;  %v662_v22 = vpack.c.bf16 %v227_v7, %v226_v6  ;;  %v718_v23 = vpack.c.bf16 %v339_v11, %v338_v8  ;;  %v340_v6 = vld [vmem:[%s5782_s27 + $0x450] sm:$0xff]  ;;  %v453_v11 = vld [vmem:[%s5782_s27 + $0x7d8] sm:$0xff] }
  0xc8   : > { %5287 = vst.msk [vmem:[%s5910_s9 + $0x550] sm:$0xf] %vm4946_vm3, %v4838_v33  ;;  %v3160_v45 = vadd.f32 %v5896_v49, %v2708_v41  ;;  %v3272_v46 = vadd.f32 %v5896_v49, %v2820_v42  ;;  %5477 = vmatmul.msk.bf16.gmra.mxu0 %vm889_vm2, %v661_v24  ;;  %5533 = vmatmul.msk.bf16.gmra.mxu1 %vm889_vm2, %v717_v25 }
  0xc9   : > { %4952 = vst.msk [vmem:[%s5910_s9 + $0x14] sm:$0xf] %vm4946_vm3, %v4503_v38  ;;  %v3831_v47 = vmax.f32 %v3383_v43, 0.0  ;;  %v3943_v48 = vmax.f32 %v3495_v44, 0.0  ;;  %5589 = vmatmul.msk.bf16.gmra.mxu2 %vm889_vm2, %v773_v30  ;;  %5645 = vmatmul.msk.bf16.gmra.mxu3 %vm889_vm2, %v829_v31  ;;  %v774_v28 = vpack.c.bf16 %v451_v13, %v450_v12  ;;  %v830_v29 = vpack.c.bf16 %v563_v17, %v562_v16 }
  0xca   : > { %5064 = vst.msk [vmem:[%s5910_s9 + $0x1d4] sm:$0xf] %vm4946_vm3, %v4615_v39  ;;  %v3608_v50 = vmax.f32 %v3160_v45, 0.0  ;;  %v3720_v51 = vmax.f32 %v3272_v46, 0.0 }
  0xcb   : > { %v4279_v52 = vmin.f32 %v3831_v47, 6.0  ;;  %v4391_v53 = vmin.f32 %v3943_v48, 6.0 }
  0xcc   : > { %v4056_v54 = vmin.f32 %v3608_v50, 6.0  ;;  %v4168_v55 = vmin.f32 %v3720_v51, 6.0  ;;  %v2153_v56 = vpop.f32.mrf.mxu2  ;;  %v2433_v57 = vpop.f32.mrf.mxu3 }
  0xcd   : > { %v4727_v58 = vpack.c.bf16 %v4279_v52, %v4279_v52  ;;  %v4839_v59 = vpack.c.bf16 %v4391_v53, %v4391_v53  ;;  %v2932_v60 = vmul.f32 %v5883_v40, %v2153_v56  ;;  %v3044_v61 = vmul.f32 %v5883_v40, %v2433_v57  ;;  %v1595_v62 = vpop.f32.mrf.mxu0  ;;  %v1875_v63 = vpop.f32.mrf.mxu1 }
  0xce   : > { %v4504_v0 = vpack.c.bf16 %v4056_v54, %v4056_v54  ;;  %v4616_v1 = vpack.c.bf16 %v4168_v55, %v4168_v55  ;;  %v2709_v2 = vmul.f32 %v5883_v40, %v1595_v62  ;;  %v2821_v3 = vmul.f32 %v5883_v40, %v1875_v63 }
  0xcf   : > { %5176 = vst.msk [vmem:[%s5910_s9 + $0x394] sm:$0xf] %vm4946_vm3, %v4727_v58  ;;  %v3384_v4 = vadd.f32 %v5896_v49, %v2932_v60  ;;  %v3496_v5 = vadd.f32 %v5896_v49, %v3044_v61 }
  0xd0   : > { %5288 = vst.msk [vmem:[%s5910_s9 + $0x554] sm:$0xf] %vm4946_vm3, %v4839_v59  ;;  %v3161_v9 = vadd.f32 %v5896_v49, %v2709_v2  ;;  %v3273_v10 = vadd.f32 %v5896_v49, %v2821_v3 }
  0xd1   : > { %4953 = vst.msk [vmem:[%s5910_s9 + $0x18] sm:$0xf] %vm4946_vm3, %v4504_v0  ;;  %v3832_v14 = vmax.f32 %v3384_v4, 0.0  ;;  %v3944_v15 = vmax.f32 %v3496_v5, 0.0  ;;  %v228_v4 = vld [vmem:[%s5782_s27 + $0xd0] sm:$0xff]  ;;  %v229_v5 = vld [vmem:[%s5782_s27 + $0xd8] sm:$0xff] }
  0xd2   : > { %5065 = vst.msk [vmem:[%s5910_s9 + $0x1d8] sm:$0xf] %vm4946_vm3, %v4616_v1  ;;  %v3609_v18 = vmax.f32 %v3161_v9, 0.0  ;;  %v3721_v19 = vmax.f32 %v3273_v10, 0.0  ;;  %v341_v9 = vld [vmem:[%s5782_s27 + $0x458] sm:$0xff]  ;;  %v452_v10 = vld [vmem:[%s5782_s27 + $0x7d0] sm:$0xff] }
  0xd3   : > { %v4280_v20 = vmin.f32 %v3832_v14, 6.0  ;;  %v4392_v21 = vmin.f32 %v3944_v15, 6.0  ;;  %v564_v14 = vld [vmem:[%s5782_s27 + $0xb50] sm:$0xff]  ;;  %v565_v15 = vld [vmem:[%s5782_s27 + $0xb58] sm:$0xff] }
  0xd4   : > { %v4057_v24 = vmin.f32 %v3609_v18, 6.0  ;;  %v4169_v25 = vmin.f32 %v3721_v19, 6.0  ;;  %v2155_v26 = vpop.f32.mrf.mxu2  ;;  %v2435_v27 = vpop.f32.mrf.mxu3 }
  0xd5   : > { %v4728_v30 = vpack.c.bf16 %v4280_v20, %v4280_v20  ;;  %v4840_v31 = vpack.c.bf16 %v4392_v21, %v4392_v21  ;;  %v2933_v32 = vmul.f32 %v5883_v40, %v2155_v26  ;;  %v3045_v33 = vmul.f32 %v5883_v40, %v2435_v27  ;;  %v1598_v34 = vpop.f32.mrf.mxu0  ;;  %v1878_v35 = vpop.f32.mrf.mxu1 }
  0xd6   : > { %v4505_v36 = vpack.c.bf16 %v4057_v24, %v4057_v24  ;;  %v4617_v37 = vpack.c.bf16 %v4169_v25, %v4169_v25  ;;  %v2710_v38 = vmul.f32 %v5883_v40, %v1598_v34  ;;  %v2822_v39 = vmul.f32 %v5883_v40, %v1878_v35 }
  0xd7   : > { %5177 = vst.msk [vmem:[%s5910_s9 + $0x398] sm:$0xf] %vm4946_vm3, %v4728_v30  ;;  %v3385_v41 = vadd.f32 %v5896_v49, %v2933_v32  ;;  %v3497_v42 = vadd.f32 %v5896_v49, %v3045_v33  ;;  %v663_v20 = vpack.c.bf16 %v229_v5, %v228_v4  ;;  %v719_v21 = vpack.c.bf16 %v341_v9, %v340_v6  ;;  %v342_v4 = vld [vmem:[%s5782_s27 + $0x460] sm:$0xff]  ;;  %v455_v9 = vld [vmem:[%s5782_s27 + $0x7e8] sm:$0xff] }
  0xd8   : > { %5289 = vst.msk [vmem:[%s5910_s9 + $0x558] sm:$0xf] %vm4946_vm3, %v4840_v31  ;;  %v3162_v43 = vadd.f32 %v5896_v49, %v2710_v38  ;;  %v3274_v44 = vadd.f32 %v5896_v49, %v2822_v39  ;;  %5478 = vmatmul.msk.bf16.gmra.mxu0 %vm889_vm2, %v662_v22  ;;  %5534 = vmatmul.msk.bf16.gmra.mxu1 %vm889_vm2, %v718_v23 }
  0xd9   : > { %4954 = vst.msk [vmem:[%s5910_s9 + $0x1c] sm:$0xf] %vm4946_vm3, %v4505_v36  ;;  %v3833_v45 = vmax.f32 %v3385_v41, 0.0  ;;  %v3945_v46 = vmax.f32 %v3497_v42, 0.0  ;;  %5590 = vmatmul.msk.bf16.gmra.mxu2 %vm889_vm2, %v774_v28  ;;  %5646 = vmatmul.msk.bf16.gmra.mxu3 %vm889_vm2, %v830_v29  ;;  %v775_v26 = vpack.c.bf16 %v453_v11, %v452_v10  ;;  %v831_v27 = vpack.c.bf16 %v565_v15, %v564_v14 }
  0xda   : > { %5066 = vst.msk [vmem:[%s5910_s9 + $0x1dc] sm:$0xf] %vm4946_vm3, %v4617_v37  ;;  %v3610_v47 = vmax.f32 %v3162_v43, 0.0  ;;  %v3722_v48 = vmax.f32 %v3274_v44, 0.0 }
  0xdb   : > { %v4281_v50 = vmin.f32 %v3833_v45, 6.0  ;;  %v4393_v51 = vmin.f32 %v3945_v46, 6.0 }
  0xdc   : > { %v4058_v52 = vmin.f32 %v3610_v47, 6.0  ;;  %v4170_v53 = vmin.f32 %v3722_v48, 6.0  ;;  %v2158_v54 = vpop.f32.mrf.mxu2  ;;  %v2438_v55 = vpop.f32.mrf.mxu3 }
  0xdd   : > { %v4729_v56 = vpack.c.bf16 %v4281_v50, %v4281_v50  ;;  %v4841_v57 = vpack.c.bf16 %v4393_v51, %v4393_v51  ;;  %v2934_v58 = vmul.f32 %v5883_v40, %v2158_v54  ;;  %v3046_v59 = vmul.f32 %v5883_v40, %v2438_v55  ;;  %v1600_v60 = vpop.f32.mrf.mxu0  ;;  %v1880_v61 = vpop.f32.mrf.mxu1 }
  0xde   : > { %v4506_v62 = vpack.c.bf16 %v4058_v52, %v4058_v52  ;;  %v4618_v63 = vpack.c.bf16 %v4170_v53, %v4170_v53  ;;  %v2711_v0 = vmul.f32 %v5883_v40, %v1600_v60  ;;  %v2823_v1 = vmul.f32 %v5883_v40, %v1880_v61 }
  0xdf   : > { %5178 = vst.msk [vmem:[%s5910_s9 + $0x39c] sm:$0xf] %vm4946_vm3, %v4729_v56  ;;  %v3386_v2 = vadd.f32 %v5896_v49, %v2934_v58  ;;  %v3498_v3 = vadd.f32 %v5896_v49, %v3046_v59 }
  0xe0   : > { %5290 = vst.msk [vmem:[%s5910_s9 + $0x55c] sm:$0xf] %vm4946_vm3, %v4841_v57  ;;  %v3163_v7 = vadd.f32 %v5896_v49, %v2711_v0  ;;  %v3275_v8 = vadd.f32 %v5896_v49, %v2823_v1 }
  0xe1   : > { %4955 = vst.msk [vmem:[%s5910_s9 + $0x20] sm:$0xf] %vm4946_vm3, %v4506_v62  ;;  %v3834_v12 = vmax.f32 %v3386_v2, 0.0  ;;  %v3946_v13 = vmax.f32 %v3498_v3, 0.0  ;;  %v230_v2 = vld [vmem:[%s5782_s27 + $0xe0] sm:$0xff]  ;;  %v231_v3 = vld [vmem:[%s5782_s27 + $0xe8] sm:$0xff] }
  0xe2   : > { %5067 = vst.msk [vmem:[%s5910_s9 + $0x1e0] sm:$0xf] %vm4946_vm3, %v4618_v63  ;;  %v3611_v16 = vmax.f32 %v3163_v7, 0.0  ;;  %v3723_v17 = vmax.f32 %v3275_v8, 0.0  ;;  %v343_v7 = vld [vmem:[%s5782_s27 + $0x468] sm:$0xff]  ;;  %v454_v8 = vld [vmem:[%s5782_s27 + $0x7e0] sm:$0xff] }
  0xe3   : > { %v4282_v18 = vmin.f32 %v3834_v12, 6.0  ;;  %v4394_v19 = vmin.f32 %v3946_v13, 6.0  ;;  %v566_v12 = vld [vmem:[%s5782_s27 + $0xb60] sm:$0xff]  ;;  %v567_v13 = vld [vmem:[%s5782_s27 + $0xb68] sm:$0xff] }
  0xe4   : > { %v4059_v22 = vmin.f32 %v3611_v16, 6.0  ;;  %v4171_v23 = vmin.f32 %v3723_v17, 6.0  ;;  %v2160_v24 = vpop.f32.mrf.mxu2  ;;  %v2440_v25 = vpop.f32.mrf.mxu3 }
  0xe5   : > { %v4730_v28 = vpack.c.bf16 %v4282_v18, %v4282_v18  ;;  %v4842_v29 = vpack.c.bf16 %v4394_v19, %v4394_v19  ;;  %v2935_v30 = vmul.f32 %v5883_v40, %v2160_v24  ;;  %v3047_v31 = vmul.f32 %v5883_v40, %v2440_v25  ;;  %v1603_v32 = vpop.f32.mrf.mxu0  ;;  %v1883_v33 = vpop.f32.mrf.mxu1 }
  0xe6   : > { %v4507_v34 = vpack.c.bf16 %v4059_v22, %v4059_v22  ;;  %v4619_v35 = vpack.c.bf16 %v4171_v23, %v4171_v23  ;;  %v2712_v36 = vmul.f32 %v5883_v40, %v1603_v32  ;;  %v2824_v37 = vmul.f32 %v5883_v40, %v1883_v33 }
  0xe7   : > { %5179 = vst.msk [vmem:[%s5910_s9 + $0x3a0] sm:$0xf] %vm4946_vm3, %v4730_v28  ;;  %v3387_v38 = vadd.f32 %v5896_v49, %v2935_v30  ;;  %v3499_v39 = vadd.f32 %v5896_v49, %v3047_v31  ;;  %v664_v18 = vpack.c.bf16 %v231_v3, %v230_v2  ;;  %v720_v19 = vpack.c.bf16 %v343_v7, %v342_v4  ;;  %v344_v2 = vld [vmem:[%s5782_s27 + $0x470] sm:$0xff]  ;;  %v457_v7 = vld [vmem:[%s5782_s27 + $0x7f8] sm:$0xff] }
  0xe8   : > { %5291 = vst.msk [vmem:[%s5910_s9 + $0x560] sm:$0xf] %vm4946_vm3, %v4842_v29  ;;  %v3164_v41 = vadd.f32 %v5896_v49, %v2712_v36  ;;  %v3276_v42 = vadd.f32 %v5896_v49, %v2824_v37  ;;  %5479 = vmatmul.msk.bf16.gmra.mxu0 %vm889_vm2, %v663_v20  ;;  %5535 = vmatmul.msk.bf16.gmra.mxu1 %vm889_vm2, %v719_v21 }
  0xe9   : > { %4956 = vst.msk [vmem:[%s5910_s9 + $0x24] sm:$0xf] %vm4946_vm3, %v4507_v34  ;;  %v3835_v43 = vmax.f32 %v3387_v38, 0.0  ;;  %v3947_v44 = vmax.f32 %v3499_v39, 0.0  ;;  %5591 = vmatmul.msk.bf16.gmra.mxu2 %vm889_vm2, %v775_v26  ;;  %5647 = vmatmul.msk.bf16.gmra.mxu3 %vm889_vm2, %v831_v27  ;;  %v776_v24 = vpack.c.bf16 %v455_v9, %v454_v8  ;;  %v832_v25 = vpack.c.bf16 %v567_v13, %v566_v12 }
  0xea   : > { %5068 = vst.msk [vmem:[%s5910_s9 + $0x1e4] sm:$0xf] %vm4946_vm3, %v4619_v35  ;;  %v3612_v45 = vmax.f32 %v3164_v41, 0.0  ;;  %v3724_v46 = vmax.f32 %v3276_v42, 0.0 }
  0xeb   : > { %v4283_v47 = vmin.f32 %v3835_v43, 6.0  ;;  %v4395_v48 = vmin.f32 %v3947_v44, 6.0 }
  0xec   : > { %v4060_v50 = vmin.f32 %v3612_v45, 6.0  ;;  %v4172_v51 = vmin.f32 %v3724_v46, 6.0  ;;  %v2163_v52 = vpop.f32.mrf.mxu2  ;;  %v2443_v53 = vpop.f32.mrf.mxu3 }
  0xed   : > { %v4731_v54 = vpack.c.bf16 %v4283_v47, %v4283_v47  ;;  %v4843_v55 = vpack.c.bf16 %v4395_v48, %v4395_v48  ;;  %v2936_v56 = vmul.f32 %v5883_v40, %v2163_v52  ;;  %v3048_v57 = vmul.f32 %v5883_v40, %v2443_v53  ;;  %v1605_v58 = vpop.f32.mrf.mxu0  ;;  %v1885_v59 = vpop.f32.mrf.mxu1 }
  0xee   : > { %v4508_v60 = vpack.c.bf16 %v4060_v50, %v4060_v50  ;;  %v4620_v61 = vpack.c.bf16 %v4172_v51, %v4172_v51  ;;  %v2713_v62 = vmul.f32 %v5883_v40, %v1605_v58  ;;  %v2825_v63 = vmul.f32 %v5883_v40, %v1885_v59 }
  0xef   : > { %5180 = vst.msk [vmem:[%s5910_s9 + $0x3a4] sm:$0xf] %vm4946_vm3, %v4731_v54  ;;  %v3388_v0 = vadd.f32 %v5896_v49, %v2936_v56  ;;  %v3500_v1 = vadd.f32 %v5896_v49, %v3048_v57 }
  0xf0   : > { %5292 = vst.msk [vmem:[%s5910_s9 + $0x564] sm:$0xf] %vm4946_vm3, %v4843_v55  ;;  %v3165_v5 = vadd.f32 %v5896_v49, %v2713_v62  ;;  %v3277_v6 = vadd.f32 %v5896_v49, %v2825_v63 }
  0xf1   : > { %4957 = vst.msk [vmem:[%s5910_s9 + $0x28] sm:$0xf] %vm4946_vm3, %v4508_v60  ;;  %v3836_v10 = vmax.f32 %v3388_v0, 0.0  ;;  %v3948_v11 = vmax.f32 %v3500_v1, 0.0  ;;  %v232_v0 = vld [vmem:[%s5782_s27 + $0xf0] sm:$0xff]  ;;  %v233_v1 = vld [vmem:[%s5782_s27 + $0xf8] sm:$0xff] }
  0xf2   : > { %5069 = vst.msk [vmem:[%s5910_s9 + $0x1e8] sm:$0xf] %vm4946_vm3, %v4620_v61  ;;  %v3613_v14 = vmax.f32 %v3165_v5, 0.0  ;;  %v3725_v15 = vmax.f32 %v3277_v6, 0.0  ;;  %v345_v5 = vld [vmem:[%s5782_s27 + $0x478] sm:$0xff]  ;;  %v456_v6 = vld [vmem:[%s5782_s27 + $0x7f0] sm:$0xff] }
  0xf3   : > { %v4284_v16 = vmin.f32 %v3836_v10, 6.0  ;;  %v4396_v17 = vmin.f32 %v3948_v11, 6.0  ;;  %v568_v10 = vld [vmem:[%s5782_s27 + $0xb70] sm:$0xff]  ;;  %v569_v11 = vld [vmem:[%s5782_s27 + $0xb78] sm:$0xff] }
  0xf4   : > { %v4061_v20 = vmin.f32 %v3613_v14, 6.0  ;;  %v4173_v21 = vmin.f32 %v3725_v15, 6.0  ;;  %v2165_v22 = vpop.f32.mrf.mxu2  ;;  %v2445_v23 = vpop.f32.mrf.mxu3 }
  0xf5   : > { %v4732_v26 = vpack.c.bf16 %v4284_v16, %v4284_v16  ;;  %v4844_v27 = vpack.c.bf16 %v4396_v17, %v4396_v17  ;;  %v2937_v28 = vmul.f32 %v5883_v40, %v2165_v22  ;;  %v3049_v29 = vmul.f32 %v5883_v40, %v2445_v23  ;;  %v1608_v30 = vpop.f32.mrf.mxu0  ;;  %v1888_v31 = vpop.f32.mrf.mxu1 }
  0xf6   : > { %v4509_v32 = vpack.c.bf16 %v4061_v20, %v4061_v20  ;;  %v4621_v33 = vpack.c.bf16 %v4173_v21, %v4173_v21  ;;  %v2714_v34 = vmul.f32 %v5883_v40, %v1608_v30  ;;  %v2826_v35 = vmul.f32 %v5883_v40, %v1888_v31 }
  0xf7   : > { %5181 = vst.msk [vmem:[%s5910_s9 + $0x3a8] sm:$0xf] %vm4946_vm3, %v4732_v26  ;;  %v3389_v36 = vadd.f32 %v5896_v49, %v2937_v28  ;;  %v3501_v37 = vadd.f32 %v5896_v49, %v3049_v29  ;;  %v665_v16 = vpack.c.bf16 %v233_v1, %v232_v0  ;;  %v721_v17 = vpack.c.bf16 %v345_v5, %v344_v2  ;;  %v346_v0 = vld [vmem:[%s5782_s27 + $0x480] sm:$0xff]  ;;  %v459_v5 = vld [vmem:[%s5782_s27 + $0x808] sm:$0xff] }
  0xf8   : > { %5293 = vst.msk [vmem:[%s5910_s9 + $0x568] sm:$0xf] %vm4946_vm3, %v4844_v27  ;;  %v3166_v38 = vadd.f32 %v5896_v49, %v2714_v34  ;;  %v3278_v39 = vadd.f32 %v5896_v49, %v2826_v35  ;;  %5480 = vmatmul.msk.bf16.gmra.mxu0 %vm889_vm2, %v664_v18  ;;  %5536 = vmatmul.msk.bf16.gmra.mxu1 %vm889_vm2, %v720_v19 }
  0xf9   : > { %4958 = vst.msk [vmem:[%s5910_s9 + $0x2c] sm:$0xf] %vm4946_vm3, %v4509_v32  ;;  %v3837_v41 = vmax.f32 %v3389_v36, 0.0  ;;  %v3949_v42 = vmax.f32 %v3501_v37, 0.0  ;;  %5592 = vmatmul.msk.bf16.gmra.mxu2 %vm889_vm2, %v776_v24  ;;  %5648 = vmatmul.msk.bf16.gmra.mxu3 %vm889_vm2, %v832_v25  ;;  %v777_v22 = vpack.c.bf16 %v457_v7, %v456_v6  ;;  %v833_v23 = vpack.c.bf16 %v569_v11, %v568_v10 }
  0xfa   : > { %5070 = vst.msk [vmem:[%s5910_s9 + $0x1ec] sm:$0xf] %vm4946_vm3, %v4621_v33  ;;  %v3614_v43 = vmax.f32 %v3166_v38, 0.0  ;;  %v3726_v44 = vmax.f32 %v3278_v39, 0.0 }
  0xfb   : > { %v4285_v45 = vmin.f32 %v3837_v41, 6.0  ;;  %v4397_v46 = vmin.f32 %v3949_v42, 6.0 }
  0xfc   : > { %v4062_v47 = vmin.f32 %v3614_v43, 6.0  ;;  %v4174_v48 = vmin.f32 %v3726_v44, 6.0  ;;  %v2168_v50 = vpop.f32.mrf.mxu2  ;;  %v2448_v51 = vpop.f32.mrf.mxu3 }
  0xfd   : > { %v4733_v52 = vpack.c.bf16 %v4285_v45, %v4285_v45  ;;  %v4845_v53 = vpack.c.bf16 %v4397_v46, %v4397_v46  ;;  %v2938_v54 = vmul.f32 %v5883_v40, %v2168_v50  ;;  %v3050_v55 = vmul.f32 %v5883_v40, %v2448_v51  ;;  %v1610_v56 = vpop.f32.mrf.mxu0  ;;  %v1890_v57 = vpop.f32.mrf.mxu1  ;;  %v6219_v50 = vld [vmem:[%s8339_s2] ss:$0 sm:$0xff] }
  0xfe   : > { %v4510_v58 = vpack.c.bf16 %v4062_v47, %v4062_v47  ;;  %v4622_v59 = vpack.c.bf16 %v4174_v48, %v4174_v48  ;;  %v2715_v60 = vmul.f32 %v5883_v40, %v1610_v56  ;;  %v2827_v61 = vmul.f32 %v5883_v40, %v1890_v57 }
  0xff   : > { %5182 = vst.msk [vmem:[%s5910_s9 + $0x3ac] sm:$0xf] %vm4946_vm3, %v4733_v52  ;;  %v3390_v62 = vadd.f32 %v5896_v49, %v2938_v54  ;;  %v3502_v63 = vadd.f32 %v5896_v49, %v3050_v55 }
 0x100   : > { %5294 = vst.msk [vmem:[%s5910_s9 + $0x56c] sm:$0xf] %vm4946_vm3, %v4845_v53  ;;  %v3167_v3 = vadd.f32 %v5896_v49, %v2715_v60  ;;  %v3279_v4 = vadd.f32 %v5896_v49, %v2827_v61 }
 0x101   : > { %4959 = vst.msk [vmem:[%s5910_s9 + $0x30] sm:$0xf] %vm4946_vm3, %v4510_v58  ;;  %v3838_v8 = vmax.f32 %v3390_v62, 0.0  ;;  %v3950_v9 = vmax.f32 %v3502_v63, 0.0  ;;  %v234_v62 = vld [vmem:[%s5782_s27 + $0x100] sm:$0xff]  ;;  %v235_v63 = vld [vmem:[%s5782_s27 + $0x108] sm:$0xff] }
 0x102   : > { %5071 = vst.msk [vmem:[%s5910_s9 + $0x1f0] sm:$0xf] %vm4946_vm3, %v4622_v59  ;;  %v3615_v12 = vmax.f32 %v3167_v3, 0.0  ;;  %v3727_v13 = vmax.f32 %v3279_v4, 0.0  ;;  %v6230_v59 = vld [vmem:[%s8340_s3] ss:$0 sm:$0xff] }
 0x103   : > { %v4286_v14 = vmin.f32 %v3838_v8, 6.0  ;;  %v4398_v15 = vmin.f32 %v3950_v9, 6.0  ;;  %v347_v3 = vld [vmem:[%s5782_s27 + $0x488] sm:$0xff]  ;;  %v458_v4 = vld [vmem:[%s5782_s27 + $0x800] sm:$0xff] }
 0x104   : > { %v4063_v18 = vmin.f32 %v3615_v12, 6.0  ;;  %v4175_v19 = vmin.f32 %v3727_v13, 6.0  ;;  %v2170_v20 = vpop.f32.mrf.mxu2  ;;  %v2450_v21 = vpop.f32.mrf.mxu3  ;;  %v570_v8 = vld [vmem:[%s5782_s27 + $0xb80] sm:$0xff]  ;;  %v571_v9 = vld [vmem:[%s5782_s27 + $0xb88] sm:$0xff] }
 0x105   : > { %v4734_v24 = vpack.c.bf16 %v4286_v14, %v4286_v14  ;;  %v4846_v25 = vpack.c.bf16 %v4398_v15, %v4398_v15  ;;  %v2939_v26 = vmul.f32 %v5883_v40, %v2170_v20  ;;  %v3051_v27 = vmul.f32 %v5883_v40, %v2450_v21  ;;  %v1613_v28 = vpop.f32.mrf.mxu0  ;;  %v1893_v29 = vpop.f32.mrf.mxu1 }
 0x106   : > { %v4511_v30 = vpack.c.bf16 %v4063_v18, %v4063_v18  ;;  %v4623_v31 = vpack.c.bf16 %v4175_v19, %v4175_v19  ;;  %v2716_v32 = vmul.f32 %v5883_v40, %v1613_v28  ;;  %v2828_v33 = vmul.f32 %v5883_v40, %v1893_v29 }
 0x107   : > { %5183 = vst.msk [vmem:[%s5910_s9 + $0x3b0] sm:$0xf] %vm4946_vm3, %v4734_v24  ;;  %v3391_v34 = vadd.f32 %v5896_v49, %v2939_v26  ;;  %v3503_v35 = vadd.f32 %v5896_v49, %v3051_v27  ;;  %v666_v14 = vpack.c.bf16 %v235_v63, %v234_v62  ;;  %v722_v15 = vpack.c.bf16 %v347_v3, %v346_v0  ;;  %v348_v62 = vld [vmem:[%s5782_s27 + $0x490] sm:$0xff]  ;;  %v461_v3 = vld [vmem:[%s5782_s27 + $0x818] sm:$0xff] }
 0x108   : > { %5295 = vst.msk [vmem:[%s5910_s9 + $0x570] sm:$0xf] %vm4946_vm3, %v4846_v25  ;;  %v3168_v36 = vadd.f32 %v5896_v49, %v2716_v32  ;;  %v3280_v37 = vadd.f32 %v5896_v49, %v2828_v33  ;;  %5481 = vmatmul.msk.bf16.gmra.mxu0 %vm889_vm2, %v665_v16  ;;  %5537 = vmatmul.msk.bf16.gmra.mxu1 %vm889_vm2, %v721_v17 }
 0x109   : > { %4960 = vst.msk [vmem:[%s5910_s9 + $0x34] sm:$0xf] %vm4946_vm3, %v4511_v30  ;;  %v3839_v38 = vmax.f32 %v3391_v34, 0.0  ;;  %v3951_v40 = vmax.f32 %v3503_v35, 0.0  ;;  %5593 = vmatmul.msk.bf16.gmra.mxu2 %vm889_vm2, %v777_v22  ;;  %5649 = vmatmul.msk.bf16.gmra.mxu3 %vm889_vm2, %v833_v23  ;;  %v778_v20 = vpack.c.bf16 %v459_v5, %v458_v4  ;;  %v834_v21 = vpack.c.bf16 %v571_v9, %v570_v8 }
 0x10a   : > { %5072 = vst.msk [vmem:[%s5910_s9 + $0x1f4] sm:$0xf] %vm4946_vm3, %v4623_v31  ;;  %v3616_v39 = vmax.f32 %v3168_v36, 0.0  ;;  %v3728_v41 = vmax.f32 %v3280_v37, 0.0 }
 0x10b   : > { %v4287_v42 = vmin.f32 %v3839_v38, 6.0  ;;  %v4399_v43 = vmin.f32 %v3951_v40, 6.0 }
 0x10c   : > { %v4064_v49 = vmin.f32 %v3616_v39, 6.0  ;;  %v4176_v44 = vmin.f32 %v3728_v41, 6.0  ;;  %v2173_v45 = vpop.f32.mrf.mxu2  ;;  %v2453_v46 = vpop.f32.mrf.mxu3 }
 0x10d   : > { %v4735_v47 = vpack.c.bf16 %v4287_v42, %v4287_v42  ;;  %v4847_v48 = vpack.c.bf16 %v4399_v43, %v4399_v43  ;;  %v2940_v51 = vmul.f32 %v6219_v50, %v2173_v45  ;;  %v3052_v52 = vmul.f32 %v6219_v50, %v2453_v46  ;;  %v1615_v53 = vpop.f32.mrf.mxu0  ;;  %v1895_v54 = vpop.f32.mrf.mxu1 }
 0x10e   : > { %v4512_v55 = vpack.c.bf16 %v4064_v49, %v4064_v49  ;;  %v4624_v56 = vpack.c.bf16 %v4176_v44, %v4176_v44  ;;  %v2717_v57 = vmul.f32 %v6219_v50, %v1615_v53  ;;  %v2829_v58 = vmul.f32 %v6219_v50, %v1895_v54 }
 0x10f   : > { %5184 = vst.msk [vmem:[%s5910_s9 + $0x3b4] sm:$0xf] %vm4946_vm3, %v4735_v47  ;;  %v3392_v60 = vadd.f32 %v6230_v59, %v2940_v51  ;;  %v3504_v61 = vadd.f32 %v6230_v59, %v3052_v52 }
 0x110   : > { %5296 = vst.msk [vmem:[%s5910_s9 + $0x574] sm:$0xf] %vm4946_vm3, %v4847_v48  ;;  %v3169_v1 = vadd.f32 %v6230_v59, %v2717_v57  ;;  %v3281_v2 = vadd.f32 %v6230_v59, %v2829_v58 }
 0x111   : > { %4961 = vst.msk [vmem:[%s5910_s9 + $0x38] sm:$0xf] %vm4946_vm3, %v4512_v55  ;;  %v3840_v6 = vmax.f32 %v3392_v60, 0.0  ;;  %v3952_v7 = vmax.f32 %v3504_v61, 0.0  ;;  %v236_v60 = vld [vmem:[%s5782_s27 + $0x110] sm:$0xff]  ;;  %v237_v61 = vld [vmem:[%s5782_s27 + $0x118] sm:$0xff] }
 0x112   : > { %5073 = vst.msk [vmem:[%s5910_s9 + $0x1f8] sm:$0xf] %vm4946_vm3, %v4624_v56  ;;  %v3617_v10 = vmax.f32 %v3169_v1, 0.0  ;;  %v3729_v11 = vmax.f32 %v3281_v2, 0.0  ;;  %v349_v1 = vld [vmem:[%s5782_s27 + $0x498] sm:$0xff]  ;;  %v460_v2 = vld [vmem:[%s5782_s27 + $0x810] sm:$0xff] }
 0x113   : > { %v4288_v12 = vmin.f32 %v3840_v6, 6.0  ;;  %v4400_v13 = vmin.f32 %v3952_v7, 6.0  ;;  %v572_v6 = vld [vmem:[%s5782_s27 + $0xb90] sm:$0xff]  ;;  %v573_v7 = vld [vmem:[%s5782_s27 + $0xb98] sm:$0xff] }
 0x114   : > { %v4065_v16 = vmin.f32 %v3617_v10, 6.0  ;;  %v4177_v17 = vmin.f32 %v3729_v11, 6.0  ;;  %v2175_v18 = vpop.f32.mrf.mxu2  ;;  %v2455_v19 = vpop.f32.mrf.mxu3 }
 0x115   : > { %v4736_v22 = vpack.c.bf16 %v4288_v12, %v4288_v12  ;;  %v4848_v23 = vpack.c.bf16 %v4400_v13, %v4400_v13  ;;  %v2941_v24 = vmul.f32 %v6219_v50, %v2175_v18  ;;  %v3053_v25 = vmul.f32 %v6219_v50, %v2455_v19  ;;  %v1618_v26 = vpop.f32.mrf.mxu0  ;;  %v1898_v27 = vpop.f32.mrf.mxu1 }
 0x116   : > { %v4513_v28 = vpack.c.bf16 %v4065_v16, %v4065_v16  ;;  %v4625_v29 = vpack.c.bf16 %v4177_v17, %v4177_v17  ;;  %v2718_v30 = vmul.f32 %v6219_v50, %v1618_v26  ;;  %v2830_v31 = vmul.f32 %v6219_v50, %v1898_v27 }
 0x117   : > { %5185 = vst.msk [vmem:[%s5910_s9 + $0x3b8] sm:$0xf] %vm4946_vm3, %v4736_v22  ;;  %v3393_v32 = vadd.f32 %v6230_v59, %v2941_v24  ;;  %v3505_v33 = vadd.f32 %v6230_v59, %v3053_v25  ;;  %v667_v12 = vpack.c.bf16 %v237_v61, %v236_v60  ;;  %v723_v13 = vpack.c.bf16 %v349_v1, %v348_v62  ;;  %v350_v60 = vld [vmem:[%s5782_s27 + $0x4a0] sm:$0xff]  ;;  %v463_v1 = vld [vmem:[%s5782_s27 + $0x828] sm:$0xff] }
 0x118   : > { %5297 = vst.msk [vmem:[%s5910_s9 + $0x578] sm:$0xf] %vm4946_vm3, %v4848_v23  ;;  %v3170_v34 = vadd.f32 %v6230_v59, %v2718_v30  ;;  %v3282_v35 = vadd.f32 %v6230_v59, %v2830_v31  ;;  %5482 = vmatmul.msk.bf16.gmra.mxu0 %vm889_vm2, %v666_v14  ;;  %5538 = vmatmul.msk.bf16.gmra.mxu1 %vm889_vm2, %v722_v15 }
 0x119   : > { %4962 = vst.msk [vmem:[%s5910_s9 + $0x3c] sm:$0xf] %vm4946_vm3, %v4513_v28  ;;  %v3841_v36 = vmax.f32 %v3393_v32, 0.0  ;;  %v3953_v37 = vmax.f32 %v3505_v33, 0.0  ;;  %5594 = vmatmul.msk.bf16.gmra.mxu2 %vm889_vm2, %v778_v20  ;;  %5650 = vmatmul.msk.bf16.gmra.mxu3 %vm889_vm2, %v834_v21  ;;  %v779_v18 = vpack.c.bf16 %v461_v3, %v460_v2  ;;  %v835_v19 = vpack.c.bf16 %v573_v7, %v572_v6 }
 0x11a   : > { %5074 = vst.msk [vmem:[%s5910_s9 + $0x1fc] sm:$0xf] %vm4946_vm3, %v4625_v29  ;;  %v3618_v38 = vmax.f32 %v3170_v34, 0.0  ;;  %v3730_v40 = vmax.f32 %v3282_v35, 0.0 }
 0x11b   : > { %v4289_v39 = vmin.f32 %v3841_v36, 6.0  ;;  %v4401_v41 = vmin.f32 %v3953_v37, 6.0 }
 0x11c   : > { %v4066_v42 = vmin.f32 %v3618_v38, 6.0  ;;  %v4178_v43 = vmin.f32 %v3730_v40, 6.0  ;;  %v2178_v49 = vpop.f32.mrf.mxu2  ;;  %v2458_v44 = vpop.f32.mrf.mxu3 }
 0x11d   : > { %v4737_v45 = vpack.c.bf16 %v4289_v39, %v4289_v39  ;;  %v4849_v46 = vpack.c.bf16 %v4401_v41, %v4401_v41  ;;  %v2942_v47 = vmul.f32 %v6219_v50, %v2178_v49  ;;  %v3054_v48 = vmul.f32 %v6219_v50, %v2458_v44  ;;  %v1620_v51 = vpop.f32.mrf.mxu0  ;;  %v1900_v52 = vpop.f32.mrf.mxu1 }
 0x11e   : > { %v4514_v53 = vpack.c.bf16 %v4066_v42, %v4066_v42  ;;  %v4626_v54 = vpack.c.bf16 %v4178_v43, %v4178_v43  ;;  %v2719_v55 = vmul.f32 %v6219_v50, %v1620_v51  ;;  %v2831_v56 = vmul.f32 %v6219_v50, %v1900_v52 }
 0x11f   : > { %5186 = vst.msk [vmem:[%s5910_s9 + $0x3bc] sm:$0xf] %vm4946_vm3, %v4737_v45  ;;  %v3394_v57 = vadd.f32 %v6230_v59, %v2942_v47  ;;  %v3506_v58 = vadd.f32 %v6230_v59, %v3054_v48 }
 0x120   : > { %5298 = vst.msk [vmem:[%s5910_s9 + $0x57c] sm:$0xf] %vm4946_vm3, %v4849_v46  ;;  %v3171_v63 = vadd.f32 %v6230_v59, %v2719_v55  ;;  %v3283_v0 = vadd.f32 %v6230_v59, %v2831_v56 }
 0x121   : > { %4963 = vst.msk [vmem:[%s5910_s9 + $0x40] sm:$0xf] %vm4946_vm3, %v4514_v53  ;;  %v3842_v4 = vmax.f32 %v3394_v57, 0.0  ;;  %v3954_v5 = vmax.f32 %v3506_v58, 0.0  ;;  %v238_v57 = vld [vmem:[%s5782_s27 + $0x120] sm:$0xff]  ;;  %v239_v58 = vld [vmem:[%s5782_s27 + $0x128] sm:$0xff] }
 0x122   : > { %5075 = vst.msk [vmem:[%s5910_s9 + $0x200] sm:$0xf] %vm4946_vm3, %v4626_v54  ;;  %v3619_v8 = vmax.f32 %v3171_v63, 0.0  ;;  %v3731_v9 = vmax.f32 %v3283_v0, 0.0  ;;  %v351_v63 = vld [vmem:[%s5782_s27 + $0x4a8] sm:$0xff]  ;;  %v462_v0 = vld [vmem:[%s5782_s27 + $0x820] sm:$0xff] }
 0x123   : > { %v4290_v10 = vmin.f32 %v3842_v4, 6.0  ;;  %v4402_v11 = vmin.f32 %v3954_v5, 6.0  ;;  %v574_v4 = vld [vmem:[%s5782_s27 + $0xba0] sm:$0xff]  ;;  %v575_v5 = vld [vmem:[%s5782_s27 + $0xba8] sm:$0xff] }
 0x124   : > { %v4067_v14 = vmin.f32 %v3619_v8, 6.0  ;;  %v4179_v15 = vmin.f32 %v3731_v9, 6.0  ;;  %v2180_v16 = vpop.f32.mrf.mxu2  ;;  %v2460_v17 = vpop.f32.mrf.mxu3 }
 0x125   : > { %v4738_v20 = vpack.c.bf16 %v4290_v10, %v4290_v10  ;;  %v4850_v21 = vpack.c.bf16 %v4402_v11, %v4402_v11  ;;  %v2943_v22 = vmul.f32 %v6219_v50, %v2180_v16  ;;  %v3055_v23 = vmul.f32 %v6219_v50, %v2460_v17  ;;  %v1623_v24 = vpop.f32.mrf.mxu0  ;;  %v1903_v25 = vpop.f32.mrf.mxu1 }
 0x126   : > { %v4515_v26 = vpack.c.bf16 %v4067_v14, %v4067_v14  ;;  %v4627_v27 = vpack.c.bf16 %v4179_v15, %v4179_v15  ;;  %v2720_v28 = vmul.f32 %v6219_v50, %v1623_v24  ;;  %v2832_v29 = vmul.f32 %v6219_v50, %v1903_v25 }
 0x127   : > { %5187 = vst.msk [vmem:[%s5910_s9 + $0x3c0] sm:$0xf] %vm4946_vm3, %v4738_v20  ;;  %v3395_v30 = vadd.f32 %v6230_v59, %v2943_v22  ;;  %v3507_v31 = vadd.f32 %v6230_v59, %v3055_v23  ;;  %v668_v10 = vpack.c.bf16 %v239_v58, %v238_v57  ;;  %v724_v11 = vpack.c.bf16 %v351_v63, %v350_v60  ;;  %v352_v57 = vld [vmem:[%s5782_s27 + $0x4b0] sm:$0xff]  ;;  %v465_v63 = vld [vmem:[%s5782_s27 + $0x838] sm:$0xff] }
 0x128   : > { %5299 = vst.msk [vmem:[%s5910_s9 + $0x580] sm:$0xf] %vm4946_vm3, %v4850_v21  ;;  %v3172_v32 = vadd.f32 %v6230_v59, %v2720_v28  ;;  %v3284_v33 = vadd.f32 %v6230_v59, %v2832_v29  ;;  %5483 = vmatmul.msk.bf16.gmra.mxu0 %vm889_vm2, %v667_v12  ;;  %5539 = vmatmul.msk.bf16.gmra.mxu1 %vm889_vm2, %v723_v13 }
 0x129   : > { %4964 = vst.msk [vmem:[%s5910_s9 + $0x44] sm:$0xf] %vm4946_vm3, %v4515_v26  ;;  %v3843_v34 = vmax.f32 %v3395_v30, 0.0  ;;  %v3955_v35 = vmax.f32 %v3507_v31, 0.0  ;;  %5595 = vmatmul.msk.bf16.gmra.mxu2 %vm889_vm2, %v779_v18  ;;  %5651 = vmatmul.msk.bf16.gmra.mxu3 %vm889_vm2, %v835_v19  ;;  %v780_v16 = vpack.c.bf16 %v463_v1, %v462_v0  ;;  %v836_v17 = vpack.c.bf16 %v575_v5, %v574_v4 }
 0x12a   : > { %5076 = vst.msk [vmem:[%s5910_s9 + $0x204] sm:$0xf] %vm4946_vm3, %v4627_v27  ;;  %v3620_v36 = vmax.f32 %v3172_v32, 0.0  ;;  %v3732_v37 = vmax.f32 %v3284_v33, 0.0 }
 0x12b   : > { %v4291_v38 = vmin.f32 %v3843_v34, 6.0  ;;  %v4403_v40 = vmin.f32 %v3955_v35, 6.0 }
 0x12c   : > { %v4068_v39 = vmin.f32 %v3620_v36, 6.0  ;;  %v4180_v41 = vmin.f32 %v3732_v37, 6.0  ;;  %v2183_v42 = vpop.f32.mrf.mxu2  ;;  %v2463_v43 = vpop.f32.mrf.mxu3 }
 0x12d   : > { %v4739_v49 = vpack.c.bf16 %v4291_v38, %v4291_v38  ;;  %v4851_v44 = vpack.c.bf16 %v4403_v40, %v4403_v40  ;;  %v2944_v45 = vmul.f32 %v6219_v50, %v2183_v42  ;;  %v3056_v46 = vmul.f32 %v6219_v50, %v2463_v43  ;;  %v1625_v47 = vpop.f32.mrf.mxu0  ;;  %v1905_v48 = vpop.f32.mrf.mxu1 }
 0x12e   : > { %v4516_v51 = vpack.c.bf16 %v4068_v39, %v4068_v39  ;;  %v4628_v52 = vpack.c.bf16 %v4180_v41, %v4180_v41  ;;  %v2721_v53 = vmul.f32 %v6219_v50, %v1625_v47  ;;  %v2833_v54 = vmul.f32 %v6219_v50, %v1905_v48 }
 0x12f   : > { %5188 = vst.msk [vmem:[%s5910_s9 + $0x3c4] sm:$0xf] %vm4946_vm3, %v4739_v49  ;;  %v3396_v55 = vadd.f32 %v6230_v59, %v2944_v45  ;;  %v3508_v56 = vadd.f32 %v6230_v59, %v3056_v46 }
 0x130   : > { %5300 = vst.msk [vmem:[%s5910_s9 + $0x584] sm:$0xf] %vm4946_vm3, %v4851_v44  ;;  %v3173_v61 = vadd.f32 %v6230_v59, %v2721_v53  ;;  %v3285_v62 = vadd.f32 %v6230_v59, %v2833_v54 }
 0x131   : > { %4965 = vst.msk [vmem:[%s5910_s9 + $0x48] sm:$0xf] %vm4946_vm3, %v4516_v51  ;;  %v3844_v2 = vmax.f32 %v3396_v55, 0.0  ;;  %v3956_v3 = vmax.f32 %v3508_v56, 0.0  ;;  %v240_v55 = vld [vmem:[%s5782_s27 + $0x130] sm:$0xff]  ;;  %v241_v56 = vld [vmem:[%s5782_s27 + $0x138] sm:$0xff] }
 0x132   : > { %5077 = vst.msk [vmem:[%s5910_s9 + $0x208] sm:$0xf] %vm4946_vm3, %v4628_v52  ;;  %v3621_v6 = vmax.f32 %v3173_v61, 0.0  ;;  %v3733_v7 = vmax.f32 %v3285_v62, 0.0  ;;  %v353_v61 = vld [vmem:[%s5782_s27 + $0x4b8] sm:$0xff]  ;;  %v464_v62 = vld [vmem:[%s5782_s27 + $0x830] sm:$0xff] }
 0x133   : > { %v4292_v8 = vmin.f32 %v3844_v2, 6.0  ;;  %v4404_v9 = vmin.f32 %v3956_v3, 6.0  ;;  %v576_v2 = vld [vmem:[%s5782_s27 + $0xbb0] sm:$0xff]  ;;  %v577_v3 = vld [vmem:[%s5782_s27 + $0xbb8] sm:$0xff] }
 0x134   : > { %v4069_v12 = vmin.f32 %v3621_v6, 6.0  ;;  %v4181_v13 = vmin.f32 %v3733_v7, 6.0  ;;  %v2185_v14 = vpop.f32.mrf.mxu2  ;;  %v2465_v15 = vpop.f32.mrf.mxu3 }
 0x135   : > { %v4740_v18 = vpack.c.bf16 %v4292_v8, %v4292_v8  ;;  %v4852_v19 = vpack.c.bf16 %v4404_v9, %v4404_v9  ;;  %v2945_v20 = vmul.f32 %v6219_v50, %v2185_v14  ;;  %v3057_v21 = vmul.f32 %v6219_v50, %v2465_v15  ;;  %v1628_v22 = vpop.f32.mrf.mxu0  ;;  %v1908_v23 = vpop.f32.mrf.mxu1 }
 0x136   : > { %v4517_v24 = vpack.c.bf16 %v4069_v12, %v4069_v12  ;;  %v4629_v25 = vpack.c.bf16 %v4181_v13, %v4181_v13  ;;  %v2722_v26 = vmul.f32 %v6219_v50, %v1628_v22  ;;  %v2834_v27 = vmul.f32 %v6219_v50, %v1908_v23 }
 0x137   : > { %5189 = vst.msk [vmem:[%s5910_s9 + $0x3c8] sm:$0xf] %vm4946_vm3, %v4740_v18  ;;  %v3397_v28 = vadd.f32 %v6230_v59, %v2945_v20  ;;  %v3509_v29 = vadd.f32 %v6230_v59, %v3057_v21  ;;  %v669_v8 = vpack.c.bf16 %v241_v56, %v240_v55  ;;  %v725_v9 = vpack.c.bf16 %v353_v61, %v352_v57  ;;  %v354_v55 = vld [vmem:[%s5782_s27 + $0x4c0] sm:$0xff]  ;;  %v467_v61 = vld [vmem:[%s5782_s27 + $0x848] sm:$0xff] }
 0x138   : > { %5301 = vst.msk [vmem:[%s5910_s9 + $0x588] sm:$0xf] %vm4946_vm3, %v4852_v19  ;;  %v3174_v30 = vadd.f32 %v6230_v59, %v2722_v26  ;;  %v3286_v31 = vadd.f32 %v6230_v59, %v2834_v27  ;;  %5484 = vmatmul.msk.bf16.gmra.mxu0 %vm889_vm2, %v668_v10  ;;  %5540 = vmatmul.msk.bf16.gmra.mxu1 %vm889_vm2, %v724_v11 }
 0x139   : > { %4966 = vst.msk [vmem:[%s5910_s9 + $0x4c] sm:$0xf] %vm4946_vm3, %v4517_v24  ;;  %v3845_v32 = vmax.f32 %v3397_v28, 0.0  ;;  %v3957_v33 = vmax.f32 %v3509_v29, 0.0  ;;  %5596 = vmatmul.msk.bf16.gmra.mxu2 %vm889_vm2, %v780_v16  ;;  %5652 = vmatmul.msk.bf16.gmra.mxu3 %vm889_vm2, %v836_v17  ;;  %v781_v14 = vpack.c.bf16 %v465_v63, %v464_v62  ;;  %v837_v15 = vpack.c.bf16 %v577_v3, %v576_v2 }
 0x13a   : > { %5078 = vst.msk [vmem:[%s5910_s9 + $0x20c] sm:$0xf] %vm4946_vm3, %v4629_v25  ;;  %v3622_v34 = vmax.f32 %v3174_v30, 0.0  ;;  %v3734_v35 = vmax.f32 %v3286_v31, 0.0 }
 0x13b   : > { %v4293_v36 = vmin.f32 %v3845_v32, 6.0  ;;  %v4405_v37 = vmin.f32 %v3957_v33, 6.0 }
 0x13c   : > { %v4070_v38 = vmin.f32 %v3622_v34, 6.0  ;;  %v4182_v40 = vmin.f32 %v3734_v35, 6.0  ;;  %v2188_v39 = vpop.f32.mrf.mxu2  ;;  %v2468_v41 = vpop.f32.mrf.mxu3 }
 0x13d   : > { %v4741_v42 = vpack.c.bf16 %v4293_v36, %v4293_v36  ;;  %v4853_v43 = vpack.c.bf16 %v4405_v37, %v4405_v37  ;;  %v2946_v49 = vmul.f32 %v6219_v50, %v2188_v39  ;;  %v3058_v44 = vmul.f32 %v6219_v50, %v2468_v41  ;;  %v1630_v45 = vpop.f32.mrf.mxu0  ;;  %v1910_v46 = vpop.f32.mrf.mxu1 }
 0x13e   : > { %v4518_v47 = vpack.c.bf16 %v4070_v38, %v4070_v38  ;;  %v4630_v48 = vpack.c.bf16 %v4182_v40, %v4182_v40  ;;  %v2723_v51 = vmul.f32 %v6219_v50, %v1630_v45  ;;  %v2835_v52 = vmul.f32 %v6219_v50, %v1910_v46 }
 0x13f   : > { %5190 = vst.msk [vmem:[%s5910_s9 + $0x3cc] sm:$0xf] %vm4946_vm3, %v4741_v42  ;;  %v3398_v53 = vadd.f32 %v6230_v59, %v2946_v49  ;;  %v3510_v54 = vadd.f32 %v6230_v59, %v3058_v44 }
 0x140   : > { %5302 = vst.msk [vmem:[%s5910_s9 + $0x58c] sm:$0xf] %vm4946_vm3, %v4853_v43  ;;  %v3175_v58 = vadd.f32 %v6230_v59, %v2723_v51  ;;  %v3287_v60 = vadd.f32 %v6230_v59, %v2835_v52 }
 0x141   : > { %4967 = vst.msk [vmem:[%s5910_s9 + $0x50] sm:$0xf] %vm4946_vm3, %v4518_v47  ;;  %v3846_v0 = vmax.f32 %v3398_v53, 0.0  ;;  %v3958_v1 = vmax.f32 %v3510_v54, 0.0  ;;  %v242_v53 = vld [vmem:[%s5782_s27 + $0x140] sm:$0xff]  ;;  %v243_v54 = vld [vmem:[%s5782_s27 + $0x148] sm:$0xff] }
 0x142   : > { %5079 = vst.msk [vmem:[%s5910_s9 + $0x210] sm:$0xf] %vm4946_vm3, %v4630_v48  ;;  %v3623_v4 = vmax.f32 %v3175_v58, 0.0  ;;  %v3735_v5 = vmax.f32 %v3287_v60, 0.0  ;;  %v355_v58 = vld [vmem:[%s5782_s27 + $0x4c8] sm:$0xff]  ;;  %v466_v60 = vld [vmem:[%s5782_s27 + $0x840] sm:$0xff] }
 0x143   : > { %v4294_v6 = vmin.f32 %v3846_v0, 6.0  ;;  %v4406_v7 = vmin.f32 %v3958_v1, 6.0  ;;  %v578_v0 = vld [vmem:[%s5782_s27 + $0xbc0] sm:$0xff]  ;;  %v579_v1 = vld [vmem:[%s5782_s27 + $0xbc8] sm:$0xff] }
 0x144   : > { %v4071_v10 = vmin.f32 %v3623_v4, 6.0  ;;  %v4183_v11 = vmin.f32 %v3735_v5, 6.0  ;;  %v2190_v12 = vpop.f32.mrf.mxu2  ;;  %v2470_v13 = vpop.f32.mrf.mxu3 }
 0x145   : > { %v4742_v16 = vpack.c.bf16 %v4294_v6, %v4294_v6  ;;  %v4854_v17 = vpack.c.bf16 %v4406_v7, %v4406_v7  ;;  %v2947_v18 = vmul.f32 %v6219_v50, %v2190_v12  ;;  %v3059_v19 = vmul.f32 %v6219_v50, %v2470_v13  ;;  %v1633_v20 = vpop.f32.mrf.mxu0  ;;  %v1913_v21 = vpop.f32.mrf.mxu1 }
 0x146   : > { %v4519_v22 = vpack.c.bf16 %v4071_v10, %v4071_v10  ;;  %v4631_v23 = vpack.c.bf16 %v4183_v11, %v4183_v11  ;;  %v2724_v24 = vmul.f32 %v6219_v50, %v1633_v20  ;;  %v2836_v25 = vmul.f32 %v6219_v50, %v1913_v21 }
 0x147   : > { %5191 = vst.msk [vmem:[%s5910_s9 + $0x3d0] sm:$0xf] %vm4946_vm3, %v4742_v16  ;;  %v3399_v26 = vadd.f32 %v6230_v59, %v2947_v18  ;;  %v3511_v27 = vadd.f32 %v6230_v59, %v3059_v19  ;;  %v670_v6 = vpack.c.bf16 %v243_v54, %v242_v53  ;;  %v726_v7 = vpack.c.bf16 %v355_v58, %v354_v55  ;;  %v356_v53 = vld [vmem:[%s5782_s27 + $0x4d0] sm:$0xff]  ;;  %v469_v58 = vld [vmem:[%s5782_s27 + $0x858] sm:$0xff] }
 0x148   : > { %5303 = vst.msk [vmem:[%s5910_s9 + $0x590] sm:$0xf] %vm4946_vm3, %v4854_v17  ;;  %v3176_v28 = vadd.f32 %v6230_v59, %v2724_v24  ;;  %v3288_v29 = vadd.f32 %v6230_v59, %v2836_v25  ;;  %5485 = vmatmul.msk.bf16.gmra.mxu0 %vm889_vm2, %v669_v8  ;;  %5541 = vmatmul.msk.bf16.gmra.mxu1 %vm889_vm2, %v725_v9 }
 0x149   : > { %4968 = vst.msk [vmem:[%s5910_s9 + $0x54] sm:$0xf] %vm4946_vm3, %v4519_v22  ;;  %v3847_v30 = vmax.f32 %v3399_v26, 0.0  ;;  %v3959_v31 = vmax.f32 %v3511_v27, 0.0  ;;  %5597 = vmatmul.msk.bf16.gmra.mxu2 %vm889_vm2, %v781_v14  ;;  %5653 = vmatmul.msk.bf16.gmra.mxu3 %vm889_vm2, %v837_v15  ;;  %v782_v12 = vpack.c.bf16 %v467_v61, %v466_v60  ;;  %v838_v13 = vpack.c.bf16 %v579_v1, %v578_v0 }
 0x14a   : > { %5080 = vst.msk [vmem:[%s5910_s9 + $0x214] sm:$0xf] %vm4946_vm3, %v4631_v23  ;;  %v3624_v32 = vmax.f32 %v3176_v28, 0.0  ;;  %v3736_v33 = vmax.f32 %v3288_v29, 0.0 }
 0x14b   : > { %v4295_v34 = vmin.f32 %v3847_v30, 6.0  ;;  %v4407_v35 = vmin.f32 %v3959_v31, 6.0 }
 0x14c   : > { %v4072_v36 = vmin.f32 %v3624_v32, 6.0  ;;  %v4184_v37 = vmin.f32 %v3736_v33, 6.0  ;;  %v2193_v38 = vpop.f32.mrf.mxu2  ;;  %v2473_v40 = vpop.f32.mrf.mxu3 }
 0x14d   : > { %v4743_v39 = vpack.c.bf16 %v4295_v34, %v4295_v34  ;;  %v4855_v41 = vpack.c.bf16 %v4407_v35, %v4407_v35  ;;  %v2948_v42 = vmul.f32 %v6219_v50, %v2193_v38  ;;  %v3060_v43 = vmul.f32 %v6219_v50, %v2473_v40  ;;  %v1635_v49 = vpop.f32.mrf.mxu0  ;;  %v1915_v44 = vpop.f32.mrf.mxu1 }
 0x14e   : > { %v4520_v45 = vpack.c.bf16 %v4072_v36, %v4072_v36  ;;  %v4632_v46 = vpack.c.bf16 %v4184_v37, %v4184_v37  ;;  %v2725_v47 = vmul.f32 %v6219_v50, %v1635_v49  ;;  %v2837_v48 = vmul.f32 %v6219_v50, %v1915_v44 }
 0x14f   : > { %5192 = vst.msk [vmem:[%s5910_s9 + $0x3d4] sm:$0xf] %vm4946_vm3, %v4743_v39  ;;  %v3400_v51 = vadd.f32 %v6230_v59, %v2948_v42  ;;  %v3512_v52 = vadd.f32 %v6230_v59, %v3060_v43 }
 0x150   : > { %5304 = vst.msk [vmem:[%s5910_s9 + $0x594] sm:$0xf] %vm4946_vm3, %v4855_v41  ;;  %v3177_v56 = vadd.f32 %v6230_v59, %v2725_v47  ;;  %v3289_v57 = vadd.f32 %v6230_v59, %v2837_v48 }
 0x151   : > { %4969 = vst.msk [vmem:[%s5910_s9 + $0x58] sm:$0xf] %vm4946_vm3, %v4520_v45  ;;  %v3848_v62 = vmax.f32 %v3400_v51, 0.0  ;;  %v3960_v63 = vmax.f32 %v3512_v52, 0.0  ;;  %v244_v51 = vld [vmem:[%s5782_s27 + $0x150] sm:$0xff]  ;;  %v245_v52 = vld [vmem:[%s5782_s27 + $0x158] sm:$0xff] }
 0x152   : > { %5081 = vst.msk [vmem:[%s5910_s9 + $0x218] sm:$0xf] %vm4946_vm3, %v4632_v46  ;;  %v3625_v2 = vmax.f32 %v3177_v56, 0.0  ;;  %v3737_v3 = vmax.f32 %v3289_v57, 0.0  ;;  %v357_v56 = vld [vmem:[%s5782_s27 + $0x4d8] sm:$0xff]  ;;  %v468_v57 = vld [vmem:[%s5782_s27 + $0x850] sm:$0xff] }
 0x153   : > { %v4296_v4 = vmin.f32 %v3848_v62, 6.0  ;;  %v4408_v5 = vmin.f32 %v3960_v63, 6.0  ;;  %v580_v62 = vld [vmem:[%s5782_s27 + $0xbd0] sm:$0xff]  ;;  %v581_v63 = vld [vmem:[%s5782_s27 + $0xbd8] sm:$0xff] }
 0x154   : > { %v4073_v8 = vmin.f32 %v3625_v2, 6.0  ;;  %v4185_v9 = vmin.f32 %v3737_v3, 6.0  ;;  %v2195_v10 = vpop.f32.mrf.mxu2  ;;  %v2475_v11 = vpop.f32.mrf.mxu3 }
 0x155   : > { %v4744_v14 = vpack.c.bf16 %v4296_v4, %v4296_v4  ;;  %v4856_v15 = vpack.c.bf16 %v4408_v5, %v4408_v5  ;;  %v2949_v16 = vmul.f32 %v6219_v50, %v2195_v10  ;;  %v3061_v17 = vmul.f32 %v6219_v50, %v2475_v11  ;;  %v1638_v18 = vpop.f32.mrf.mxu0  ;;  %v1918_v19 = vpop.f32.mrf.mxu1 }
 0x156   : > { %v4521_v20 = vpack.c.bf16 %v4073_v8, %v4073_v8  ;;  %v4633_v21 = vpack.c.bf16 %v4185_v9, %v4185_v9  ;;  %v2726_v22 = vmul.f32 %v6219_v50, %v1638_v18  ;;  %v2838_v23 = vmul.f32 %v6219_v50, %v1918_v19 }
 0x157   : > { %5193 = vst.msk [vmem:[%s5910_s9 + $0x3d8] sm:$0xf] %vm4946_vm3, %v4744_v14  ;;  %v3401_v24 = vadd.f32 %v6230_v59, %v2949_v16  ;;  %v3513_v25 = vadd.f32 %v6230_v59, %v3061_v17  ;;  %v671_v4 = vpack.c.bf16 %v245_v52, %v244_v51  ;;  %v727_v5 = vpack.c.bf16 %v357_v56, %v356_v53  ;;  %v358_v51 = vld [vmem:[%s5782_s27 + $0x4e0] sm:$0xff]  ;;  %v471_v56 = vld [vmem:[%s5782_s27 + $0x868] sm:$0xff] }
 0x158   : > { %5305 = vst.msk [vmem:[%s5910_s9 + $0x598] sm:$0xf] %vm4946_vm3, %v4856_v15  ;;  %v3178_v26 = vadd.f32 %v6230_v59, %v2726_v22  ;;  %v3290_v27 = vadd.f32 %v6230_v59, %v2838_v23  ;;  %5486 = vmatmul.msk.bf16.gmra.mxu0 %vm889_vm2, %v670_v6  ;;  %5542 = vmatmul.msk.bf16.gmra.mxu1 %vm889_vm2, %v726_v7 }
 0x159   : > { %4970 = vst.msk [vmem:[%s5910_s9 + $0x5c] sm:$0xf] %vm4946_vm3, %v4521_v20  ;;  %v3849_v28 = vmax.f32 %v3401_v24, 0.0  ;;  %v3961_v29 = vmax.f32 %v3513_v25, 0.0  ;;  %5598 = vmatmul.msk.bf16.gmra.mxu2 %vm889_vm2, %v782_v12  ;;  %5654 = vmatmul.msk.bf16.gmra.mxu3 %vm889_vm2, %v838_v13  ;;  %v783_v10 = vpack.c.bf16 %v469_v58, %v468_v57  ;;  %v839_v11 = vpack.c.bf16 %v581_v63, %v580_v62 }
 0x15a   : > { %5082 = vst.msk [vmem:[%s5910_s9 + $0x21c] sm:$0xf] %vm4946_vm3, %v4633_v21  ;;  %v3626_v30 = vmax.f32 %v3178_v26, 0.0  ;;  %v3738_v31 = vmax.f32 %v3290_v27, 0.0 }
 0x15b   : > { %v4297_v32 = vmin.f32 %v3849_v28, 6.0  ;;  %v4409_v33 = vmin.f32 %v3961_v29, 6.0 }
 0x15c   : > { %v4074_v34 = vmin.f32 %v3626_v30, 6.0  ;;  %v4186_v35 = vmin.f32 %v3738_v31, 6.0  ;;  %v2198_v36 = vpop.f32.mrf.mxu2  ;;  %v2478_v37 = vpop.f32.mrf.mxu3 }
 0x15d   : > { %v4745_v38 = vpack.c.bf16 %v4297_v32, %v4297_v32  ;;  %v4857_v40 = vpack.c.bf16 %v4409_v33, %v4409_v33  ;;  %v2950_v39 = vmul.f32 %v6219_v50, %v2198_v36  ;;  %v3062_v41 = vmul.f32 %v6219_v50, %v2478_v37  ;;  %v1640_v42 = vpop.f32.mrf.mxu0  ;;  %v1920_v43 = vpop.f32.mrf.mxu1 }
 0x15e   : > { %v4522_v49 = vpack.c.bf16 %v4074_v34, %v4074_v34  ;;  %v4634_v44 = vpack.c.bf16 %v4186_v35, %v4186_v35  ;;  %v2727_v45 = vmul.f32 %v6219_v50, %v1640_v42  ;;  %v2839_v46 = vmul.f32 %v6219_v50, %v1920_v43 }
 0x15f   : > { %5194 = vst.msk [vmem:[%s5910_s9 + $0x3dc] sm:$0xf] %vm4946_vm3, %v4745_v38  ;;  %v3402_v47 = vadd.f32 %v6230_v59, %v2950_v39  ;;  %v3514_v48 = vadd.f32 %v6230_v59, %v3062_v41 }
 0x160   : > { %5306 = vst.msk [vmem:[%s5910_s9 + $0x59c] sm:$0xf] %vm4946_vm3, %v4857_v40  ;;  %v3179_v54 = vadd.f32 %v6230_v59, %v2727_v45  ;;  %v3291_v55 = vadd.f32 %v6230_v59, %v2839_v46 }
 0x161   : > { %4971 = vst.msk [vmem:[%s5910_s9 + $0x60] sm:$0xf] %vm4946_vm3, %v4522_v49  ;;  %v3850_v60 = vmax.f32 %v3402_v47, 0.0  ;;  %v3962_v61 = vmax.f32 %v3514_v48, 0.0  ;;  %v246_v47 = vld [vmem:[%s5782_s27 + $0x160] sm:$0xff]  ;;  %v247_v48 = vld [vmem:[%s5782_s27 + $0x168] sm:$0xff] }
 0x162   : > { %5083 = vst.msk [vmem:[%s5910_s9 + $0x220] sm:$0xf] %vm4946_vm3, %v4634_v44  ;;  %v3627_v0 = vmax.f32 %v3179_v54, 0.0  ;;  %v3739_v1 = vmax.f32 %v3291_v55, 0.0  ;;  %v359_v54 = vld [vmem:[%s5782_s27 + $0x4e8] sm:$0xff]  ;;  %v470_v55 = vld [vmem:[%s5782_s27 + $0x860] sm:$0xff] }
 0x163   : > { %v4298_v2 = vmin.f32 %v3850_v60, 6.0  ;;  %v4410_v3 = vmin.f32 %v3962_v61, 6.0  ;;  %v582_v60 = vld [vmem:[%s5782_s27 + $0xbe0] sm:$0xff]  ;;  %v583_v61 = vld [vmem:[%s5782_s27 + $0xbe8] sm:$0xff] }
 0x164   : > { %v4075_v6 = vmin.f32 %v3627_v0, 6.0  ;;  %v4187_v7 = vmin.f32 %v3739_v1, 6.0  ;;  %v2200_v8 = vpop.f32.mrf.mxu2  ;;  %v2480_v9 = vpop.f32.mrf.mxu3 }
 0x165   : > { %v4746_v12 = vpack.c.bf16 %v4298_v2, %v4298_v2  ;;  %v4858_v13 = vpack.c.bf16 %v4410_v3, %v4410_v3  ;;  %v2951_v14 = vmul.f32 %v6219_v50, %v2200_v8  ;;  %v3063_v15 = vmul.f32 %v6219_v50, %v2480_v9  ;;  %v1643_v16 = vpop.f32.mrf.mxu0  ;;  %v1923_v17 = vpop.f32.mrf.mxu1 }
 0x166   : > { %v4523_v18 = vpack.c.bf16 %v4075_v6, %v4075_v6  ;;  %v4635_v19 = vpack.c.bf16 %v4187_v7, %v4187_v7  ;;  %v2728_v20 = vmul.f32 %v6219_v50, %v1643_v16  ;;  %v2840_v21 = vmul.f32 %v6219_v50, %v1923_v17 }
 0x167   : > { %5195 = vst.msk [vmem:[%s5910_s9 + $0x3e0] sm:$0xf] %vm4946_vm3, %v4746_v12  ;;  %v3403_v22 = vadd.f32 %v6230_v59, %v2951_v14  ;;  %v3515_v23 = vadd.f32 %v6230_v59, %v3063_v15  ;;  %v672_v2 = vpack.c.bf16 %v247_v48, %v246_v47  ;;  %v728_v3 = vpack.c.bf16 %v359_v54, %v358_v51  ;;  %v360_v47 = vld [vmem:[%s5782_s27 + $0x4f0] sm:$0xff] }
 0x168   : > { %5307 = vst.msk [vmem:[%s5910_s9 + $0x5a0] sm:$0xf] %vm4946_vm3, %v4858_v13  ;;  %v3180_v24 = vadd.f32 %v6230_v59, %v2728_v20  ;;  %v3292_v25 = vadd.f32 %v6230_v59, %v2840_v21  ;;  %5487 = vmatmul.msk.bf16.gmra.mxu0 %vm889_vm2, %v671_v4  ;;  %5543 = vmatmul.msk.bf16.gmra.mxu1 %vm889_vm2, %v727_v5 }
 0x169   : > { %4972 = vst.msk [vmem:[%s5910_s9 + $0x64] sm:$0xf] %vm4946_vm3, %v4523_v18  ;;  %v3851_v26 = vmax.f32 %v3403_v22, 0.0  ;;  %v3963_v27 = vmax.f32 %v3515_v23, 0.0  ;;  %5599 = vmatmul.msk.bf16.gmra.mxu2 %vm889_vm2, %v783_v10  ;;  %5655 = vmatmul.msk.bf16.gmra.mxu3 %vm889_vm2, %v839_v11  ;;  %v784_v8 = vpack.c.bf16 %v471_v56, %v470_v55  ;;  %v840_v9 = vpack.c.bf16 %v583_v61, %v582_v60  ;;  %v584_v56 = vld [vmem:[%s5782_s27 + $0xbf0] sm:$0xff] }
 0x16a   : > { %5084 = vst.msk [vmem:[%s5910_s9 + $0x224] sm:$0xf] %vm4946_vm3, %v4635_v19  ;;  %v3628_v28 = vmax.f32 %v3180_v24, 0.0  ;;  %v3740_v29 = vmax.f32 %v3292_v25, 0.0 }
 0x16b   : > { %v4299_v30 = vmin.f32 %v3851_v26, 6.0  ;;  %v4411_v31 = vmin.f32 %v3963_v27, 6.0 }
 0x16c   : > { %v4076_v32 = vmin.f32 %v3628_v28, 6.0  ;;  %v4188_v33 = vmin.f32 %v3740_v29, 6.0  ;;  %v2203_v34 = vpop.f32.mrf.mxu2  ;;  %v2483_v35 = vpop.f32.mrf.mxu3 }
 0x16d   : > { %v4747_v36 = vpack.c.bf16 %v4299_v30, %v4299_v30  ;;  %v4859_v37 = vpack.c.bf16 %v4411_v31, %v4411_v31  ;;  %v2952_v38 = vmul.f32 %v6219_v50, %v2203_v34  ;;  %v3064_v40 = vmul.f32 %v6219_v50, %v2483_v35  ;;  %v1645_v39 = vpop.f32.mrf.mxu0  ;;  %v1925_v41 = vpop.f32.mrf.mxu1 }
 0x16e   : > { %v4524_v42 = vpack.c.bf16 %v4076_v32, %v4076_v32  ;;  %v4636_v43 = vpack.c.bf16 %v4188_v33, %v4188_v33  ;;  %v2729_v49 = vmul.f32 %v6219_v50, %v1645_v39  ;;  %v2841_v44 = vmul.f32 %v6219_v50, %v1925_v41 }
 0x16f   : > { %5196 = vst.msk [vmem:[%s5910_s9 + $0x3e4] sm:$0xf] %vm4946_vm3, %v4747_v36  ;;  %v3404_v45 = vadd.f32 %v6230_v59, %v2952_v38  ;;  %v3516_v46 = vadd.f32 %v6230_v59, %v3064_v40 }
 0x170   : > { %5308 = vst.msk [vmem:[%s5910_s9 + $0x5a4] sm:$0xf] %vm4946_vm3, %v4859_v37  ;;  %v3181_v52 = vadd.f32 %v6230_v59, %v2729_v49  ;;  %v3293_v53 = vadd.f32 %v6230_v59, %v2841_v44 }
 0x171   : > { %4973 = vst.msk [vmem:[%s5910_s9 + $0x68] sm:$0xf] %vm4946_vm3, %v4524_v42  ;;  %v3852_v57 = vmax.f32 %v3404_v45, 0.0  ;;  %v3964_v58 = vmax.f32 %v3516_v46, 0.0  ;;  %v248_v45 = vld [vmem:[%s5782_s27 + $0x170] sm:$0xff]  ;;  %v249_v46 = vld [vmem:[%s5782_s27 + $0x178] sm:$0xff] }
 0x172   : > { %5085 = vst.msk [vmem:[%s5910_s9 + $0x228] sm:$0xf] %vm4946_vm3, %v4636_v43  ;;  %v3629_v62 = vmax.f32 %v3181_v52, 0.0  ;;  %v3741_v63 = vmax.f32 %v3293_v53, 0.0  ;;  %v361_v52 = vld [vmem:[%s5782_s27 + $0x4f8] sm:$0xff] }
 0x173   : > { %v4300_v0 = vmin.f32 %v3852_v57, 6.0  ;;  %v4412_v1 = vmin.f32 %v3964_v58, 6.0  ;;  %v473_v53 = vld [vmem:[%s5782_s27 + $0x878] sm:$0xff] }
 0x174   : > { %v4077_v4 = vmin.f32 %v3629_v62, 6.0  ;;  %v4189_v5 = vmin.f32 %v3741_v63, 6.0  ;;  %v2205_v6 = vpop.f32.mrf.mxu2  ;;  %v2485_v7 = vpop.f32.mrf.mxu3  ;;  %v585_v57 = vld [vmem:[%s5782_s27 + $0xbf8] sm:$0xff]  ;;  %v673_v63 = vpack.c.bf16 %v249_v46, %v248_v45  ;;  %v362_v45 = vld [vmem:[%s5782_s27 + $0x500] sm:$0xff] }
 0x175   : > { %v4748_v10 = vpack.c.bf16 %v4300_v0, %v4300_v0  ;;  %v4860_v11 = vpack.c.bf16 %v4412_v1, %v4412_v1  ;;  %v2953_v12 = vmul.f32 %v6219_v50, %v2205_v6  ;;  %v3065_v13 = vmul.f32 %v6219_v50, %v2485_v7  ;;  %v1648_v14 = vpop.f32.mrf.mxu0  ;;  %v1928_v15 = vpop.f32.mrf.mxu1 }
 0x176   : > { %v4525_v16 = vpack.c.bf16 %v4077_v4, %v4077_v4  ;;  %v4637_v17 = vpack.c.bf16 %v4189_v5, %v4189_v5  ;;  %v2730_v18 = vmul.f32 %v6219_v50, %v1648_v14  ;;  %v2842_v19 = vmul.f32 %v6219_v50, %v1928_v15 }
 0x177   : > { %5197 = vst.msk [vmem:[%s5910_s9 + $0x3e8] sm:$0xf] %vm4946_vm3, %v4748_v10  ;;  %v3405_v20 = vadd.f32 %v6230_v59, %v2953_v12  ;;  %v3517_v21 = vadd.f32 %v6230_v59, %v3065_v13  ;;  %v729_v0 = vpack.c.bf16 %v361_v52, %v360_v47  ;;  %v841_v5 = vpack.c.bf16 %v585_v57, %v584_v56  ;;  %v475_v52 = vld [vmem:[%s5782_s27 + $0x888] sm:$0xff] }
 0x178   : > { %5309 = vst.msk [vmem:[%s5910_s9 + $0x5a8] sm:$0xf] %vm4946_vm3, %v4860_v11  ;;  %v3182_v22 = vadd.f32 %v6230_v59, %v2730_v18  ;;  %v3294_v23 = vadd.f32 %v6230_v59, %v2842_v19  ;;  %5488 = vmatmul.msk.bf16.gmra.mxu0 %vm889_vm2, %v672_v2  ;;  %5544 = vmatmul.msk.bf16.gmra.mxu1 %vm889_vm2, %v728_v3 }
 0x179   : > { %4974 = vst.msk [vmem:[%s5910_s9 + $0x6c] sm:$0xf] %vm4946_vm3, %v4525_v16  ;;  %v3853_v24 = vmax.f32 %v3405_v20, 0.0  ;;  %v3965_v25 = vmax.f32 %v3517_v21, 0.0  ;;  %5600 = vmatmul.msk.bf16.gmra.mxu2 %vm889_vm2, %v784_v8  ;;  %5656 = vmatmul.msk.bf16.gmra.mxu3 %vm889_vm2, %v840_v9  ;;  %v6561_v8 = vld [vmem:[%s8339_s2] ss:$0 sm:$0xff] }
 0x17a   : > { %5086 = vst.msk [vmem:[%s5910_s9 + $0x22c] sm:$0xf] %vm4946_vm3, %v4637_v17  ;;  %v3630_v26 = vmax.f32 %v3182_v22, 0.0  ;;  %v3742_v27 = vmax.f32 %v3294_v23, 0.0  ;;  %v6572_v17 = vld [vmem:[%s8340_s3] ss:$0 sm:$0xff] }
 0x17b   : > { %v4301_v28 = vmin.f32 %v3853_v24, 6.0  ;;  %v4413_v29 = vmin.f32 %v3965_v25, 6.0 }
 0x17c   : > { %v4078_v30 = vmin.f32 %v3630_v26, 6.0  ;;  %v4190_v31 = vmin.f32 %v3742_v27, 6.0  ;;  %v2208_v32 = vpop.f32.mrf.mxu2  ;;  %v2488_v33 = vpop.f32.mrf.mxu3 }
 0x17d   : > { %v4749_v34 = vpack.c.bf16 %v4301_v28, %v4301_v28  ;;  %v4861_v35 = vpack.c.bf16 %v4413_v29, %v4413_v29  ;;  %v2954_v36 = vmul.f32 %v6219_v50, %v2208_v32  ;;  %v3066_v37 = vmul.f32 %v6219_v50, %v2488_v33  ;;  %v1650_v38 = vpop.f32.mrf.mxu0  ;;  %v1930_v40 = vpop.f32.mrf.mxu1 }
 0x17e   : > { %v4526_v39 = vpack.c.bf16 %v4078_v30, %v4078_v30  ;;  %v4638_v41 = vpack.c.bf16 %v4190_v31, %v4190_v31  ;;  %v2731_v42 = vmul.f32 %v6219_v50, %v1650_v38  ;;  %v2843_v43 = vmul.f32 %v6219_v50, %v1930_v40  ;;  %v472_v50 = vld [vmem:[%s5782_s27 + $0x870] sm:$0xff] }
 0x17f   : > { %5198 = vst.msk [vmem:[%s5910_s9 + $0x3ec] sm:$0xf] %vm4946_vm3, %v4749_v34  ;;  %v3406_v49 = vadd.f32 %v6230_v59, %v2954_v36  ;;  %v3518_v44 = vadd.f32 %v6230_v59, %v3066_v37  ;;  %v785_v4 = vpack.c.bf16 %v473_v53, %v472_v50 }
 0x180   : > { %5310 = vst.msk [vmem:[%s5910_s9 + $0x5ac] sm:$0xf] %vm4946_vm3, %v4861_v35  ;;  %v3183_v48 = vadd.f32 %v6230_v59, %v2731_v42  ;;  %v3295_v51 = vadd.f32 %v6230_v59, %v2843_v43 }
 0x181   : > { %4975 = vst.msk [vmem:[%s5910_s9 + $0x70] sm:$0xf] %vm4946_vm3, %v4526_v39  ;;  %v3854_v54 = vmax.f32 %v3406_v49, 0.0  ;;  %v3966_v55 = vmax.f32 %v3518_v44, 0.0  ;;  %v250_v49 = vld [vmem:[%s5782_s27 + $0x180] sm:$0xff]  ;;  %v251_v44 = vld [vmem:[%s5782_s27 + $0x188] sm:$0xff] }
 0x182   : > { %5087 = vst.msk [vmem:[%s5910_s9 + $0x230] sm:$0xf] %vm4946_vm3, %v4638_v41  ;;  %v3631_v58 = vmax.f32 %v3183_v48, 0.0  ;;  %v3743_v60 = vmax.f32 %v3295_v51, 0.0  ;;  %v363_v48 = vld [vmem:[%s5782_s27 + $0x508] sm:$0xff]  ;;  %v474_v51 = vld [vmem:[%s5782_s27 + $0x880] sm:$0xff] }
 0x183   : > { %v4302_v61 = vmin.f32 %v3854_v54, 6.0  ;;  %v4414_v62 = vmin.f32 %v3966_v55, 6.0  ;;  %v586_v54 = vld [vmem:[%s5782_s27 + $0xc00] sm:$0xff]  ;;  %v587_v55 = vld [vmem:[%s5782_s27 + $0xc08] sm:$0xff] }
 0x184   : > { %v4079_v1 = vmin.f32 %v3631_v58, 6.0  ;;  %v4191_v2 = vmin.f32 %v3743_v60, 6.0  ;;  %v2210_v59 = vpop.f32.mrf.mxu2  ;;  %v2490_v3 = vpop.f32.mrf.mxu3 }
 0x185   : > { %v4750_v6 = vpack.c.bf16 %v4302_v61, %v4302_v61  ;;  %v4862_v7 = vpack.c.bf16 %v4414_v62, %v4414_v62  ;;  %v2955_v9 = vmul.f32 %v6561_v8, %v2210_v59  ;;  %v3067_v10 = vmul.f32 %v6561_v8, %v2490_v3  ;;  %v1653_v11 = vpop.f32.mrf.mxu0  ;;  %v1933_v12 = vpop.f32.mrf.mxu1 }
 0x186   : > { %v4527_v13 = vpack.c.bf16 %v4079_v1, %v4079_v1  ;;  %v4639_v14 = vpack.c.bf16 %v4191_v2, %v4191_v2  ;;  %v2732_v15 = vmul.f32 %v6561_v8, %v1653_v11  ;;  %v2844_v16 = vmul.f32 %v6561_v8, %v1933_v12 }
 0x187   : > { %5199 = vst.msk [vmem:[%s5910_s9 + $0x3f0] sm:$0xf] %vm4946_vm3, %v4750_v6  ;;  %v3407_v18 = vadd.f32 %v6572_v17, %v2955_v9  ;;  %v3519_v19 = vadd.f32 %v6572_v17, %v3067_v10  ;;  %v674_v61 = vpack.c.bf16 %v251_v44, %v250_v49  ;;  %v730_v62 = vpack.c.bf16 %v363_v48, %v362_v45  ;;  %v364_v49 = vld [vmem:[%s5782_s27 + $0x510] sm:$0xff]  ;;  %v477_v48 = vld [vmem:[%s5782_s27 + $0x898] sm:$0xff] }
 0x188   : > { %5311 = vst.msk [vmem:[%s5910_s9 + $0x5b0] sm:$0xf] %vm4946_vm3, %v4862_v7  ;;  %v3184_v20 = vadd.f32 %v6572_v17, %v2732_v15  ;;  %v3296_v21 = vadd.f32 %v6572_v17, %v2844_v16  ;;  %5489 = vmatmul.msk.bf16.gmra.mxu0 %vm889_vm2, %v673_v63  ;;  %5545 = vmatmul.msk.bf16.gmra.mxu1 %vm889_vm2, %v729_v0 }
 0x189   : > { %4976 = vst.msk [vmem:[%s5910_s9 + $0x74] sm:$0xf] %vm4946_vm3, %v4527_v13  ;;  %v3855_v22 = vmax.f32 %v3407_v18, 0.0  ;;  %v3967_v23 = vmax.f32 %v3519_v19, 0.0  ;;  %5601 = vmatmul.msk.bf16.gmra.mxu2 %vm889_vm2, %v785_v4  ;;  %5657 = vmatmul.msk.bf16.gmra.mxu3 %vm889_vm2, %v841_v5  ;;  %v786_v59 = vpack.c.bf16 %v475_v52, %v474_v51  ;;  %v842_v3 = vpack.c.bf16 %v587_v55, %v586_v54 }
 0x18a   : > { %5088 = vst.msk [vmem:[%s5910_s9 + $0x234] sm:$0xf] %vm4946_vm3, %v4639_v14  ;;  %v3632_v24 = vmax.f32 %v3184_v20, 0.0  ;;  %v3744_v25 = vmax.f32 %v3296_v21, 0.0 }
 0x18b   : > { %v4303_v26 = vmin.f32 %v3855_v22, 6.0  ;;  %v4415_v27 = vmin.f32 %v3967_v23, 6.0 }
 0x18c   : > { %v4080_v28 = vmin.f32 %v3632_v24, 6.0  ;;  %v4192_v29 = vmin.f32 %v3744_v25, 6.0  ;;  %v2213_v30 = vpop.f32.mrf.mxu2  ;;  %v2493_v31 = vpop.f32.mrf.mxu3 }
 0x18d   : > { %v4751_v32 = vpack.c.bf16 %v4303_v26, %v4303_v26  ;;  %v4863_v33 = vpack.c.bf16 %v4415_v27, %v4415_v27  ;;  %v2956_v34 = vmul.f32 %v6561_v8, %v2213_v30  ;;  %v3068_v35 = vmul.f32 %v6561_v8, %v2493_v31  ;;  %v1655_v36 = vpop.f32.mrf.mxu0  ;;  %v1935_v37 = vpop.f32.mrf.mxu1 }
 0x18e   : > { %v4528_v38 = vpack.c.bf16 %v4080_v28, %v4080_v28  ;;  %v4640_v40 = vpack.c.bf16 %v4192_v29, %v4192_v29  ;;  %v2733_v39 = vmul.f32 %v6561_v8, %v1655_v36  ;;  %v2845_v41 = vmul.f32 %v6561_v8, %v1935_v37 }
 0x18f   : > { %5200 = vst.msk [vmem:[%s5910_s9 + $0x3f4] sm:$0xf] %vm4946_vm3, %v4751_v32  ;;  %v3408_v42 = vadd.f32 %v6572_v17, %v2956_v34  ;;  %v3520_v43 = vadd.f32 %v6572_v17, %v3068_v35 }
 0x190   : > { %5312 = vst.msk [vmem:[%s5910_s9 + $0x5b4] sm:$0xf] %vm4946_vm3, %v4863_v33  ;;  %v3185_v46 = vadd.f32 %v6572_v17, %v2733_v39  ;;  %v3297_v47 = vadd.f32 %v6572_v17, %v2845_v41 }
 0x191   : > { %4977 = vst.msk [vmem:[%s5910_s9 + $0x78] sm:$0xf] %vm4946_vm3, %v4528_v38  ;;  %v3856_v50 = vmax.f32 %v3408_v42, 0.0  ;;  %v3968_v53 = vmax.f32 %v3520_v43, 0.0  ;;  %v252_v42 = vld [vmem:[%s5782_s27 + $0x190] sm:$0xff]  ;;  %v253_v43 = vld [vmem:[%s5782_s27 + $0x198] sm:$0xff] }
 0x192   : > { %5089 = vst.msk [vmem:[%s5910_s9 + $0x238] sm:$0xf] %vm4946_vm3, %v4640_v40  ;;  %v3633_v56 = vmax.f32 %v3185_v46, 0.0  ;;  %v3745_v57 = vmax.f32 %v3297_v47, 0.0  ;;  %v365_v46 = vld [vmem:[%s5782_s27 + $0x518] sm:$0xff]  ;;  %v476_v47 = vld [vmem:[%s5782_s27 + $0x890] sm:$0xff] }
 0x193   : > { %v4304_v58 = vmin.f32 %v3856_v50, 6.0  ;;  %v4416_v60 = vmin.f32 %v3968_v53, 6.0  ;;  %v588_v50 = vld [vmem:[%s5782_s27 + $0xc10] sm:$0xff]  ;;  %v589_v53 = vld [vmem:[%s5782_s27 + $0xc18] sm:$0xff] }
 0x194   : > { %v4081_v63 = vmin.f32 %v3633_v56, 6.0  ;;  %v4193_v0 = vmin.f32 %v3745_v57, 6.0  ;;  %v2215_v1 = vpop.f32.mrf.mxu2  ;;  %v2495_v2 = vpop.f32.mrf.mxu3 }
 0x195   : > { %v4752_v4 = vpack.c.bf16 %v4304_v58, %v4304_v58  ;;  %v4864_v5 = vpack.c.bf16 %v4416_v60, %v4416_v60  ;;  %v2957_v6 = vmul.f32 %v6561_v8, %v2215_v1  ;;  %v3069_v7 = vmul.f32 %v6561_v8, %v2495_v2  ;;  %v1658_v9 = vpop.f32.mrf.mxu0  ;;  %v1938_v10 = vpop.f32.mrf.mxu1 }
 0x196   : > { %v4529_v11 = vpack.c.bf16 %v4081_v63, %v4081_v63  ;;  %v4641_v12 = vpack.c.bf16 %v4193_v0, %v4193_v0  ;;  %v2734_v13 = vmul.f32 %v6561_v8, %v1658_v9  ;;  %v2846_v14 = vmul.f32 %v6561_v8, %v1938_v10 }
 0x197   : > { %5201 = vst.msk [vmem:[%s5910_s9 + $0x3f8] sm:$0xf] %vm4946_vm3, %v4752_v4  ;;  %v3409_v15 = vadd.f32 %v6572_v17, %v2957_v6  ;;  %v3521_v16 = vadd.f32 %v6572_v17, %v3069_v7  ;;  %v675_v58 = vpack.c.bf16 %v253_v43, %v252_v42  ;;  %v731_v60 = vpack.c.bf16 %v365_v46, %v364_v49  ;;  %v366_v42 = vld [vmem:[%s5782_s27 + $0x520] sm:$0xff]  ;;  %v479_v46 = vld [vmem:[%s5782_s27 + $0x8a8] sm:$0xff] }
 0x198   : > { %5313 = vst.msk [vmem:[%s5910_s9 + $0x5b8] sm:$0xf] %vm4946_vm3, %v4864_v5  ;;  %v3186_v18 = vadd.f32 %v6572_v17, %v2734_v13  ;;  %v3298_v19 = vadd.f32 %v6572_v17, %v2846_v14  ;;  %5490 = vmatmul.msk.bf16.gmra.mxu0 %vm889_vm2, %v674_v61  ;;  %5546 = vmatmul.msk.bf16.gmra.mxu1 %vm889_vm2, %v730_v62 }
 0x199   : > { %4978 = vst.msk [vmem:[%s5910_s9 + $0x7c] sm:$0xf] %vm4946_vm3, %v4529_v11  ;;  %v3857_v20 = vmax.f32 %v3409_v15, 0.0  ;;  %v3969_v21 = vmax.f32 %v3521_v16, 0.0  ;;  %5602 = vmatmul.msk.bf16.gmra.mxu2 %vm889_vm2, %v786_v59  ;;  %5658 = vmatmul.msk.bf16.gmra.mxu3 %vm889_vm2, %v842_v3  ;;  %v787_v1 = vpack.c.bf16 %v477_v48, %v476_v47  ;;  %v843_v2 = vpack.c.bf16 %v589_v53, %v588_v50 }
 0x19a   : > { %5090 = vst.msk [vmem:[%s5910_s9 + $0x23c] sm:$0xf] %vm4946_vm3, %v4641_v12  ;;  %v3634_v22 = vmax.f32 %v3186_v18, 0.0  ;;  %v3746_v23 = vmax.f32 %v3298_v19, 0.0 }
 0x19b   : > { %v4305_v24 = vmin.f32 %v3857_v20, 6.0  ;;  %v4417_v25 = vmin.f32 %v3969_v21, 6.0 }
 0x19c   : > { %v4082_v26 = vmin.f32 %v3634_v22, 6.0  ;;  %v4194_v27 = vmin.f32 %v3746_v23, 6.0  ;;  %v2218_v28 = vpop.f32.mrf.mxu2  ;;  %v2498_v29 = vpop.f32.mrf.mxu3 }
 0x19d   : > { %v4753_v30 = vpack.c.bf16 %v4305_v24, %v4305_v24  ;;  %v4865_v31 = vpack.c.bf16 %v4417_v25, %v4417_v25  ;;  %v2958_v32 = vmul.f32 %v6561_v8, %v2218_v28  ;;  %v3070_v33 = vmul.f32 %v6561_v8, %v2498_v29  ;;  %v1660_v34 = vpop.f32.mrf.mxu0  ;;  %v1940_v35 = vpop.f32.mrf.mxu1 }
 0x19e   : > { %v4530_v36 = vpack.c.bf16 %v4082_v26, %v4082_v26  ;;  %v4642_v37 = vpack.c.bf16 %v4194_v27, %v4194_v27  ;;  %v2735_v38 = vmul.f32 %v6561_v8, %v1660_v34  ;;  %v2847_v40 = vmul.f32 %v6561_v8, %v1940_v35 }
 0x19f   : > { %5202 = vst.msk [vmem:[%s5910_s9 + $0x3fc] sm:$0xf] %vm4946_vm3, %v4753_v30  ;;  %v3410_v39 = vadd.f32 %v6572_v17, %v2958_v32  ;;  %v3522_v41 = vadd.f32 %v6572_v17, %v3070_v33 }
 0x1a0   : > { %5314 = vst.msk [vmem:[%s5910_s9 + $0x5bc] sm:$0xf] %vm4946_vm3, %v4865_v31  ;;  %v3187_v44 = vadd.f32 %v6572_v17, %v2735_v38  ;;  %v3299_v45 = vadd.f32 %v6572_v17, %v2847_v40 }
 0x1a1   : > { %4979 = vst.msk [vmem:[%s5910_s9 + $0x80] sm:$0xf] %vm4946_vm3, %v4530_v36  ;;  %v3858_v51 = vmax.f32 %v3410_v39, 0.0  ;;  %v3970_v52 = vmax.f32 %v3522_v41, 0.0  ;;  %v254_v39 = vld [vmem:[%s5782_s27 + $0x1a0] sm:$0xff]  ;;  %v255_v41 = vld [vmem:[%s5782_s27 + $0x1a8] sm:$0xff] }
 0x1a2   : > { %5091 = vst.msk [vmem:[%s5910_s9 + $0x240] sm:$0xf] %vm4946_vm3, %v4642_v37  ;;  %v3635_v54 = vmax.f32 %v3187_v44, 0.0  ;;  %v3747_v55 = vmax.f32 %v3299_v45, 0.0  ;;  %v367_v44 = vld [vmem:[%s5782_s27 + $0x528] sm:$0xff]  ;;  %v478_v45 = vld [vmem:[%s5782_s27 + $0x8a0] sm:$0xff] }
 0x1a3   : > { %v4306_v56 = vmin.f32 %v3858_v51, 6.0  ;;  %v4418_v57 = vmin.f32 %v3970_v52, 6.0  ;;  %v590_v51 = vld [vmem:[%s5782_s27 + $0xc20] sm:$0xff]  ;;  %v591_v52 = vld [vmem:[%s5782_s27 + $0xc28] sm:$0xff] }
 0x1a4   : > { %v4083_v61 = vmin.f32 %v3635_v54, 6.0  ;;  %v4195_v62 = vmin.f32 %v3747_v55, 6.0  ;;  %v2220_v63 = vpop.f32.mrf.mxu2  ;;  %v2500_v0 = vpop.f32.mrf.mxu3 }
 0x1a5   : > { %v4754_v59 = vpack.c.bf16 %v4306_v56, %v4306_v56  ;;  %v4866_v3 = vpack.c.bf16 %v4418_v57, %v4418_v57  ;;  %v2959_v4 = vmul.f32 %v6561_v8, %v2220_v63  ;;  %v3071_v5 = vmul.f32 %v6561_v8, %v2500_v0  ;;  %v1663_v6 = vpop.f32.mrf.mxu0  ;;  %v1943_v7 = vpop.f32.mrf.mxu1 }
 0x1a6   : > { %v4531_v9 = vpack.c.bf16 %v4083_v61, %v4083_v61  ;;  %v4643_v10 = vpack.c.bf16 %v4195_v62, %v4195_v62  ;;  %v2736_v11 = vmul.f32 %v6561_v8, %v1663_v6  ;;  %v2848_v12 = vmul.f32 %v6561_v8, %v1943_v7 }
 0x1a7   : > { %5203 = vst.msk [vmem:[%s5910_s9 + $0x400] sm:$0xf] %vm4946_vm3, %v4754_v59  ;;  %v3411_v13 = vadd.f32 %v6572_v17, %v2959_v4  ;;  %v3523_v14 = vadd.f32 %v6572_v17, %v3071_v5  ;;  %v676_v56 = vpack.c.bf16 %v255_v41, %v254_v39  ;;  %v732_v57 = vpack.c.bf16 %v367_v44, %v366_v42  ;;  %v368_v39 = vld [vmem:[%s5782_s27 + $0x530] sm:$0xff]  ;;  %v481_v44 = vld [vmem:[%s5782_s27 + $0x8b8] sm:$0xff] }
 0x1a8   : > { %5315 = vst.msk [vmem:[%s5910_s9 + $0x5c0] sm:$0xf] %vm4946_vm3, %v4866_v3  ;;  %v3188_v15 = vadd.f32 %v6572_v17, %v2736_v11  ;;  %v3300_v16 = vadd.f32 %v6572_v17, %v2848_v12  ;;  %5491 = vmatmul.msk.bf16.gmra.mxu0 %vm889_vm2, %v675_v58  ;;  %5547 = vmatmul.msk.bf16.gmra.mxu1 %vm889_vm2, %v731_v60 }
 0x1a9   : > { %4980 = vst.msk [vmem:[%s5910_s9 + $0x84] sm:$0xf] %vm4946_vm3, %v4531_v9  ;;  %v3859_v18 = vmax.f32 %v3411_v13, 0.0  ;;  %v3971_v19 = vmax.f32 %v3523_v14, 0.0  ;;  %5603 = vmatmul.msk.bf16.gmra.mxu2 %vm889_vm2, %v787_v1  ;;  %5659 = vmatmul.msk.bf16.gmra.mxu3 %vm889_vm2, %v843_v2  ;;  %v788_v63 = vpack.c.bf16 %v479_v46, %v478_v45  ;;  %v844_v0 = vpack.c.bf16 %v591_v52, %v590_v51 }
 0x1aa   : > { %5092 = vst.msk [vmem:[%s5910_s9 + $0x244] sm:$0xf] %vm4946_vm3, %v4643_v10  ;;  %v3636_v20 = vmax.f32 %v3188_v15, 0.0  ;;  %v3748_v21 = vmax.f32 %v3300_v16, 0.0 }
 0x1ab   : > { %v4307_v22 = vmin.f32 %v3859_v18, 6.0  ;;  %v4419_v23 = vmin.f32 %v3971_v19, 6.0 }
 0x1ac   : > { %v4084_v24 = vmin.f32 %v3636_v20, 6.0  ;;  %v4196_v25 = vmin.f32 %v3748_v21, 6.0  ;;  %v2223_v26 = vpop.f32.mrf.mxu2  ;;  %v2503_v27 = vpop.f32.mrf.mxu3 }
 0x1ad   : > { %v4755_v28 = vpack.c.bf16 %v4307_v22, %v4307_v22  ;;  %v4867_v29 = vpack.c.bf16 %v4419_v23, %v4419_v23  ;;  %v2960_v30 = vmul.f32 %v6561_v8, %v2223_v26  ;;  %v3072_v31 = vmul.f32 %v6561_v8, %v2503_v27  ;;  %v1665_v32 = vpop.f32.mrf.mxu0  ;;  %v1945_v33 = vpop.f32.mrf.mxu1 }
 0x1ae   : > { %v4532_v34 = vpack.c.bf16 %v4084_v24, %v4084_v24  ;;  %v4644_v35 = vpack.c.bf16 %v4196_v25, %v4196_v25  ;;  %v2737_v36 = vmul.f32 %v6561_v8, %v1665_v32  ;;  %v2849_v37 = vmul.f32 %v6561_v8, %v1945_v33 }
 0x1af   : > { %5204 = vst.msk [vmem:[%s5910_s9 + $0x404] sm:$0xf] %vm4946_vm3, %v4755_v28  ;;  %v3412_v38 = vadd.f32 %v6572_v17, %v2960_v30  ;;  %v3524_v40 = vadd.f32 %v6572_v17, %v3072_v31 }
 0x1b0   : > { %5316 = vst.msk [vmem:[%s5910_s9 + $0x5c4] sm:$0xf] %vm4946_vm3, %v4867_v29  ;;  %v3189_v43 = vadd.f32 %v6572_v17, %v2737_v36  ;;  %v3301_v49 = vadd.f32 %v6572_v17, %v2849_v37 }
 0x1b1   : > { %4981 = vst.msk [vmem:[%s5910_s9 + $0x88] sm:$0xf] %vm4946_vm3, %v4532_v34  ;;  %v3860_v47 = vmax.f32 %v3412_v38, 0.0  ;;  %v3972_v48 = vmax.f32 %v3524_v40, 0.0  ;;  %v256_v38 = vld [vmem:[%s5782_s27 + $0x1b0] sm:$0xff]  ;;  %v257_v40 = vld [vmem:[%s5782_s27 + $0x1b8] sm:$0xff] }
 0x1b2   : > { %5093 = vst.msk [vmem:[%s5910_s9 + $0x248] sm:$0xf] %vm4946_vm3, %v4644_v35  ;;  %v3637_v50 = vmax.f32 %v3189_v43, 0.0  ;;  %v3749_v53 = vmax.f32 %v3301_v49, 0.0  ;;  %v369_v43 = vld [vmem:[%s5782_s27 + $0x538] sm:$0xff]  ;;  %v480_v49 = vld [vmem:[%s5782_s27 + $0x8b0] sm:$0xff] }
 0x1b3   : > { %v4308_v54 = vmin.f32 %v3860_v47, 6.0  ;;  %v4420_v55 = vmin.f32 %v3972_v48, 6.0  ;;  %v592_v47 = vld [vmem:[%s5782_s27 + $0xc30] sm:$0xff]  ;;  %v593_v48 = vld [vmem:[%s5782_s27 + $0xc38] sm:$0xff] }
 0x1b4   : > { %v4085_v58 = vmin.f32 %v3637_v50, 6.0  ;;  %v4197_v60 = vmin.f32 %v3749_v53, 6.0  ;;  %v2225_v61 = vpop.f32.mrf.mxu2  ;;  %v2505_v62 = vpop.f32.mrf.mxu3 }
 0x1b5   : > { %v4756_v1 = vpack.c.bf16 %v4308_v54, %v4308_v54  ;;  %v4868_v2 = vpack.c.bf16 %v4420_v55, %v4420_v55  ;;  %v2961_v59 = vmul.f32 %v6561_v8, %v2225_v61  ;;  %v3073_v3 = vmul.f32 %v6561_v8, %v2505_v62  ;;  %v1668_v4 = vpop.f32.mrf.mxu0  ;;  %v1948_v5 = vpop.f32.mrf.mxu1 }
 0x1b6   : > { %v4533_v6 = vpack.c.bf16 %v4085_v58, %v4085_v58  ;;  %v4645_v7 = vpack.c.bf16 %v4197_v60, %v4197_v60  ;;  %v2738_v9 = vmul.f32 %v6561_v8, %v1668_v4  ;;  %v2850_v10 = vmul.f32 %v6561_v8, %v1948_v5 }
 0x1b7   : > { %5205 = vst.msk [vmem:[%s5910_s9 + $0x408] sm:$0xf] %vm4946_vm3, %v4756_v1  ;;  %v3413_v11 = vadd.f32 %v6572_v17, %v2961_v59  ;;  %v3525_v12 = vadd.f32 %v6572_v17, %v3073_v3  ;;  %v677_v54 = vpack.c.bf16 %v257_v40, %v256_v38  ;;  %v733_v55 = vpack.c.bf16 %v369_v43, %v368_v39  ;;  %v370_v38 = vld [vmem:[%s5782_s27 + $0x540] sm:$0xff]  ;;  %v483_v43 = vld [vmem:[%s5782_s27 + $0x8c8] sm:$0xff] }
 0x1b8   : > { %5317 = vst.msk [vmem:[%s5910_s9 + $0x5c8] sm:$0xf] %vm4946_vm3, %v4868_v2  ;;  %v3190_v13 = vadd.f32 %v6572_v17, %v2738_v9  ;;  %v3302_v14 = vadd.f32 %v6572_v17, %v2850_v10  ;;  %5492 = vmatmul.msk.bf16.gmra.mxu0 %vm889_vm2, %v676_v56  ;;  %5548 = vmatmul.msk.bf16.gmra.mxu1 %vm889_vm2, %v732_v57 }
 0x1b9   : > { %4982 = vst.msk [vmem:[%s5910_s9 + $0x8c] sm:$0xf] %vm4946_vm3, %v4533_v6  ;;  %v3861_v15 = vmax.f32 %v3413_v11, 0.0  ;;  %v3973_v16 = vmax.f32 %v3525_v12, 0.0  ;;  %5604 = vmatmul.msk.bf16.gmra.mxu2 %vm889_vm2, %v788_v63  ;;  %5660 = vmatmul.msk.bf16.gmra.mxu3 %vm889_vm2, %v844_v0  ;;  %v789_v61 = vpack.c.bf16 %v481_v44, %v480_v49  ;;  %v845_v62 = vpack.c.bf16 %v593_v48, %v592_v47 }
 0x1ba   : > { %5094 = vst.msk [vmem:[%s5910_s9 + $0x24c] sm:$0xf] %vm4946_vm3, %v4645_v7  ;;  %v3638_v18 = vmax.f32 %v3190_v13, 0.0  ;;  %v3750_v19 = vmax.f32 %v3302_v14, 0.0 }
 0x1bb   : > { %v4309_v20 = vmin.f32 %v3861_v15, 6.0  ;;  %v4421_v21 = vmin.f32 %v3973_v16, 6.0 }
 0x1bc   : > { %v4086_v22 = vmin.f32 %v3638_v18, 6.0  ;;  %v4198_v23 = vmin.f32 %v3750_v19, 6.0  ;;  %v2228_v24 = vpop.f32.mrf.mxu2  ;;  %v2508_v25 = vpop.f32.mrf.mxu3 }
 0x1bd   : > { %v4757_v26 = vpack.c.bf16 %v4309_v20, %v4309_v20  ;;  %v4869_v27 = vpack.c.bf16 %v4421_v21, %v4421_v21  ;;  %v2962_v28 = vmul.f32 %v6561_v8, %v2228_v24  ;;  %v3074_v29 = vmul.f32 %v6561_v8, %v2508_v25  ;;  %v1670_v30 = vpop.f32.mrf.mxu0  ;;  %v1950_v31 = vpop.f32.mrf.mxu1 }
 0x1be   : > { %v4534_v32 = vpack.c.bf16 %v4086_v22, %v4086_v22  ;;  %v4646_v33 = vpack.c.bf16 %v4198_v23, %v4198_v23  ;;  %v2739_v34 = vmul.f32 %v6561_v8, %v1670_v30  ;;  %v2851_v35 = vmul.f32 %v6561_v8, %v1950_v31 }
 0x1bf   : > { %5206 = vst.msk [vmem:[%s5910_s9 + $0x40c] sm:$0xf] %vm4946_vm3, %v4757_v26  ;;  %v3414_v36 = vadd.f32 %v6572_v17, %v2962_v28  ;;  %v3526_v37 = vadd.f32 %v6572_v17, %v3074_v29 }
 0x1c0   : > { %5318 = vst.msk [vmem:[%s5910_s9 + $0x5cc] sm:$0xf] %vm4946_vm3, %v4869_v27  ;;  %v3191_v41 = vadd.f32 %v6572_v17, %v2739_v34  ;;  %v3303_v42 = vadd.f32 %v6572_v17, %v2851_v35 }
 0x1c1   : > { %4983 = vst.msk [vmem:[%s5910_s9 + $0x90] sm:$0xf] %vm4946_vm3, %v4534_v32  ;;  %v3862_v45 = vmax.f32 %v3414_v36, 0.0  ;;  %v3974_v46 = vmax.f32 %v3526_v37, 0.0  ;;  %v258_v36 = vld [vmem:[%s5782_s27 + $0x1c0] sm:$0xff]  ;;  %v259_v37 = vld [vmem:[%s5782_s27 + $0x1c8] sm:$0xff] }
 0x1c2   : > { %5095 = vst.msk [vmem:[%s5910_s9 + $0x250] sm:$0xf] %vm4946_vm3, %v4646_v33  ;;  %v3639_v51 = vmax.f32 %v3191_v41, 0.0  ;;  %v3751_v52 = vmax.f32 %v3303_v42, 0.0  ;;  %v371_v41 = vld [vmem:[%s5782_s27 + $0x548] sm:$0xff]  ;;  %v482_v42 = vld [vmem:[%s5782_s27 + $0x8c0] sm:$0xff] }
 0x1c3   : > { %v4310_v50 = vmin.f32 %v3862_v45, 6.0  ;;  %v4422_v53 = vmin.f32 %v3974_v46, 6.0  ;;  %v594_v45 = vld [vmem:[%s5782_s27 + $0xc40] sm:$0xff]  ;;  %v595_v46 = vld [vmem:[%s5782_s27 + $0xc48] sm:$0xff] }
 0x1c4   : > { %v4087_v56 = vmin.f32 %v3639_v51, 6.0  ;;  %v4199_v57 = vmin.f32 %v3751_v52, 6.0  ;;  %v2230_v58 = vpop.f32.mrf.mxu2  ;;  %v2510_v60 = vpop.f32.mrf.mxu3 }
 0x1c5   : > { %v4758_v63 = vpack.c.bf16 %v4310_v50, %v4310_v50  ;;  %v4870_v0 = vpack.c.bf16 %v4422_v53, %v4422_v53  ;;  %v2963_v1 = vmul.f32 %v6561_v8, %v2230_v58  ;;  %v3075_v2 = vmul.f32 %v6561_v8, %v2510_v60  ;;  %v1673_v59 = vpop.f32.mrf.mxu0  ;;  %v1953_v3 = vpop.f32.mrf.mxu1 }
 0x1c6   : > { %v4535_v4 = vpack.c.bf16 %v4087_v56, %v4087_v56  ;;  %v4647_v5 = vpack.c.bf16 %v4199_v57, %v4199_v57  ;;  %v2740_v6 = vmul.f32 %v6561_v8, %v1673_v59  ;;  %v2852_v7 = vmul.f32 %v6561_v8, %v1953_v3 }
 0x1c7   : > { %5207 = vst.msk [vmem:[%s5910_s9 + $0x410] sm:$0xf] %vm4946_vm3, %v4758_v63  ;;  %v3415_v9 = vadd.f32 %v6572_v17, %v2963_v1  ;;  %v3527_v10 = vadd.f32 %v6572_v17, %v3075_v2  ;;  %v678_v50 = vpack.c.bf16 %v259_v37, %v258_v36  ;;  %v734_v53 = vpack.c.bf16 %v371_v41, %v370_v38  ;;  %v372_v36 = vld [vmem:[%s5782_s27 + $0x550] sm:$0xff]  ;;  %v485_v41 = vld [vmem:[%s5782_s27 + $0x8d8] sm:$0xff] }
 0x1c8   : > { %5319 = vst.msk [vmem:[%s5910_s9 + $0x5d0] sm:$0xf] %vm4946_vm3, %v4870_v0  ;;  %v3192_v11 = vadd.f32 %v6572_v17, %v2740_v6  ;;  %v3304_v12 = vadd.f32 %v6572_v17, %v2852_v7  ;;  %5493 = vmatmul.msk.bf16.gmra.mxu0 %vm889_vm2, %v677_v54  ;;  %5549 = vmatmul.msk.bf16.gmra.mxu1 %vm889_vm2, %v733_v55 }
 0x1c9   : > { %4984 = vst.msk [vmem:[%s5910_s9 + $0x94] sm:$0xf] %vm4946_vm3, %v4535_v4  ;;  %v3863_v13 = vmax.f32 %v3415_v9, 0.0  ;;  %v3975_v14 = vmax.f32 %v3527_v10, 0.0  ;;  %5605 = vmatmul.msk.bf16.gmra.mxu2 %vm889_vm2, %v789_v61  ;;  %5661 = vmatmul.msk.bf16.gmra.mxu3 %vm889_vm2, %v845_v62  ;;  %v790_v58 = vpack.c.bf16 %v483_v43, %v482_v42  ;;  %v846_v60 = vpack.c.bf16 %v595_v46, %v594_v45 }
 0x1ca   : > { %5096 = vst.msk [vmem:[%s5910_s9 + $0x254] sm:$0xf] %vm4946_vm3, %v4647_v5  ;;  %v3640_v15 = vmax.f32 %v3192_v11, 0.0  ;;  %v3752_v16 = vmax.f32 %v3304_v12, 0.0 }
 0x1cb   : > { %v4311_v18 = vmin.f32 %v3863_v13, 6.0  ;;  %v4423_v19 = vmin.f32 %v3975_v14, 6.0 }
 0x1cc   : > { %v4088_v20 = vmin.f32 %v3640_v15, 6.0  ;;  %v4200_v21 = vmin.f32 %v3752_v16, 6.0  ;;  %v2233_v22 = vpop.f32.mrf.mxu2  ;;  %v2513_v23 = vpop.f32.mrf.mxu3 }
 0x1cd   : > { %v4759_v24 = vpack.c.bf16 %v4311_v18, %v4311_v18  ;;  %v4871_v25 = vpack.c.bf16 %v4423_v19, %v4423_v19  ;;  %v2964_v26 = vmul.f32 %v6561_v8, %v2233_v22  ;;  %v3076_v27 = vmul.f32 %v6561_v8, %v2513_v23  ;;  %v1675_v28 = vpop.f32.mrf.mxu0  ;;  %v1955_v29 = vpop.f32.mrf.mxu1 }
 0x1ce   : > { %v4536_v30 = vpack.c.bf16 %v4088_v20, %v4088_v20  ;;  %v4648_v31 = vpack.c.bf16 %v4200_v21, %v4200_v21  ;;  %v2741_v32 = vmul.f32 %v6561_v8, %v1675_v28  ;;  %v2853_v33 = vmul.f32 %v6561_v8, %v1955_v29 }
 0x1cf   : > { %5208 = vst.msk [vmem:[%s5910_s9 + $0x414] sm:$0xf] %vm4946_vm3, %v4759_v24  ;;  %v3416_v34 = vadd.f32 %v6572_v17, %v2964_v26  ;;  %v3528_v35 = vadd.f32 %v6572_v17, %v3076_v27 }
 0x1d0   : > { %5320 = vst.msk [vmem:[%s5910_s9 + $0x5d4] sm:$0xf] %vm4946_vm3, %v4871_v25  ;;  %v3193_v40 = vadd.f32 %v6572_v17, %v2741_v32  ;;  %v3305_v39 = vadd.f32 %v6572_v17, %v2853_v33 }
 0x1d1   : > { %4985 = vst.msk [vmem:[%s5910_s9 + $0x98] sm:$0xf] %vm4946_vm3, %v4536_v30  ;;  %v3864_v49 = vmax.f32 %v3416_v34, 0.0  ;;  %v3976_v44 = vmax.f32 %v3528_v35, 0.0  ;;  %v260_v34 = vld [vmem:[%s5782_s27 + $0x1d0] sm:$0xff]  ;;  %v261_v35 = vld [vmem:[%s5782_s27 + $0x1d8] sm:$0xff] }
 0x1d2   : > { %5097 = vst.msk [vmem:[%s5910_s9 + $0x258] sm:$0xf] %vm4946_vm3, %v4648_v31  ;;  %v3641_v47 = vmax.f32 %v3193_v40, 0.0  ;;  %v3753_v48 = vmax.f32 %v3305_v39, 0.0  ;;  %v373_v40 = vld [vmem:[%s5782_s27 + $0x558] sm:$0xff]  ;;  %v484_v39 = vld [vmem:[%s5782_s27 + $0x8d0] sm:$0xff] }
 0x1d3   : > { %v4312_v51 = vmin.f32 %v3864_v49, 6.0  ;;  %v4424_v52 = vmin.f32 %v3976_v44, 6.0  ;;  %v596_v49 = vld [vmem:[%s5782_s27 + $0xc50] sm:$0xff]  ;;  %v597_v44 = vld [vmem:[%s5782_s27 + $0xc58] sm:$0xff] }
 0x1d4   : > { %v4089_v54 = vmin.f32 %v3641_v47, 6.0  ;;  %v4201_v55 = vmin.f32 %v3753_v48, 6.0  ;;  %v2235_v56 = vpop.f32.mrf.mxu2  ;;  %v2515_v57 = vpop.f32.mrf.mxu3 }
 0x1d5   : > { %v4760_v61 = vpack.c.bf16 %v4312_v51, %v4312_v51  ;;  %v4872_v62 = vpack.c.bf16 %v4424_v52, %v4424_v52  ;;  %v2965_v63 = vmul.f32 %v6561_v8, %v2235_v56  ;;  %v3077_v0 = vmul.f32 %v6561_v8, %v2515_v57  ;;  %v1678_v1 = vpop.f32.mrf.mxu0  ;;  %v1958_v2 = vpop.f32.mrf.mxu1 }
 0x1d6   : > { %v4537_v59 = vpack.c.bf16 %v4089_v54, %v4089_v54  ;;  %v4649_v3 = vpack.c.bf16 %v4201_v55, %v4201_v55  ;;  %v2742_v4 = vmul.f32 %v6561_v8, %v1678_v1  ;;  %v2854_v5 = vmul.f32 %v6561_v8, %v1958_v2 }
 0x1d7   : > { %5209 = vst.msk [vmem:[%s5910_s9 + $0x418] sm:$0xf] %vm4946_vm3, %v4760_v61  ;;  %v3417_v6 = vadd.f32 %v6572_v17, %v2965_v63  ;;  %v3529_v7 = vadd.f32 %v6572_v17, %v3077_v0  ;;  %v679_v51 = vpack.c.bf16 %v261_v35, %v260_v34  ;;  %v735_v52 = vpack.c.bf16 %v373_v40, %v372_v36  ;;  %v374_v34 = vld [vmem:[%s5782_s27 + $0x560] sm:$0xff]  ;;  %v487_v40 = vld [vmem:[%s5782_s27 + $0x8e8] sm:$0xff] }
 0x1d8   : > { %5321 = vst.msk [vmem:[%s5910_s9 + $0x5d8] sm:$0xf] %vm4946_vm3, %v4872_v62  ;;  %v3194_v9 = vadd.f32 %v6572_v17, %v2742_v4  ;;  %v3306_v10 = vadd.f32 %v6572_v17, %v2854_v5  ;;  %5494 = vmatmul.msk.bf16.gmra.mxu0 %vm889_vm2, %v678_v50  ;;  %5550 = vmatmul.msk.bf16.gmra.mxu1 %vm889_vm2, %v734_v53 }
 0x1d9   : > { %4986 = vst.msk [vmem:[%s5910_s9 + $0x9c] sm:$0xf] %vm4946_vm3, %v4537_v59  ;;  %v3865_v11 = vmax.f32 %v3417_v6, 0.0  ;;  %v3977_v12 = vmax.f32 %v3529_v7, 0.0  ;;  %5606 = vmatmul.msk.bf16.gmra.mxu2 %vm889_vm2, %v790_v58  ;;  %5662 = vmatmul.msk.bf16.gmra.mxu3 %vm889_vm2, %v846_v60  ;;  %v791_v56 = vpack.c.bf16 %v485_v41, %v484_v39  ;;  %v847_v57 = vpack.c.bf16 %v597_v44, %v596_v49 }
 0x1da   : > { %5098 = vst.msk [vmem:[%s5910_s9 + $0x25c] sm:$0xf] %vm4946_vm3, %v4649_v3  ;;  %v3642_v13 = vmax.f32 %v3194_v9, 0.0  ;;  %v3754_v14 = vmax.f32 %v3306_v10, 0.0 }
 0x1db   : > { %v4313_v15 = vmin.f32 %v3865_v11, 6.0  ;;  %v4425_v16 = vmin.f32 %v3977_v12, 6.0 }
 0x1dc   : > { %v4090_v18 = vmin.f32 %v3642_v13, 6.0  ;;  %v4202_v19 = vmin.f32 %v3754_v14, 6.0  ;;  %v2238_v20 = vpop.f32.mrf.mxu2  ;;  %v2518_v21 = vpop.f32.mrf.mxu3 }
 0x1dd   : > { %v4761_v22 = vpack.c.bf16 %v4313_v15, %v4313_v15  ;;  %v4873_v23 = vpack.c.bf16 %v4425_v16, %v4425_v16  ;;  %v2966_v24 = vmul.f32 %v6561_v8, %v2238_v20  ;;  %v3078_v25 = vmul.f32 %v6561_v8, %v2518_v21  ;;  %v1680_v26 = vpop.f32.mrf.mxu0  ;;  %v1960_v27 = vpop.f32.mrf.mxu1 }
 0x1de   : > { %v4538_v28 = vpack.c.bf16 %v4090_v18, %v4090_v18  ;;  %v4650_v29 = vpack.c.bf16 %v4202_v19, %v4202_v19  ;;  %v2743_v30 = vmul.f32 %v6561_v8, %v1680_v26  ;;  %v2855_v31 = vmul.f32 %v6561_v8, %v1960_v27 }
 0x1df   : > { %5210 = vst.msk [vmem:[%s5910_s9 + $0x41c] sm:$0xf] %vm4946_vm3, %v4761_v22  ;;  %v3418_v32 = vadd.f32 %v6572_v17, %v2966_v24  ;;  %v3530_v33 = vadd.f32 %v6572_v17, %v3078_v25 }
 0x1e0   : > { %5322 = vst.msk [vmem:[%s5910_s9 + $0x5dc] sm:$0xf] %vm4946_vm3, %v4873_v23  ;;  %v3195_v37 = vadd.f32 %v6572_v17, %v2743_v30  ;;  %v3307_v38 = vadd.f32 %v6572_v17, %v2855_v31 }
 0x1e1   : > { %4987 = vst.msk [vmem:[%s5910_s9 + $0xa0] sm:$0xf] %vm4946_vm3, %v4538_v28  ;;  %v3866_v42 = vmax.f32 %v3418_v32, 0.0  ;;  %v3978_v43 = vmax.f32 %v3530_v33, 0.0  ;;  %v262_v32 = vld [vmem:[%s5782_s27 + $0x1e0] sm:$0xff]  ;;  %v263_v33 = vld [vmem:[%s5782_s27 + $0x1e8] sm:$0xff] }
 0x1e2   : > { %5099 = vst.msk [vmem:[%s5910_s9 + $0x260] sm:$0xf] %vm4946_vm3, %v4650_v29  ;;  %v3643_v45 = vmax.f32 %v3195_v37, 0.0  ;;  %v3755_v46 = vmax.f32 %v3307_v38, 0.0  ;;  %v375_v37 = vld [vmem:[%s5782_s27 + $0x568] sm:$0xff]  ;;  %v486_v38 = vld [vmem:[%s5782_s27 + $0x8e0] sm:$0xff] }
 0x1e3   : > { %v4314_v47 = vmin.f32 %v3866_v42, 6.0  ;;  %v4426_v48 = vmin.f32 %v3978_v43, 6.0  ;;  %v598_v42 = vld [vmem:[%s5782_s27 + $0xc60] sm:$0xff]  ;;  %v599_v43 = vld [vmem:[%s5782_s27 + $0xc68] sm:$0xff] }
 0x1e4   : > { %v4091_v50 = vmin.f32 %v3643_v45, 6.0  ;;  %v4203_v53 = vmin.f32 %v3755_v46, 6.0  ;;  %v2240_v54 = vpop.f32.mrf.mxu2  ;;  %v2520_v55 = vpop.f32.mrf.mxu3 }
 0x1e5   : > { %v4762_v58 = vpack.c.bf16 %v4314_v47, %v4314_v47  ;;  %v4874_v60 = vpack.c.bf16 %v4426_v48, %v4426_v48  ;;  %v2967_v61 = vmul.f32 %v6561_v8, %v2240_v54  ;;  %v3079_v62 = vmul.f32 %v6561_v8, %v2520_v55  ;;  %v1683_v63 = vpop.f32.mrf.mxu0  ;;  %v1963_v0 = vpop.f32.mrf.mxu1 }
 0x1e6   : > { %v4539_v1 = vpack.c.bf16 %v4091_v50, %v4091_v50  ;;  %v4651_v2 = vpack.c.bf16 %v4203_v53, %v4203_v53  ;;  %v2744_v59 = vmul.f32 %v6561_v8, %v1683_v63  ;;  %v2856_v3 = vmul.f32 %v6561_v8, %v1963_v0 }
 0x1e7   : > { %5211 = vst.msk [vmem:[%s5910_s9 + $0x420] sm:$0xf] %vm4946_vm3, %v4762_v58  ;;  %v3419_v4 = vadd.f32 %v6572_v17, %v2967_v61  ;;  %v3531_v5 = vadd.f32 %v6572_v17, %v3079_v62  ;;  %v680_v47 = vpack.c.bf16 %v263_v33, %v262_v32  ;;  %v736_v48 = vpack.c.bf16 %v375_v37, %v374_v34  ;;  %v376_v32 = vld [vmem:[%s5782_s27 + $0x570] sm:$0xff]  ;;  %v489_v37 = vld [vmem:[%s5782_s27 + $0x8f8] sm:$0xff] }
 0x1e8   : > { %5323 = vst.msk [vmem:[%s5910_s9 + $0x5e0] sm:$0xf] %vm4946_vm3, %v4874_v60  ;;  %v3196_v6 = vadd.f32 %v6572_v17, %v2744_v59  ;;  %v3308_v7 = vadd.f32 %v6572_v17, %v2856_v3  ;;  %5495 = vmatmul.msk.bf16.gmra.mxu0 %vm889_vm2, %v679_v51  ;;  %5551 = vmatmul.msk.bf16.gmra.mxu1 %vm889_vm2, %v735_v52 }
 0x1e9   : > { %4988 = vst.msk [vmem:[%s5910_s9 + $0xa4] sm:$0xf] %vm4946_vm3, %v4539_v1  ;;  %v3867_v9 = vmax.f32 %v3419_v4, 0.0  ;;  %v3979_v10 = vmax.f32 %v3531_v5, 0.0  ;;  %5607 = vmatmul.msk.bf16.gmra.mxu2 %vm889_vm2, %v791_v56  ;;  %5663 = vmatmul.msk.bf16.gmra.mxu3 %vm889_vm2, %v847_v57  ;;  %v792_v54 = vpack.c.bf16 %v487_v40, %v486_v38  ;;  %v848_v55 = vpack.c.bf16 %v599_v43, %v598_v42 }
 0x1ea   : > { %5100 = vst.msk [vmem:[%s5910_s9 + $0x264] sm:$0xf] %vm4946_vm3, %v4651_v2  ;;  %v3644_v11 = vmax.f32 %v3196_v6, 0.0  ;;  %v3756_v12 = vmax.f32 %v3308_v7, 0.0 }
 0x1eb   : > { %v4315_v13 = vmin.f32 %v3867_v9, 6.0  ;;  %v4427_v14 = vmin.f32 %v3979_v10, 6.0 }
 0x1ec   : > { %v4092_v15 = vmin.f32 %v3644_v11, 6.0  ;;  %v4204_v16 = vmin.f32 %v3756_v12, 6.0  ;;  %v2243_v18 = vpop.f32.mrf.mxu2  ;;  %v2523_v19 = vpop.f32.mrf.mxu3 }
 0x1ed   : > { %v4763_v20 = vpack.c.bf16 %v4315_v13, %v4315_v13  ;;  %v4875_v21 = vpack.c.bf16 %v4427_v14, %v4427_v14  ;;  %v2968_v22 = vmul.f32 %v6561_v8, %v2243_v18  ;;  %v3080_v23 = vmul.f32 %v6561_v8, %v2523_v19  ;;  %v1685_v24 = vpop.f32.mrf.mxu0  ;;  %v1965_v25 = vpop.f32.mrf.mxu1  ;;  %v6899_v18 = vld [vmem:[%s8339_s2] ss:$0 sm:$0xff] }
 0x1ee   : > { %v4540_v26 = vpack.c.bf16 %v4092_v15, %v4092_v15  ;;  %v4652_v27 = vpack.c.bf16 %v4204_v16, %v4204_v16  ;;  %v2745_v28 = vmul.f32 %v6561_v8, %v1685_v24  ;;  %v2857_v29 = vmul.f32 %v6561_v8, %v1965_v25 }
 0x1ef   : > { %5212 = vst.msk [vmem:[%s5910_s9 + $0x424] sm:$0xf] %vm4946_vm3, %v4763_v20  ;;  %v3420_v30 = vadd.f32 %v6572_v17, %v2968_v22  ;;  %v3532_v31 = vadd.f32 %v6572_v17, %v3080_v23 }
 0x1f0   : > { %5324 = vst.msk [vmem:[%s5910_s9 + $0x5e4] sm:$0xf] %vm4946_vm3, %v4875_v21  ;;  %v3197_v35 = vadd.f32 %v6572_v17, %v2745_v28  ;;  %v3309_v36 = vadd.f32 %v6572_v17, %v2857_v29 }
 0x1f1   : > { %4989 = vst.msk [vmem:[%s5910_s9 + $0xa8] sm:$0xf] %vm4946_vm3, %v4540_v26  ;;  %v3868_v39 = vmax.f32 %v3420_v30, 0.0  ;;  %v3980_v41 = vmax.f32 %v3532_v31, 0.0  ;;  %v264_v30 = vld [vmem:[%s5782_s27 + $0x1f0] sm:$0xff]  ;;  %v265_v31 = vld [vmem:[%s5782_s27 + $0x1f8] sm:$0xff] }
 0x1f2   : > { %5101 = vst.msk [vmem:[%s5910_s9 + $0x268] sm:$0xf] %vm4946_vm3, %v4652_v27  ;;  %v3645_v49 = vmax.f32 %v3197_v35, 0.0  ;;  %v3757_v44 = vmax.f32 %v3309_v36, 0.0  ;;  %v6910_v27 = vld [vmem:[%s8340_s3] ss:$0 sm:$0xff] }
 0x1f3   : > { %v4316_v45 = vmin.f32 %v3868_v39, 6.0  ;;  %v4428_v46 = vmin.f32 %v3980_v41, 6.0  ;;  %v377_v35 = vld [vmem:[%s5782_s27 + $0x578] sm:$0xff]  ;;  %v488_v36 = vld [vmem:[%s5782_s27 + $0x8f0] sm:$0xff] }
 0x1f4   : > { %v4093_v51 = vmin.f32 %v3645_v49, 6.0  ;;  %v4205_v52 = vmin.f32 %v3757_v44, 6.0  ;;  %v2245_v50 = vpop.f32.mrf.mxu2  ;;  %v2525_v53 = vpop.f32.mrf.mxu3  ;;  %v600_v39 = vld [vmem:[%s5782_s27 + $0xc70] sm:$0xff]  ;;  %v601_v41 = vld [vmem:[%s5782_s27 + $0xc78] sm:$0xff] }
 0x1f5   : > { %v4764_v56 = vpack.c.bf16 %v4316_v45, %v4316_v45  ;;  %v4876_v57 = vpack.c.bf16 %v4428_v46, %v4428_v46  ;;  %v2969_v58 = vmul.f32 %v6561_v8, %v2245_v50  ;;  %v3081_v60 = vmul.f32 %v6561_v8, %v2525_v53  ;;  %v1688_v61 = vpop.f32.mrf.mxu0  ;;  %v1968_v62 = vpop.f32.mrf.mxu1 }
 0x1f6   : > { %v4541_v63 = vpack.c.bf16 %v4093_v51, %v4093_v51  ;;  %v4653_v0 = vpack.c.bf16 %v4205_v52, %v4205_v52  ;;  %v2746_v1 = vmul.f32 %v6561_v8, %v1688_v61  ;;  %v2858_v2 = vmul.f32 %v6561_v8, %v1968_v62 }
 0x1f7   : > { %5213 = vst.msk [vmem:[%s5910_s9 + $0x428] sm:$0xf] %vm4946_vm3, %v4764_v56  ;;  %v3421_v59 = vadd.f32 %v6572_v17, %v2969_v58  ;;  %v3533_v3 = vadd.f32 %v6572_v17, %v3081_v60  ;;  %v681_v45 = vpack.c.bf16 %v265_v31, %v264_v30  ;;  %v737_v46 = vpack.c.bf16 %v377_v35, %v376_v32  ;;  %v378_v30 = vld [vmem:[%s5782_s27 + $0x580] sm:$0xff]  ;;  %v491_v35 = vld [vmem:[%s5782_s27 + $0x908] sm:$0xff] }
 0x1f8   : > { %5325 = vst.msk [vmem:[%s5910_s9 + $0x5e8] sm:$0xf] %vm4946_vm3, %v4876_v57  ;;  %v3198_v4 = vadd.f32 %v6572_v17, %v2746_v1  ;;  %v3310_v5 = vadd.f32 %v6572_v17, %v2858_v2  ;;  %5496 = vmatmul.msk.bf16.gmra.mxu0 %vm889_vm2, %v680_v47  ;;  %5552 = vmatmul.msk.bf16.gmra.mxu1 %vm889_vm2, %v736_v48 }
 0x1f9   : > { %4990 = vst.msk [vmem:[%s5910_s9 + $0xac] sm:$0xf] %vm4946_vm3, %v4541_v63  ;;  %v3869_v6 = vmax.f32 %v3421_v59, 0.0  ;;  %v3981_v8 = vmax.f32 %v3533_v3, 0.0  ;;  %5608 = vmatmul.msk.bf16.gmra.mxu2 %vm889_vm2, %v792_v54  ;;  %5664 = vmatmul.msk.bf16.gmra.mxu3 %vm889_vm2, %v848_v55  ;;  %v793_v50 = vpack.c.bf16 %v489_v37, %v488_v36  ;;  %v849_v53 = vpack.c.bf16 %v601_v41, %v600_v39 }
 0x1fa   : > { %5102 = vst.msk [vmem:[%s5910_s9 + $0x26c] sm:$0xf] %vm4946_vm3, %v4653_v0  ;;  %v3646_v7 = vmax.f32 %v3198_v4, 0.0  ;;  %v3758_v9 = vmax.f32 %v3310_v5, 0.0 }
 0x1fb   : > { %v4317_v10 = vmin.f32 %v3869_v6, 6.0  ;;  %v4429_v11 = vmin.f32 %v3981_v8, 6.0 }
 0x1fc   : > { %v4094_v17 = vmin.f32 %v3646_v7, 6.0  ;;  %v4206_v12 = vmin.f32 %v3758_v9, 6.0  ;;  %v2248_v13 = vpop.f32.mrf.mxu2  ;;  %v2528_v14 = vpop.f32.mrf.mxu3 }
 0x1fd   : > { %v4765_v15 = vpack.c.bf16 %v4317_v10, %v4317_v10  ;;  %v4877_v16 = vpack.c.bf16 %v4429_v11, %v4429_v11  ;;  %v2970_v19 = vmul.f32 %v6899_v18, %v2248_v13  ;;  %v3082_v20 = vmul.f32 %v6899_v18, %v2528_v14  ;;  %v1690_v21 = vpop.f32.mrf.mxu0  ;;  %v1970_v22 = vpop.f32.mrf.mxu1 }
 0x1fe   : > { %v4542_v23 = vpack.c.bf16 %v4094_v17, %v4094_v17  ;;  %v4654_v24 = vpack.c.bf16 %v4206_v12, %v4206_v12  ;;  %v2747_v25 = vmul.f32 %v6899_v18, %v1690_v21  ;;  %v2859_v26 = vmul.f32 %v6899_v18, %v1970_v22 }
 0x1ff   : > { %5214 = vst.msk [vmem:[%s5910_s9 + $0x42c] sm:$0xf] %vm4946_vm3, %v4765_v15  ;;  %v3422_v28 = vadd.f32 %v6910_v27, %v2970_v19  ;;  %v3534_v29 = vadd.f32 %v6910_v27, %v3082_v20 }
 0x200   : > { %5326 = vst.msk [vmem:[%s5910_s9 + $0x5ec] sm:$0xf] %vm4946_vm3, %v4877_v16  ;;  %v3199_v33 = vadd.f32 %v6910_v27, %v2747_v25  ;;  %v3311_v34 = vadd.f32 %v6910_v27, %v2859_v26 }
 0x201   : > { %4991 = vst.msk [vmem:[%s5910_s9 + $0xb0] sm:$0xf] %vm4946_vm3, %v4542_v23  ;;  %v3870_v38 = vmax.f32 %v3422_v28, 0.0  ;;  %v3982_v40 = vmax.f32 %v3534_v29, 0.0  ;;  %v266_v28 = vld [vmem:[%s5782_s27 + $0x200] sm:$0xff]  ;;  %v267_v29 = vld [vmem:[%s5782_s27 + $0x208] sm:$0xff] }
 0x202   : > { %5103 = vst.msk [vmem:[%s5910_s9 + $0x270] sm:$0xf] %vm4946_vm3, %v4654_v24  ;;  %v3647_v42 = vmax.f32 %v3199_v33, 0.0  ;;  %v3759_v43 = vmax.f32 %v3311_v34, 0.0  ;;  %v379_v33 = vld [vmem:[%s5782_s27 + $0x588] sm:$0xff]  ;;  %v490_v34 = vld [vmem:[%s5782_s27 + $0x900] sm:$0xff] }
 0x203   : > { %v4318_v49 = vmin.f32 %v3870_v38, 6.0  ;;  %v4430_v44 = vmin.f32 %v3982_v40, 6.0  ;;  %v602_v38 = vld [vmem:[%s5782_s27 + $0xc80] sm:$0xff]  ;;  %v603_v40 = vld [vmem:[%s5782_s27 + $0xc88] sm:$0xff] }
 0x204   : > { %v4095_v47 = vmin.f32 %v3647_v42, 6.0  ;;  %v4207_v48 = vmin.f32 %v3759_v43, 6.0  ;;  %v2250_v51 = vpop.f32.mrf.mxu2  ;;  %v2530_v52 = vpop.f32.mrf.mxu3 }
 0x205   : > { %v4766_v54 = vpack.c.bf16 %v4318_v49, %v4318_v49  ;;  %v4878_v55 = vpack.c.bf16 %v4430_v44, %v4430_v44  ;;  %v2971_v56 = vmul.f32 %v6899_v18, %v2250_v51  ;;  %v3083_v57 = vmul.f32 %v6899_v18, %v2530_v52  ;;  %v1693_v58 = vpop.f32.mrf.mxu0  ;;  %v1973_v60 = vpop.f32.mrf.mxu1 }
 0x206   : > { %v4543_v61 = vpack.c.bf16 %v4095_v47, %v4095_v47  ;;  %v4655_v62 = vpack.c.bf16 %v4207_v48, %v4207_v48  ;;  %v2748_v63 = vmul.f32 %v6899_v18, %v1693_v58  ;;  %v2860_v0 = vmul.f32 %v6899_v18, %v1973_v60 }
 0x207   : > { %5215 = vst.msk [vmem:[%s5910_s9 + $0x430] sm:$0xf] %vm4946_vm3, %v4766_v54  ;;  %v3423_v1 = vadd.f32 %v6910_v27, %v2971_v56  ;;  %v3535_v2 = vadd.f32 %v6910_v27, %v3083_v57  ;;  %v682_v49 = vpack.c.bf16 %v267_v29, %v266_v28  ;;  %v738_v44 = vpack.c.bf16 %v379_v33, %v378_v30  ;;  %v380_v28 = vld [vmem:[%s5782_s27 + $0x590] sm:$0xff]  ;;  %v493_v33 = vld [vmem:[%s5782_s27 + $0x918] sm:$0xff] }
 0x208   : > { %5327 = vst.msk [vmem:[%s5910_s9 + $0x5f0] sm:$0xf] %vm4946_vm3, %v4878_v55  ;;  %v3200_v59 = vadd.f32 %v6910_v27, %v2748_v63  ;;  %v3312_v3 = vadd.f32 %v6910_v27, %v2860_v0  ;;  %5497 = vmatmul.msk.bf16.gmra.mxu0 %vm889_vm2, %v681_v45  ;;  %5553 = vmatmul.msk.bf16.gmra.mxu1 %vm889_vm2, %v737_v46 }
 0x209   : > { %4992 = vst.msk [vmem:[%s5910_s9 + $0xb4] sm:$0xf] %vm4946_vm3, %v4543_v61  ;;  %v3871_v4 = vmax.f32 %v3423_v1, 0.0  ;;  %v3983_v5 = vmax.f32 %v3535_v2, 0.0  ;;  %5609 = vmatmul.msk.bf16.gmra.mxu2 %vm889_vm2, %v793_v50  ;;  %5665 = vmatmul.msk.bf16.gmra.mxu3 %vm889_vm2, %v849_v53  ;;  %v794_v51 = vpack.c.bf16 %v491_v35, %v490_v34  ;;  %v850_v52 = vpack.c.bf16 %v603_v40, %v602_v38 }
 0x20a   : > { %5104 = vst.msk [vmem:[%s5910_s9 + $0x274] sm:$0xf] %vm4946_vm3, %v4655_v62  ;;  %v3648_v6 = vmax.f32 %v3200_v59, 0.0  ;;  %v3760_v8 = vmax.f32 %v3312_v3, 0.0 }
 0x20b   : > { %v4319_v7 = vmin.f32 %v3871_v4, 6.0  ;;  %v4431_v9 = vmin.f32 %v3983_v5, 6.0 }
 0x20c   : > { %v4096_v10 = vmin.f32 %v3648_v6, 6.0  ;;  %v4208_v11 = vmin.f32 %v3760_v8, 6.0  ;;  %v2253_v17 = vpop.f32.mrf.mxu2  ;;  %v2533_v12 = vpop.f32.mrf.mxu3 }
 0x20d   : > { %v4767_v13 = vpack.c.bf16 %v4319_v7, %v4319_v7  ;;  %v4879_v14 = vpack.c.bf16 %v4431_v9, %v4431_v9  ;;  %v2972_v15 = vmul.f32 %v6899_v18, %v2253_v17  ;;  %v3084_v16 = vmul.f32 %v6899_v18, %v2533_v12  ;;  %v1695_v19 = vpop.f32.mrf.mxu0  ;;  %v1975_v20 = vpop.f32.mrf.mxu1 }
 0x20e   : > { %v4544_v21 = vpack.c.bf16 %v4096_v10, %v4096_v10  ;;  %v4656_v22 = vpack.c.bf16 %v4208_v11, %v4208_v11  ;;  %v2749_v23 = vmul.f32 %v6899_v18, %v1695_v19  ;;  %v2861_v24 = vmul.f32 %v6899_v18, %v1975_v20 }
 0x20f   : > { %5216 = vst.msk [vmem:[%s5910_s9 + $0x434] sm:$0xf] %vm4946_vm3, %v4767_v13  ;;  %v3424_v25 = vadd.f32 %v6910_v27, %v2972_v15  ;;  %v3536_v26 = vadd.f32 %v6910_v27, %v3084_v16 }
 0x210   : > { %5328 = vst.msk [vmem:[%s5910_s9 + $0x5f4] sm:$0xf] %vm4946_vm3, %v4879_v14  ;;  %v3201_v31 = vadd.f32 %v6910_v27, %v2749_v23  ;;  %v3313_v32 = vadd.f32 %v6910_v27, %v2861_v24 }
 0x211   : > { %4993 = vst.msk [vmem:[%s5910_s9 + $0xb8] sm:$0xf] %vm4946_vm3, %v4544_v21  ;;  %v3872_v36 = vmax.f32 %v3424_v25, 0.0  ;;  %v3984_v37 = vmax.f32 %v3536_v26, 0.0  ;;  %v268_v25 = vld [vmem:[%s5782_s27 + $0x210] sm:$0xff]  ;;  %v269_v26 = vld [vmem:[%s5782_s27 + $0x218] sm:$0xff] }
 0x212   : > { %5105 = vst.msk [vmem:[%s5910_s9 + $0x278] sm:$0xf] %vm4946_vm3, %v4656_v22  ;;  %v3649_v39 = vmax.f32 %v3201_v31, 0.0  ;;  %v3761_v41 = vmax.f32 %v3313_v32, 0.0  ;;  %v381_v31 = vld [vmem:[%s5782_s27 + $0x598] sm:$0xff]  ;;  %v492_v32 = vld [vmem:[%s5782_s27 + $0x910] sm:$0xff] }
 0x213   : > { %v4320_v42 = vmin.f32 %v3872_v36, 6.0  ;;  %v4432_v43 = vmin.f32 %v3984_v37, 6.0  ;;  %v604_v36 = vld [vmem:[%s5782_s27 + $0xc90] sm:$0xff]  ;;  %v605_v37 = vld [vmem:[%s5782_s27 + $0xc98] sm:$0xff] }
 0x214   : > { %v4097_v45 = vmin.f32 %v3649_v39, 6.0  ;;  %v4209_v46 = vmin.f32 %v3761_v41, 6.0  ;;  %v2255_v47 = vpop.f32.mrf.mxu2  ;;  %v2535_v48 = vpop.f32.mrf.mxu3 }
 0x215   : > { %v4768_v50 = vpack.c.bf16 %v4320_v42, %v4320_v42  ;;  %v4880_v53 = vpack.c.bf16 %v4432_v43, %v4432_v43  ;;  %v2973_v54 = vmul.f32 %v6899_v18, %v2255_v47  ;;  %v3085_v55 = vmul.f32 %v6899_v18, %v2535_v48  ;;  %v1698_v56 = vpop.f32.mrf.mxu0  ;;  %v1978_v57 = vpop.f32.mrf.mxu1 }
 0x216   : > { %v4545_v58 = vpack.c.bf16 %v4097_v45, %v4097_v45  ;;  %v4657_v60 = vpack.c.bf16 %v4209_v46, %v4209_v46  ;;  %v2750_v61 = vmul.f32 %v6899_v18, %v1698_v56  ;;  %v2862_v62 = vmul.f32 %v6899_v18, %v1978_v57 }
 0x217   : > { %5217 = vst.msk [vmem:[%s5910_s9 + $0x438] sm:$0xf] %vm4946_vm3, %v4768_v50  ;;  %v3425_v63 = vadd.f32 %v6910_v27, %v2973_v54  ;;  %v3537_v0 = vadd.f32 %v6910_v27, %v3085_v55  ;;  %v683_v42 = vpack.c.bf16 %v269_v26, %v268_v25  ;;  %v739_v43 = vpack.c.bf16 %v381_v31, %v380_v28  ;;  %v382_v25 = vld [vmem:[%s5782_s27 + $0x5a0] sm:$0xff]  ;;  %v495_v31 = vld [vmem:[%s5782_s27 + $0x928] sm:$0xff] }
 0x218   : > { %5329 = vst.msk [vmem:[%s5910_s9 + $0x5f8] sm:$0xf] %vm4946_vm3, %v4880_v53  ;;  %v3202_v1 = vadd.f32 %v6910_v27, %v2750_v61  ;;  %v3314_v2 = vadd.f32 %v6910_v27, %v2862_v62  ;;  %5498 = vmatmul.msk.bf16.gmra.mxu0 %vm889_vm2, %v682_v49  ;;  %5554 = vmatmul.msk.bf16.gmra.mxu1 %vm889_vm2, %v738_v44 }
 0x219   : > { %4994 = vst.msk [vmem:[%s5910_s9 + $0xbc] sm:$0xf] %vm4946_vm3, %v4545_v58  ;;  %v3873_v59 = vmax.f32 %v3425_v63, 0.0  ;;  %v3985_v3 = vmax.f32 %v3537_v0, 0.0  ;;  %5610 = vmatmul.msk.bf16.gmra.mxu2 %vm889_vm2, %v794_v51  ;;  %5666 = vmatmul.msk.bf16.gmra.mxu3 %vm889_vm2, %v850_v52  ;;  %v795_v47 = vpack.c.bf16 %v493_v33, %v492_v32  ;;  %v851_v48 = vpack.c.bf16 %v605_v37, %v604_v36 }
 0x21a   : > { %5106 = vst.msk [vmem:[%s5910_s9 + $0x27c] sm:$0xf] %vm4946_vm3, %v4657_v60  ;;  %v3650_v4 = vmax.f32 %v3202_v1, 0.0  ;;  %v3762_v5 = vmax.f32 %v3314_v2, 0.0 }
 0x21b   : > { %v4321_v6 = vmin.f32 %v3873_v59, 6.0  ;;  %v4433_v8 = vmin.f32 %v3985_v3, 6.0 }
 0x21c   : > { %v4098_v7 = vmin.f32 %v3650_v4, 6.0  ;;  %v4210_v9 = vmin.f32 %v3762_v5, 6.0  ;;  %v2258_v10 = vpop.f32.mrf.mxu2  ;;  %v2538_v11 = vpop.f32.mrf.mxu3 }
 0x21d   : > { %v4769_v17 = vpack.c.bf16 %v4321_v6, %v4321_v6  ;;  %v4881_v12 = vpack.c.bf16 %v4433_v8, %v4433_v8  ;;  %v2974_v13 = vmul.f32 %v6899_v18, %v2258_v10  ;;  %v3086_v14 = vmul.f32 %v6899_v18, %v2538_v11  ;;  %v1700_v15 = vpop.f32.mrf.mxu0  ;;  %v1980_v16 = vpop.f32.mrf.mxu1 }
 0x21e   : > { %v4546_v19 = vpack.c.bf16 %v4098_v7, %v4098_v7  ;;  %v4658_v20 = vpack.c.bf16 %v4210_v9, %v4210_v9  ;;  %v2751_v21 = vmul.f32 %v6899_v18, %v1700_v15  ;;  %v2863_v22 = vmul.f32 %v6899_v18, %v1980_v16 }
 0x21f   : > { %5218 = vst.msk [vmem:[%s5910_s9 + $0x43c] sm:$0xf] %vm4946_vm3, %v4769_v17  ;;  %v3426_v23 = vadd.f32 %v6910_v27, %v2974_v13  ;;  %v3538_v24 = vadd.f32 %v6910_v27, %v3086_v14 }
 0x220   : > { %5330 = vst.msk [vmem:[%s5910_s9 + $0x5fc] sm:$0xf] %vm4946_vm3, %v4881_v12  ;;  %v3203_v29 = vadd.f32 %v6910_v27, %v2751_v21  ;;  %v3315_v30 = vadd.f32 %v6910_v27, %v2863_v22 }
 0x221   : > { %4995 = vst.msk [vmem:[%s5910_s9 + $0xc0] sm:$0xf] %vm4946_vm3, %v4546_v19  ;;  %v3874_v34 = vmax.f32 %v3426_v23, 0.0  ;;  %v3986_v35 = vmax.f32 %v3538_v24, 0.0  ;;  %v270_v23 = vld [vmem:[%s5782_s27 + $0x220] sm:$0xff]  ;;  %v271_v24 = vld [vmem:[%s5782_s27 + $0x228] sm:$0xff] }
 0x222   : > { %5107 = vst.msk [vmem:[%s5910_s9 + $0x280] sm:$0xf] %vm4946_vm3, %v4658_v20  ;;  %v3651_v38 = vmax.f32 %v3203_v29, 0.0  ;;  %v3763_v40 = vmax.f32 %v3315_v30, 0.0  ;;  %v383_v29 = vld [vmem:[%s5782_s27 + $0x5a8] sm:$0xff]  ;;  %v494_v30 = vld [vmem:[%s5782_s27 + $0x920] sm:$0xff] }
 0x223   : > { %v4322_v39 = vmin.f32 %v3874_v34, 6.0  ;;  %v4434_v41 = vmin.f32 %v3986_v35, 6.0  ;;  %v606_v34 = vld [vmem:[%s5782_s27 + $0xca0] sm:$0xff]  ;;  %v607_v35 = vld [vmem:[%s5782_s27 + $0xca8] sm:$0xff] }
 0x224   : > { %v4099_v49 = vmin.f32 %v3651_v38, 6.0  ;;  %v4211_v44 = vmin.f32 %v3763_v40, 6.0  ;;  %v2260_v45 = vpop.f32.mrf.mxu2  ;;  %v2540_v46 = vpop.f32.mrf.mxu3 }
 0x225   : > { %v4770_v51 = vpack.c.bf16 %v4322_v39, %v4322_v39  ;;  %v4882_v52 = vpack.c.bf16 %v4434_v41, %v4434_v41  ;;  %v2975_v50 = vmul.f32 %v6899_v18, %v2260_v45  ;;  %v3087_v53 = vmul.f32 %v6899_v18, %v2540_v46  ;;  %v1703_v54 = vpop.f32.mrf.mxu0  ;;  %v1983_v55 = vpop.f32.mrf.mxu1 }
 0x226   : > { %v4547_v56 = vpack.c.bf16 %v4099_v49, %v4099_v49  ;;  %v4659_v57 = vpack.c.bf16 %v4211_v44, %v4211_v44  ;;  %v2752_v58 = vmul.f32 %v6899_v18, %v1703_v54  ;;  %v2864_v60 = vmul.f32 %v6899_v18, %v1983_v55 }
 0x227   : > { %5219 = vst.msk [vmem:[%s5910_s9 + $0x440] sm:$0xf] %vm4946_vm3, %v4770_v51  ;;  %v3427_v61 = vadd.f32 %v6910_v27, %v2975_v50  ;;  %v3539_v62 = vadd.f32 %v6910_v27, %v3087_v53  ;;  %v684_v39 = vpack.c.bf16 %v271_v24, %v270_v23  ;;  %v740_v41 = vpack.c.bf16 %v383_v29, %v382_v25  ;;  %v384_v23 = vld [vmem:[%s5782_s27 + $0x5b0] sm:$0xff]  ;;  %v497_v29 = vld [vmem:[%s5782_s27 + $0x938] sm:$0xff] }
 0x228   : > { %5331 = vst.msk [vmem:[%s5910_s9 + $0x600] sm:$0xf] %vm4946_vm3, %v4882_v52  ;;  %v3204_v63 = vadd.f32 %v6910_v27, %v2752_v58  ;;  %v3316_v0 = vadd.f32 %v6910_v27, %v2864_v60  ;;  %5499 = vmatmul.msk.bf16.gmra.mxu0 %vm889_vm2, %v683_v42  ;;  %5555 = vmatmul.msk.bf16.gmra.mxu1 %vm889_vm2, %v739_v43 }
 0x229   : > { %4996 = vst.msk [vmem:[%s5910_s9 + $0xc4] sm:$0xf] %vm4946_vm3, %v4547_v56  ;;  %v3875_v1 = vmax.f32 %v3427_v61, 0.0  ;;  %v3987_v2 = vmax.f32 %v3539_v62, 0.0  ;;  %5611 = vmatmul.msk.bf16.gmra.mxu2 %vm889_vm2, %v795_v47  ;;  %5667 = vmatmul.msk.bf16.gmra.mxu3 %vm889_vm2, %v851_v48  ;;  %v796_v45 = vpack.c.bf16 %v495_v31, %v494_v30  ;;  %v852_v46 = vpack.c.bf16 %v607_v35, %v606_v34 }
 0x22a   : > { %5108 = vst.msk [vmem:[%s5910_s9 + $0x284] sm:$0xf] %vm4946_vm3, %v4659_v57  ;;  %v3652_v59 = vmax.f32 %v3204_v63, 0.0  ;;  %v3764_v3 = vmax.f32 %v3316_v0, 0.0 }
 0x22b   : > { %v4323_v4 = vmin.f32 %v3875_v1, 6.0  ;;  %v4435_v5 = vmin.f32 %v3987_v2, 6.0 }
 0x22c   : > { %v4100_v6 = vmin.f32 %v3652_v59, 6.0  ;;  %v4212_v8 = vmin.f32 %v3764_v3, 6.0  ;;  %v2263_v7 = vpop.f32.mrf.mxu2  ;;  %v2543_v9 = vpop.f32.mrf.mxu3 }
 0x22d   : > { %v4771_v10 = vpack.c.bf16 %v4323_v4, %v4323_v4  ;;  %v4883_v11 = vpack.c.bf16 %v4435_v5, %v4435_v5  ;;  %v2976_v17 = vmul.f32 %v6899_v18, %v2263_v7  ;;  %v3088_v12 = vmul.f32 %v6899_v18, %v2543_v9  ;;  %v1705_v13 = vpop.f32.mrf.mxu0  ;;  %v1985_v14 = vpop.f32.mrf.mxu1 }
 0x22e   : > { %v4548_v15 = vpack.c.bf16 %v4100_v6, %v4100_v6  ;;  %v4660_v16 = vpack.c.bf16 %v4212_v8, %v4212_v8  ;;  %v2753_v19 = vmul.f32 %v6899_v18, %v1705_v13  ;;  %v2865_v20 = vmul.f32 %v6899_v18, %v1985_v14 }
 0x22f   : > { %5220 = vst.msk [vmem:[%s5910_s9 + $0x444] sm:$0xf] %vm4946_vm3, %v4771_v10  ;;  %v3428_v21 = vadd.f32 %v6910_v27, %v2976_v17  ;;  %v3540_v22 = vadd.f32 %v6910_v27, %v3088_v12 }
 0x230   : > { %5332 = vst.msk [vmem:[%s5910_s9 + $0x604] sm:$0xf] %vm4946_vm3, %v4883_v11  ;;  %v3205_v26 = vadd.f32 %v6910_v27, %v2753_v19  ;;  %v3317_v28 = vadd.f32 %v6910_v27, %v2865_v20 }
 0x231   : > { %4997 = vst.msk [vmem:[%s5910_s9 + $0xc8] sm:$0xf] %vm4946_vm3, %v4548_v15  ;;  %v3876_v32 = vmax.f32 %v3428_v21, 0.0  ;;  %v3988_v33 = vmax.f32 %v3540_v22, 0.0  ;;  %v272_v21 = vld [vmem:[%s5782_s27 + $0x230] sm:$0xff]  ;;  %v273_v22 = vld [vmem:[%s5782_s27 + $0x238] sm:$0xff] }
 0x232   : > { %5109 = vst.msk [vmem:[%s5910_s9 + $0x288] sm:$0xf] %vm4946_vm3, %v4660_v16  ;;  %v3653_v36 = vmax.f32 %v3205_v26, 0.0  ;;  %v3765_v37 = vmax.f32 %v3317_v28, 0.0  ;;  %v385_v26 = vld [vmem:[%s5782_s27 + $0x5b8] sm:$0xff]  ;;  %v496_v28 = vld [vmem:[%s5782_s27 + $0x930] sm:$0xff] }
 0x233   : > { %v4324_v38 = vmin.f32 %v3876_v32, 6.0  ;;  %v4436_v40 = vmin.f32 %v3988_v33, 6.0  ;;  %v608_v32 = vld [vmem:[%s5782_s27 + $0xcb0] sm:$0xff]  ;;  %v609_v33 = vld [vmem:[%s5782_s27 + $0xcb8] sm:$0xff] }
 0x234   : > { %v4101_v42 = vmin.f32 %v3653_v36, 6.0  ;;  %v4213_v43 = vmin.f32 %v3765_v37, 6.0  ;;  %v2265_v49 = vpop.f32.mrf.mxu2  ;;  %v2545_v44 = vpop.f32.mrf.mxu3 }
 0x235   : > { %v4772_v47 = vpack.c.bf16 %v4324_v38, %v4324_v38  ;;  %v4884_v48 = vpack.c.bf16 %v4436_v40, %v4436_v40  ;;  %v2977_v51 = vmul.f32 %v6899_v18, %v2265_v49  ;;  %v3089_v52 = vmul.f32 %v6899_v18, %v2545_v44  ;;  %v1708_v50 = vpop.f32.mrf.mxu0  ;;  %v1988_v53 = vpop.f32.mrf.mxu1 }
 0x236   : > { %v4549_v54 = vpack.c.bf16 %v4101_v42, %v4101_v42  ;;  %v4661_v55 = vpack.c.bf16 %v4213_v43, %v4213_v43  ;;  %v2754_v56 = vmul.f32 %v6899_v18, %v1708_v50  ;;  %v2866_v57 = vmul.f32 %v6899_v18, %v1988_v53 }
 0x237   : > { %5221 = vst.msk [vmem:[%s5910_s9 + $0x448] sm:$0xf] %vm4946_vm3, %v4772_v47  ;;  %v3429_v58 = vadd.f32 %v6910_v27, %v2977_v51  ;;  %v3541_v60 = vadd.f32 %v6910_v27, %v3089_v52  ;;  %v685_v38 = vpack.c.bf16 %v273_v22, %v272_v21  ;;  %v741_v40 = vpack.c.bf16 %v385_v26, %v384_v23  ;;  %v386_v21 = vld [vmem:[%s5782_s27 + $0x5c0] sm:$0xff]  ;;  %v499_v26 = vld [vmem:[%s5782_s27 + $0x948] sm:$0xff] }
 0x238   : > { %5333 = vst.msk [vmem:[%s5910_s9 + $0x608] sm:$0xf] %vm4946_vm3, %v4884_v48  ;;  %v3206_v61 = vadd.f32 %v6910_v27, %v2754_v56  ;;  %v3318_v62 = vadd.f32 %v6910_v27, %v2866_v57  ;;  %5500 = vmatmul.msk.bf16.gmra.mxu0 %vm889_vm2, %v684_v39  ;;  %5556 = vmatmul.msk.bf16.gmra.mxu1 %vm889_vm2, %v740_v41 }
 0x239   : > { %4998 = vst.msk [vmem:[%s5910_s9 + $0xcc] sm:$0xf] %vm4946_vm3, %v4549_v54  ;;  %v3877_v63 = vmax.f32 %v3429_v58, 0.0  ;;  %v3989_v0 = vmax.f32 %v3541_v60, 0.0  ;;  %5612 = vmatmul.msk.bf16.gmra.mxu2 %vm889_vm2, %v796_v45  ;;  %5668 = vmatmul.msk.bf16.gmra.mxu3 %vm889_vm2, %v852_v46  ;;  %v797_v49 = vpack.c.bf16 %v497_v29, %v496_v28  ;;  %v853_v44 = vpack.c.bf16 %v609_v33, %v608_v32 }
 0x23a   : > { %5110 = vst.msk [vmem:[%s5910_s9 + $0x28c] sm:$0xf] %vm4946_vm3, %v4661_v55  ;;  %v3654_v1 = vmax.f32 %v3206_v61, 0.0  ;;  %v3766_v2 = vmax.f32 %v3318_v62, 0.0 }
 0x23b   : > { %v4325_v59 = vmin.f32 %v3877_v63, 6.0  ;;  %v4437_v3 = vmin.f32 %v3989_v0, 6.0 }
 0x23c   : > { %v4102_v4 = vmin.f32 %v3654_v1, 6.0  ;;  %v4214_v5 = vmin.f32 %v3766_v2, 6.0  ;;  %v2268_v6 = vpop.f32.mrf.mxu2  ;;  %v2548_v8 = vpop.f32.mrf.mxu3 }
 0x23d   : > { %v4773_v7 = vpack.c.bf16 %v4325_v59, %v4325_v59  ;;  %v4885_v9 = vpack.c.bf16 %v4437_v3, %v4437_v3  ;;  %v2978_v10 = vmul.f32 %v6899_v18, %v2268_v6  ;;  %v3090_v11 = vmul.f32 %v6899_v18, %v2548_v8  ;;  %v1710_v17 = vpop.f32.mrf.mxu0  ;;  %v1990_v12 = vpop.f32.mrf.mxu1 }
 0x23e   : > { %v4550_v13 = vpack.c.bf16 %v4102_v4, %v4102_v4  ;;  %v4662_v14 = vpack.c.bf16 %v4214_v5, %v4214_v5  ;;  %v2755_v15 = vmul.f32 %v6899_v18, %v1710_v17  ;;  %v2867_v16 = vmul.f32 %v6899_v18, %v1990_v12 }
 0x23f   : > { %5222 = vst.msk [vmem:[%s5910_s9 + $0x44c] sm:$0xf] %vm4946_vm3, %v4773_v7  ;;  %v3430_v19 = vadd.f32 %v6910_v27, %v2978_v10  ;;  %v3542_v20 = vadd.f32 %v6910_v27, %v3090_v11 }
 0x240   : > { %5334 = vst.msk [vmem:[%s5910_s9 + $0x60c] sm:$0xf] %vm4946_vm3, %v4885_v9  ;;  %v3207_v24 = vadd.f32 %v6910_v27, %v2755_v15  ;;  %v3319_v25 = vadd.f32 %v6910_v27, %v2867_v16 }
 0x241   : > { %4999 = vst.msk [vmem:[%s5910_s9 + $0xd0] sm:$0xf] %vm4946_vm3, %v4550_v13  ;;  %v3878_v30 = vmax.f32 %v3430_v19, 0.0  ;;  %v3990_v31 = vmax.f32 %v3542_v20, 0.0  ;;  %v274_v19 = vld [vmem:[%s5782_s27 + $0x240] sm:$0xff]  ;;  %v275_v20 = vld [vmem:[%s5782_s27 + $0x248] sm:$0xff] }
 0x242   : > { %5111 = vst.msk [vmem:[%s5910_s9 + $0x290] sm:$0xf] %vm4946_vm3, %v4662_v14  ;;  %v3655_v34 = vmax.f32 %v3207_v24, 0.0  ;;  %v3767_v35 = vmax.f32 %v3319_v25, 0.0  ;;  %v387_v24 = vld [vmem:[%s5782_s27 + $0x5c8] sm:$0xff]  ;;  %v498_v25 = vld [vmem:[%s5782_s27 + $0x940] sm:$0xff] }
 0x243   : > { %v4326_v36 = vmin.f32 %v3878_v30, 6.0  ;;  %v4438_v37 = vmin.f32 %v3990_v31, 6.0  ;;  %v610_v30 = vld [vmem:[%s5782_s27 + $0xcc0] sm:$0xff]  ;;  %v611_v31 = vld [vmem:[%s5782_s27 + $0xcc8] sm:$0xff] }
 0x244   : > { %v4103_v39 = vmin.f32 %v3655_v34, 6.0  ;;  %v4215_v41 = vmin.f32 %v3767_v35, 6.0  ;;  %v2270_v42 = vpop.f32.mrf.mxu2  ;;  %v2550_v43 = vpop.f32.mrf.mxu3 }
 0x245   : > { %v4774_v45 = vpack.c.bf16 %v4326_v36, %v4326_v36  ;;  %v4886_v46 = vpack.c.bf16 %v4438_v37, %v4438_v37  ;;  %v2979_v47 = vmul.f32 %v6899_v18, %v2270_v42  ;;  %v3091_v48 = vmul.f32 %v6899_v18, %v2550_v43  ;;  %v1713_v51 = vpop.f32.mrf.mxu0  ;;  %v1993_v52 = vpop.f32.mrf.mxu1 }
 0x246   : > { %v4551_v50 = vpack.c.bf16 %v4103_v39, %v4103_v39  ;;  %v4663_v53 = vpack.c.bf16 %v4215_v41, %v4215_v41  ;;  %v2756_v54 = vmul.f32 %v6899_v18, %v1713_v51  ;;  %v2868_v55 = vmul.f32 %v6899_v18, %v1993_v52 }
 0x247   : > { %5223 = vst.msk [vmem:[%s5910_s9 + $0x450] sm:$0xf] %vm4946_vm3, %v4774_v45  ;;  %v3431_v56 = vadd.f32 %v6910_v27, %v2979_v47  ;;  %v3543_v57 = vadd.f32 %v6910_v27, %v3091_v48  ;;  %v686_v36 = vpack.c.bf16 %v275_v20, %v274_v19  ;;  %v742_v37 = vpack.c.bf16 %v387_v24, %v386_v21  ;;  %v388_v19 = vld [vmem:[%s5782_s27 + $0x5d0] sm:$0xff]  ;;  %v501_v24 = vld [vmem:[%s5782_s27 + $0x958] sm:$0xff] }
 0x248   : > { %5335 = vst.msk [vmem:[%s5910_s9 + $0x610] sm:$0xf] %vm4946_vm3, %v4886_v46  ;;  %v3208_v58 = vadd.f32 %v6910_v27, %v2756_v54  ;;  %v3320_v60 = vadd.f32 %v6910_v27, %v2868_v55  ;;  %5501 = vmatmul.msk.bf16.gmra.mxu0 %vm889_vm2, %v685_v38  ;;  %5557 = vmatmul.msk.bf16.gmra.mxu1 %vm889_vm2, %v741_v40 }
 0x249   : > { %5000 = vst.msk [vmem:[%s5910_s9 + $0xd4] sm:$0xf] %vm4946_vm3, %v4551_v50  ;;  %v3879_v61 = vmax.f32 %v3431_v56, 0.0  ;;  %v3991_v62 = vmax.f32 %v3543_v57, 0.0  ;;  %5613 = vmatmul.msk.bf16.gmra.mxu2 %vm889_vm2, %v797_v49  ;;  %5669 = vmatmul.msk.bf16.gmra.mxu3 %vm889_vm2, %v853_v44  ;;  %v798_v42 = vpack.c.bf16 %v499_v26, %v498_v25  ;;  %v854_v43 = vpack.c.bf16 %v611_v31, %v610_v30 }
 0x24a   : > { %5112 = vst.msk [vmem:[%s5910_s9 + $0x294] sm:$0xf] %vm4946_vm3, %v4663_v53  ;;  %v3656_v63 = vmax.f32 %v3208_v58, 0.0  ;;  %v3768_v0 = vmax.f32 %v3320_v60, 0.0 }
 0x24b   : > { %v4327_v1 = vmin.f32 %v3879_v61, 6.0  ;;  %v4439_v2 = vmin.f32 %v3991_v62, 6.0 }
 0x24c   : > { %v4104_v59 = vmin.f32 %v3656_v63, 6.0  ;;  %v4216_v3 = vmin.f32 %v3768_v0, 6.0  ;;  %v2273_v4 = vpop.f32.mrf.mxu2  ;;  %v2553_v5 = vpop.f32.mrf.mxu3 }
 0x24d   : > { %v4775_v6 = vpack.c.bf16 %v4327_v1, %v4327_v1  ;;  %v4887_v8 = vpack.c.bf16 %v4439_v2, %v4439_v2  ;;  %v2980_v7 = vmul.f32 %v6899_v18, %v2273_v4  ;;  %v3092_v9 = vmul.f32 %v6899_v18, %v2553_v5  ;;  %v1715_v10 = vpop.f32.mrf.mxu0  ;;  %v1995_v11 = vpop.f32.mrf.mxu1 }
 0x24e   : > { %v4552_v17 = vpack.c.bf16 %v4104_v59, %v4104_v59  ;;  %v4664_v12 = vpack.c.bf16 %v4216_v3, %v4216_v3  ;;  %v2757_v13 = vmul.f32 %v6899_v18, %v1715_v10  ;;  %v2869_v14 = vmul.f32 %v6899_v18, %v1995_v11 }
 0x24f   : > { %5224 = vst.msk [vmem:[%s5910_s9 + $0x454] sm:$0xf] %vm4946_vm3, %v4775_v6  ;;  %v3432_v15 = vadd.f32 %v6910_v27, %v2980_v7  ;;  %v3544_v16 = vadd.f32 %v6910_v27, %v3092_v9 }
 0x250   : > { %5336 = vst.msk [vmem:[%s5910_s9 + $0x614] sm:$0xf] %vm4946_vm3, %v4887_v8  ;;  %v3209_v22 = vadd.f32 %v6910_v27, %v2757_v13  ;;  %v3321_v23 = vadd.f32 %v6910_v27, %v2869_v14 }
 0x251   : > { %5001 = vst.msk [vmem:[%s5910_s9 + $0xd8] sm:$0xf] %vm4946_vm3, %v4552_v17  ;;  %v3880_v28 = vmax.f32 %v3432_v15, 0.0  ;;  %v3992_v29 = vmax.f32 %v3544_v16, 0.0  ;;  %v276_v15 = vld [vmem:[%s5782_s27 + $0x250] sm:$0xff]  ;;  %v277_v16 = vld [vmem:[%s5782_s27 + $0x258] sm:$0xff] }
 0x252   : > { %5113 = vst.msk [vmem:[%s5910_s9 + $0x298] sm:$0xf] %vm4946_vm3, %v4664_v12  ;;  %v3657_v32 = vmax.f32 %v3209_v22, 0.0  ;;  %v3769_v33 = vmax.f32 %v3321_v23, 0.0  ;;  %v389_v22 = vld [vmem:[%s5782_s27 + $0x5d8] sm:$0xff]  ;;  %v500_v23 = vld [vmem:[%s5782_s27 + $0x950] sm:$0xff] }
 0x253   : > { %v4328_v34 = vmin.f32 %v3880_v28, 6.0  ;;  %v4440_v35 = vmin.f32 %v3992_v29, 6.0  ;;  %v612_v28 = vld [vmem:[%s5782_s27 + $0xcd0] sm:$0xff]  ;;  %v613_v29 = vld [vmem:[%s5782_s27 + $0xcd8] sm:$0xff] }
 0x254   : > { %v4105_v38 = vmin.f32 %v3657_v32, 6.0  ;;  %v4217_v40 = vmin.f32 %v3769_v33, 6.0  ;;  %v2275_v39 = vpop.f32.mrf.mxu2  ;;  %v2555_v41 = vpop.f32.mrf.mxu3 }
 0x255   : > { %v4776_v49 = vpack.c.bf16 %v4328_v34, %v4328_v34  ;;  %v4888_v44 = vpack.c.bf16 %v4440_v35, %v4440_v35  ;;  %v2981_v45 = vmul.f32 %v6899_v18, %v2275_v39  ;;  %v3093_v46 = vmul.f32 %v6899_v18, %v2555_v41  ;;  %v1718_v47 = vpop.f32.mrf.mxu0  ;;  %v1998_v48 = vpop.f32.mrf.mxu1 }
 0x256   : > { %v4553_v51 = vpack.c.bf16 %v4105_v38, %v4105_v38  ;;  %v4665_v52 = vpack.c.bf16 %v4217_v40, %v4217_v40  ;;  %v2758_v50 = vmul.f32 %v6899_v18, %v1718_v47  ;;  %v2870_v53 = vmul.f32 %v6899_v18, %v1998_v48 }
 0x257   : > { %5225 = vst.msk [vmem:[%s5910_s9 + $0x458] sm:$0xf] %vm4946_vm3, %v4776_v49  ;;  %v3433_v54 = vadd.f32 %v6910_v27, %v2981_v45  ;;  %v3545_v55 = vadd.f32 %v6910_v27, %v3093_v46  ;;  %v687_v34 = vpack.c.bf16 %v277_v16, %v276_v15  ;;  %v743_v35 = vpack.c.bf16 %v389_v22, %v388_v19  ;;  %v390_v15 = vld [vmem:[%s5782_s27 + $0x5e0] sm:$0xff] }
 0x258   : > { %5337 = vst.msk [vmem:[%s5910_s9 + $0x618] sm:$0xf] %vm4946_vm3, %v4888_v44  ;;  %v3210_v56 = vadd.f32 %v6910_v27, %v2758_v50  ;;  %v3322_v57 = vadd.f32 %v6910_v27, %v2870_v53  ;;  %5502 = vmatmul.msk.bf16.gmra.mxu0 %vm889_vm2, %v686_v36  ;;  %5558 = vmatmul.msk.bf16.gmra.mxu1 %vm889_vm2, %v742_v37 }
 0x259   : > { %5002 = vst.msk [vmem:[%s5910_s9 + $0xdc] sm:$0xf] %vm4946_vm3, %v4553_v51  ;;  %v3881_v58 = vmax.f32 %v3433_v54, 0.0  ;;  %v3993_v60 = vmax.f32 %v3545_v55, 0.0  ;;  %5614 = vmatmul.msk.bf16.gmra.mxu2 %vm889_vm2, %v798_v42  ;;  %5670 = vmatmul.msk.bf16.gmra.mxu3 %vm889_vm2, %v854_v43  ;;  %v799_v39 = vpack.c.bf16 %v501_v24, %v500_v23  ;;  %v855_v41 = vpack.c.bf16 %v613_v29, %v612_v28  ;;  %v614_v24 = vld [vmem:[%s5782_s27 + $0xce0] sm:$0xff] }
 0x25a   : > { %5114 = vst.msk [vmem:[%s5910_s9 + $0x29c] sm:$0xf] %vm4946_vm3, %v4665_v52  ;;  %v3658_v61 = vmax.f32 %v3210_v56, 0.0  ;;  %v3770_v62 = vmax.f32 %v3322_v57, 0.0 }
 0x25b   : > { %v4329_v63 = vmin.f32 %v3881_v58, 6.0  ;;  %v4441_v0 = vmin.f32 %v3993_v60, 6.0 }
 0x25c   : > { %v4106_v1 = vmin.f32 %v3658_v61, 6.0  ;;  %v4218_v2 = vmin.f32 %v3770_v62, 6.0  ;;  %v2278_v59 = vpop.f32.mrf.mxu2  ;;  %v2558_v3 = vpop.f32.mrf.mxu3 }
 0x25d   : > { %v4777_v4 = vpack.c.bf16 %v4329_v63, %v4329_v63  ;;  %v4889_v5 = vpack.c.bf16 %v4441_v0, %v4441_v0  ;;  %v2982_v6 = vmul.f32 %v6899_v18, %v2278_v59  ;;  %v3094_v8 = vmul.f32 %v6899_v18, %v2558_v3  ;;  %v1720_v7 = vpop.f32.mrf.mxu0  ;;  %v2000_v9 = vpop.f32.mrf.mxu1 }
 0x25e   : > { %v4554_v10 = vpack.c.bf16 %v4106_v1, %v4106_v1  ;;  %v4666_v11 = vpack.c.bf16 %v4218_v2, %v4218_v2  ;;  %v2759_v17 = vmul.f32 %v6899_v18, %v1720_v7  ;;  %v2871_v12 = vmul.f32 %v6899_v18, %v2000_v9 }
 0x25f   : > { %5226 = vst.msk [vmem:[%s5910_s9 + $0x45c] sm:$0xf] %vm4946_vm3, %v4777_v4  ;;  %v3434_v13 = vadd.f32 %v6910_v27, %v2982_v6  ;;  %v3546_v14 = vadd.f32 %v6910_v27, %v3094_v8 }
 0x260   : > { %5338 = vst.msk [vmem:[%s5910_s9 + $0x61c] sm:$0xf] %vm4946_vm3, %v4889_v5  ;;  %v3211_v20 = vadd.f32 %v6910_v27, %v2759_v17  ;;  %v3323_v21 = vadd.f32 %v6910_v27, %v2871_v12 }
 0x261   : > { %5003 = vst.msk [vmem:[%s5910_s9 + $0xe0] sm:$0xf] %vm4946_vm3, %v4554_v10  ;;  %v3882_v25 = vmax.f32 %v3434_v13, 0.0  ;;  %v3994_v26 = vmax.f32 %v3546_v14, 0.0  ;;  %v278_v13 = vld [vmem:[%s5782_s27 + $0x260] sm:$0xff]  ;;  %v279_v14 = vld [vmem:[%s5782_s27 + $0x268] sm:$0xff] }
 0x262   : > { %5115 = vst.msk [vmem:[%s5910_s9 + $0x2a0] sm:$0xf] %vm4946_vm3, %v4666_v11  ;;  %v3659_v30 = vmax.f32 %v3211_v20, 0.0  ;;  %v3771_v31 = vmax.f32 %v3323_v21, 0.0  ;;  %v391_v20 = vld [vmem:[%s5782_s27 + $0x5e8] sm:$0xff] }
 0x263   : > { %v4330_v32 = vmin.f32 %v3882_v25, 6.0  ;;  %v4442_v33 = vmin.f32 %v3994_v26, 6.0  ;;  %v503_v21 = vld [vmem:[%s5782_s27 + $0x968] sm:$0xff] }
 0x264   : > { %v4107_v36 = vmin.f32 %v3659_v30, 6.0  ;;  %v4219_v37 = vmin.f32 %v3771_v31, 6.0  ;;  %v2280_v38 = vpop.f32.mrf.mxu2  ;;  %v2560_v40 = vpop.f32.mrf.mxu3  ;;  %v615_v25 = vld [vmem:[%s5782_s27 + $0xce8] sm:$0xff]  ;;  %v688_v31 = vpack.c.bf16 %v279_v14, %v278_v13  ;;  %v392_v13 = vld [vmem:[%s5782_s27 + $0x5f0] sm:$0xff] }
 0x265   : > { %v4778_v42 = vpack.c.bf16 %v4330_v32, %v4330_v32  ;;  %v4890_v43 = vpack.c.bf16 %v4442_v33, %v4442_v33  ;;  %v2983_v49 = vmul.f32 %v6899_v18, %v2280_v38  ;;  %v3095_v44 = vmul.f32 %v6899_v18, %v2560_v40  ;;  %v1723_v45 = vpop.f32.mrf.mxu0  ;;  %v2003_v46 = vpop.f32.mrf.mxu1 }
 0x266   : > { %v4555_v47 = vpack.c.bf16 %v4107_v36, %v4107_v36  ;;  %v4667_v48 = vpack.c.bf16 %v4219_v37, %v4219_v37  ;;  %v2760_v51 = vmul.f32 %v6899_v18, %v1723_v45  ;;  %v2872_v52 = vmul.f32 %v6899_v18, %v2003_v46 }
 0x267   : > { %5227 = vst.msk [vmem:[%s5910_s9 + $0x460] sm:$0xf] %vm4946_vm3, %v4778_v42  ;;  %v3435_v50 = vadd.f32 %v6910_v27, %v2983_v49  ;;  %v3547_v53 = vadd.f32 %v6910_v27, %v3095_v44  ;;  %v744_v32 = vpack.c.bf16 %v391_v20, %v390_v15  ;;  %v856_v37 = vpack.c.bf16 %v615_v25, %v614_v24  ;;  %v505_v20 = vld [vmem:[%s5782_s27 + $0x978] sm:$0xff] }
 0x268   : > { %5339 = vst.msk [vmem:[%s5910_s9 + $0x620] sm:$0xf] %vm4946_vm3, %v4890_v43  ;;  %v3212_v54 = vadd.f32 %v6910_v27, %v2760_v51  ;;  %v3324_v55 = vadd.f32 %v6910_v27, %v2872_v52  ;;  %5503 = vmatmul.msk.bf16.gmra.mxu0 %vm889_vm2, %v687_v34  ;;  %5559 = vmatmul.msk.bf16.gmra.mxu1 %vm889_vm2, %v743_v35 }
 0x269   : > { %5004 = vst.msk [vmem:[%s5910_s9 + $0xe4] sm:$0xf] %vm4946_vm3, %v4555_v47  ;;  %v3883_v56 = vmax.f32 %v3435_v50, 0.0  ;;  %v3995_v57 = vmax.f32 %v3547_v53, 0.0  ;;  %5615 = vmatmul.msk.bf16.gmra.mxu2 %vm889_vm2, %v799_v39  ;;  %5671 = vmatmul.msk.bf16.gmra.mxu3 %vm889_vm2, %v855_v41  ;;  %v7241_v39 = vld [vmem:[%s8339_s2] ss:$0 sm:$0xff] }
 0x26a   : > { %5116 = vst.msk [vmem:[%s5910_s9 + $0x2a4] sm:$0xf] %vm4946_vm3, %v4667_v48  ;;  %v3660_v58 = vmax.f32 %v3212_v54, 0.0  ;;  %v3772_v60 = vmax.f32 %v3324_v55, 0.0  ;;  %v7252_v48 = vld [vmem:[%s8340_s3] ss:$0 sm:$0xff] }
 0x26b   : > { %v4331_v61 = vmin.f32 %v3883_v56, 6.0  ;;  %v4443_v62 = vmin.f32 %v3995_v57, 6.0 }
 0x26c   : > { %v4108_v63 = vmin.f32 %v3660_v58, 6.0  ;;  %v4220_v0 = vmin.f32 %v3772_v60, 6.0  ;;  %v2283_v1 = vpop.f32.mrf.mxu2  ;;  %v2563_v2 = vpop.f32.mrf.mxu3 }
 0x26d   : > { %v4779_v59 = vpack.c.bf16 %v4331_v61, %v4331_v61  ;;  %v4891_v3 = vpack.c.bf16 %v4443_v62, %v4443_v62  ;;  %v2984_v4 = vmul.f32 %v6899_v18, %v2283_v1  ;;  %v3096_v5 = vmul.f32 %v6899_v18, %v2563_v2  ;;  %v1725_v6 = vpop.f32.mrf.mxu0  ;;  %v2005_v8 = vpop.f32.mrf.mxu1 }
 0x26e   : > { %v4556_v7 = vpack.c.bf16 %v4108_v63, %v4108_v63  ;;  %v4668_v9 = vpack.c.bf16 %v4220_v0, %v4220_v0  ;;  %v2761_v10 = vmul.f32 %v6899_v18, %v1725_v6  ;;  %v2873_v11 = vmul.f32 %v6899_v18, %v2005_v8  ;;  %v502_v18 = vld [vmem:[%s5782_s27 + $0x960] sm:$0xff] }
 0x26f   : > { %5228 = vst.msk [vmem:[%s5910_s9 + $0x464] sm:$0xf] %vm4946_vm3, %v4779_v59  ;;  %v3436_v17 = vadd.f32 %v6910_v27, %v2984_v4  ;;  %v3548_v12 = vadd.f32 %v6910_v27, %v3096_v5  ;;  %v800_v36 = vpack.c.bf16 %v503_v21, %v502_v18 }
 0x270   : > { %5340 = vst.msk [vmem:[%s5910_s9 + $0x624] sm:$0xf] %vm4946_vm3, %v4891_v3  ;;  %v3213_v16 = vadd.f32 %v6910_v27, %v2761_v10  ;;  %v3325_v19 = vadd.f32 %v6910_v27, %v2873_v11 }
 0x271   : > { %5005 = vst.msk [vmem:[%s5910_s9 + $0xe8] sm:$0xf] %vm4946_vm3, %v4556_v7  ;;  %v3884_v22 = vmax.f32 %v3436_v17, 0.0  ;;  %v3996_v23 = vmax.f32 %v3548_v12, 0.0  ;;  %v280_v17 = vld [vmem:[%s5782_s27 + $0x270] sm:$0xff]  ;;  %v281_v12 = vld [vmem:[%s5782_s27 + $0x278] sm:$0xff] }
 0x272   : > { %5117 = vst.msk [vmem:[%s5910_s9 + $0x2a8] sm:$0xf] %vm4946_vm3, %v4668_v9  ;;  %v3661_v26 = vmax.f32 %v3213_v16, 0.0  ;;  %v3773_v28 = vmax.f32 %v3325_v19, 0.0  ;;  %v393_v16 = vld [vmem:[%s5782_s27 + $0x5f8] sm:$0xff]  ;;  %v504_v19 = vld [vmem:[%s5782_s27 + $0x970] sm:$0xff] }
 0x273   : > { %v4332_v29 = vmin.f32 %v3884_v22, 6.0  ;;  %v4444_v30 = vmin.f32 %v3996_v23, 6.0  ;;  %v616_v22 = vld [vmem:[%s5782_s27 + $0xcf0] sm:$0xff]  ;;  %v617_v23 = vld [vmem:[%s5782_s27 + $0xcf8] sm:$0xff] }
 0x274   : > { %v4109_v33 = vmin.f32 %v3661_v26, 6.0  ;;  %v4221_v34 = vmin.f32 %v3773_v28, 6.0  ;;  %v2285_v27 = vpop.f32.mrf.mxu2  ;;  %v2565_v35 = vpop.f32.mrf.mxu3 }
 0x275   : > { %v4780_v38 = vpack.c.bf16 %v4332_v29, %v4332_v29  ;;  %v4892_v40 = vpack.c.bf16 %v4444_v30, %v4444_v30  ;;  %v2985_v41 = vmul.f32 %v7241_v39, %v2285_v27  ;;  %v3097_v42 = vmul.f32 %v7241_v39, %v2565_v35  ;;  %v1728_v43 = vpop.f32.mrf.mxu0  ;;  %v2008_v49 = vpop.f32.mrf.mxu1 }
 0x276   : > { %v4557_v44 = vpack.c.bf16 %v4109_v33, %v4109_v33  ;;  %v4669_v45 = vpack.c.bf16 %v4221_v34, %v4221_v34  ;;  %v2762_v46 = vmul.f32 %v7241_v39, %v1728_v43  ;;  %v2874_v47 = vmul.f32 %v7241_v39, %v2008_v49 }
 0x277   : > { %5229 = vst.msk [vmem:[%s5910_s9 + $0x468] sm:$0xf] %vm4946_vm3, %v4780_v38  ;;  %v3437_v51 = vadd.f32 %v7252_v48, %v2985_v41  ;;  %v3549_v52 = vadd.f32 %v7252_v48, %v3097_v42  ;;  %v689_v29 = vpack.c.bf16 %v281_v12, %v280_v17  ;;  %v745_v30 = vpack.c.bf16 %v393_v16, %v392_v13  ;;  %v394_v17 = vld [vmem:[%s5782_s27 + $0x600] sm:$0xff]  ;;  %v507_v16 = vld [vmem:[%s5782_s27 + $0x988] sm:$0xff] }
 0x278   : > { %5341 = vst.msk [vmem:[%s5910_s9 + $0x628] sm:$0xf] %vm4946_vm3, %v4892_v40  ;;  %v3214_v50 = vadd.f32 %v7252_v48, %v2762_v46  ;;  %v3326_v53 = vadd.f32 %v7252_v48, %v2874_v47  ;;  %5504 = vmatmul.msk.bf16.gmra.mxu0 %vm889_vm2, %v688_v31  ;;  %5560 = vmatmul.msk.bf16.gmra.mxu1 %vm889_vm2, %v744_v32 }
 0x279   : > { %5006 = vst.msk [vmem:[%s5910_s9 + $0xec] sm:$0xf] %vm4946_vm3, %v4557_v44  ;;  %v3885_v54 = vmax.f32 %v3437_v51, 0.0  ;;  %v3997_v55 = vmax.f32 %v3549_v52, 0.0  ;;  %5616 = vmatmul.msk.bf16.gmra.mxu2 %vm889_vm2, %v800_v36  ;;  %5672 = vmatmul.msk.bf16.gmra.mxu3 %vm889_vm2, %v856_v37  ;;  %v801_v27 = vpack.c.bf16 %v505_v20, %v504_v19  ;;  %v857_v35 = vpack.c.bf16 %v617_v23, %v616_v22 }
 0x27a   : > { %5118 = vst.msk [vmem:[%s5910_s9 + $0x2ac] sm:$0xf] %vm4946_vm3, %v4669_v45  ;;  %v3662_v56 = vmax.f32 %v3214_v50, 0.0  ;;  %v3774_v57 = vmax.f32 %v3326_v53, 0.0 }
 0x27b   : > { %v4333_v58 = vmin.f32 %v3885_v54, 6.0  ;;  %v4445_v60 = vmin.f32 %v3997_v55, 6.0 }
 0x27c   : > { %v4110_v61 = vmin.f32 %v3662_v56, 6.0  ;;  %v4222_v62 = vmin.f32 %v3774_v57, 6.0  ;;  %v2288_v63 = vpop.f32.mrf.mxu2  ;;  %v2568_v0 = vpop.f32.mrf.mxu3 }
 0x27d   : > { %v4781_v1 = vpack.c.bf16 %v4333_v58, %v4333_v58  ;;  %v4893_v2 = vpack.c.bf16 %v4445_v60, %v4445_v60  ;;  %v2986_v59 = vmul.f32 %v7241_v39, %v2288_v63  ;;  %v3098_v3 = vmul.f32 %v7241_v39, %v2568_v0  ;;  %v1730_v4 = vpop.f32.mrf.mxu0  ;;  %v2010_v5 = vpop.f32.mrf.mxu1 }
 0x27e   : > { %v4558_v6 = vpack.c.bf16 %v4110_v61, %v4110_v61  ;;  %v4670_v8 = vpack.c.bf16 %v4222_v62, %v4222_v62  ;;  %v2763_v7 = vmul.f32 %v7241_v39, %v1730_v4  ;;  %v2875_v9 = vmul.f32 %v7241_v39, %v2010_v5 }
 0x27f   : > { %5230 = vst.msk [vmem:[%s5910_s9 + $0x46c] sm:$0xf] %vm4946_vm3, %v4781_v1  ;;  %v3438_v10 = vadd.f32 %v7252_v48, %v2986_v59  ;;  %v3550_v11 = vadd.f32 %v7252_v48, %v3098_v3 }
 0x280   : > { %5342 = vst.msk [vmem:[%s5910_s9 + $0x62c] sm:$0xf] %vm4946_vm3, %v4893_v2  ;;  %v3215_v14 = vadd.f32 %v7252_v48, %v2763_v7  ;;  %v3327_v15 = vadd.f32 %v7252_v48, %v2875_v9 }
 0x281   : > { %5007 = vst.msk [vmem:[%s5910_s9 + $0xf0] sm:$0xf] %vm4946_vm3, %v4558_v6  ;;  %v3886_v18 = vmax.f32 %v3438_v10, 0.0  ;;  %v3998_v21 = vmax.f32 %v3550_v11, 0.0  ;;  %v282_v10 = vld [vmem:[%s5782_s27 + $0x280] sm:$0xff]  ;;  %v283_v11 = vld [vmem:[%s5782_s27 + $0x288] sm:$0xff] }
 0x282   : > { %5119 = vst.msk [vmem:[%s5910_s9 + $0x2b0] sm:$0xf] %vm4946_vm3, %v4670_v8  ;;  %v3663_v24 = vmax.f32 %v3215_v14, 0.0  ;;  %v3775_v25 = vmax.f32 %v3327_v15, 0.0  ;;  %v395_v14 = vld [vmem:[%s5782_s27 + $0x608] sm:$0xff]  ;;  %v506_v15 = vld [vmem:[%s5782_s27 + $0x980] sm:$0xff] }
 0x283   : > { %v4334_v26 = vmin.f32 %v3886_v18, 6.0  ;;  %v4446_v28 = vmin.f32 %v3998_v21, 6.0  ;;  %v618_v18 = vld [vmem:[%s5782_s27 + $0xd00] sm:$0xff]  ;;  %v619_v21 = vld [vmem:[%s5782_s27 + $0xd08] sm:$0xff] }
 0x284   : > { %v4111_v31 = vmin.f32 %v3663_v24, 6.0  ;;  %v4223_v32 = vmin.f32 %v3775_v25, 6.0  ;;  %v2290_v33 = vpop.f32.mrf.mxu2  ;;  %v2570_v34 = vpop.f32.mrf.mxu3 }
 0x285   : > { %v4782_v36 = vpack.c.bf16 %v4334_v26, %v4334_v26  ;;  %v4894_v37 = vpack.c.bf16 %v4446_v28, %v4446_v28  ;;  %v2987_v38 = vmul.f32 %v7241_v39, %v2290_v33  ;;  %v3099_v40 = vmul.f32 %v7241_v39, %v2570_v34  ;;  %v1733_v41 = vpop.f32.mrf.mxu0  ;;  %v2013_v42 = vpop.f32.mrf.mxu1 }
 0x286   : > { %v4559_v43 = vpack.c.bf16 %v4111_v31, %v4111_v31  ;;  %v4671_v49 = vpack.c.bf16 %v4223_v32, %v4223_v32  ;;  %v2764_v44 = vmul.f32 %v7241_v39, %v1733_v41  ;;  %v2876_v45 = vmul.f32 %v7241_v39, %v2013_v42 }
 0x287   : > { %5231 = vst.msk [vmem:[%s5910_s9 + $0x470] sm:$0xf] %vm4946_vm3, %v4782_v36  ;;  %v3439_v46 = vadd.f32 %v7252_v48, %v2987_v38  ;;  %v3551_v47 = vadd.f32 %v7252_v48, %v3099_v40  ;;  %v690_v26 = vpack.c.bf16 %v283_v11, %v282_v10  ;;  %v746_v28 = vpack.c.bf16 %v395_v14, %v394_v17  ;;  %v396_v10 = vld [vmem:[%s5782_s27 + $0x610] sm:$0xff]  ;;  %v509_v14 = vld [vmem:[%s5782_s27 + $0x998] sm:$0xff] }
 0x288   : > { %5343 = vst.msk [vmem:[%s5910_s9 + $0x630] sm:$0xf] %vm4946_vm3, %v4894_v37  ;;  %v3216_v51 = vadd.f32 %v7252_v48, %v2764_v44  ;;  %v3328_v52 = vadd.f32 %v7252_v48, %v2876_v45  ;;  %5505 = vmatmul.msk.bf16.gmra.mxu0 %vm889_vm2, %v689_v29  ;;  %5561 = vmatmul.msk.bf16.gmra.mxu1 %vm889_vm2, %v745_v30 }
 0x289   : > { %5008 = vst.msk [vmem:[%s5910_s9 + $0xf4] sm:$0xf] %vm4946_vm3, %v4559_v43  ;;  %v3887_v50 = vmax.f32 %v3439_v46, 0.0  ;;  %v3999_v53 = vmax.f32 %v3551_v47, 0.0  ;;  %5617 = vmatmul.msk.bf16.gmra.mxu2 %vm889_vm2, %v801_v27  ;;  %5673 = vmatmul.msk.bf16.gmra.mxu3 %vm889_vm2, %v857_v35  ;;  %v802_v33 = vpack.c.bf16 %v507_v16, %v506_v15  ;;  %v858_v34 = vpack.c.bf16 %v619_v21, %v618_v18 }
 0x28a   : > { %5120 = vst.msk [vmem:[%s5910_s9 + $0x2b4] sm:$0xf] %vm4946_vm3, %v4671_v49  ;;  %v3664_v54 = vmax.f32 %v3216_v51, 0.0  ;;  %v3776_v55 = vmax.f32 %v3328_v52, 0.0 }
 0x28b   : > { %v4335_v56 = vmin.f32 %v3887_v50, 6.0  ;;  %v4447_v57 = vmin.f32 %v3999_v53, 6.0 }
 0x28c   : > { %v4112_v58 = vmin.f32 %v3664_v54, 6.0  ;;  %v4224_v60 = vmin.f32 %v3776_v55, 6.0  ;;  %v2293_v61 = vpop.f32.mrf.mxu2  ;;  %v2573_v62 = vpop.f32.mrf.mxu3 }
 0x28d   : > { %v4783_v63 = vpack.c.bf16 %v4335_v56, %v4335_v56  ;;  %v4895_v0 = vpack.c.bf16 %v4447_v57, %v4447_v57  ;;  %v2988_v1 = vmul.f32 %v7241_v39, %v2293_v61  ;;  %v3100_v2 = vmul.f32 %v7241_v39, %v2573_v62  ;;  %v1735_v59 = vpop.f32.mrf.mxu0  ;;  %v2015_v3 = vpop.f32.mrf.mxu1 }
 0x28e   : > { %v4560_v4 = vpack.c.bf16 %v4112_v58, %v4112_v58  ;;  %v4672_v5 = vpack.c.bf16 %v4224_v60, %v4224_v60  ;;  %v2765_v6 = vmul.f32 %v7241_v39, %v1735_v59  ;;  %v2877_v8 = vmul.f32 %v7241_v39, %v2015_v3 }
 0x28f   : > { %5232 = vst.msk [vmem:[%s5910_s9 + $0x474] sm:$0xf] %vm4946_vm3, %v4783_v63  ;;  %v3440_v7 = vadd.f32 %v7252_v48, %v2988_v1  ;;  %v3552_v9 = vadd.f32 %v7252_v48, %v3100_v2 }
 0x290   : > { %5344 = vst.msk [vmem:[%s5910_s9 + $0x634] sm:$0xf] %vm4946_vm3, %v4895_v0  ;;  %v3217_v12 = vadd.f32 %v7252_v48, %v2765_v6  ;;  %v3329_v13 = vadd.f32 %v7252_v48, %v2877_v8 }
 0x291   : > { %5009 = vst.msk [vmem:[%s5910_s9 + $0xf8] sm:$0xf] %vm4946_vm3, %v4560_v4  ;;  %v3888_v19 = vmax.f32 %v3440_v7, 0.0  ;;  %v4000_v20 = vmax.f32 %v3552_v9, 0.0  ;;  %v284_v7 = vld [vmem:[%s5782_s27 + $0x290] sm:$0xff]  ;;  %v285_v9 = vld [vmem:[%s5782_s27 + $0x298] sm:$0xff] }
 0x292   : > { %5121 = vst.msk [vmem:[%s5910_s9 + $0x2b8] sm:$0xf] %vm4946_vm3, %v4672_v5  ;;  %v3665_v22 = vmax.f32 %v3217_v12, 0.0  ;;  %v3777_v23 = vmax.f32 %v3329_v13, 0.0  ;;  %v397_v12 = vld [vmem:[%s5782_s27 + $0x618] sm:$0xff]  ;;  %v508_v13 = vld [vmem:[%s5782_s27 + $0x990] sm:$0xff] }
 0x293   : > { %v4336_v24 = vmin.f32 %v3888_v19, 6.0  ;;  %v4448_v25 = vmin.f32 %v4000_v20, 6.0  ;;  %v620_v19 = vld [vmem:[%s5782_s27 + $0xd10] sm:$0xff]  ;;  %v621_v20 = vld [vmem:[%s5782_s27 + $0xd18] sm:$0xff] }
 0x294   : > { %v4113_v29 = vmin.f32 %v3665_v22, 6.0  ;;  %v4225_v30 = vmin.f32 %v3777_v23, 6.0  ;;  %v2295_v31 = vpop.f32.mrf.mxu2  ;;  %v2575_v32 = vpop.f32.mrf.mxu3 }
 0x295   : > { %v4784_v27 = vpack.c.bf16 %v4336_v24, %v4336_v24  ;;  %v4896_v35 = vpack.c.bf16 %v4448_v25, %v4448_v25  ;;  %v2989_v36 = vmul.f32 %v7241_v39, %v2295_v31  ;;  %v3101_v37 = vmul.f32 %v7241_v39, %v2575_v32  ;;  %v1738_v38 = vpop.f32.mrf.mxu0  ;;  %v2018_v40 = vpop.f32.mrf.mxu1 }
 0x296   : > { %v4561_v41 = vpack.c.bf16 %v4113_v29, %v4113_v29  ;;  %v4673_v42 = vpack.c.bf16 %v4225_v30, %v4225_v30  ;;  %v2766_v43 = vmul.f32 %v7241_v39, %v1738_v38  ;;  %v2878_v49 = vmul.f32 %v7241_v39, %v2018_v40 }
 0x297   : > { %5233 = vst.msk [vmem:[%s5910_s9 + $0x478] sm:$0xf] %vm4946_vm3, %v4784_v27  ;;  %v3441_v44 = vadd.f32 %v7252_v48, %v2989_v36  ;;  %v3553_v45 = vadd.f32 %v7252_v48, %v3101_v37  ;;  %v691_v24 = vpack.c.bf16 %v285_v9, %v284_v7  ;;  %v747_v25 = vpack.c.bf16 %v397_v12, %v396_v10  ;;  %v398_v7 = vld [vmem:[%s5782_s27 + $0x620] sm:$0xff]  ;;  %v511_v12 = vld [vmem:[%s5782_s27 + $0x9a8] sm:$0xff] }
 0x298   : > { %5345 = vst.msk [vmem:[%s5910_s9 + $0x638] sm:$0xf] %vm4946_vm3, %v4896_v35  ;;  %v3218_v46 = vadd.f32 %v7252_v48, %v2766_v43  ;;  %v3330_v47 = vadd.f32 %v7252_v48, %v2878_v49  ;;  %5506 = vmatmul.msk.bf16.gmra.mxu0 %vm889_vm2, %v690_v26  ;;  %5562 = vmatmul.msk.bf16.gmra.mxu1 %vm889_vm2, %v746_v28 }
 0x299   : > { %5010 = vst.msk [vmem:[%s5910_s9 + $0xfc] sm:$0xf] %vm4946_vm3, %v4561_v41  ;;  %v3889_v51 = vmax.f32 %v3441_v44, 0.0  ;;  %v4001_v52 = vmax.f32 %v3553_v45, 0.0  ;;  %5618 = vmatmul.msk.bf16.gmra.mxu2 %vm889_vm2, %v802_v33  ;;  %5674 = vmatmul.msk.bf16.gmra.mxu3 %vm889_vm2, %v858_v34  ;;  %v803_v31 = vpack.c.bf16 %v509_v14, %v508_v13  ;;  %v859_v32 = vpack.c.bf16 %v621_v20, %v620_v19 }
 0x29a   : > { %5122 = vst.msk [vmem:[%s5910_s9 + $0x2bc] sm:$0xf] %vm4946_vm3, %v4673_v42  ;;  %v3666_v50 = vmax.f32 %v3218_v46, 0.0  ;;  %v3778_v53 = vmax.f32 %v3330_v47, 0.0 }
 0x29b   : > { %v4337_v54 = vmin.f32 %v3889_v51, 6.0  ;;  %v4449_v55 = vmin.f32 %v4001_v52, 6.0 }
 0x29c   : > { %v4114_v56 = vmin.f32 %v3666_v50, 6.0  ;;  %v4226_v57 = vmin.f32 %v3778_v53, 6.0  ;;  %v2298_v58 = vpop.f32.mrf.mxu2  ;;  %v2578_v60 = vpop.f32.mrf.mxu3 }
 0x29d   : > { %v4785_v61 = vpack.c.bf16 %v4337_v54, %v4337_v54  ;;  %v4897_v62 = vpack.c.bf16 %v4449_v55, %v4449_v55  ;;  %v2990_v63 = vmul.f32 %v7241_v39, %v2298_v58  ;;  %v3102_v0 = vmul.f32 %v7241_v39, %v2578_v60  ;;  %v1740_v1 = vpop.f32.mrf.mxu0  ;;  %v2020_v2 = vpop.f32.mrf.mxu1 }
 0x29e   : > { %v4562_v59 = vpack.c.bf16 %v4114_v56, %v4114_v56  ;;  %v4674_v3 = vpack.c.bf16 %v4226_v57, %v4226_v57  ;;  %v2767_v4 = vmul.f32 %v7241_v39, %v1740_v1  ;;  %v2879_v5 = vmul.f32 %v7241_v39, %v2020_v2 }
 0x29f   : > { %5234 = vst.msk [vmem:[%s5910_s9 + $0x47c] sm:$0xf] %vm4946_vm3, %v4785_v61  ;;  %v3442_v6 = vadd.f32 %v7252_v48, %v2990_v63  ;;  %v3554_v8 = vadd.f32 %v7252_v48, %v3102_v0 }
 0x2a0   : > { %5346 = vst.msk [vmem:[%s5910_s9 + $0x63c] sm:$0xf] %vm4946_vm3, %v4897_v62  ;;  %v3219_v11 = vadd.f32 %v7252_v48, %v2767_v4  ;;  %v3331_v17 = vadd.f32 %v7252_v48, %v2879_v5 }
 0x2a1   : > { %5011 = vst.msk [vmem:[%s5910_s9 + $0x100] sm:$0xf] %vm4946_vm3, %v4562_v59  ;;  %v3890_v15 = vmax.f32 %v3442_v6, 0.0  ;;  %v4002_v16 = vmax.f32 %v3554_v8, 0.0  ;;  %v286_v6 = vld [vmem:[%s5782_s27 + $0x2a0] sm:$0xff]  ;;  %v287_v8 = vld [vmem:[%s5782_s27 + $0x2a8] sm:$0xff] }
 0x2a2   : > { %5123 = vst.msk [vmem:[%s5910_s9 + $0x2c0] sm:$0xf] %vm4946_vm3, %v4674_v3  ;;  %v3667_v18 = vmax.f32 %v3219_v11, 0.0  ;;  %v3779_v21 = vmax.f32 %v3331_v17, 0.0  ;;  %v399_v11 = vld [vmem:[%s5782_s27 + $0x628] sm:$0xff]  ;;  %v510_v17 = vld [vmem:[%s5782_s27 + $0x9a0] sm:$0xff] }
 0x2a3   : > { %v4338_v22 = vmin.f32 %v3890_v15, 6.0  ;;  %v4450_v23 = vmin.f32 %v4002_v16, 6.0  ;;  %v622_v15 = vld [vmem:[%s5782_s27 + $0xd20] sm:$0xff]  ;;  %v623_v16 = vld [vmem:[%s5782_s27 + $0xd28] sm:$0xff] }
 0x2a4   : > { %v4115_v26 = vmin.f32 %v3667_v18, 6.0  ;;  %v4227_v28 = vmin.f32 %v3779_v21, 6.0  ;;  %v2300_v29 = vpop.f32.mrf.mxu2  ;;  %v2580_v30 = vpop.f32.mrf.mxu3 }
 0x2a5   : > { %v4786_v33 = vpack.c.bf16 %v4338_v22, %v4338_v22  ;;  %v4898_v34 = vpack.c.bf16 %v4450_v23, %v4450_v23  ;;  %v2991_v27 = vmul.f32 %v7241_v39, %v2300_v29  ;;  %v3103_v35 = vmul.f32 %v7241_v39, %v2580_v30  ;;  %v1743_v36 = vpop.f32.mrf.mxu0  ;;  %v2023_v37 = vpop.f32.mrf.mxu1 }
 0x2a6   : > { %v4563_v38 = vpack.c.bf16 %v4115_v26, %v4115_v26  ;;  %v4675_v40 = vpack.c.bf16 %v4227_v28, %v4227_v28  ;;  %v2768_v41 = vmul.f32 %v7241_v39, %v1743_v36  ;;  %v2880_v42 = vmul.f32 %v7241_v39, %v2023_v37 }
 0x2a7   : > { %5235 = vst.msk [vmem:[%s5910_s9 + $0x480] sm:$0xf] %vm4946_vm3, %v4786_v33  ;;  %v3443_v43 = vadd.f32 %v7252_v48, %v2991_v27  ;;  %v3555_v49 = vadd.f32 %v7252_v48, %v3103_v35  ;;  %v692_v22 = vpack.c.bf16 %v287_v8, %v286_v6  ;;  %v748_v23 = vpack.c.bf16 %v399_v11, %v398_v7  ;;  %v400_v6 = vld [vmem:[%s5782_s27 + $0x630] sm:$0xff]  ;;  %v513_v11 = vld [vmem:[%s5782_s27 + $0x9b8] sm:$0xff] }
 0x2a8   : > { %5347 = vst.msk [vmem:[%s5910_s9 + $0x640] sm:$0xf] %vm4946_vm3, %v4898_v34  ;;  %v3220_v44 = vadd.f32 %v7252_v48, %v2768_v41  ;;  %v3332_v45 = vadd.f32 %v7252_v48, %v2880_v42  ;;  %5507 = vmatmul.msk.bf16.gmra.mxu0 %vm889_vm2, %v691_v24  ;;  %5563 = vmatmul.msk.bf16.gmra.mxu1 %vm889_vm2, %v747_v25 }
 0x2a9   : > { %5012 = vst.msk [vmem:[%s5910_s9 + $0x104] sm:$0xf] %vm4946_vm3, %v4563_v38  ;;  %v3891_v46 = vmax.f32 %v3443_v43, 0.0  ;;  %v4003_v47 = vmax.f32 %v3555_v49, 0.0  ;;  %5619 = vmatmul.msk.bf16.gmra.mxu2 %vm889_vm2, %v803_v31  ;;  %5675 = vmatmul.msk.bf16.gmra.mxu3 %vm889_vm2, %v859_v32  ;;  %v804_v29 = vpack.c.bf16 %v511_v12, %v510_v17  ;;  %v860_v30 = vpack.c.bf16 %v623_v16, %v622_v15 }
 0x2aa   : > { %5124 = vst.msk [vmem:[%s5910_s9 + $0x2c4] sm:$0xf] %vm4946_vm3, %v4675_v40  ;;  %v3668_v51 = vmax.f32 %v3220_v44, 0.0  ;;  %v3780_v52 = vmax.f32 %v3332_v45, 0.0 }
 0x2ab   : > { %v4339_v50 = vmin.f32 %v3891_v46, 6.0  ;;  %v4451_v53 = vmin.f32 %v4003_v47, 6.0 }
 0x2ac   : > { %v4116_v54 = vmin.f32 %v3668_v51, 6.0  ;;  %v4228_v55 = vmin.f32 %v3780_v52, 6.0  ;;  %v2303_v56 = vpop.f32.mrf.mxu2  ;;  %v2583_v57 = vpop.f32.mrf.mxu3 }
 0x2ad   : > { %v4787_v58 = vpack.c.bf16 %v4339_v50, %v4339_v50  ;;  %v4899_v60 = vpack.c.bf16 %v4451_v53, %v4451_v53  ;;  %v2992_v61 = vmul.f32 %v7241_v39, %v2303_v56  ;;  %v3104_v62 = vmul.f32 %v7241_v39, %v2583_v57  ;;  %v1745_v63 = vpop.f32.mrf.mxu0  ;;  %v2025_v0 = vpop.f32.mrf.mxu1 }
 0x2ae   : > { %v4564_v1 = vpack.c.bf16 %v4116_v54, %v4116_v54  ;;  %v4676_v2 = vpack.c.bf16 %v4228_v55, %v4228_v55  ;;  %v2769_v59 = vmul.f32 %v7241_v39, %v1745_v63  ;;  %v2881_v3 = vmul.f32 %v7241_v39, %v2025_v0 }
 0x2af   : > { %5236 = vst.msk [vmem:[%s5910_s9 + $0x484] sm:$0xf] %vm4946_vm3, %v4787_v58  ;;  %v3444_v4 = vadd.f32 %v7252_v48, %v2992_v61  ;;  %v3556_v5 = vadd.f32 %v7252_v48, %v3104_v62 }
 0x2b0   : > { %5348 = vst.msk [vmem:[%s5910_s9 + $0x644] sm:$0xf] %vm4946_vm3, %v4899_v60  ;;  %v3221_v9 = vadd.f32 %v7252_v48, %v2769_v59  ;;  %v3333_v10 = vadd.f32 %v7252_v48, %v2881_v3 }
 0x2b1   : > { %5013 = vst.msk [vmem:[%s5910_s9 + $0x108] sm:$0xf] %vm4946_vm3, %v4564_v1  ;;  %v3892_v13 = vmax.f32 %v3444_v4, 0.0  ;;  %v4004_v14 = vmax.f32 %v3556_v5, 0.0  ;;  %v288_v4 = vld [vmem:[%s5782_s27 + $0x2b0] sm:$0xff]  ;;  %v289_v5 = vld [vmem:[%s5782_s27 + $0x2b8] sm:$0xff] }
 0x2b2   : > { %5125 = vst.msk [vmem:[%s5910_s9 + $0x2c8] sm:$0xf] %vm4946_vm3, %v4676_v2  ;;  %v3669_v19 = vmax.f32 %v3221_v9, 0.0  ;;  %v3781_v20 = vmax.f32 %v3333_v10, 0.0  ;;  %v401_v9 = vld [vmem:[%s5782_s27 + $0x638] sm:$0xff]  ;;  %v512_v10 = vld [vmem:[%s5782_s27 + $0x9b0] sm:$0xff] }
 0x2b3   : > { %v4340_v18 = vmin.f32 %v3892_v13, 6.0  ;;  %v4452_v21 = vmin.f32 %v4004_v14, 6.0  ;;  %v624_v13 = vld [vmem:[%s5782_s27 + $0xd30] sm:$0xff]  ;;  %v625_v14 = vld [vmem:[%s5782_s27 + $0xd38] sm:$0xff] }
 0x2b4   : > { %v4117_v24 = vmin.f32 %v3669_v19, 6.0  ;;  %v4229_v25 = vmin.f32 %v3781_v20, 6.0  ;;  %v2305_v26 = vpop.f32.mrf.mxu2  ;;  %v2585_v28 = vpop.f32.mrf.mxu3 }
 0x2b5   : > { %v4788_v31 = vpack.c.bf16 %v4340_v18, %v4340_v18  ;;  %v4900_v32 = vpack.c.bf16 %v4452_v21, %v4452_v21  ;;  %v2993_v33 = vmul.f32 %v7241_v39, %v2305_v26  ;;  %v3105_v34 = vmul.f32 %v7241_v39, %v2585_v28  ;;  %v1748_v27 = vpop.f32.mrf.mxu0  ;;  %v2028_v35 = vpop.f32.mrf.mxu1 }
 0x2b6   : > { %v4565_v36 = vpack.c.bf16 %v4117_v24, %v4117_v24  ;;  %v4677_v37 = vpack.c.bf16 %v4229_v25, %v4229_v25  ;;  %v2770_v38 = vmul.f32 %v7241_v39, %v1748_v27  ;;  %v2882_v40 = vmul.f32 %v7241_v39, %v2028_v35 }
 0x2b7   : > { %5237 = vst.msk [vmem:[%s5910_s9 + $0x488] sm:$0xf] %vm4946_vm3, %v4788_v31  ;;  %v3445_v41 = vadd.f32 %v7252_v48, %v2993_v33  ;;  %v3557_v42 = vadd.f32 %v7252_v48, %v3105_v34  ;;  %v693_v18 = vpack.c.bf16 %v289_v5, %v288_v4  ;;  %v749_v21 = vpack.c.bf16 %v401_v9, %v400_v6  ;;  %v402_v4 = vld [vmem:[%s5782_s27 + $0x640] sm:$0xff]  ;;  %v515_v9 = vld [vmem:[%s5782_s27 + $0x9c8] sm:$0xff] }
 0x2b8   : > { %5349 = vst.msk [vmem:[%s5910_s9 + $0x648] sm:$0xf] %vm4946_vm3, %v4900_v32  ;;  %v3222_v43 = vadd.f32 %v7252_v48, %v2770_v38  ;;  %v3334_v49 = vadd.f32 %v7252_v48, %v2882_v40  ;;  %5508 = vmatmul.msk.bf16.gmra.mxu0 %vm889_vm2, %v692_v22  ;;  %5564 = vmatmul.msk.bf16.gmra.mxu1 %vm889_vm2, %v748_v23 }
 0x2b9   : > { %5014 = vst.msk [vmem:[%s5910_s9 + $0x10c] sm:$0xf] %vm4946_vm3, %v4565_v36  ;;  %v3893_v44 = vmax.f32 %v3445_v41, 0.0  ;;  %v4005_v45 = vmax.f32 %v3557_v42, 0.0  ;;  %5620 = vmatmul.msk.bf16.gmra.mxu2 %vm889_vm2, %v804_v29  ;;  %5676 = vmatmul.msk.bf16.gmra.mxu3 %vm889_vm2, %v860_v30  ;;  %v805_v26 = vpack.c.bf16 %v513_v11, %v512_v10  ;;  %v861_v28 = vpack.c.bf16 %v625_v14, %v624_v13 }
 0x2ba   : > { %5126 = vst.msk [vmem:[%s5910_s9 + $0x2cc] sm:$0xf] %vm4946_vm3, %v4677_v37  ;;  %v3670_v46 = vmax.f32 %v3222_v43, 0.0  ;;  %v3782_v47 = vmax.f32 %v3334_v49, 0.0 }
 0x2bb   : > { %v4341_v51 = vmin.f32 %v3893_v44, 6.0  ;;  %v4453_v52 = vmin.f32 %v4005_v45, 6.0 }
 0x2bc   : > { %v4118_v50 = vmin.f32 %v3670_v46, 6.0  ;;  %v4230_v53 = vmin.f32 %v3782_v47, 6.0  ;;  %v2308_v54 = vpop.f32.mrf.mxu2  ;;  %v2588_v55 = vpop.f32.mrf.mxu3 }
 0x2bd   : > { %v4789_v56 = vpack.c.bf16 %v4341_v51, %v4341_v51  ;;  %v4901_v57 = vpack.c.bf16 %v4453_v52, %v4453_v52  ;;  %v2994_v58 = vmul.f32 %v7241_v39, %v2308_v54  ;;  %v3106_v60 = vmul.f32 %v7241_v39, %v2588_v55  ;;  %v1750_v61 = vpop.f32.mrf.mxu0  ;;  %v2030_v62 = vpop.f32.mrf.mxu1 }
 0x2be   : > { %v4566_v63 = vpack.c.bf16 %v4118_v50, %v4118_v50  ;;  %v4678_v0 = vpack.c.bf16 %v4230_v53, %v4230_v53  ;;  %v2771_v1 = vmul.f32 %v7241_v39, %v1750_v61  ;;  %v2883_v2 = vmul.f32 %v7241_v39, %v2030_v62 }
 0x2bf   : > { %5238 = vst.msk [vmem:[%s5910_s9 + $0x48c] sm:$0xf] %vm4946_vm3, %v4789_v56  ;;  %v3446_v59 = vadd.f32 %v7252_v48, %v2994_v58  ;;  %v3558_v3 = vadd.f32 %v7252_v48, %v3106_v60 }
 0x2c0   : > { %5350 = vst.msk [vmem:[%s5910_s9 + $0x64c] sm:$0xf] %vm4946_vm3, %v4901_v57  ;;  %v3223_v8 = vadd.f32 %v7252_v48, %v2771_v1  ;;  %v3335_v7 = vadd.f32 %v7252_v48, %v2883_v2 }
 0x2c1   : > { %5015 = vst.msk [vmem:[%s5910_s9 + $0x110] sm:$0xf] %vm4946_vm3, %v4566_v63  ;;  %v3894_v17 = vmax.f32 %v3446_v59, 0.0  ;;  %v4006_v12 = vmax.f32 %v3558_v3, 0.0  ;;  %v290_v59 = vld [vmem:[%s5782_s27 + $0x2c0] sm:$0xff]  ;;  %v291_v3 = vld [vmem:[%s5782_s27 + $0x2c8] sm:$0xff] }
 0x2c2   : > { %5127 = vst.msk [vmem:[%s5910_s9 + $0x2d0] sm:$0xf] %vm4946_vm3, %v4678_v0  ;;  %v3671_v15 = vmax.f32 %v3223_v8, 0.0  ;;  %v3783_v16 = vmax.f32 %v3335_v7, 0.0  ;;  %v403_v8 = vld [vmem:[%s5782_s27 + $0x648] sm:$0xff]  ;;  %v514_v7 = vld [vmem:[%s5782_s27 + $0x9c0] sm:$0xff] }
 0x2c3   : > { %v4342_v19 = vmin.f32 %v3894_v17, 6.0  ;;  %v4454_v20 = vmin.f32 %v4006_v12, 6.0  ;;  %v626_v17 = vld [vmem:[%s5782_s27 + $0xd40] sm:$0xff]  ;;  %v627_v12 = vld [vmem:[%s5782_s27 + $0xd48] sm:$0xff] }
 0x2c4   : > { %v4119_v22 = vmin.f32 %v3671_v15, 6.0  ;;  %v4231_v23 = vmin.f32 %v3783_v16, 6.0  ;;  %v2310_v24 = vpop.f32.mrf.mxu2  ;;  %v2590_v25 = vpop.f32.mrf.mxu3 }
 0x2c5   : > { %v4790_v29 = vpack.c.bf16 %v4342_v19, %v4342_v19  ;;  %v4902_v30 = vpack.c.bf16 %v4454_v20, %v4454_v20  ;;  %v2995_v31 = vmul.f32 %v7241_v39, %v2310_v24  ;;  %v3107_v32 = vmul.f32 %v7241_v39, %v2590_v25  ;;  %v1753_v33 = vpop.f32.mrf.mxu0  ;;  %v2033_v34 = vpop.f32.mrf.mxu1 }
 0x2c6   : > { %v4567_v27 = vpack.c.bf16 %v4119_v22, %v4119_v22  ;;  %v4679_v35 = vpack.c.bf16 %v4231_v23, %v4231_v23  ;;  %v2772_v36 = vmul.f32 %v7241_v39, %v1753_v33  ;;  %v2884_v37 = vmul.f32 %v7241_v39, %v2033_v34 }
 0x2c7   : > { %5239 = vst.msk [vmem:[%s5910_s9 + $0x490] sm:$0xf] %vm4946_vm3, %v4790_v29  ;;  %v3447_v38 = vadd.f32 %v7252_v48, %v2995_v31  ;;  %v3559_v40 = vadd.f32 %v7252_v48, %v3107_v32  ;;  %v694_v19 = vpack.c.bf16 %v291_v3, %v290_v59  ;;  %v750_v20 = vpack.c.bf16 %v403_v8, %v402_v4  ;;  %v404_v59 = vld [vmem:[%s5782_s27 + $0x650] sm:$0xff]  ;;  %v517_v8 = vld [vmem:[%s5782_s27 + $0x9d8] sm:$0xff] }
 0x2c8   : > { %5351 = vst.msk [vmem:[%s5910_s9 + $0x650] sm:$0xf] %vm4946_vm3, %v4902_v30  ;;  %v3224_v41 = vadd.f32 %v7252_v48, %v2772_v36  ;;  %v3336_v42 = vadd.f32 %v7252_v48, %v2884_v37  ;;  %5509 = vmatmul.msk.bf16.gmra.mxu0 %vm889_vm2, %v693_v18  ;;  %5565 = vmatmul.msk.bf16.gmra.mxu1 %vm889_vm2, %v749_v21 }
 0x2c9   : > { %5016 = vst.msk [vmem:[%s5910_s9 + $0x114] sm:$0xf] %vm4946_vm3, %v4567_v27  ;;  %v3895_v43 = vmax.f32 %v3447_v38, 0.0  ;;  %v4007_v49 = vmax.f32 %v3559_v40, 0.0  ;;  %5621 = vmatmul.msk.bf16.gmra.mxu2 %vm889_vm2, %v805_v26  ;;  %5677 = vmatmul.msk.bf16.gmra.mxu3 %vm889_vm2, %v861_v28  ;;  %v806_v24 = vpack.c.bf16 %v515_v9, %v514_v7  ;;  %v862_v25 = vpack.c.bf16 %v627_v12, %v626_v17 }
 0x2ca   : > { %5128 = vst.msk [vmem:[%s5910_s9 + $0x2d4] sm:$0xf] %vm4946_vm3, %v4679_v35  ;;  %v3672_v44 = vmax.f32 %v3224_v41, 0.0  ;;  %v3784_v45 = vmax.f32 %v3336_v42, 0.0 }
 0x2cb   : > { %v4343_v46 = vmin.f32 %v3895_v43, 6.0  ;;  %v4455_v47 = vmin.f32 %v4007_v49, 6.0 }
 0x2cc   : > { %v4120_v51 = vmin.f32 %v3672_v44, 6.0  ;;  %v4232_v52 = vmin.f32 %v3784_v45, 6.0  ;;  %v2313_v50 = vpop.f32.mrf.mxu2  ;;  %v2593_v53 = vpop.f32.mrf.mxu3 }
 0x2cd   : > { %v4791_v54 = vpack.c.bf16 %v4343_v46, %v4343_v46  ;;  %v4903_v55 = vpack.c.bf16 %v4455_v47, %v4455_v47  ;;  %v2996_v56 = vmul.f32 %v7241_v39, %v2313_v50  ;;  %v3108_v57 = vmul.f32 %v7241_v39, %v2593_v53  ;;  %v1755_v58 = vpop.f32.mrf.mxu0  ;;  %v2035_v60 = vpop.f32.mrf.mxu1 }
 0x2ce   : > { %v4568_v61 = vpack.c.bf16 %v4120_v51, %v4120_v51  ;;  %v4680_v62 = vpack.c.bf16 %v4232_v52, %v4232_v52  ;;  %v2773_v63 = vmul.f32 %v7241_v39, %v1755_v58  ;;  %v2885_v0 = vmul.f32 %v7241_v39, %v2035_v60 }
 0x2cf   : > { %5240 = vst.msk [vmem:[%s5910_s9 + $0x494] sm:$0xf] %vm4946_vm3, %v4791_v54  ;;  %v3448_v1 = vadd.f32 %v7252_v48, %v2996_v56  ;;  %v3560_v2 = vadd.f32 %v7252_v48, %v3108_v57 }
 0x2d0   : > { %5352 = vst.msk [vmem:[%s5910_s9 + $0x654] sm:$0xf] %vm4946_vm3, %v4903_v55  ;;  %v3225_v5 = vadd.f32 %v7252_v48, %v2773_v63  ;;  %v3337_v6 = vadd.f32 %v7252_v48, %v2885_v0 }
 0x2d1   : > { %5017 = vst.msk [vmem:[%s5910_s9 + $0x118] sm:$0xf] %vm4946_vm3, %v4568_v61  ;;  %v3896_v10 = vmax.f32 %v3448_v1, 0.0  ;;  %v4008_v11 = vmax.f32 %v3560_v2, 0.0  ;;  %v292_v1 = vld [vmem:[%s5782_s27 + $0x2d0] sm:$0xff]  ;;  %v293_v2 = vld [vmem:[%s5782_s27 + $0x2d8] sm:$0xff] }
 0x2d2   : > { %5129 = vst.msk [vmem:[%s5910_s9 + $0x2d8] sm:$0xf] %vm4946_vm3, %v4680_v62  ;;  %v3673_v13 = vmax.f32 %v3225_v5, 0.0  ;;  %v3785_v14 = vmax.f32 %v3337_v6, 0.0  ;;  %v405_v5 = vld [vmem:[%s5782_s27 + $0x658] sm:$0xff]  ;;  %v516_v6 = vld [vmem:[%s5782_s27 + $0x9d0] sm:$0xff] }
 0x2d3   : > { %v4344_v15 = vmin.f32 %v3896_v10, 6.0  ;;  %v4456_v16 = vmin.f32 %v4008_v11, 6.0  ;;  %v628_v10 = vld [vmem:[%s5782_s27 + $0xd50] sm:$0xff]  ;;  %v629_v11 = vld [vmem:[%s5782_s27 + $0xd58] sm:$0xff] }
 0x2d4   : > { %v4121_v18 = vmin.f32 %v3673_v13, 6.0  ;;  %v4233_v21 = vmin.f32 %v3785_v14, 6.0  ;;  %v2315_v22 = vpop.f32.mrf.mxu2  ;;  %v2595_v23 = vpop.f32.mrf.mxu3 }
 0x2d5   : > { %v4792_v26 = vpack.c.bf16 %v4344_v15, %v4344_v15  ;;  %v4904_v28 = vpack.c.bf16 %v4456_v16, %v4456_v16  ;;  %v2997_v29 = vmul.f32 %v7241_v39, %v2315_v22  ;;  %v3109_v30 = vmul.f32 %v7241_v39, %v2595_v23  ;;  %v1758_v31 = vpop.f32.mrf.mxu0  ;;  %v2038_v32 = vpop.f32.mrf.mxu1 }
 0x2d6   : > { %v4569_v33 = vpack.c.bf16 %v4121_v18, %v4121_v18  ;;  %v4681_v34 = vpack.c.bf16 %v4233_v21, %v4233_v21  ;;  %v2774_v27 = vmul.f32 %v7241_v39, %v1758_v31  ;;  %v2886_v35 = vmul.f32 %v7241_v39, %v2038_v32 }
 0x2d7   : > { %5241 = vst.msk [vmem:[%s5910_s9 + $0x498] sm:$0xf] %vm4946_vm3, %v4792_v26  ;;  %v3449_v36 = vadd.f32 %v7252_v48, %v2997_v29  ;;  %v3561_v37 = vadd.f32 %v7252_v48, %v3109_v30  ;;  %v695_v15 = vpack.c.bf16 %v293_v2, %v292_v1  ;;  %v751_v16 = vpack.c.bf16 %v405_v5, %v404_v59  ;;  %v406_v1 = vld [vmem:[%s5782_s27 + $0x660] sm:$0xff]  ;;  %v519_v5 = vld [vmem:[%s5782_s27 + $0x9e8] sm:$0xff] }
 0x2d8   : > { %5353 = vst.msk [vmem:[%s5910_s9 + $0x658] sm:$0xf] %vm4946_vm3, %v4904_v28  ;;  %v3226_v38 = vadd.f32 %v7252_v48, %v2774_v27  ;;  %v3338_v40 = vadd.f32 %v7252_v48, %v2886_v35  ;;  %5510 = vmatmul.msk.bf16.gmra.mxu0 %vm889_vm2, %v694_v19  ;;  %5566 = vmatmul.msk.bf16.gmra.mxu1 %vm889_vm2, %v750_v20 }
 0x2d9   : > { %5018 = vst.msk [vmem:[%s5910_s9 + $0x11c] sm:$0xf] %vm4946_vm3, %v4569_v33  ;;  %v3897_v41 = vmax.f32 %v3449_v36, 0.0  ;;  %v4009_v42 = vmax.f32 %v3561_v37, 0.0  ;;  %5622 = vmatmul.msk.bf16.gmra.mxu2 %vm889_vm2, %v806_v24  ;;  %5678 = vmatmul.msk.bf16.gmra.mxu3 %vm889_vm2, %v862_v25  ;;  %v807_v22 = vpack.c.bf16 %v517_v8, %v516_v6  ;;  %v863_v23 = vpack.c.bf16 %v629_v11, %v628_v10 }
 0x2da   : > { %5130 = vst.msk [vmem:[%s5910_s9 + $0x2dc] sm:$0xf] %vm4946_vm3, %v4681_v34  ;;  %v3674_v43 = vmax.f32 %v3226_v38, 0.0  ;;  %v3786_v49 = vmax.f32 %v3338_v40, 0.0 }
 0x2db   : > { %v4345_v44 = vmin.f32 %v3897_v41, 6.0  ;;  %v4457_v45 = vmin.f32 %v4009_v42, 6.0 }
 0x2dc   : > { %v4122_v46 = vmin.f32 %v3674_v43, 6.0  ;;  %v4234_v47 = vmin.f32 %v3786_v49, 6.0  ;;  %v2318_v51 = vpop.f32.mrf.mxu2  ;;  %v2598_v52 = vpop.f32.mrf.mxu3 }
 0x2dd   : > { %v4793_v50 = vpack.c.bf16 %v4345_v44, %v4345_v44  ;;  %v4905_v53 = vpack.c.bf16 %v4457_v45, %v4457_v45  ;;  %v2998_v54 = vmul.f32 %v7241_v39, %v2318_v51  ;;  %v3110_v55 = vmul.f32 %v7241_v39, %v2598_v52  ;;  %v1760_v56 = vpop.f32.mrf.mxu0  ;;  %v2040_v57 = vpop.f32.mrf.mxu1  ;;  %v7579_v51 = vld [vmem:[%s8339_s2] ss:$0 sm:$0xff] }
 0x2de   : > { %v4570_v58 = vpack.c.bf16 %v4122_v46, %v4122_v46  ;;  %v4682_v60 = vpack.c.bf16 %v4234_v47, %v4234_v47  ;;  %v2775_v61 = vmul.f32 %v7241_v39, %v1760_v56  ;;  %v2887_v62 = vmul.f32 %v7241_v39, %v2040_v57 }
 0x2df   : > { %5242 = vst.msk [vmem:[%s5910_s9 + $0x49c] sm:$0xf] %vm4946_vm3, %v4793_v50  ;;  %v3450_v63 = vadd.f32 %v7252_v48, %v2998_v54  ;;  %v3562_v0 = vadd.f32 %v7252_v48, %v3110_v55 }
 0x2e0   : > { %5354 = vst.msk [vmem:[%s5910_s9 + $0x65c] sm:$0xf] %vm4946_vm3, %v4905_v53  ;;  %v3227_v3 = vadd.f32 %v7252_v48, %v2775_v61  ;;  %v3339_v4 = vadd.f32 %v7252_v48, %v2887_v62 }
 0x2e1   : > { %5019 = vst.msk [vmem:[%s5910_s9 + $0x120] sm:$0xf] %vm4946_vm3, %v4570_v58  ;;  %v3898_v7 = vmax.f32 %v3450_v63, 0.0  ;;  %v4010_v9 = vmax.f32 %v3562_v0, 0.0  ;;  %v294_v63 = vld [vmem:[%s5782_s27 + $0x2e0] sm:$0xff]  ;;  %v295_v0 = vld [vmem:[%s5782_s27 + $0x2e8] sm:$0xff] }
 0x2e2   : > { %5131 = vst.msk [vmem:[%s5910_s9 + $0x2e0] sm:$0xf] %vm4946_vm3, %v4682_v60  ;;  %v3675_v17 = vmax.f32 %v3227_v3, 0.0  ;;  %v3787_v12 = vmax.f32 %v3339_v4, 0.0  ;;  %v7590_v60 = vld [vmem:[%s8340_s3] ss:$0 sm:$0xff] }
 0x2e3   : > { %v4346_v13 = vmin.f32 %v3898_v7, 6.0  ;;  %v4458_v14 = vmin.f32 %v4010_v9, 6.0  ;;  %v407_v3 = vld [vmem:[%s5782_s27 + $0x668] sm:$0xff]  ;;  %v518_v4 = vld [vmem:[%s5782_s27 + $0x9e0] sm:$0xff] }
 0x2e4   : > { %v4123_v19 = vmin.f32 %v3675_v17, 6.0  ;;  %v4235_v20 = vmin.f32 %v3787_v12, 6.0  ;;  %v2320_v18 = vpop.f32.mrf.mxu2  ;;  %v2600_v21 = vpop.f32.mrf.mxu3  ;;  %v630_v7 = vld [vmem:[%s5782_s27 + $0xd60] sm:$0xff]  ;;  %v631_v9 = vld [vmem:[%s5782_s27 + $0xd68] sm:$0xff] }
 0x2e5   : > { %v4794_v24 = vpack.c.bf16 %v4346_v13, %v4346_v13  ;;  %v4906_v25 = vpack.c.bf16 %v4458_v14, %v4458_v14  ;;  %v2999_v26 = vmul.f32 %v7241_v39, %v2320_v18  ;;  %v3111_v28 = vmul.f32 %v7241_v39, %v2600_v21  ;;  %v1763_v29 = vpop.f32.mrf.mxu0  ;;  %v2043_v30 = vpop.f32.mrf.mxu1 }
 0x2e6   : > { %v4571_v31 = vpack.c.bf16 %v4123_v19, %v4123_v19  ;;  %v4683_v32 = vpack.c.bf16 %v4235_v20, %v4235_v20  ;;  %v2776_v33 = vmul.f32 %v7241_v39, %v1763_v29  ;;  %v2888_v34 = vmul.f32 %v7241_v39, %v2043_v30 }
 0x2e7   : > { %5243 = vst.msk [vmem:[%s5910_s9 + $0x4a0] sm:$0xf] %vm4946_vm3, %v4794_v24  ;;  %v3451_v27 = vadd.f32 %v7252_v48, %v2999_v26  ;;  %v3563_v35 = vadd.f32 %v7252_v48, %v3111_v28  ;;  %v696_v13 = vpack.c.bf16 %v295_v0, %v294_v63  ;;  %v752_v14 = vpack.c.bf16 %v407_v3, %v406_v1  ;;  %v408_v63 = vld [vmem:[%s5782_s27 + $0x670] sm:$0xff]  ;;  %v521_v3 = vld [vmem:[%s5782_s27 + $0x9f8] sm:$0xff] }
 0x2e8   : > { %5355 = vst.msk [vmem:[%s5910_s9 + $0x660] sm:$0xf] %vm4946_vm3, %v4906_v25  ;;  %v3228_v36 = vadd.f32 %v7252_v48, %v2776_v33  ;;  %v3340_v37 = vadd.f32 %v7252_v48, %v2888_v34  ;;  %5511 = vmatmul.msk.bf16.gmra.mxu0 %vm889_vm2, %v695_v15  ;;  %5567 = vmatmul.msk.bf16.gmra.mxu1 %vm889_vm2, %v751_v16 }
 0x2e9   : > { %5020 = vst.msk [vmem:[%s5910_s9 + $0x124] sm:$0xf] %vm4946_vm3, %v4571_v31  ;;  %v3899_v38 = vmax.f32 %v3451_v27, 0.0  ;;  %v4011_v39 = vmax.f32 %v3563_v35, 0.0  ;;  %5623 = vmatmul.msk.bf16.gmra.mxu2 %vm889_vm2, %v807_v22  ;;  %5679 = vmatmul.msk.bf16.gmra.mxu3 %vm889_vm2, %v863_v23  ;;  %v808_v18 = vpack.c.bf16 %v519_v5, %v518_v4  ;;  %v864_v21 = vpack.c.bf16 %v631_v9, %v630_v7 }
 0x2ea   : > { %5132 = vst.msk [vmem:[%s5910_s9 + $0x2e4] sm:$0xf] %vm4946_vm3, %v4683_v32  ;;  %v3676_v40 = vmax.f32 %v3228_v36, 0.0  ;;  %v3788_v41 = vmax.f32 %v3340_v37, 0.0 }
 0x2eb   : > { %v4347_v42 = vmin.f32 %v3899_v38, 6.0  ;;  %v4459_v43 = vmin.f32 %v4011_v39, 6.0 }
 0x2ec   : > { %v4124_v48 = vmin.f32 %v3676_v40, 6.0  ;;  %v4236_v49 = vmin.f32 %v3788_v41, 6.0  ;;  %v2323_v44 = vpop.f32.mrf.mxu2  ;;  %v2603_v45 = vpop.f32.mrf.mxu3 }
 0x2ed   : > { %v4795_v46 = vpack.c.bf16 %v4347_v42, %v4347_v42  ;;  %v4907_v47 = vpack.c.bf16 %v4459_v43, %v4459_v43  ;;  %v3000_v52 = vmul.f32 %v7579_v51, %v2323_v44  ;;  %v3112_v50 = vmul.f32 %v7579_v51, %v2603_v45  ;;  %v1765_v53 = vpop.f32.mrf.mxu0  ;;  %v2045_v54 = vpop.f32.mrf.mxu1 }
 0x2ee   : > { %v4572_v55 = vpack.c.bf16 %v4124_v48, %v4124_v48  ;;  %v4684_v56 = vpack.c.bf16 %v4236_v49, %v4236_v49  ;;  %v2777_v57 = vmul.f32 %v7579_v51, %v1765_v53  ;;  %v2889_v58 = vmul.f32 %v7579_v51, %v2045_v54 }
 0x2ef   : > { %5244 = vst.msk [vmem:[%s5910_s9 + $0x4a4] sm:$0xf] %vm4946_vm3, %v4795_v46  ;;  %v3452_v61 = vadd.f32 %v7590_v60, %v3000_v52  ;;  %v3564_v62 = vadd.f32 %v7590_v60, %v3112_v50 }
 0x2f0   : > { %5356 = vst.msk [vmem:[%s5910_s9 + $0x664] sm:$0xf] %vm4946_vm3, %v4907_v47  ;;  %v3229_v2 = vadd.f32 %v7590_v60, %v2777_v57  ;;  %v3341_v59 = vadd.f32 %v7590_v60, %v2889_v58 }
 0x2f1   : > { %5021 = vst.msk [vmem:[%s5910_s9 + $0x128] sm:$0xf] %vm4946_vm3, %v4572_v55  ;;  %v3900_v6 = vmax.f32 %v3452_v61, 0.0  ;;  %v4012_v8 = vmax.f32 %v3564_v62, 0.0  ;;  %v296_v61 = vld [vmem:[%s5782_s27 + $0x2f0] sm:$0xff]  ;;  %v297_v62 = vld [vmem:[%s5782_s27 + $0x2f8] sm:$0xff] }
 0x2f2   : > { %5133 = vst.msk [vmem:[%s5910_s9 + $0x2e8] sm:$0xf] %vm4946_vm3, %v4684_v56  ;;  %v3677_v10 = vmax.f32 %v3229_v2, 0.0  ;;  %v3789_v11 = vmax.f32 %v3341_v59, 0.0  ;;  %v409_v2 = vld [vmem:[%s5782_s27 + $0x678] sm:$0xff]  ;;  %v520_v59 = vld [vmem:[%s5782_s27 + $0x9f0] sm:$0xff] }
 0x2f3   : > { %v4348_v17 = vmin.f32 %v3900_v6, 6.0  ;;  %v4460_v12 = vmin.f32 %v4012_v8, 6.0  ;;  %v632_v6 = vld [vmem:[%s5782_s27 + $0xd70] sm:$0xff]  ;;  %v633_v8 = vld [vmem:[%s5782_s27 + $0xd78] sm:$0xff] }
 0x2f4   : > { %v4125_v15 = vmin.f32 %v3677_v10, 6.0  ;;  %v4237_v16 = vmin.f32 %v3789_v11, 6.0  ;;  %v2325_v19 = vpop.f32.mrf.mxu2  ;;  %v2605_v20 = vpop.f32.mrf.mxu3 }
 0x2f5   : > { %v4796_v22 = vpack.c.bf16 %v4348_v17, %v4348_v17  ;;  %v4908_v23 = vpack.c.bf16 %v4460_v12, %v4460_v12  ;;  %v3001_v24 = vmul.f32 %v7579_v51, %v2325_v19  ;;  %v3113_v25 = vmul.f32 %v7579_v51, %v2605_v20  ;;  %v1768_v26 = vpop.f32.mrf.mxu0  ;;  %v2048_v28 = vpop.f32.mrf.mxu1 }
 0x2f6   : > { %v4573_v29 = vpack.c.bf16 %v4125_v15, %v4125_v15  ;;  %v4685_v30 = vpack.c.bf16 %v4237_v16, %v4237_v16  ;;  %v2778_v31 = vmul.f32 %v7579_v51, %v1768_v26  ;;  %v2890_v32 = vmul.f32 %v7579_v51, %v2048_v28 }
 0x2f7   : > { %5245 = vst.msk [vmem:[%s5910_s9 + $0x4a8] sm:$0xf] %vm4946_vm3, %v4796_v22  ;;  %v3453_v33 = vadd.f32 %v7590_v60, %v3001_v24  ;;  %v3565_v34 = vadd.f32 %v7590_v60, %v3113_v25  ;;  %v697_v17 = vpack.c.bf16 %v297_v62, %v296_v61  ;;  %v753_v12 = vpack.c.bf16 %v409_v2, %v408_v63  ;;  %v410_v61 = vld [vmem:[%s5782_s27 + $0x680] sm:$0xff]  ;;  %v523_v2 = vld [vmem:[%s5782_s27 + $0xa08] sm:$0xff] }
 0x2f8   : > { %5357 = vst.msk [vmem:[%s5910_s9 + $0x668] sm:$0xf] %vm4946_vm3, %v4908_v23  ;;  %v3230_v27 = vadd.f32 %v7590_v60, %v2778_v31  ;;  %v3342_v35 = vadd.f32 %v7590_v60, %v2890_v32  ;;  %5512 = vmatmul.msk.bf16.gmra.mxu0 %vm889_vm2, %v696_v13  ;;  %5568 = vmatmul.msk.bf16.gmra.mxu1 %vm889_vm2, %v752_v14 }
 0x2f9   : > { %5022 = vst.msk [vmem:[%s5910_s9 + $0x12c] sm:$0xf] %vm4946_vm3, %v4573_v29  ;;  %v3901_v36 = vmax.f32 %v3453_v33, 0.0  ;;  %v4013_v37 = vmax.f32 %v3565_v34, 0.0  ;;  %5624 = vmatmul.msk.bf16.gmra.mxu2 %vm889_vm2, %v808_v18  ;;  %5680 = vmatmul.msk.bf16.gmra.mxu3 %vm889_vm2, %v864_v21  ;;  %v809_v19 = vpack.c.bf16 %v521_v3, %v520_v59  ;;  %v865_v20 = vpack.c.bf16 %v633_v8, %v632_v6 }
 0x2fa   : > { %5134 = vst.msk [vmem:[%s5910_s9 + $0x2ec] sm:$0xf] %vm4946_vm3, %v4685_v30  ;;  %v3678_v38 = vmax.f32 %v3230_v27, 0.0  ;;  %v3790_v39 = vmax.f32 %v3342_v35, 0.0 }
 0x2fb   : > { %v4349_v40 = vmin.f32 %v3901_v36, 6.0  ;;  %v4461_v41 = vmin.f32 %v4013_v37, 6.0 }
 0x2fc   : > { %v4126_v42 = vmin.f32 %v3678_v38, 6.0  ;;  %v4238_v43 = vmin.f32 %v3790_v39, 6.0  ;;  %v2328_v48 = vpop.f32.mrf.mxu2  ;;  %v2608_v49 = vpop.f32.mrf.mxu3 }
 0x2fd   : > { %v4797_v44 = vpack.c.bf16 %v4349_v40, %v4349_v40  ;;  %v4909_v45 = vpack.c.bf16 %v4461_v41, %v4461_v41  ;;  %v3002_v46 = vmul.f32 %v7579_v51, %v2328_v48  ;;  %v3114_v47 = vmul.f32 %v7579_v51, %v2608_v49  ;;  %v1770_v52 = vpop.f32.mrf.mxu0  ;;  %v2050_v50 = vpop.f32.mrf.mxu1 }
 0x2fe   : > { %v4574_v53 = vpack.c.bf16 %v4126_v42, %v4126_v42  ;;  %v4686_v54 = vpack.c.bf16 %v4238_v43, %v4238_v43  ;;  %v2779_v55 = vmul.f32 %v7579_v51, %v1770_v52  ;;  %v2891_v56 = vmul.f32 %v7579_v51, %v2050_v50 }
 0x2ff   : > { %5246 = vst.msk [vmem:[%s5910_s9 + $0x4ac] sm:$0xf] %vm4946_vm3, %v4797_v44  ;;  %v3454_v57 = vadd.f32 %v7590_v60, %v3002_v46  ;;  %v3566_v58 = vadd.f32 %v7590_v60, %v3114_v47 }
 0x300   : > { %5358 = vst.msk [vmem:[%s5910_s9 + $0x66c] sm:$0xf] %vm4946_vm3, %v4909_v45  ;;  %v3231_v0 = vadd.f32 %v7590_v60, %v2779_v55  ;;  %v3343_v1 = vadd.f32 %v7590_v60, %v2891_v56 }
 0x301   : > { %5023 = vst.msk [vmem:[%s5910_s9 + $0x130] sm:$0xf] %vm4946_vm3, %v4574_v53  ;;  %v3902_v4 = vmax.f32 %v3454_v57, 0.0  ;;  %v4014_v5 = vmax.f32 %v3566_v58, 0.0  ;;  %v298_v57 = vld [vmem:[%s5782_s27 + $0x300] sm:$0xff]  ;;  %v299_v58 = vld [vmem:[%s5782_s27 + $0x308] sm:$0xff] }
 0x302   : > { %5135 = vst.msk [vmem:[%s5910_s9 + $0x2f0] sm:$0xf] %vm4946_vm3, %v4686_v54  ;;  %v3679_v7 = vmax.f32 %v3231_v0, 0.0  ;;  %v3791_v9 = vmax.f32 %v3343_v1, 0.0  ;;  %v411_v0 = vld [vmem:[%s5782_s27 + $0x688] sm:$0xff]  ;;  %v522_v1 = vld [vmem:[%s5782_s27 + $0xa00] sm:$0xff] }
 0x303   : > { %v4350_v10 = vmin.f32 %v3902_v4, 6.0  ;;  %v4462_v11 = vmin.f32 %v4014_v5, 6.0  ;;  %v634_v4 = vld [vmem:[%s5782_s27 + $0xd80] sm:$0xff]  ;;  %v635_v5 = vld [vmem:[%s5782_s27 + $0xd88] sm:$0xff] }
 0x304   : > { %v4127_v13 = vmin.f32 %v3679_v7, 6.0  ;;  %v4239_v14 = vmin.f32 %v3791_v9, 6.0  ;;  %v2330_v15 = vpop.f32.mrf.mxu2  ;;  %v2610_v16 = vpop.f32.mrf.mxu3 }
 0x305   : > { %v4798_v18 = vpack.c.bf16 %v4350_v10, %v4350_v10  ;;  %v4910_v21 = vpack.c.bf16 %v4462_v11, %v4462_v11  ;;  %v3003_v22 = vmul.f32 %v7579_v51, %v2330_v15  ;;  %v3115_v23 = vmul.f32 %v7579_v51, %v2610_v16  ;;  %v1773_v24 = vpop.f32.mrf.mxu0  ;;  %v2053_v25 = vpop.f32.mrf.mxu1 }
 0x306   : > { %v4575_v26 = vpack.c.bf16 %v4127_v13, %v4127_v13  ;;  %v4687_v28 = vpack.c.bf16 %v4239_v14, %v4239_v14  ;;  %v2780_v29 = vmul.f32 %v7579_v51, %v1773_v24  ;;  %v2892_v30 = vmul.f32 %v7579_v51, %v2053_v25 }
 0x307   : > { %5247 = vst.msk [vmem:[%s5910_s9 + $0x4b0] sm:$0xf] %vm4946_vm3, %v4798_v18  ;;  %v3455_v31 = vadd.f32 %v7590_v60, %v3003_v22  ;;  %v3567_v32 = vadd.f32 %v7590_v60, %v3115_v23  ;;  %v698_v10 = vpack.c.bf16 %v299_v58, %v298_v57  ;;  %v754_v11 = vpack.c.bf16 %v411_v0, %v410_v61  ;;  %v412_v57 = vld [vmem:[%s5782_s27 + $0x690] sm:$0xff]  ;;  %v525_v0 = vld [vmem:[%s5782_s27 + $0xa18] sm:$0xff] }
 0x308   : > { %5359 = vst.msk [vmem:[%s5910_s9 + $0x670] sm:$0xf] %vm4946_vm3, %v4910_v21  ;;  %v3232_v33 = vadd.f32 %v7590_v60, %v2780_v29  ;;  %v3344_v34 = vadd.f32 %v7590_v60, %v2892_v30  ;;  %5513 = vmatmul.msk.bf16.gmra.mxu0 %vm889_vm2, %v697_v17  ;;  %5569 = vmatmul.msk.bf16.gmra.mxu1 %vm889_vm2, %v753_v12 }
 0x309   : > { %5024 = vst.msk [vmem:[%s5910_s9 + $0x134] sm:$0xf] %vm4946_vm3, %v4575_v26  ;;  %v3903_v27 = vmax.f32 %v3455_v31, 0.0  ;;  %v4015_v35 = vmax.f32 %v3567_v32, 0.0  ;;  %5625 = vmatmul.msk.bf16.gmra.mxu2 %vm889_vm2, %v809_v19  ;;  %5681 = vmatmul.msk.bf16.gmra.mxu3 %vm889_vm2, %v865_v20  ;;  %v810_v15 = vpack.c.bf16 %v523_v2, %v522_v1  ;;  %v866_v16 = vpack.c.bf16 %v635_v5, %v634_v4 }
 0x30a   : > { %5136 = vst.msk [vmem:[%s5910_s9 + $0x2f4] sm:$0xf] %vm4946_vm3, %v4687_v28  ;;  %v3680_v36 = vmax.f32 %v3232_v33, 0.0  ;;  %v3792_v37 = vmax.f32 %v3344_v34, 0.0 }
 0x30b   : > { %v4351_v38 = vmin.f32 %v3903_v27, 6.0  ;;  %v4463_v39 = vmin.f32 %v4015_v35, 6.0 }
 0x30c   : > { %v4128_v40 = vmin.f32 %v3680_v36, 6.0  ;;  %v4240_v41 = vmin.f32 %v3792_v37, 6.0  ;;  %v2333_v42 = vpop.f32.mrf.mxu2  ;;  %v2613_v43 = vpop.f32.mrf.mxu3 }
 0x30d   : > { %v4799_v48 = vpack.c.bf16 %v4351_v38, %v4351_v38  ;;  %v4911_v49 = vpack.c.bf16 %v4463_v39, %v4463_v39  ;;  %v3004_v44 = vmul.f32 %v7579_v51, %v2333_v42  ;;  %v3116_v45 = vmul.f32 %v7579_v51, %v2613_v43  ;;  %v1775_v46 = vpop.f32.mrf.mxu0  ;;  %v2055_v47 = vpop.f32.mrf.mxu1 }
 0x30e   : > { %v4576_v52 = vpack.c.bf16 %v4128_v40, %v4128_v40  ;;  %v4688_v50 = vpack.c.bf16 %v4240_v41, %v4240_v41  ;;  %v2781_v53 = vmul.f32 %v7579_v51, %v1775_v46  ;;  %v2893_v54 = vmul.f32 %v7579_v51, %v2055_v47 }
 0x30f   : > { %5248 = vst.msk [vmem:[%s5910_s9 + $0x4b4] sm:$0xf] %vm4946_vm3, %v4799_v48  ;;  %v3456_v55 = vadd.f32 %v7590_v60, %v3004_v44  ;;  %v3568_v56 = vadd.f32 %v7590_v60, %v3116_v45 }
 0x310   : > { %5360 = vst.msk [vmem:[%s5910_s9 + $0x674] sm:$0xf] %vm4946_vm3, %v4911_v49  ;;  %v3233_v62 = vadd.f32 %v7590_v60, %v2781_v53  ;;  %v3345_v63 = vadd.f32 %v7590_v60, %v2893_v54 }
 0x311   : > { %5025 = vst.msk [vmem:[%s5910_s9 + $0x138] sm:$0xf] %vm4946_vm3, %v4576_v52  ;;  %v3904_v59 = vmax.f32 %v3456_v55, 0.0  ;;  %v4016_v3 = vmax.f32 %v3568_v56, 0.0  ;;  %v300_v55 = vld [vmem:[%s5782_s27 + $0x310] sm:$0xff]  ;;  %v301_v56 = vld [vmem:[%s5782_s27 + $0x318] sm:$0xff] }
 0x312   : > { %5137 = vst.msk [vmem:[%s5910_s9 + $0x2f8] sm:$0xf] %vm4946_vm3, %v4688_v50  ;;  %v3681_v6 = vmax.f32 %v3233_v62, 0.0  ;;  %v3793_v8 = vmax.f32 %v3345_v63, 0.0  ;;  %v413_v62 = vld [vmem:[%s5782_s27 + $0x698] sm:$0xff]  ;;  %v524_v63 = vld [vmem:[%s5782_s27 + $0xa10] sm:$0xff] }
 0x313   : > { %v4352_v7 = vmin.f32 %v3904_v59, 6.0  ;;  %v4464_v9 = vmin.f32 %v4016_v3, 6.0  ;;  %v636_v59 = vld [vmem:[%s5782_s27 + $0xd90] sm:$0xff]  ;;  %v637_v3 = vld [vmem:[%s5782_s27 + $0xd98] sm:$0xff] }
 0x314   : > { %v4129_v17 = vmin.f32 %v3681_v6, 6.0  ;;  %v4241_v12 = vmin.f32 %v3793_v8, 6.0  ;;  %v2335_v13 = vpop.f32.mrf.mxu2  ;;  %v2615_v14 = vpop.f32.mrf.mxu3 }
 0x315   : > { %v4800_v19 = vpack.c.bf16 %v4352_v7, %v4352_v7  ;;  %v4912_v20 = vpack.c.bf16 %v4464_v9, %v4464_v9  ;;  %v3005_v18 = vmul.f32 %v7579_v51, %v2335_v13  ;;  %v3117_v21 = vmul.f32 %v7579_v51, %v2615_v14  ;;  %v1778_v22 = vpop.f32.mrf.mxu0  ;;  %v2058_v23 = vpop.f32.mrf.mxu1 }
 0x316   : > { %v4577_v24 = vpack.c.bf16 %v4129_v17, %v4129_v17  ;;  %v4689_v25 = vpack.c.bf16 %v4241_v12, %v4241_v12  ;;  %v2782_v26 = vmul.f32 %v7579_v51, %v1778_v22  ;;  %v2894_v28 = vmul.f32 %v7579_v51, %v2058_v23 }
 0x317   : > { %5249 = vst.msk [vmem:[%s5910_s9 + $0x4b8] sm:$0xf] %vm4946_vm3, %v4800_v19  ;;  %v3457_v29 = vadd.f32 %v7590_v60, %v3005_v18  ;;  %v3569_v30 = vadd.f32 %v7590_v60, %v3117_v21  ;;  %v699_v7 = vpack.c.bf16 %v301_v56, %v300_v55  ;;  %v755_v9 = vpack.c.bf16 %v413_v62, %v412_v57  ;;  %v414_v55 = vld [vmem:[%s5782_s27 + $0x6a0] sm:$0xff]  ;;  %v527_v62 = vld [vmem:[%s5782_s27 + $0xa28] sm:$0xff] }
 0x318   : > { %5361 = vst.msk [vmem:[%s5910_s9 + $0x678] sm:$0xf] %vm4946_vm3, %v4912_v20  ;;  %v3234_v31 = vadd.f32 %v7590_v60, %v2782_v26  ;;  %v3346_v32 = vadd.f32 %v7590_v60, %v2894_v28  ;;  %5514 = vmatmul.msk.bf16.gmra.mxu0 %vm889_vm2, %v698_v10  ;;  %5570 = vmatmul.msk.bf16.gmra.mxu1 %vm889_vm2, %v754_v11 }
 0x319   : > { %5026 = vst.msk [vmem:[%s5910_s9 + $0x13c] sm:$0xf] %vm4946_vm3, %v4577_v24  ;;  %v3905_v33 = vmax.f32 %v3457_v29, 0.0  ;;  %v4017_v34 = vmax.f32 %v3569_v30, 0.0  ;;  %5626 = vmatmul.msk.bf16.gmra.mxu2 %vm889_vm2, %v810_v15  ;;  %5682 = vmatmul.msk.bf16.gmra.mxu3 %vm889_vm2, %v866_v16  ;;  %v811_v13 = vpack.c.bf16 %v525_v0, %v524_v63  ;;  %v867_v14 = vpack.c.bf16 %v637_v3, %v636_v59 }
 0x31a   : > { %5138 = vst.msk [vmem:[%s5910_s9 + $0x2fc] sm:$0xf] %vm4946_vm3, %v4689_v25  ;;  %v3682_v27 = vmax.f32 %v3234_v31, 0.0  ;;  %v3794_v35 = vmax.f32 %v3346_v32, 0.0 }
 0x31b   : > { %v4353_v36 = vmin.f32 %v3905_v33, 6.0  ;;  %v4465_v37 = vmin.f32 %v4017_v34, 6.0 }
 0x31c   : > { %v4130_v38 = vmin.f32 %v3682_v27, 6.0  ;;  %v4242_v39 = vmin.f32 %v3794_v35, 6.0  ;;  %v2338_v40 = vpop.f32.mrf.mxu2  ;;  %v2618_v41 = vpop.f32.mrf.mxu3 }
 0x31d   : > { %v4801_v42 = vpack.c.bf16 %v4353_v36, %v4353_v36  ;;  %v4913_v43 = vpack.c.bf16 %v4465_v37, %v4465_v37  ;;  %v3006_v48 = vmul.f32 %v7579_v51, %v2338_v40  ;;  %v3118_v49 = vmul.f32 %v7579_v51, %v2618_v41  ;;  %v1780_v44 = vpop.f32.mrf.mxu0  ;;  %v2060_v45 = vpop.f32.mrf.mxu1 }
 0x31e   : > { %v4578_v46 = vpack.c.bf16 %v4130_v38, %v4130_v38  ;;  %v4690_v47 = vpack.c.bf16 %v4242_v39, %v4242_v39  ;;  %v2783_v52 = vmul.f32 %v7579_v51, %v1780_v44  ;;  %v2895_v50 = vmul.f32 %v7579_v51, %v2060_v45 }
 0x31f   : > { %5250 = vst.msk [vmem:[%s5910_s9 + $0x4bc] sm:$0xf] %vm4946_vm3, %v4801_v42  ;;  %v3458_v53 = vadd.f32 %v7590_v60, %v3006_v48  ;;  %v3570_v54 = vadd.f32 %v7590_v60, %v3118_v49 }
 0x320   : > { %5362 = vst.msk [vmem:[%s5910_s9 + $0x67c] sm:$0xf] %vm4946_vm3, %v4913_v43  ;;  %v3235_v58 = vadd.f32 %v7590_v60, %v2783_v52  ;;  %v3347_v61 = vadd.f32 %v7590_v60, %v2895_v50 }
 0x321   : > { %5027 = vst.msk [vmem:[%s5910_s9 + $0x140] sm:$0xf] %vm4946_vm3, %v4578_v46  ;;  %v3906_v1 = vmax.f32 %v3458_v53, 0.0  ;;  %v4018_v2 = vmax.f32 %v3570_v54, 0.0  ;;  %v302_v53 = vld [vmem:[%s5782_s27 + $0x320] sm:$0xff]  ;;  %v303_v54 = vld [vmem:[%s5782_s27 + $0x328] sm:$0xff] }
 0x322   : > { %5139 = vst.msk [vmem:[%s5910_s9 + $0x300] sm:$0xf] %vm4946_vm3, %v4690_v47  ;;  %v3683_v4 = vmax.f32 %v3235_v58, 0.0  ;;  %v3795_v5 = vmax.f32 %v3347_v61, 0.0  ;;  %v415_v58 = vld [vmem:[%s5782_s27 + $0x6a8] sm:$0xff]  ;;  %v526_v61 = vld [vmem:[%s5782_s27 + $0xa20] sm:$0xff] }
 0x323   : > { %v4354_v6 = vmin.f32 %v3906_v1, 6.0  ;;  %v4466_v8 = vmin.f32 %v4018_v2, 6.0  ;;  %v638_v1 = vld [vmem:[%s5782_s27 + $0xda0] sm:$0xff]  ;;  %v639_v2 = vld [vmem:[%s5782_s27 + $0xda8] sm:$0xff] }
 0x324   : > { %v4131_v10 = vmin.f32 %v3683_v4, 6.0  ;;  %v4243_v11 = vmin.f32 %v3795_v5, 6.0  ;;  %v2340_v17 = vpop.f32.mrf.mxu2  ;;  %v2620_v12 = vpop.f32.mrf.mxu3 }
 0x325   : > { %v4802_v15 = vpack.c.bf16 %v4354_v6, %v4354_v6  ;;  %v4914_v16 = vpack.c.bf16 %v4466_v8, %v4466_v8  ;;  %v3007_v19 = vmul.f32 %v7579_v51, %v2340_v17  ;;  %v3119_v20 = vmul.f32 %v7579_v51, %v2620_v12  ;;  %v1783_v18 = vpop.f32.mrf.mxu0  ;;  %v2063_v21 = vpop.f32.mrf.mxu1 }
 0x326   : > { %v4579_v22 = vpack.c.bf16 %v4131_v10, %v4131_v10  ;;  %v4691_v23 = vpack.c.bf16 %v4243_v11, %v4243_v11  ;;  %v2784_v24 = vmul.f32 %v7579_v51, %v1783_v18  ;;  %v2896_v25 = vmul.f32 %v7579_v51, %v2063_v21 }
 0x327   : > { %5251 = vst.msk [vmem:[%s5910_s9 + $0x4c0] sm:$0xf] %vm4946_vm3, %v4802_v15  ;;  %v3459_v26 = vadd.f32 %v7590_v60, %v3007_v19  ;;  %v3571_v28 = vadd.f32 %v7590_v60, %v3119_v20  ;;  %v700_v6 = vpack.c.bf16 %v303_v54, %v302_v53  ;;  %v756_v8 = vpack.c.bf16 %v415_v58, %v414_v55  ;;  %v416_v53 = vld [vmem:[%s5782_s27 + $0x6b0] sm:$0xff]  ;;  %v529_v58 = vld [vmem:[%s5782_s27 + $0xa38] sm:$0xff] }
 0x328   : > { %5363 = vst.msk [vmem:[%s5910_s9 + $0x680] sm:$0xf] %vm4946_vm3, %v4914_v16  ;;  %v3236_v29 = vadd.f32 %v7590_v60, %v2784_v24  ;;  %v3348_v30 = vadd.f32 %v7590_v60, %v2896_v25  ;;  %5515 = vmatmul.msk.bf16.gmra.mxu0 %vm889_vm2, %v699_v7  ;;  %5571 = vmatmul.msk.bf16.gmra.mxu1 %vm889_vm2, %v755_v9 }
 0x329   : > { %5028 = vst.msk [vmem:[%s5910_s9 + $0x144] sm:$0xf] %vm4946_vm3, %v4579_v22  ;;  %v3907_v31 = vmax.f32 %v3459_v26, 0.0  ;;  %v4019_v32 = vmax.f32 %v3571_v28, 0.0  ;;  %5627 = vmatmul.msk.bf16.gmra.mxu2 %vm889_vm2, %v811_v13  ;;  %5683 = vmatmul.msk.bf16.gmra.mxu3 %vm889_vm2, %v867_v14  ;;  %v812_v17 = vpack.c.bf16 %v527_v62, %v526_v61  ;;  %v868_v12 = vpack.c.bf16 %v639_v2, %v638_v1 }
 0x32a   : > { %5140 = vst.msk [vmem:[%s5910_s9 + $0x304] sm:$0xf] %vm4946_vm3, %v4691_v23  ;;  %v3684_v33 = vmax.f32 %v3236_v29, 0.0  ;;  %v3796_v34 = vmax.f32 %v3348_v30, 0.0 }
 0x32b   : > { %v4355_v27 = vmin.f32 %v3907_v31, 6.0  ;;  %v4467_v35 = vmin.f32 %v4019_v32, 6.0 }
 0x32c   : > { %v4132_v36 = vmin.f32 %v3684_v33, 6.0  ;;  %v4244_v37 = vmin.f32 %v3796_v34, 6.0  ;;  %v2343_v38 = vpop.f32.mrf.mxu2  ;;  %v2623_v39 = vpop.f32.mrf.mxu3 }
 0x32d   : > { %v4803_v40 = vpack.c.bf16 %v4355_v27, %v4355_v27  ;;  %v4915_v41 = vpack.c.bf16 %v4467_v35, %v4467_v35  ;;  %v3008_v42 = vmul.f32 %v7579_v51, %v2343_v38  ;;  %v3120_v43 = vmul.f32 %v7579_v51, %v2623_v39  ;;  %v1785_v48 = vpop.f32.mrf.mxu0  ;;  %v2065_v49 = vpop.f32.mrf.mxu1 }
 0x32e   : > { %v4580_v44 = vpack.c.bf16 %v4132_v36, %v4132_v36  ;;  %v4692_v45 = vpack.c.bf16 %v4244_v37, %v4244_v37  ;;  %v2785_v46 = vmul.f32 %v7579_v51, %v1785_v48  ;;  %v2897_v47 = vmul.f32 %v7579_v51, %v2065_v49 }
 0x32f   : > { %5252 = vst.msk [vmem:[%s5910_s9 + $0x4c4] sm:$0xf] %vm4946_vm3, %v4803_v40  ;;  %v3460_v52 = vadd.f32 %v7590_v60, %v3008_v42  ;;  %v3572_v50 = vadd.f32 %v7590_v60, %v3120_v43 }
 0x330   : > { %5364 = vst.msk [vmem:[%s5910_s9 + $0x684] sm:$0xf] %vm4946_vm3, %v4915_v41  ;;  %v3237_v56 = vadd.f32 %v7590_v60, %v2785_v46  ;;  %v3349_v57 = vadd.f32 %v7590_v60, %v2897_v47 }
 0x331   : > { %5029 = vst.msk [vmem:[%s5910_s9 + $0x148] sm:$0xf] %vm4946_vm3, %v4580_v44  ;;  %v3908_v63 = vmax.f32 %v3460_v52, 0.0  ;;  %v4020_v0 = vmax.f32 %v3572_v50, 0.0  ;;  %v304_v52 = vld [vmem:[%s5782_s27 + $0x330] sm:$0xff]  ;;  %v305_v50 = vld [vmem:[%s5782_s27 + $0x338] sm:$0xff] }
 0x332   : > { %5141 = vst.msk [vmem:[%s5910_s9 + $0x308] sm:$0xf] %vm4946_vm3, %v4692_v45  ;;  %v3685_v59 = vmax.f32 %v3237_v56, 0.0  ;;  %v3797_v3 = vmax.f32 %v3349_v57, 0.0  ;;  %v417_v56 = vld [vmem:[%s5782_s27 + $0x6b8] sm:$0xff]  ;;  %v528_v57 = vld [vmem:[%s5782_s27 + $0xa30] sm:$0xff] }
 0x333   : > { %v4356_v4 = vmin.f32 %v3908_v63, 6.0  ;;  %v4468_v5 = vmin.f32 %v4020_v0, 6.0  ;;  %v640_v63 = vld [vmem:[%s5782_s27 + $0xdb0] sm:$0xff]  ;;  %v641_v0 = vld [vmem:[%s5782_s27 + $0xdb8] sm:$0xff] }
 0x334   : > { %v4133_v7 = vmin.f32 %v3685_v59, 6.0  ;;  %v4245_v9 = vmin.f32 %v3797_v3, 6.0  ;;  %v2345_v10 = vpop.f32.mrf.mxu2  ;;  %v2625_v11 = vpop.f32.mrf.mxu3 }
 0x335   : > { %v4804_v13 = vpack.c.bf16 %v4356_v4, %v4356_v4  ;;  %v4916_v14 = vpack.c.bf16 %v4468_v5, %v4468_v5  ;;  %v3009_v15 = vmul.f32 %v7579_v51, %v2345_v10  ;;  %v3121_v16 = vmul.f32 %v7579_v51, %v2625_v11  ;;  %v1788_v19 = vpop.f32.mrf.mxu0  ;;  %v2068_v20 = vpop.f32.mrf.mxu1 }
 0x336   : > { %v4581_v18 = vpack.c.bf16 %v4133_v7, %v4133_v7  ;;  %v4693_v21 = vpack.c.bf16 %v4245_v9, %v4245_v9  ;;  %v2786_v22 = vmul.f32 %v7579_v51, %v1788_v19  ;;  %v2898_v23 = vmul.f32 %v7579_v51, %v2068_v20 }
 0x337   : > { %5253 = vst.msk [vmem:[%s5910_s9 + $0x4c8] sm:$0xf] %vm4946_vm3, %v4804_v13  ;;  %v3461_v24 = vadd.f32 %v7590_v60, %v3009_v15  ;;  %v3573_v25 = vadd.f32 %v7590_v60, %v3121_v16  ;;  %v701_v4 = vpack.c.bf16 %v305_v50, %v304_v52  ;;  %v757_v5 = vpack.c.bf16 %v417_v56, %v416_v53  ;;  %v418_v52 = vld [vmem:[%s5782_s27 + $0x6c0] sm:$0xff]  ;;  %v531_v56 = vld [vmem:[%s5782_s27 + $0xa48] sm:$0xff] }
 0x338   : > { %5365 = vst.msk [vmem:[%s5910_s9 + $0x688] sm:$0xf] %vm4946_vm3, %v4916_v14  ;;  %v3238_v26 = vadd.f32 %v7590_v60, %v2786_v22  ;;  %v3350_v28 = vadd.f32 %v7590_v60, %v2898_v23  ;;  %5516 = vmatmul.msk.bf16.gmra.mxu0 %vm889_vm2, %v700_v6  ;;  %5572 = vmatmul.msk.bf16.gmra.mxu1 %vm889_vm2, %v756_v8 }
 0x339   : > { %5030 = vst.msk [vmem:[%s5910_s9 + $0x14c] sm:$0xf] %vm4946_vm3, %v4581_v18  ;;  %v3909_v29 = vmax.f32 %v3461_v24, 0.0  ;;  %v4021_v30 = vmax.f32 %v3573_v25, 0.0  ;;  %5628 = vmatmul.msk.bf16.gmra.mxu2 %vm889_vm2, %v812_v17  ;;  %5684 = vmatmul.msk.bf16.gmra.mxu3 %vm889_vm2, %v868_v12  ;;  %v813_v10 = vpack.c.bf16 %v529_v58, %v528_v57  ;;  %v869_v11 = vpack.c.bf16 %v641_v0, %v640_v63 }
 0x33a   : > { %5142 = vst.msk [vmem:[%s5910_s9 + $0x30c] sm:$0xf] %vm4946_vm3, %v4693_v21  ;;  %v3686_v31 = vmax.f32 %v3238_v26, 0.0  ;;  %v3798_v32 = vmax.f32 %v3350_v28, 0.0 }
 0x33b   : > { %v4357_v33 = vmin.f32 %v3909_v29, 6.0  ;;  %v4469_v34 = vmin.f32 %v4021_v30, 6.0 }
 0x33c   : > { %v4134_v27 = vmin.f32 %v3686_v31, 6.0  ;;  %v4246_v35 = vmin.f32 %v3798_v32, 6.0  ;;  %v2348_v36 = vpop.f32.mrf.mxu2  ;;  %v2628_v37 = vpop.f32.mrf.mxu3 }
 0x33d   : > { %v4805_v38 = vpack.c.bf16 %v4357_v33, %v4357_v33  ;;  %v4917_v39 = vpack.c.bf16 %v4469_v34, %v4469_v34  ;;  %v3010_v40 = vmul.f32 %v7579_v51, %v2348_v36  ;;  %v3122_v41 = vmul.f32 %v7579_v51, %v2628_v37  ;;  %v1790_v42 = vpop.f32.mrf.mxu0  ;;  %v2070_v43 = vpop.f32.mrf.mxu1 }
 0x33e   : > { %v4582_v48 = vpack.c.bf16 %v4134_v27, %v4134_v27  ;;  %v4694_v49 = vpack.c.bf16 %v4246_v35, %v4246_v35  ;;  %v2787_v44 = vmul.f32 %v7579_v51, %v1790_v42  ;;  %v2899_v45 = vmul.f32 %v7579_v51, %v2070_v43 }
 0x33f   : > { %5254 = vst.msk [vmem:[%s5910_s9 + $0x4cc] sm:$0xf] %vm4946_vm3, %v4805_v38  ;;  %v3462_v46 = vadd.f32 %v7590_v60, %v3010_v40  ;;  %v3574_v47 = vadd.f32 %v7590_v60, %v3122_v41 }
 0x340   : > { %5366 = vst.msk [vmem:[%s5910_s9 + $0x68c] sm:$0xf] %vm4946_vm3, %v4917_v39  ;;  %v3239_v54 = vadd.f32 %v7590_v60, %v2787_v44  ;;  %v3351_v55 = vadd.f32 %v7590_v60, %v2899_v45 }
 0x341   : > { %5031 = vst.msk [vmem:[%s5910_s9 + $0x150] sm:$0xf] %vm4946_vm3, %v4582_v48  ;;  %v3910_v61 = vmax.f32 %v3462_v46, 0.0  ;;  %v4022_v62 = vmax.f32 %v3574_v47, 0.0  ;;  %v306_v46 = vld [vmem:[%s5782_s27 + $0x340] sm:$0xff]  ;;  %v307_v47 = vld [vmem:[%s5782_s27 + $0x348] sm:$0xff] }
 0x342   : > { %5143 = vst.msk [vmem:[%s5910_s9 + $0x310] sm:$0xf] %vm4946_vm3, %v4694_v49  ;;  %v3687_v1 = vmax.f32 %v3239_v54, 0.0  ;;  %v3799_v2 = vmax.f32 %v3351_v55, 0.0  ;;  %v419_v54 = vld [vmem:[%s5782_s27 + $0x6c8] sm:$0xff]  ;;  %v530_v55 = vld [vmem:[%s5782_s27 + $0xa40] sm:$0xff] }
 0x343   : > { %v4358_v59 = vmin.f32 %v3910_v61, 6.0  ;;  %v4470_v3 = vmin.f32 %v4022_v62, 6.0  ;;  %v642_v61 = vld [vmem:[%s5782_s27 + $0xdc0] sm:$0xff]  ;;  %v643_v62 = vld [vmem:[%s5782_s27 + $0xdc8] sm:$0xff] }
 0x344   : > { %v4135_v6 = vmin.f32 %v3687_v1, 6.0  ;;  %v4247_v8 = vmin.f32 %v3799_v2, 6.0  ;;  %v2350_v7 = vpop.f32.mrf.mxu2  ;;  %v2630_v9 = vpop.f32.mrf.mxu3 }
 0x345   : > { %v4806_v17 = vpack.c.bf16 %v4358_v59, %v4358_v59  ;;  %v4918_v12 = vpack.c.bf16 %v4470_v3, %v4470_v3  ;;  %v3011_v13 = vmul.f32 %v7579_v51, %v2350_v7  ;;  %v3123_v14 = vmul.f32 %v7579_v51, %v2630_v9  ;;  %v1793_v15 = vpop.f32.mrf.mxu0  ;;  %v2073_v16 = vpop.f32.mrf.mxu1 }
 0x346   : > { %v4583_v19 = vpack.c.bf16 %v4135_v6, %v4135_v6  ;;  %v4695_v20 = vpack.c.bf16 %v4247_v8, %v4247_v8  ;;  %v2788_v18 = vmul.f32 %v7579_v51, %v1793_v15  ;;  %v2900_v21 = vmul.f32 %v7579_v51, %v2073_v16 }
 0x347   : > { %5255 = vst.msk [vmem:[%s5910_s9 + $0x4d0] sm:$0xf] %vm4946_vm3, %v4806_v17  ;;  %v3463_v22 = vadd.f32 %v7590_v60, %v3011_v13  ;;  %v3575_v23 = vadd.f32 %v7590_v60, %v3123_v14  ;;  %v702_v59 = vpack.c.bf16 %v307_v47, %v306_v46  ;;  %v758_v3 = vpack.c.bf16 %v419_v54, %v418_v52  ;;  %v420_v46 = vld [vmem:[%s5782_s27 + $0x6d0] sm:$0xff] }
 0x348   : > { %5367 = vst.msk [vmem:[%s5910_s9 + $0x690] sm:$0xf] %vm4946_vm3, %v4918_v12  ;;  %v3240_v24 = vadd.f32 %v7590_v60, %v2788_v18  ;;  %v3352_v25 = vadd.f32 %v7590_v60, %v2900_v21  ;;  %5517 = vmatmul.msk.bf16.gmra.mxu0 %vm889_vm2, %v701_v4  ;;  %5573 = vmatmul.msk.bf16.gmra.mxu1 %vm889_vm2, %v757_v5 }
 0x349   : > { %5032 = vst.msk [vmem:[%s5910_s9 + $0x154] sm:$0xf] %vm4946_vm3, %v4583_v19  ;;  %v3911_v26 = vmax.f32 %v3463_v22, 0.0  ;;  %v4023_v28 = vmax.f32 %v3575_v23, 0.0  ;;  %5629 = vmatmul.msk.bf16.gmra.mxu2 %vm889_vm2, %v813_v10  ;;  %5685 = vmatmul.msk.bf16.gmra.mxu3 %vm889_vm2, %v869_v11  ;;  %v814_v7 = vpack.c.bf16 %v531_v56, %v530_v55  ;;  %v870_v9 = vpack.c.bf16 %v643_v62, %v642_v61  ;;  %v644_v56 = vld [vmem:[%s5782_s27 + $0xdd0] sm:$0xff] }
 0x34a   : > { %5144 = vst.msk [vmem:[%s5910_s9 + $0x314] sm:$0xf] %vm4946_vm3, %v4695_v20  ;;  %v3688_v29 = vmax.f32 %v3240_v24, 0.0  ;;  %v3800_v30 = vmax.f32 %v3352_v25, 0.0 }
 0x34b   : > { %v4359_v31 = vmin.f32 %v3911_v26, 6.0  ;;  %v4471_v32 = vmin.f32 %v4023_v28, 6.0 }
 0x34c   : > { %v4136_v33 = vmin.f32 %v3688_v29, 6.0  ;;  %v4248_v34 = vmin.f32 %v3800_v30, 6.0  ;;  %v2353_v27 = vpop.f32.mrf.mxu2  ;;  %v2633_v35 = vpop.f32.mrf.mxu3 }
 0x34d   : > { %v4807_v36 = vpack.c.bf16 %v4359_v31, %v4359_v31  ;;  %v4919_v37 = vpack.c.bf16 %v4471_v32, %v4471_v32  ;;  %v3012_v38 = vmul.f32 %v7579_v51, %v2353_v27  ;;  %v3124_v39 = vmul.f32 %v7579_v51, %v2633_v35  ;;  %v1795_v40 = vpop.f32.mrf.mxu0  ;;  %v2075_v41 = vpop.f32.mrf.mxu1 }
 0x34e   : > { %v4584_v42 = vpack.c.bf16 %v4136_v33, %v4136_v33  ;;  %v4696_v43 = vpack.c.bf16 %v4248_v34, %v4248_v34  ;;  %v2789_v48 = vmul.f32 %v7579_v51, %v1795_v40  ;;  %v2901_v49 = vmul.f32 %v7579_v51, %v2075_v41 }
 0x34f   : > { %5256 = vst.msk [vmem:[%s5910_s9 + $0x4d4] sm:$0xf] %vm4946_vm3, %v4807_v36  ;;  %v3464_v44 = vadd.f32 %v7590_v60, %v3012_v38  ;;  %v3576_v45 = vadd.f32 %v7590_v60, %v3124_v39 }
 0x350   : > { %5368 = vst.msk [vmem:[%s5910_s9 + $0x694] sm:$0xf] %vm4946_vm3, %v4919_v37  ;;  %v3241_v50 = vadd.f32 %v7590_v60, %v2789_v48  ;;  %v3353_v53 = vadd.f32 %v7590_v60, %v2901_v49 }
 0x351   : > { %5033 = vst.msk [vmem:[%s5910_s9 + $0x158] sm:$0xf] %vm4946_vm3, %v4584_v42  ;;  %v3912_v57 = vmax.f32 %v3464_v44, 0.0  ;;  %v4024_v58 = vmax.f32 %v3576_v45, 0.0  ;;  %v308_v44 = vld [vmem:[%s5782_s27 + $0x350] sm:$0xff]  ;;  %v309_v45 = vld [vmem:[%s5782_s27 + $0x358] sm:$0xff] }
 0x352   : > { %5145 = vst.msk [vmem:[%s5910_s9 + $0x318] sm:$0xf] %vm4946_vm3, %v4696_v43  ;;  %v3689_v63 = vmax.f32 %v3241_v50, 0.0  ;;  %v3801_v0 = vmax.f32 %v3353_v53, 0.0  ;;  %v421_v50 = vld [vmem:[%s5782_s27 + $0x6d8] sm:$0xff] }
 0x353   : > { %v4360_v1 = vmin.f32 %v3912_v57, 6.0  ;;  %v4472_v2 = vmin.f32 %v4024_v58, 6.0  ;;  %v533_v53 = vld [vmem:[%s5782_s27 + $0xa58] sm:$0xff] }
 0x354   : > { %v4137_v4 = vmin.f32 %v3689_v63, 6.0  ;;  %v4249_v5 = vmin.f32 %v3801_v0, 6.0  ;;  %v2355_v6 = vpop.f32.mrf.mxu2  ;;  %v2635_v8 = vpop.f32.mrf.mxu3  ;;  %v645_v57 = vld [vmem:[%s5782_s27 + $0xdd8] sm:$0xff]  ;;  %v703_v0 = vpack.c.bf16 %v309_v45, %v308_v44  ;;  %v422_v44 = vld [vmem:[%s5782_s27 + $0x6e0] sm:$0xff] }
 0x355   : > { %v4808_v10 = vpack.c.bf16 %v4360_v1, %v4360_v1  ;;  %v4920_v11 = vpack.c.bf16 %v4472_v2, %v4472_v2  ;;  %v3013_v17 = vmul.f32 %v7579_v51, %v2355_v6  ;;  %v3125_v12 = vmul.f32 %v7579_v51, %v2635_v8  ;;  %v1798_v13 = vpop.f32.mrf.mxu0  ;;  %v2078_v14 = vpop.f32.mrf.mxu1 }
 0x356   : > { %v4585_v15 = vpack.c.bf16 %v4137_v4, %v4137_v4  ;;  %v4697_v16 = vpack.c.bf16 %v4249_v5, %v4249_v5  ;;  %v2790_v19 = vmul.f32 %v7579_v51, %v1798_v13  ;;  %v2902_v20 = vmul.f32 %v7579_v51, %v2078_v14 }
 0x357   : > { %5257 = vst.msk [vmem:[%s5910_s9 + $0x4d8] sm:$0xf] %vm4946_vm3, %v4808_v10  ;;  %v3465_v18 = vadd.f32 %v7590_v60, %v3013_v17  ;;  %v3577_v21 = vadd.f32 %v7590_v60, %v3125_v12  ;;  %v759_v1 = vpack.c.bf16 %v421_v50, %v420_v46  ;;  %v871_v5 = vpack.c.bf16 %v645_v57, %v644_v56  ;;  %v535_v50 = vld [vmem:[%s5782_s27 + $0xa68] sm:$0xff] }
 0x358   : > { %5369 = vst.msk [vmem:[%s5910_s9 + $0x698] sm:$0xf] %vm4946_vm3, %v4920_v11  ;;  %v3242_v22 = vadd.f32 %v7590_v60, %v2790_v19  ;;  %v3354_v23 = vadd.f32 %v7590_v60, %v2902_v20  ;;  %5518 = vmatmul.msk.bf16.gmra.mxu0 %vm889_vm2, %v702_v59  ;;  %5574 = vmatmul.msk.bf16.gmra.mxu1 %vm889_vm2, %v758_v3 }
 0x359   : > { %5034 = vst.msk [vmem:[%s5910_s9 + $0x15c] sm:$0xf] %vm4946_vm3, %v4585_v15  ;;  %v3913_v24 = vmax.f32 %v3465_v18, 0.0  ;;  %v4025_v25 = vmax.f32 %v3577_v21, 0.0  ;;  %5630 = vmatmul.msk.bf16.gmra.mxu2 %vm889_vm2, %v814_v7  ;;  %5686 = vmatmul.msk.bf16.gmra.mxu3 %vm889_vm2, %v870_v9  ;;  %v7921_v7 = vld [vmem:[%s8339_s2] ss:$0 sm:$0xff] }
 0x35a   : > { %5146 = vst.msk [vmem:[%s5910_s9 + $0x31c] sm:$0xf] %vm4946_vm3, %v4697_v16  ;;  %v3690_v26 = vmax.f32 %v3242_v22, 0.0  ;;  %v3802_v28 = vmax.f32 %v3354_v23, 0.0  ;;  %v7932_v16 = vld [vmem:[%s8340_s3] ss:$0 sm:$0xff] }
 0x35b   : > { %v4361_v29 = vmin.f32 %v3913_v24, 6.0  ;;  %v4473_v30 = vmin.f32 %v4025_v25, 6.0 }
 0x35c   : > { %v4138_v31 = vmin.f32 %v3690_v26, 6.0  ;;  %v4250_v32 = vmin.f32 %v3802_v28, 6.0  ;;  %v2358_v33 = vpop.f32.mrf.mxu2  ;;  %v2638_v34 = vpop.f32.mrf.mxu3 }
 0x35d   : > { %v4809_v27 = vpack.c.bf16 %v4361_v29, %v4361_v29  ;;  %v4921_v35 = vpack.c.bf16 %v4473_v30, %v4473_v30  ;;  %v3014_v36 = vmul.f32 %v7579_v51, %v2358_v33  ;;  %v3126_v37 = vmul.f32 %v7579_v51, %v2638_v34  ;;  %v1800_v38 = vpop.f32.mrf.mxu0  ;;  %v2080_v39 = vpop.f32.mrf.mxu1 }
 0x35e   : > { %v4586_v40 = vpack.c.bf16 %v4138_v31, %v4138_v31  ;;  %v4698_v41 = vpack.c.bf16 %v4250_v32, %v4250_v32  ;;  %v2791_v42 = vmul.f32 %v7579_v51, %v1800_v38  ;;  %v2903_v43 = vmul.f32 %v7579_v51, %v2080_v39  ;;  %v532_v51 = vld [vmem:[%s5782_s27 + $0xa50] sm:$0xff] }
 0x35f   : > { %5258 = vst.msk [vmem:[%s5910_s9 + $0x4dc] sm:$0xf] %vm4946_vm3, %v4809_v27  ;;  %v3466_v48 = vadd.f32 %v7590_v60, %v3014_v36  ;;  %v3578_v49 = vadd.f32 %v7590_v60, %v3126_v37  ;;  %v815_v4 = vpack.c.bf16 %v533_v53, %v532_v51 }
 0x360   : > { %5370 = vst.msk [vmem:[%s5910_s9 + $0x69c] sm:$0xf] %vm4946_vm3, %v4921_v35  ;;  %v3243_v47 = vadd.f32 %v7590_v60, %v2791_v42  ;;  %v3355_v52 = vadd.f32 %v7590_v60, %v2903_v43 }
 0x361   : > { %5035 = vst.msk [vmem:[%s5910_s9 + $0x160] sm:$0xf] %vm4946_vm3, %v4586_v40  ;;  %v3914_v54 = vmax.f32 %v3466_v48, 0.0  ;;  %v4026_v55 = vmax.f32 %v3578_v49, 0.0  ;;  %v310_v48 = vld [vmem:[%s5782_s27 + $0x360] sm:$0xff]  ;;  %v311_v49 = vld [vmem:[%s5782_s27 + $0x368] sm:$0xff] }
 0x362   : > { %5147 = vst.msk [vmem:[%s5910_s9 + $0x320] sm:$0xf] %vm4946_vm3, %v4698_v41  ;;  %v3691_v58 = vmax.f32 %v3243_v47, 0.0  ;;  %v3803_v61 = vmax.f32 %v3355_v52, 0.0  ;;  %v423_v47 = vld [vmem:[%s5782_s27 + $0x6e8] sm:$0xff]  ;;  %v534_v52 = vld [vmem:[%s5782_s27 + $0xa60] sm:$0xff] }
 0x363   : > { %v4362_v62 = vmin.f32 %v3914_v54, 6.0  ;;  %v4474_v63 = vmin.f32 %v4026_v55, 6.0  ;;  %v646_v54 = vld [vmem:[%s5782_s27 + $0xde0] sm:$0xff]  ;;  %v647_v55 = vld [vmem:[%s5782_s27 + $0xde8] sm:$0xff] }
 0x364   : > { %v4139_v2 = vmin.f32 %v3691_v58, 6.0  ;;  %v4251_v59 = vmin.f32 %v3803_v61, 6.0  ;;  %v2360_v60 = vpop.f32.mrf.mxu2  ;;  %v2640_v3 = vpop.f32.mrf.mxu3 }
 0x365   : > { %v4810_v6 = vpack.c.bf16 %v4362_v62, %v4362_v62  ;;  %v4922_v8 = vpack.c.bf16 %v4474_v63, %v4474_v63  ;;  %v3015_v9 = vmul.f32 %v7921_v7, %v2360_v60  ;;  %v3127_v10 = vmul.f32 %v7921_v7, %v2640_v3  ;;  %v1803_v11 = vpop.f32.mrf.mxu0  ;;  %v2083_v17 = vpop.f32.mrf.mxu1 }
 0x366   : > { %v4587_v12 = vpack.c.bf16 %v4139_v2, %v4139_v2  ;;  %v4699_v13 = vpack.c.bf16 %v4251_v59, %v4251_v59  ;;  %v2792_v14 = vmul.f32 %v7921_v7, %v1803_v11  ;;  %v2904_v15 = vmul.f32 %v7921_v7, %v2083_v17 }
 0x367   : > { %5259 = vst.msk [vmem:[%s5910_s9 + $0x4e0] sm:$0xf] %vm4946_vm3, %v4810_v6  ;;  %v3467_v19 = vadd.f32 %v7932_v16, %v3015_v9  ;;  %v3579_v20 = vadd.f32 %v7932_v16, %v3127_v10  ;;  %v704_v62 = vpack.c.bf16 %v311_v49, %v310_v48  ;;  %v760_v63 = vpack.c.bf16 %v423_v47, %v422_v44  ;;  %v424_v48 = vld [vmem:[%s5782_s27 + $0x6f0] sm:$0xff]  ;;  %v537_v47 = vld [vmem:[%s5782_s27 + $0xa78] sm:$0xff] }
 0x368   : > { %5371 = vst.msk [vmem:[%s5910_s9 + $0x6a0] sm:$0xf] %vm4946_vm3, %v4922_v8  ;;  %v3244_v18 = vadd.f32 %v7932_v16, %v2792_v14  ;;  %v3356_v21 = vadd.f32 %v7932_v16, %v2904_v15  ;;  %5519 = vmatmul.msk.bf16.gmra.mxu0 %vm889_vm2, %v703_v0  ;;  %5575 = vmatmul.msk.bf16.gmra.mxu1 %vm889_vm2, %v759_v1 }
 0x369   : > { %5036 = vst.msk [vmem:[%s5910_s9 + $0x164] sm:$0xf] %vm4946_vm3, %v4587_v12  ;;  %v3915_v22 = vmax.f32 %v3467_v19, 0.0  ;;  %v4027_v23 = vmax.f32 %v3579_v20, 0.0  ;;  %5631 = vmatmul.msk.bf16.gmra.mxu2 %vm889_vm2, %v815_v4  ;;  %5687 = vmatmul.msk.bf16.gmra.mxu3 %vm889_vm2, %v871_v5  ;;  %v816_v60 = vpack.c.bf16 %v535_v50, %v534_v52  ;;  %v872_v3 = vpack.c.bf16 %v647_v55, %v646_v54 }
 0x36a   : > { %5148 = vst.msk [vmem:[%s5910_s9 + $0x324] sm:$0xf] %vm4946_vm3, %v4699_v13  ;;  %v3692_v24 = vmax.f32 %v3244_v18, 0.0  ;;  %v3804_v25 = vmax.f32 %v3356_v21, 0.0 }
 0x36b   : > { %v4363_v26 = vmin.f32 %v3915_v22, 6.0  ;;  %v4475_v28 = vmin.f32 %v4027_v23, 6.0 }
 0x36c   : > { %v4140_v29 = vmin.f32 %v3692_v24, 6.0  ;;  %v4252_v30 = vmin.f32 %v3804_v25, 6.0  ;;  %v2363_v31 = vpop.f32.mrf.mxu2  ;;  %v2643_v32 = vpop.f32.mrf.mxu3 }
 0x36d   : > { %v4811_v33 = vpack.c.bf16 %v4363_v26, %v4363_v26  ;;  %v4923_v34 = vpack.c.bf16 %v4475_v28, %v4475_v28  ;;  %v3016_v27 = vmul.f32 %v7921_v7, %v2363_v31  ;;  %v3128_v35 = vmul.f32 %v7921_v7, %v2643_v32  ;;  %v1805_v36 = vpop.f32.mrf.mxu0  ;;  %v2085_v37 = vpop.f32.mrf.mxu1 }
 0x36e   : > { %v4588_v38 = vpack.c.bf16 %v4140_v29, %v4140_v29  ;;  %v4700_v39 = vpack.c.bf16 %v4252_v30, %v4252_v30  ;;  %v2793_v40 = vmul.f32 %v7921_v7, %v1805_v36  ;;  %v2905_v41 = vmul.f32 %v7921_v7, %v2085_v37 }
 0x36f   : > { %5260 = vst.msk [vmem:[%s5910_s9 + $0x4e4] sm:$0xf] %vm4946_vm3, %v4811_v33  ;;  %v3468_v42 = vadd.f32 %v7932_v16, %v3016_v27  ;;  %v3580_v43 = vadd.f32 %v7932_v16, %v3128_v35 }
 0x370   : > { %5372 = vst.msk [vmem:[%s5910_s9 + $0x6a4] sm:$0xf] %vm4946_vm3, %v4923_v34  ;;  %v3245_v45 = vadd.f32 %v7932_v16, %v2793_v40  ;;  %v3357_v46 = vadd.f32 %v7932_v16, %v2905_v41 }
 0x371   : > { %5037 = vst.msk [vmem:[%s5910_s9 + $0x168] sm:$0xf] %vm4946_vm3, %v4588_v38  ;;  %v3916_v51 = vmax.f32 %v3468_v42, 0.0  ;;  %v4028_v53 = vmax.f32 %v3580_v43, 0.0  ;;  %v312_v42 = vld [vmem:[%s5782_s27 + $0x370] sm:$0xff]  ;;  %v313_v43 = vld [vmem:[%s5782_s27 + $0x378] sm:$0xff] }
 0x372   : > { %5149 = vst.msk [vmem:[%s5910_s9 + $0x328] sm:$0xf] %vm4946_vm3, %v4700_v39  ;;  %v3693_v56 = vmax.f32 %v3245_v45, 0.0  ;;  %v3805_v57 = vmax.f32 %v3357_v46, 0.0  ;;  %v425_v45 = vld [vmem:[%s5782_s27 + $0x6f8] sm:$0xff]  ;;  %v536_v46 = vld [vmem:[%s5782_s27 + $0xa70] sm:$0xff] }
 0x373   : > { %v4364_v58 = vmin.f32 %v3916_v51, 6.0  ;;  %v4476_v61 = vmin.f32 %v4028_v53, 6.0  ;;  %v648_v51 = vld [vmem:[%s5782_s27 + $0xdf0] sm:$0xff]  ;;  %v649_v53 = vld [vmem:[%s5782_s27 + $0xdf8] sm:$0xff] }
 0x374   : > { %v4141_v0 = vmin.f32 %v3693_v56, 6.0  ;;  %v4253_v1 = vmin.f32 %v3805_v57, 6.0  ;;  %v2365_v2 = vpop.f32.mrf.mxu2  ;;  %v2645_v59 = vpop.f32.mrf.mxu3 }
 0x375   : > { %v4812_v4 = vpack.c.bf16 %v4364_v58, %v4364_v58  ;;  %v4924_v5 = vpack.c.bf16 %v4476_v61, %v4476_v61  ;;  %v3017_v6 = vmul.f32 %v7921_v7, %v2365_v2  ;;  %v3129_v8 = vmul.f32 %v7921_v7, %v2645_v59  ;;  %v1808_v9 = vpop.f32.mrf.mxu0  ;;  %v2088_v10 = vpop.f32.mrf.mxu1 }
 0x376   : > { %v4589_v11 = vpack.c.bf16 %v4141_v0, %v4141_v0  ;;  %v4701_v17 = vpack.c.bf16 %v4253_v1, %v4253_v1  ;;  %v2794_v12 = vmul.f32 %v7921_v7, %v1808_v9  ;;  %v2906_v13 = vmul.f32 %v7921_v7, %v2088_v10 }
 0x377   : > { %5261 = vst.msk [vmem:[%s5910_s9 + $0x4e8] sm:$0xf] %vm4946_vm3, %v4812_v4  ;;  %v3469_v14 = vadd.f32 %v7932_v16, %v3017_v6  ;;  %v3581_v15 = vadd.f32 %v7932_v16, %v3129_v8  ;;  %v705_v58 = vpack.c.bf16 %v313_v43, %v312_v42  ;;  %v761_v61 = vpack.c.bf16 %v425_v45, %v424_v48 }
 0x378   : > { %5373 = vst.msk [vmem:[%s5910_s9 + $0x6a8] sm:$0xf] %vm4946_vm3, %v4924_v5  ;;  %v3246_v19 = vadd.f32 %v7932_v16, %v2794_v12  ;;  %v3358_v20 = vadd.f32 %v7932_v16, %v2906_v13  ;;  %5520 = vmatmul.msk.bf16.gmra.mxu0 %vm889_vm2, %v704_v62  ;;  %5576 = vmatmul.msk.bf16.gmra.mxu1 %vm889_vm2, %v760_v63 }
 0x379   : > { %5038 = vst.msk [vmem:[%s5910_s9 + $0x16c] sm:$0xf] %vm4946_vm3, %v4589_v11  ;;  %v3917_v18 = vmax.f32 %v3469_v14, 0.0  ;;  %v4029_v21 = vmax.f32 %v3581_v15, 0.0  ;;  %5632 = vmatmul.msk.bf16.gmra.mxu2 %vm889_vm2, %v816_v60  ;;  %5688 = vmatmul.msk.bf16.gmra.mxu3 %vm889_vm2, %v872_v3  ;;  %v817_v2 = vpack.c.bf16 %v537_v47, %v536_v46  ;;  %v873_v59 = vpack.c.bf16 %v649_v53, %v648_v51 }
 0x37a   : > { %5150 = vst.msk [vmem:[%s5910_s9 + $0x32c] sm:$0xf] %vm4946_vm3, %v4701_v17  ;;  %v3694_v22 = vmax.f32 %v3246_v19, 0.0  ;;  %v3806_v23 = vmax.f32 %v3358_v20, 0.0 }
 0x37b   : > { %v4365_v24 = vmin.f32 %v3917_v18, 6.0  ;;  %v4477_v25 = vmin.f32 %v4029_v21, 6.0 }
 0x37c   : > { %v4142_v26 = vmin.f32 %v3694_v22, 6.0  ;;  %v4254_v28 = vmin.f32 %v3806_v23, 6.0  ;;  %v2368_v29 = vpop.f32.mrf.mxu2  ;;  %v2648_v30 = vpop.f32.mrf.mxu3 }
 0x37d   : > { %v4813_v31 = vpack.c.bf16 %v4365_v24, %v4365_v24  ;;  %v4925_v32 = vpack.c.bf16 %v4477_v25, %v4477_v25  ;;  %v3018_v33 = vmul.f32 %v7921_v7, %v2368_v29  ;;  %v3130_v34 = vmul.f32 %v7921_v7, %v2648_v30  ;;  %v1810_v27 = vpop.f32.mrf.mxu0  ;;  %v2090_v35 = vpop.f32.mrf.mxu1 }
 0x37e   : > { %v4590_v36 = vpack.c.bf16 %v4142_v26, %v4142_v26  ;;  %v4702_v37 = vpack.c.bf16 %v4254_v28, %v4254_v28  ;;  %v2795_v38 = vmul.f32 %v7921_v7, %v1810_v27  ;;  %v2907_v39 = vmul.f32 %v7921_v7, %v2090_v35 }
 0x37f   : > { %5262 = vst.msk [vmem:[%s5910_s9 + $0x4ec] sm:$0xf] %vm4946_vm3, %v4813_v31  ;;  %v3470_v40 = vadd.f32 %v7932_v16, %v3018_v33  ;;  %v3582_v41 = vadd.f32 %v7932_v16, %v3130_v34 }
 0x380   : > { %5374 = vst.msk [vmem:[%s5910_s9 + $0x6ac] sm:$0xf] %vm4946_vm3, %v4925_v32  ;;  %v3247_v49 = vadd.f32 %v7932_v16, %v2795_v38  ;;  %v3359_v44 = vadd.f32 %v7932_v16, %v2907_v39 }
 0x381   : > { %5039 = vst.msk [vmem:[%s5910_s9 + $0x170] sm:$0xf] %vm4946_vm3, %v4590_v36  ;;  %v3918_v52 = vmax.f32 %v3470_v40, 0.0  ;;  %v4030_v50 = vmax.f32 %v3582_v41, 0.0 }
 0x382   : > { %5151 = vst.msk [vmem:[%s5910_s9 + $0x330] sm:$0xf] %vm4946_vm3, %v4702_v37  ;;  %v3695_v54 = vmax.f32 %v3247_v49, 0.0  ;;  %v3807_v55 = vmax.f32 %v3359_v44, 0.0 }
 0x383   : > { %v4366_v56 = vmin.f32 %v3918_v52, 6.0  ;;  %v4478_v57 = vmin.f32 %v4030_v50, 6.0 }
 0x384   : > { %v4143_v62 = vmin.f32 %v3695_v54, 6.0  ;;  %v4255_v63 = vmin.f32 %v3807_v55, 6.0  ;;  %v2370_v0 = vpop.f32.mrf.mxu2  ;;  %v2650_v1 = vpop.f32.mrf.mxu3 }
 0x385   : > { %v4814_v60 = vpack.c.bf16 %v4366_v56, %v4366_v56  ;;  %v4926_v3 = vpack.c.bf16 %v4478_v57, %v4478_v57  ;;  %v3019_v4 = vmul.f32 %v7921_v7, %v2370_v0  ;;  %v3131_v5 = vmul.f32 %v7921_v7, %v2650_v1  ;;  %v1813_v6 = vpop.f32.mrf.mxu0  ;;  %v2093_v8 = vpop.f32.mrf.mxu1 }
 0x386   : > { %v4591_v9 = vpack.c.bf16 %v4143_v62, %v4143_v62  ;;  %v4703_v10 = vpack.c.bf16 %v4255_v63, %v4255_v63  ;;  %v2796_v11 = vmul.f32 %v7921_v7, %v1813_v6  ;;  %v2908_v17 = vmul.f32 %v7921_v7, %v2093_v8 }
 0x387   : > { %5263 = vst.msk [vmem:[%s5910_s9 + $0x4f0] sm:$0xf] %vm4946_vm3, %v4814_v60  ;;  %v3471_v12 = vadd.f32 %v7932_v16, %v3019_v4  ;;  %v3583_v13 = vadd.f32 %v7932_v16, %v3131_v5 }
 0x388   : > { %5375 = vst.msk [vmem:[%s5910_s9 + $0x6b0] sm:$0xf] %vm4946_vm3, %v4926_v3  ;;  %v3248_v14 = vadd.f32 %v7932_v16, %v2796_v11  ;;  %v3360_v15 = vadd.f32 %v7932_v16, %v2908_v17  ;;  %5521 = vmatmul.msk.bf16.gmra.mxu0 %vm889_vm2, %v705_v58  ;;  %5577 = vmatmul.msk.bf16.gmra.mxu1 %vm889_vm2, %v761_v61 }
 0x389   : > { %5040 = vst.msk [vmem:[%s5910_s9 + $0x174] sm:$0xf] %vm4946_vm3, %v4591_v9  ;;  %v3919_v19 = vmax.f32 %v3471_v12, 0.0  ;;  %v4031_v20 = vmax.f32 %v3583_v13, 0.0  ;;  %5633 = vmatmul.msk.bf16.gmra.mxu2 %vm889_vm2, %v817_v2  ;;  %5689 = vmatmul.msk.bf16.gmra.mxu3 %vm889_vm2, %v873_v59 }
 0x38a   : > { %5152 = vst.msk [vmem:[%s5910_s9 + $0x334] sm:$0xf] %vm4946_vm3, %v4703_v10  ;;  %v3696_v18 = vmax.f32 %v3248_v14, 0.0  ;;  %v3808_v21 = vmax.f32 %v3360_v15, 0.0 }
 0x38b   : > { %v4367_v22 = vmin.f32 %v3919_v19, 6.0  ;;  %v4479_v23 = vmin.f32 %v4031_v20, 6.0 }
 0x38c   : > { %v4144_v24 = vmin.f32 %v3696_v18, 6.0  ;;  %v4256_v25 = vmin.f32 %v3808_v21, 6.0  ;;  %v2373_v26 = vpop.f32.mrf.mxu2  ;;  %v2653_v28 = vpop.f32.mrf.mxu3 }
 0x38d   : > { %v4815_v29 = vpack.c.bf16 %v4367_v22, %v4367_v22  ;;  %v4927_v30 = vpack.c.bf16 %v4479_v23, %v4479_v23  ;;  %v3020_v31 = vmul.f32 %v7921_v7, %v2373_v26  ;;  %v3132_v32 = vmul.f32 %v7921_v7, %v2653_v28  ;;  %v1815_v33 = vpop.f32.mrf.mxu0  ;;  %v2095_v34 = vpop.f32.mrf.mxu1 }
 0x38e   : > { %v4592_v27 = vpack.c.bf16 %v4144_v24, %v4144_v24  ;;  %v4704_v35 = vpack.c.bf16 %v4256_v25, %v4256_v25  ;;  %v2797_v36 = vmul.f32 %v7921_v7, %v1815_v33  ;;  %v2909_v37 = vmul.f32 %v7921_v7, %v2095_v34 }
 0x38f   : > { %5264 = vst.msk [vmem:[%s5910_s9 + $0x4f4] sm:$0xf] %vm4946_vm3, %v4815_v29  ;;  %v3472_v38 = vadd.f32 %v7932_v16, %v3020_v31  ;;  %v3584_v39 = vadd.f32 %v7932_v16, %v3132_v32 }
 0x390   : > { %5376 = vst.msk [vmem:[%s5910_s9 + $0x6b4] sm:$0xf] %vm4946_vm3, %v4927_v30  ;;  %v3249_v40 = vadd.f32 %v7932_v16, %v2797_v36  ;;  %v3361_v41 = vadd.f32 %v7932_v16, %v2909_v37 }
 0x391   : > { %5041 = vst.msk [vmem:[%s5910_s9 + $0x178] sm:$0xf] %vm4946_vm3, %v4592_v27  ;;  %v3920_v42 = vmax.f32 %v3472_v38, 0.0  ;;  %v4032_v43 = vmax.f32 %v3584_v39, 0.0 }
 0x392   : > { %5153 = vst.msk [vmem:[%s5910_s9 + $0x338] sm:$0xf] %vm4946_vm3, %v4704_v35  ;;  %v3697_v48 = vmax.f32 %v3249_v40, 0.0  ;;  %v3809_v49 = vmax.f32 %v3361_v41, 0.0 }
 0x393   : > { %v4368_v44 = vmin.f32 %v3920_v42, 6.0  ;;  %v4480_v45 = vmin.f32 %v4032_v43, 6.0 }
 0x394   : > { %v4145_v46 = vmin.f32 %v3697_v48, 6.0  ;;  %v4257_v47 = vmin.f32 %v3809_v49, 6.0  ;;  %v2375_v52 = vpop.f32.mrf.mxu2  ;;  %v2655_v50 = vpop.f32.mrf.mxu3 }
 0x395   : > { %v4816_v51 = vpack.c.bf16 %v4368_v44, %v4368_v44  ;;  %v4928_v53 = vpack.c.bf16 %v4480_v45, %v4480_v45  ;;  %v3021_v54 = vmul.f32 %v7921_v7, %v2375_v52  ;;  %v3133_v55 = vmul.f32 %v7921_v7, %v2655_v50  ;;  %v1818_v56 = vpop.f32.mrf.mxu0  ;;  %v2098_v57 = vpop.f32.mrf.mxu1 }
 0x396   : > { %v4593_v58 = vpack.c.bf16 %v4145_v46, %v4145_v46  ;;  %v4705_v61 = vpack.c.bf16 %v4257_v47, %v4257_v47  ;;  %v2798_v62 = vmul.f32 %v7921_v7, %v1818_v56  ;;  %v2910_v63 = vmul.f32 %v7921_v7, %v2098_v57 }
 0x397   : > { %5265 = vst.msk [vmem:[%s5910_s9 + $0x4f8] sm:$0xf] %vm4946_vm3, %v4816_v51  ;;  %v3473_v0 = vadd.f32 %v7932_v16, %v3021_v54  ;;  %v3585_v1 = vadd.f32 %v7932_v16, %v3133_v55 }
 0x398   : > { %5377 = vst.msk [vmem:[%s5910_s9 + $0x6b8] sm:$0xf] %vm4946_vm3, %v4928_v53  ;;  %v3250_v2 = vadd.f32 %v7932_v16, %v2798_v62  ;;  %v3362_v59 = vadd.f32 %v7932_v16, %v2910_v63 }
 0x399   : > { %5042 = vst.msk [vmem:[%s5910_s9 + $0x17c] sm:$0xf] %vm4946_vm3, %v4593_v58  ;;  %v3921_v60 = vmax.f32 %v3473_v0, 0.0  ;;  %v4033_v3 = vmax.f32 %v3585_v1, 0.0 }
 0x39a   : > { %5154 = vst.msk [vmem:[%s5910_s9 + $0x33c] sm:$0xf] %vm4946_vm3, %v4705_v61  ;;  %v3698_v4 = vmax.f32 %v3250_v2, 0.0  ;;  %v3810_v5 = vmax.f32 %v3362_v59, 0.0 }
 0x39b   : > { %v4369_v6 = vmin.f32 %v3921_v60, 6.0  ;;  %v4481_v8 = vmin.f32 %v4033_v3, 6.0 }
 0x39c   : > { %v4146_v9 = vmin.f32 %v3698_v4, 6.0  ;;  %v4258_v10 = vmin.f32 %v3810_v5, 6.0  ;;  %v2378_v11 = vpop.f32.mrf.mxu2  ;;  %v2658_v17 = vpop.f32.mrf.mxu3 }
 0x39d   : > { %v4817_v12 = vpack.c.bf16 %v4369_v6, %v4369_v6  ;;  %v4929_v13 = vpack.c.bf16 %v4481_v8, %v4481_v8  ;;  %v3022_v14 = vmul.f32 %v7921_v7, %v2378_v11  ;;  %v3134_v15 = vmul.f32 %v7921_v7, %v2658_v17  ;;  %v1820_v19 = vpop.f32.mrf.mxu0  ;;  %v2100_v20 = vpop.f32.mrf.mxu1 }
 0x39e   : > { %v4594_v18 = vpack.c.bf16 %v4146_v9, %v4146_v9  ;;  %v4706_v21 = vpack.c.bf16 %v4258_v10, %v4258_v10  ;;  %v2799_v22 = vmul.f32 %v7921_v7, %v1820_v19  ;;  %v2911_v23 = vmul.f32 %v7921_v7, %v2100_v20 }
 0x39f   : > { %5266 = vst.msk [vmem:[%s5910_s9 + $0x4fc] sm:$0xf] %vm4946_vm3, %v4817_v12  ;;  %v3474_v24 = vadd.f32 %v7932_v16, %v3022_v14  ;;  %v3586_v25 = vadd.f32 %v7932_v16, %v3134_v15 }
 0x3a0   : > { %5378 = vst.msk [vmem:[%s5910_s9 + $0x6bc] sm:$0xf] %vm4946_vm3, %v4929_v13  ;;  %v3251_v26 = vadd.f32 %v7932_v16, %v2799_v22  ;;  %v3363_v28 = vadd.f32 %v7932_v16, %v2911_v23 }
 0x3a1   : > { %5043 = vst.msk [vmem:[%s5910_s9 + $0x180] sm:$0xf] %vm4946_vm3, %v4594_v18  ;;  %v3922_v29 = vmax.f32 %v3474_v24, 0.0  ;;  %v4034_v30 = vmax.f32 %v3586_v25, 0.0 }
 0x3a2   : > { %5155 = vst.msk [vmem:[%s5910_s9 + $0x340] sm:$0xf] %vm4946_vm3, %v4706_v21  ;;  %v3699_v31 = vmax.f32 %v3251_v26, 0.0  ;;  %v3811_v32 = vmax.f32 %v3363_v28, 0.0 }
 0x3a3   : > { %v4370_v33 = vmin.f32 %v3922_v29, 6.0  ;;  %v4482_v34 = vmin.f32 %v4034_v30, 6.0 }
 0x3a4   : > { %v4147_v27 = vmin.f32 %v3699_v31, 6.0  ;;  %v4259_v35 = vmin.f32 %v3811_v32, 6.0  ;;  %v2380_v36 = vpop.f32.mrf.mxu2  ;;  %v2660_v37 = vpop.f32.mrf.mxu3 }
 0x3a5   : > { %v4818_v38 = vpack.c.bf16 %v4370_v33, %v4370_v33  ;;  %v4930_v39 = vpack.c.bf16 %v4482_v34, %v4482_v34  ;;  %v3023_v40 = vmul.f32 %v7921_v7, %v2380_v36  ;;  %v3135_v41 = vmul.f32 %v7921_v7, %v2660_v37  ;;  %v1823_v42 = vpop.f32.mrf.mxu0  ;;  %v2103_v43 = vpop.f32.mrf.mxu1 }
 0x3a6   : > { %v4595_v48 = vpack.c.bf16 %v4147_v27, %v4147_v27  ;;  %v4707_v49 = vpack.c.bf16 %v4259_v35, %v4259_v35  ;;  %v2800_v44 = vmul.f32 %v7921_v7, %v1823_v42  ;;  %v2912_v45 = vmul.f32 %v7921_v7, %v2103_v43 }
 0x3a7   : > { %5267 = vst.msk [vmem:[%s5910_s9 + $0x500] sm:$0xf] %vm4946_vm3, %v4818_v38  ;;  %v3475_v46 = vadd.f32 %v7932_v16, %v3023_v40  ;;  %v3587_v47 = vadd.f32 %v7932_v16, %v3135_v41 }
 0x3a8   : > { %5379 = vst.msk [vmem:[%s5910_s9 + $0x6c0] sm:$0xf] %vm4946_vm3, %v4930_v39  ;;  %v3252_v52 = vadd.f32 %v7932_v16, %v2800_v44  ;;  %v3364_v50 = vadd.f32 %v7932_v16, %v2912_v45 }
 0x3a9   : > { %5044 = vst.msk [vmem:[%s5910_s9 + $0x184] sm:$0xf] %vm4946_vm3, %v4595_v48  ;;  %v3923_v51 = vmax.f32 %v3475_v46, 0.0  ;;  %v4035_v53 = vmax.f32 %v3587_v47, 0.0 }
 0x3aa   : > { %5156 = vst.msk [vmem:[%s5910_s9 + $0x344] sm:$0xf] %vm4946_vm3, %v4707_v49  ;;  %v3700_v54 = vmax.f32 %v3252_v52, 0.0  ;;  %v3812_v55 = vmax.f32 %v3364_v50, 0.0 }
 0x3ab   : > { %v4371_v56 = vmin.f32 %v3923_v51, 6.0  ;;  %v4483_v57 = vmin.f32 %v4035_v53, 6.0 }
 0x3ac   : > { %v4148_v58 = vmin.f32 %v3700_v54, 6.0  ;;  %v4260_v61 = vmin.f32 %v3812_v55, 6.0  ;;  %v2383_v62 = vpop.f32.mrf.mxu2  ;;  %v2663_v63 = vpop.f32.mrf.mxu3 }
 0x3ad   : > { %v4819_v0 = vpack.c.bf16 %v4371_v56, %v4371_v56  ;;  %v4931_v1 = vpack.c.bf16 %v4483_v57, %v4483_v57  ;;  %v3024_v2 = vmul.f32 %v7921_v7, %v2383_v62  ;;  %v3136_v59 = vmul.f32 %v7921_v7, %v2663_v63  ;;  %v1825_v60 = vpop.f32.mrf.mxu0  ;;  %v2105_v3 = vpop.f32.mrf.mxu1 }
 0x3ae   : > { %v4596_v4 = vpack.c.bf16 %v4148_v58, %v4148_v58  ;;  %v4708_v5 = vpack.c.bf16 %v4260_v61, %v4260_v61  ;;  %v2801_v6 = vmul.f32 %v7921_v7, %v1825_v60  ;;  %v2913_v8 = vmul.f32 %v7921_v7, %v2105_v3 }
 0x3af   : > { %5268 = vst.msk [vmem:[%s5910_s9 + $0x504] sm:$0xf] %vm4946_vm3, %v4819_v0  ;;  %v3476_v9 = vadd.f32 %v7932_v16, %v3024_v2  ;;  %v3588_v10 = vadd.f32 %v7932_v16, %v3136_v59 }
 0x3b0   : > { %5380 = vst.msk [vmem:[%s5910_s9 + $0x6c4] sm:$0xf] %vm4946_vm3, %v4931_v1  ;;  %v3253_v11 = vadd.f32 %v7932_v16, %v2801_v6  ;;  %v3365_v17 = vadd.f32 %v7932_v16, %v2913_v8 }
 0x3b1   : > { %5045 = vst.msk [vmem:[%s5910_s9 + $0x188] sm:$0xf] %vm4946_vm3, %v4596_v4  ;;  %v3924_v12 = vmax.f32 %v3476_v9, 0.0  ;;  %v4036_v13 = vmax.f32 %v3588_v10, 0.0 }
 0x3b2   : > { %5157 = vst.msk [vmem:[%s5910_s9 + $0x348] sm:$0xf] %vm4946_vm3, %v4708_v5  ;;  %v3701_v14 = vmax.f32 %v3253_v11, 0.0  ;;  %v3813_v15 = vmax.f32 %v3365_v17, 0.0 }
 0x3b3   : > { %v4372_v19 = vmin.f32 %v3924_v12, 6.0  ;;  %v4484_v20 = vmin.f32 %v4036_v13, 6.0 }
 0x3b4   : > { %v4149_v18 = vmin.f32 %v3701_v14, 6.0  ;;  %v4261_v21 = vmin.f32 %v3813_v15, 6.0  ;;  %v2385_v22 = vpop.f32.mrf.mxu2  ;;  %v2665_v23 = vpop.f32.mrf.mxu3 }
 0x3b5   : > { %v4820_v24 = vpack.c.bf16 %v4372_v19, %v4372_v19  ;;  %v4932_v25 = vpack.c.bf16 %v4484_v20, %v4484_v20  ;;  %v3025_v26 = vmul.f32 %v7921_v7, %v2385_v22  ;;  %v3137_v28 = vmul.f32 %v7921_v7, %v2665_v23  ;;  %v1828_v29 = vpop.f32.mrf.mxu0  ;;  %v2108_v30 = vpop.f32.mrf.mxu1 }
 0x3b6   : > { %v4597_v31 = vpack.c.bf16 %v4149_v18, %v4149_v18  ;;  %v4709_v32 = vpack.c.bf16 %v4261_v21, %v4261_v21  ;;  %v2802_v33 = vmul.f32 %v7921_v7, %v1828_v29  ;;  %v2914_v34 = vmul.f32 %v7921_v7, %v2108_v30 }
 0x3b7   : > { %5269 = vst.msk [vmem:[%s5910_s9 + $0x508] sm:$0xf] %vm4946_vm3, %v4820_v24  ;;  %v3477_v27 = vadd.f32 %v7932_v16, %v3025_v26  ;;  %v3589_v35 = vadd.f32 %v7932_v16, %v3137_v28 }
 0x3b8   : > { %5381 = vst.msk [vmem:[%s5910_s9 + $0x6c8] sm:$0xf] %vm4946_vm3, %v4932_v25  ;;  %v3254_v36 = vadd.f32 %v7932_v16, %v2802_v33  ;;  %v3366_v37 = vadd.f32 %v7932_v16, %v2914_v34 }
 0x3b9   : > { %5046 = vst.msk [vmem:[%s5910_s9 + $0x18c] sm:$0xf] %vm4946_vm3, %v4597_v31  ;;  %v3925_v38 = vmax.f32 %v3477_v27, 0.0  ;;  %v4037_v39 = vmax.f32 %v3589_v35, 0.0 }
 0x3ba   : > { %5158 = vst.msk [vmem:[%s5910_s9 + $0x34c] sm:$0xf] %vm4946_vm3, %v4709_v32  ;;  %v3702_v40 = vmax.f32 %v3254_v36, 0.0  ;;  %v3814_v41 = vmax.f32 %v3366_v37, 0.0 }
 0x3bb   : > { %v4373_v42 = vmin.f32 %v3925_v38, 6.0  ;;  %v4485_v43 = vmin.f32 %v4037_v39, 6.0 }
 0x3bc   : > { %v4150_v48 = vmin.f32 %v3702_v40, 6.0  ;;  %v4262_v49 = vmin.f32 %v3814_v41, 6.0  ;;  %v2388_v44 = vpop.f32.mrf.mxu2  ;;  %v2668_v45 = vpop.f32.mrf.mxu3 }
 0x3bd   : > { %v4821_v46 = vpack.c.bf16 %v4373_v42, %v4373_v42  ;;  %v4933_v47 = vpack.c.bf16 %v4485_v43, %v4485_v43  ;;  %v3026_v52 = vmul.f32 %v7921_v7, %v2388_v44  ;;  %v3138_v50 = vmul.f32 %v7921_v7, %v2668_v45  ;;  %v1830_v51 = vpop.f32.mrf.mxu0  ;;  %v2110_v53 = vpop.f32.mrf.mxu1 }
 0x3be   : > { %v4598_v54 = vpack.c.bf16 %v4150_v48, %v4150_v48  ;;  %v4710_v55 = vpack.c.bf16 %v4262_v49, %v4262_v49  ;;  %v2803_v56 = vmul.f32 %v7921_v7, %v1830_v51  ;;  %v2915_v57 = vmul.f32 %v7921_v7, %v2110_v53 }
 0x3bf   : > { %5270 = vst.msk [vmem:[%s5910_s9 + $0x50c] sm:$0xf] %vm4946_vm3, %v4821_v46  ;;  %v3478_v58 = vadd.f32 %v7932_v16, %v3026_v52  ;;  %v3590_v61 = vadd.f32 %v7932_v16, %v3138_v50 }
 0x3c0   : > { %5382 = vst.msk [vmem:[%s5910_s9 + $0x6cc] sm:$0xf] %vm4946_vm3, %v4933_v47  ;;  %v3255_v62 = vadd.f32 %v7932_v16, %v2803_v56  ;;  %v3367_v63 = vadd.f32 %v7932_v16, %v2915_v57 }
 0x3c1   : > { %5047 = vst.msk [vmem:[%s5910_s9 + $0x190] sm:$0xf] %vm4946_vm3, %v4598_v54  ;;  %v3926_v0 = vmax.f32 %v3478_v58, 0.0  ;;  %v4038_v1 = vmax.f32 %v3590_v61, 0.0 }
 0x3c2   : > { %5159 = vst.msk [vmem:[%s5910_s9 + $0x350] sm:$0xf] %vm4946_vm3, %v4710_v55  ;;  %v3703_v2 = vmax.f32 %v3255_v62, 0.0  ;;  %v3815_v59 = vmax.f32 %v3367_v63, 0.0 }
 0x3c3   : > { %v4374_v60 = vmin.f32 %v3926_v0, 6.0  ;;  %v4486_v3 = vmin.f32 %v4038_v1, 6.0 }
 0x3c4   : > { %v4151_v4 = vmin.f32 %v3703_v2, 6.0  ;;  %v4263_v5 = vmin.f32 %v3815_v59, 6.0  ;;  %v2390_v6 = vpop.f32.mrf.mxu2  ;;  %v2670_v8 = vpop.f32.mrf.mxu3 }
 0x3c5   : > { %v4822_v9 = vpack.c.bf16 %v4374_v60, %v4374_v60  ;;  %v4934_v10 = vpack.c.bf16 %v4486_v3, %v4486_v3  ;;  %v3027_v11 = vmul.f32 %v7921_v7, %v2390_v6  ;;  %v3139_v17 = vmul.f32 %v7921_v7, %v2670_v8  ;;  %v1833_v12 = vpop.f32.mrf.mxu0  ;;  %v2113_v13 = vpop.f32.mrf.mxu1 }
 0x3c6   : > { %v4599_v14 = vpack.c.bf16 %v4151_v4, %v4151_v4  ;;  %v4711_v15 = vpack.c.bf16 %v4263_v5, %v4263_v5  ;;  %v2804_v19 = vmul.f32 %v7921_v7, %v1833_v12  ;;  %v2916_v20 = vmul.f32 %v7921_v7, %v2113_v13 }
 0x3c7   : > { %5271 = vst.msk [vmem:[%s5910_s9 + $0x510] sm:$0xf] %vm4946_vm3, %v4822_v9  ;;  %v3479_v18 = vadd.f32 %v7932_v16, %v3027_v11  ;;  %v3591_v21 = vadd.f32 %v7932_v16, %v3139_v17 }
 0x3c8   : > { %5383 = vst.msk [vmem:[%s5910_s9 + $0x6d0] sm:$0xf] %vm4946_vm3, %v4934_v10  ;;  %v3256_v22 = vadd.f32 %v7932_v16, %v2804_v19  ;;  %v3368_v23 = vadd.f32 %v7932_v16, %v2916_v20 }
 0x3c9   : > { %5048 = vst.msk [vmem:[%s5910_s9 + $0x194] sm:$0xf] %vm4946_vm3, %v4599_v14  ;;  %v3927_v24 = vmax.f32 %v3479_v18, 0.0  ;;  %v4039_v25 = vmax.f32 %v3591_v21, 0.0 }
 0x3ca   : > { %5160 = vst.msk [vmem:[%s5910_s9 + $0x354] sm:$0xf] %vm4946_vm3, %v4711_v15  ;;  %v3704_v26 = vmax.f32 %v3256_v22, 0.0  ;;  %v3816_v28 = vmax.f32 %v3368_v23, 0.0 }
 0x3cb   : > { %v4375_v29 = vmin.f32 %v3927_v24, 6.0  ;;  %v4487_v30 = vmin.f32 %v4039_v25, 6.0 }
 0x3cc   : > { %v4152_v31 = vmin.f32 %v3704_v26, 6.0  ;;  %v4264_v32 = vmin.f32 %v3816_v28, 6.0  ;;  %v2393_v33 = vpop.f32.mrf.mxu2  ;;  %v2673_v34 = vpop.f32.mrf.mxu3 }
 0x3cd   : > { %v4823_v27 = vpack.c.bf16 %v4375_v29, %v4375_v29  ;;  %v4935_v35 = vpack.c.bf16 %v4487_v30, %v4487_v30  ;;  %v3028_v36 = vmul.f32 %v7921_v7, %v2393_v33  ;;  %v3140_v37 = vmul.f32 %v7921_v7, %v2673_v34  ;;  %v1835_v38 = vpop.f32.mrf.mxu0  ;;  %v2115_v39 = vpop.f32.mrf.mxu1 }
 0x3ce   : > { %v4600_v40 = vpack.c.bf16 %v4152_v31, %v4152_v31  ;;  %v4712_v41 = vpack.c.bf16 %v4264_v32, %v4264_v32  ;;  %v2805_v42 = vmul.f32 %v7921_v7, %v1835_v38  ;;  %v2917_v43 = vmul.f32 %v7921_v7, %v2115_v39 }
 0x3cf   : > { %5272 = vst.msk [vmem:[%s5910_s9 + $0x514] sm:$0xf] %vm4946_vm3, %v4823_v27  ;;  %v3480_v48 = vadd.f32 %v7932_v16, %v3028_v36  ;;  %v3592_v49 = vadd.f32 %v7932_v16, %v3140_v37 }
 0x3d0   : > { %5384 = vst.msk [vmem:[%s5910_s9 + $0x6d4] sm:$0xf] %vm4946_vm3, %v4935_v35  ;;  %v3257_v44 = vadd.f32 %v7932_v16, %v2805_v42  ;;  %v3369_v45 = vadd.f32 %v7932_v16, %v2917_v43 }
 0x3d1   : > { %5049 = vst.msk [vmem:[%s5910_s9 + $0x198] sm:$0xf] %vm4946_vm3, %v4600_v40  ;;  %v3928_v46 = vmax.f32 %v3480_v48, 0.0  ;;  %v4040_v47 = vmax.f32 %v3592_v49, 0.0 }
 0x3d2   : > { %5161 = vst.msk [vmem:[%s5910_s9 + $0x358] sm:$0xf] %vm4946_vm3, %v4712_v41  ;;  %v3705_v52 = vmax.f32 %v3257_v44, 0.0  ;;  %v3817_v50 = vmax.f32 %v3369_v45, 0.0 }
 0x3d3   : > { %v4376_v51 = vmin.f32 %v3928_v46, 6.0  ;;  %v4488_v53 = vmin.f32 %v4040_v47, 6.0 }
 0x3d4   : > { %v4153_v54 = vmin.f32 %v3705_v52, 6.0  ;;  %v4265_v55 = vmin.f32 %v3817_v50, 6.0  ;;  %v2395_v56 = vpop.f32.mrf.mxu2  ;;  %v2675_v57 = vpop.f32.mrf.mxu3 }
 0x3d5   : > { %v4824_v58 = vpack.c.bf16 %v4376_v51, %v4376_v51  ;;  %v4936_v61 = vpack.c.bf16 %v4488_v53, %v4488_v53  ;;  %v3029_v62 = vmul.f32 %v7921_v7, %v2395_v56  ;;  %v3141_v63 = vmul.f32 %v7921_v7, %v2675_v57  ;;  %v1838_v0 = vpop.f32.mrf.mxu0  ;;  %v2118_v1 = vpop.f32.mrf.mxu1 }
 0x3d6   : > { %v4601_v2 = vpack.c.bf16 %v4153_v54, %v4153_v54  ;;  %v4713_v59 = vpack.c.bf16 %v4265_v55, %v4265_v55  ;;  %v2806_v60 = vmul.f32 %v7921_v7, %v1838_v0  ;;  %v2918_v3 = vmul.f32 %v7921_v7, %v2118_v1 }
 0x3d7   : > { %5273 = vst.msk [vmem:[%s5910_s9 + $0x518] sm:$0xf] %vm4946_vm3, %v4824_v58  ;;  %v3481_v4 = vadd.f32 %v7932_v16, %v3029_v62  ;;  %v3593_v5 = vadd.f32 %v7932_v16, %v3141_v63 }
 0x3d8   : > { %5385 = vst.msk [vmem:[%s5910_s9 + $0x6d8] sm:$0xf] %vm4946_vm3, %v4936_v61  ;;  %v3258_v6 = vadd.f32 %v7932_v16, %v2806_v60  ;;  %v3370_v8 = vadd.f32 %v7932_v16, %v2918_v3 }
 0x3d9   : > { %5050 = vst.msk [vmem:[%s5910_s9 + $0x19c] sm:$0xf] %vm4946_vm3, %v4601_v2  ;;  %v3929_v9 = vmax.f32 %v3481_v4, 0.0  ;;  %v4041_v10 = vmax.f32 %v3593_v5, 0.0 }
 0x3da   : > { %5162 = vst.msk [vmem:[%s5910_s9 + $0x35c] sm:$0xf] %vm4946_vm3, %v4713_v59  ;;  %v3706_v11 = vmax.f32 %v3258_v6, 0.0  ;;  %v3818_v17 = vmax.f32 %v3370_v8, 0.0 }
 0x3db   : > { %v4377_v12 = vmin.f32 %v3929_v9, 6.0  ;;  %v4489_v13 = vmin.f32 %v4041_v10, 6.0 }
 0x3dc   : > { %v4154_v14 = vmin.f32 %v3706_v11, 6.0  ;;  %v4266_v15 = vmin.f32 %v3818_v17, 6.0  ;;  %v2398_v19 = vpop.f32.mrf.mxu2  ;;  %v2678_v20 = vpop.f32.mrf.mxu3 }
 0x3dd   : > { %v4825_v18 = vpack.c.bf16 %v4377_v12, %v4377_v12  ;;  %v4937_v21 = vpack.c.bf16 %v4489_v13, %v4489_v13  ;;  %v3030_v22 = vmul.f32 %v7921_v7, %v2398_v19  ;;  %v3142_v23 = vmul.f32 %v7921_v7, %v2678_v20  ;;  %v1840_v24 = vpop.f32.mrf.mxu0  ;;  %v2120_v25 = vpop.f32.mrf.mxu1  ;;  %v8242_v13 = vld [vmem:[%s8340_s3] ss:$0 sm:$0xff] }
 0x3de   : > { %v4602_v26 = vpack.c.bf16 %v4154_v14, %v4154_v14  ;;  %v4714_v28 = vpack.c.bf16 %v4266_v15, %v4266_v15  ;;  %v2807_v29 = vmul.f32 %v7921_v7, %v1840_v24  ;;  %v2919_v30 = vmul.f32 %v7921_v7, %v2120_v25 }
 0x3df   : > { %5274 = vst.msk [vmem:[%s5910_s9 + $0x51c] sm:$0xf] %vm4946_vm3, %v4825_v18  ;;  %v3482_v31 = vadd.f32 %v7932_v16, %v3030_v22  ;;  %v3594_v32 = vadd.f32 %v7932_v16, %v3142_v23 }
 0x3e0   : > { %5386 = vst.msk [vmem:[%s5910_s9 + $0x6dc] sm:$0xf] %vm4946_vm3, %v4937_v21  ;;  %v3259_v33 = vadd.f32 %v7932_v16, %v2807_v29  ;;  %v3371_v34 = vadd.f32 %v7932_v16, %v2919_v30 }
 0x3e1   : > { %5051 = vst.msk [vmem:[%s5910_s9 + $0x1a0] sm:$0xf] %vm4946_vm3, %v4602_v26  ;;  %v3930_v27 = vmax.f32 %v3482_v31, 0.0  ;;  %v4042_v35 = vmax.f32 %v3594_v32, 0.0 }
 0x3e2   : > { %5163 = vst.msk [vmem:[%s5910_s9 + $0x360] sm:$0xf] %vm4946_vm3, %v4714_v28  ;;  %v3707_v36 = vmax.f32 %v3259_v33, 0.0  ;;  %v3819_v37 = vmax.f32 %v3371_v34, 0.0 }
 0x3e3   : > { %v4378_v38 = vmin.f32 %v3930_v27, 6.0  ;;  %v4490_v39 = vmin.f32 %v4042_v35, 6.0 }
 0x3e4   : > { %v4155_v40 = vmin.f32 %v3707_v36, 6.0  ;;  %v4267_v41 = vmin.f32 %v3819_v37, 6.0  ;;  %v2400_v42 = vpop.f32.mrf.mxu2  ;;  %v2680_v43 = vpop.f32.mrf.mxu3 }
 0x3e5   : > { %v4826_v48 = vpack.c.bf16 %v4378_v38, %v4378_v38  ;;  %v4938_v49 = vpack.c.bf16 %v4490_v39, %v4490_v39  ;;  %v3031_v44 = vmul.f32 %v7921_v7, %v2400_v42  ;;  %v3143_v45 = vmul.f32 %v7921_v7, %v2680_v43  ;;  %v1843_v46 = vpop.f32.mrf.mxu0  ;;  %v2123_v47 = vpop.f32.mrf.mxu1 }
 0x3e6   : > { %v4603_v52 = vpack.c.bf16 %v4155_v40, %v4155_v40  ;;  %v4715_v50 = vpack.c.bf16 %v4267_v41, %v4267_v41  ;;  %v2808_v51 = vmul.f32 %v7921_v7, %v1843_v46  ;;  %v2920_v53 = vmul.f32 %v7921_v7, %v2123_v47 }
 0x3e7   : > { %5275 = vst.msk [vmem:[%s5910_s9 + $0x520] sm:$0xf] %vm4946_vm3, %v4826_v48  ;;  %v3483_v54 = vadd.f32 %v7932_v16, %v3031_v44  ;;  %v3595_v55 = vadd.f32 %v7932_v16, %v3143_v45 }
 0x3e8   : > { %5387 = vst.msk [vmem:[%s5910_s9 + $0x6e0] sm:$0xf] %vm4946_vm3, %v4938_v49  ;;  %v3260_v56 = vadd.f32 %v7932_v16, %v2808_v51  ;;  %v3372_v57 = vadd.f32 %v7932_v16, %v2920_v53  ;;  %v8231_v16 = vld [vmem:[%s8339_s2] ss:$0 sm:$0xff] }
 0x3e9   : > { %5052 = vst.msk [vmem:[%s5910_s9 + $0x1a4] sm:$0xf] %vm4946_vm3, %v4603_v52  ;;  %v3931_v58 = vmax.f32 %v3483_v54, 0.0  ;;  %v4043_v61 = vmax.f32 %v3595_v55, 0.0 }
 0x3ea   : > { %5164 = vst.msk [vmem:[%s5910_s9 + $0x364] sm:$0xf] %vm4946_vm3, %v4715_v50  ;;  %v3708_v62 = vmax.f32 %v3260_v56, 0.0  ;;  %v3820_v7 = vmax.f32 %v3372_v57, 0.0 }
 0x3eb   : > { %v4379_v63 = vmin.f32 %v3931_v58, 6.0  ;;  %v4491_v0 = vmin.f32 %v4043_v61, 6.0 }
 0x3ec   : > { %v4156_v1 = vmin.f32 %v3708_v62, 6.0  ;;  %v4268_v2 = vmin.f32 %v3820_v7, 6.0  ;;  %v2403_v59 = vpop.f32.mrf.mxu2  ;;  %v2683_v60 = vpop.f32.mrf.mxu3 }
 0x3ed   : > { %v4827_v3 = vpack.c.bf16 %v4379_v63, %v4379_v63  ;;  %v4939_v4 = vpack.c.bf16 %v4491_v0, %v4491_v0  ;;  %v3032_v5 = vmul.f32 %v8231_v16, %v2403_v59  ;;  %v3144_v6 = vmul.f32 %v8231_v16, %v2683_v60  ;;  %v1845_v8 = vpop.f32.mrf.mxu0  ;;  %v2125_v9 = vpop.f32.mrf.mxu1 }
 0x3ee   : > { %v4604_v10 = vpack.c.bf16 %v4156_v1, %v4156_v1  ;;  %v4716_v11 = vpack.c.bf16 %v4268_v2, %v4268_v2  ;;  %v2809_v17 = vmul.f32 %v8231_v16, %v1845_v8  ;;  %v2921_v12 = vmul.f32 %v8231_v16, %v2125_v9 }
 0x3ef   : > { %5276 = vst.msk [vmem:[%s5910_s9 + $0x524] sm:$0xf] %vm4946_vm3, %v4827_v3  ;;  %v3484_v14 = vadd.f32 %v8242_v13, %v3032_v5  ;;  %v3596_v15 = vadd.f32 %v8242_v13, %v3144_v6 }
 0x3f0   : > { %5388 = vst.msk [vmem:[%s5910_s9 + $0x6e4] sm:$0xf] %vm4946_vm3, %v4939_v4  ;;  %v3261_v19 = vadd.f32 %v8242_v13, %v2809_v17  ;;  %v3373_v20 = vadd.f32 %v8242_v13, %v2921_v12 }
 0x3f1   : > { %5053 = vst.msk [vmem:[%s5910_s9 + $0x1a8] sm:$0xf] %vm4946_vm3, %v4604_v10  ;;  %v3932_v18 = vmax.f32 %v3484_v14, 0.0  ;;  %v4044_v21 = vmax.f32 %v3596_v15, 0.0 }
 0x3f2   : > { %5165 = vst.msk [vmem:[%s5910_s9 + $0x368] sm:$0xf] %vm4946_vm3, %v4716_v11  ;;  %v3709_v22 = vmax.f32 %v3261_v19, 0.0  ;;  %v3821_v23 = vmax.f32 %v3373_v20, 0.0 }
 0x3f3   : > { %v4380_v24 = vmin.f32 %v3932_v18, 6.0  ;;  %v4492_v25 = vmin.f32 %v4044_v21, 6.0 }
 0x3f4   : > { %v4157_v26 = vmin.f32 %v3709_v22, 6.0  ;;  %v4269_v28 = vmin.f32 %v3821_v23, 6.0  ;;  %v2405_v29 = vpop.f32.mrf.mxu2  ;;  %v2685_v30 = vpop.f32.mrf.mxu3 }
 0x3f5   : > { %v4828_v31 = vpack.c.bf16 %v4380_v24, %v4380_v24  ;;  %v4940_v32 = vpack.c.bf16 %v4492_v25, %v4492_v25  ;;  %v3033_v33 = vmul.f32 %v8231_v16, %v2405_v29  ;;  %v3145_v34 = vmul.f32 %v8231_v16, %v2685_v30  ;;  %v1848_v27 = vpop.f32.mrf.mxu0  ;;  %v2128_v35 = vpop.f32.mrf.mxu1 }
 0x3f6   : > { %v4605_v36 = vpack.c.bf16 %v4157_v26, %v4157_v26  ;;  %v4717_v37 = vpack.c.bf16 %v4269_v28, %v4269_v28  ;;  %v2810_v38 = vmul.f32 %v8231_v16, %v1848_v27  ;;  %v2922_v39 = vmul.f32 %v8231_v16, %v2128_v35 }
 0x3f7   : > { %5277 = vst.msk [vmem:[%s5910_s9 + $0x528] sm:$0xf] %vm4946_vm3, %v4828_v31  ;;  %v3485_v40 = vadd.f32 %v8242_v13, %v3033_v33  ;;  %v3597_v41 = vadd.f32 %v8242_v13, %v3145_v34 }
 0x3f8   : > { %5389 = vst.msk [vmem:[%s5910_s9 + $0x6e8] sm:$0xf] %vm4946_vm3, %v4940_v32  ;;  %v3262_v42 = vadd.f32 %v8242_v13, %v2810_v38  ;;  %v3374_v43 = vadd.f32 %v8242_v13, %v2922_v39 }
 0x3f9   : > { %5054 = vst.msk [vmem:[%s5910_s9 + $0x1ac] sm:$0xf] %vm4946_vm3, %v4605_v36  ;;  %v3933_v48 = vmax.f32 %v3485_v40, 0.0  ;;  %v4045_v49 = vmax.f32 %v3597_v41, 0.0 }
 0x3fa   : > { %5166 = vst.msk [vmem:[%s5910_s9 + $0x36c] sm:$0xf] %vm4946_vm3, %v4717_v37  ;;  %v3710_v44 = vmax.f32 %v3262_v42, 0.0  ;;  %v3822_v45 = vmax.f32 %v3374_v43, 0.0 }
 0x3fb   : > { %v4381_v46 = vmin.f32 %v3933_v48, 6.0  ;;  %v4493_v47 = vmin.f32 %v4045_v49, 6.0 }
 0x3fc   : > { %v4158_v52 = vmin.f32 %v3710_v44, 6.0  ;;  %v4270_v50 = vmin.f32 %v3822_v45, 6.0  ;;  %v2408_v51 = vpop.f32.mrf.mxu2  ;;  %v2688_v53 = vpop.f32.mrf.mxu3 }
 0x3fd   : > { %v4829_v54 = vpack.c.bf16 %v4381_v46, %v4381_v46  ;;  %v4941_v55 = vpack.c.bf16 %v4493_v47, %v4493_v47  ;;  %v3034_v56 = vmul.f32 %v8231_v16, %v2408_v51  ;;  %v3146_v57 = vmul.f32 %v8231_v16, %v2688_v53  ;;  %v1850_v58 = vpop.f32.mrf.mxu0  ;;  %v2130_v61 = vpop.f32.mrf.mxu1 }
 0x3fe   : > { %v4606_v62 = vpack.c.bf16 %v4158_v52, %v4158_v52  ;;  %v4718_v7 = vpack.c.bf16 %v4270_v50, %v4270_v50  ;;  %v2811_v63 = vmul.f32 %v8231_v16, %v1850_v58  ;;  %v2923_v0 = vmul.f32 %v8231_v16, %v2130_v61 }
 0x3ff   : > { %5278 = vst.msk [vmem:[%s5910_s9 + $0x52c] sm:$0xf] %vm4946_vm3, %v4829_v54  ;;  %v3486_v1 = vadd.f32 %v8242_v13, %v3034_v56  ;;  %v3598_v2 = vadd.f32 %v8242_v13, %v3146_v57 }
 0x400   : > { %5390 = vst.msk [vmem:[%s5910_s9 + $0x6ec] sm:$0xf] %vm4946_vm3, %v4941_v55  ;;  %v3263_v59 = vadd.f32 %v8242_v13, %v2811_v63  ;;  %v3375_v60 = vadd.f32 %v8242_v13, %v2923_v0 }
 0x401   : > { %5055 = vst.msk [vmem:[%s5910_s9 + $0x1b0] sm:$0xf] %vm4946_vm3, %v4606_v62  ;;  %v3934_v3 = vmax.f32 %v3486_v1, 0.0  ;;  %v4046_v4 = vmax.f32 %v3598_v2, 0.0 }
 0x402   : > { %5167 = vst.msk [vmem:[%s5910_s9 + $0x370] sm:$0xf] %vm4946_vm3, %v4718_v7  ;;  %v3711_v5 = vmax.f32 %v3263_v59, 0.0  ;;  %v3823_v6 = vmax.f32 %v3375_v60, 0.0 }
 0x403   : > { %v4382_v8 = vmin.f32 %v3934_v3, 6.0  ;;  %v4494_v9 = vmin.f32 %v4046_v4, 6.0 }
 0x404   : > { %v4159_v10 = vmin.f32 %v3711_v5, 6.0  ;;  %v4271_v11 = vmin.f32 %v3823_v6, 6.0  ;;  %v2410_v17 = vpop.f32.mrf.mxu2  ;;  %v2690_v12 = vpop.f32.mrf.mxu3 }
 0x405   : > { %v4830_v14 = vpack.c.bf16 %v4382_v8, %v4382_v8  ;;  %v4942_v15 = vpack.c.bf16 %v4494_v9, %v4494_v9  ;;  %v3035_v19 = vmul.f32 %v8231_v16, %v2410_v17  ;;  %v3147_v20 = vmul.f32 %v8231_v16, %v2690_v12  ;;  %v1853_v18 = vpop.f32.mrf.mxu0  ;;  %v2133_v21 = vpop.f32.mrf.mxu1 }
 0x406   : > { %v4607_v22 = vpack.c.bf16 %v4159_v10, %v4159_v10  ;;  %v4719_v23 = vpack.c.bf16 %v4271_v11, %v4271_v11  ;;  %v2812_v24 = vmul.f32 %v8231_v16, %v1853_v18  ;;  %v2924_v25 = vmul.f32 %v8231_v16, %v2133_v21 }
 0x407   : > { %5279 = vst.msk [vmem:[%s5910_s9 + $0x530] sm:$0xf] %vm4946_vm3, %v4830_v14  ;;  %v3487_v26 = vadd.f32 %v8242_v13, %v3035_v19  ;;  %v3599_v28 = vadd.f32 %v8242_v13, %v3147_v20 }
 0x408   : > { %5391 = vst.msk [vmem:[%s5910_s9 + $0x6f0] sm:$0xf] %vm4946_vm3, %v4942_v15  ;;  %v3264_v29 = vadd.f32 %v8242_v13, %v2812_v24  ;;  %v3376_v30 = vadd.f32 %v8242_v13, %v2924_v25 }
 0x409   : > { %5056 = vst.msk [vmem:[%s5910_s9 + $0x1b4] sm:$0xf] %vm4946_vm3, %v4607_v22  ;;  %v3935_v31 = vmax.f32 %v3487_v26, 0.0  ;;  %v4047_v32 = vmax.f32 %v3599_v28, 0.0 }
 0x40a   : > { %5168 = vst.msk [vmem:[%s5910_s9 + $0x374] sm:$0xf] %vm4946_vm3, %v4719_v23  ;;  %v3712_v33 = vmax.f32 %v3264_v29, 0.0  ;;  %v3824_v34 = vmax.f32 %v3376_v30, 0.0 }
 0x40b   : > { %v4383_v27 = vmin.f32 %v3935_v31, 6.0  ;;  %v4495_v35 = vmin.f32 %v4047_v32, 6.0 }
 0x40c   : > { %v4160_v36 = vmin.f32 %v3712_v33, 6.0  ;;  %v4272_v37 = vmin.f32 %v3824_v34, 6.0  ;;  %v2413_v38 = vpop.f32.mrf.mxu2  ;;  %v2693_v39 = vpop.f32.mrf.mxu3 }
 0x40d   : > { %v4831_v40 = vpack.c.bf16 %v4383_v27, %v4383_v27  ;;  %v4943_v41 = vpack.c.bf16 %v4495_v35, %v4495_v35  ;;  %v3036_v42 = vmul.f32 %v8231_v16, %v2413_v38  ;;  %v3148_v43 = vmul.f32 %v8231_v16, %v2693_v39  ;;  %v1855_v48 = vpop.f32.mrf.mxu0  ;;  %v2135_v49 = vpop.f32.mrf.mxu1 }
 0x40e   : > { %v4608_v44 = vpack.c.bf16 %v4160_v36, %v4160_v36  ;;  %v4720_v45 = vpack.c.bf16 %v4272_v37, %v4272_v37  ;;  %v2813_v46 = vmul.f32 %v8231_v16, %v1855_v48  ;;  %v2925_v47 = vmul.f32 %v8231_v16, %v2135_v49 }
 0x40f   : > { %5280 = vst.msk [vmem:[%s5910_s9 + $0x534] sm:$0xf] %vm4946_vm3, %v4831_v40  ;;  %v3488_v52 = vadd.f32 %v8242_v13, %v3036_v42  ;;  %v3600_v50 = vadd.f32 %v8242_v13, %v3148_v43 }
 0x410   : > { %5392 = vst.msk [vmem:[%s5910_s9 + $0x6f4] sm:$0xf] %vm4946_vm3, %v4943_v41  ;;  %v3265_v51 = vadd.f32 %v8242_v13, %v2813_v46  ;;  %v3377_v53 = vadd.f32 %v8242_v13, %v2925_v47 }
 0x411   : > { %5057 = vst.msk [vmem:[%s5910_s9 + $0x1b8] sm:$0xf] %vm4946_vm3, %v4608_v44  ;;  %v3936_v54 = vmax.f32 %v3488_v52, 0.0  ;;  %v4048_v55 = vmax.f32 %v3600_v50, 0.0 }
 0x412   : > { %5169 = vst.msk [vmem:[%s5910_s9 + $0x378] sm:$0xf] %vm4946_vm3, %v4720_v45  ;;  %v3713_v56 = vmax.f32 %v3265_v51, 0.0  ;;  %v3825_v57 = vmax.f32 %v3377_v53, 0.0 }
 0x413   : > { %v4384_v58 = vmin.f32 %v3936_v54, 6.0  ;;  %v4496_v61 = vmin.f32 %v4048_v55, 6.0 }
 0x414   : > { %v4161_v62 = vmin.f32 %v3713_v56, 6.0  ;;  %v4273_v7 = vmin.f32 %v3825_v57, 6.0  ;;  %v2415_v63 = vpop.f32.mrf.mxu2  ;;  %v2695_v0 = vpop.f32.mrf.mxu3 }
 0x415   : > { %v4832_v1 = vpack.c.bf16 %v4384_v58, %v4384_v58  ;;  %v4944_v2 = vpack.c.bf16 %v4496_v61, %v4496_v61  ;;  %v3037_v59 = vmul.f32 %v8231_v16, %v2415_v63  ;;  %v3149_v60 = vmul.f32 %v8231_v16, %v2695_v0 }
 0x416   : > { %v4609_v3 = vpack.c.bf16 %v4161_v62, %v4161_v62  ;;  %v4721_v4 = vpack.c.bf16 %v4273_v7, %v4273_v7 }
 0x417   : > { %5281 = vst.msk [vmem:[%s5910_s9 + $0x538] sm:$0xf] %vm4946_vm3, %v4832_v1  ;;  %v3489_v5 = vadd.f32 %v8242_v13, %v3037_v59  ;;  %v3601_v6 = vadd.f32 %v8242_v13, %v3149_v60 }
 0x418   : > { %5393 = vst.msk [vmem:[%s5910_s9 + $0x6f8] sm:$0xf] %vm4946_vm3, %v4944_v2 }
 0x419   : > { %5058 = vst.msk [vmem:[%s5910_s9 + $0x1bc] sm:$0xf] %vm4946_vm3, %v4609_v3  ;;  %v3937_v8 = vmax.f32 %v3489_v5, 0.0  ;;  %v4049_v9 = vmax.f32 %v3601_v6, 0.0 }
 0x41a   : > { %5170 = vst.msk [vmem:[%s5910_s9 + $0x37c] sm:$0xf] %vm4946_vm3, %v4721_v4 }
 0x41b   : > { %v4385_v10 = vmin.f32 %v3937_v8, 6.0  ;;  %v4497_v11 = vmin.f32 %v4049_v9, 6.0 }
 0x41d   : > { %v4833_v16 = vpack.c.bf16 %v4385_v10, %v4385_v10  ;;  %v4945_v17 = vpack.c.bf16 %v4497_v11, %v4497_v11 }
 0x41f   : > { %5282 = vst.msk [vmem:[%s5910_s9 + $0x53c] sm:$0xf] %vm4946_vm3, %v4833_v16 }
 0x420   : > { %5394 = vst.msk [vmem:[%s5910_s9 + $0x6fc] sm:$0xf] %vm4946_vm3, %v4945_v17 }
 0x421 PF: > { %s14_s15 = sadd.s32 1, %s5731_s15  }
 0x422   : > { %p11_p4 = scmp.ge.s32.totalorder %s14_s15, 9  }
 0x424   :  { %13 = sbr.rel (!%p11_p4) target bundleno = 1 (0x1), region = 66 }

</bundles_post_ra>
